<compile_context>
chip_gen: v7x
topology: tpu7x:2x2x1
jax: 0.10.0
libtpu: 0.0.40
codegen_flags: <defaults>
</compile_context>

<pallas_src>
import functools

import jax
import jax.numpy as jnp
import numpy as np
from jax import lax
from jax.experimental import pallas as pl
from jax.experimental.pallas import tpu as pltpu

VMEM = pltpu.MemorySpace.VMEM

_H, _W, _CIN = 10, 17, 9          # raw observation grid (NHWC), 170 rows per batch element
_C1, _C2 = 15, 15                 # conv channel counts
_GRID = _H * _W                   # 170
_POOL_H, _POOL_W = 3, 6           # pooled spatial grid (from the 6x13 conv2 output)
_NPOS = _POOL_H * _POOL_W         # 18
_FEAT = _C2 * _NPOS               # 270
_OFFS = tuple(kh * _W + kw for kh in range(3) for kw in range(3))  # 3x3 tap row offsets


# ---------------------------------------------------------------------------
# Fused Pallas kernel: conv1 -> conv2 -> maxpool -> fc1..fc3 -> [fc4 | fc4_2]
# ---------------------------------------------------------------------------
def _qnet_fused_kernel(x_ref, g_ref, w1_ref, b1_ref, w2_ref, b2_ref,
                       wf1_ref, bf1_ref, wf2_ref, bf2_ref, wf3_ref, bf3_ref,
                       whd_ref, bhd_ref, out_ref, z1_ref, z2_ref,
                       *, batch, n_rows, r1_rows):
    f32 = jnp.float32

    # ---- conv1 + relu -----------------------------------------------------
    # Z1[q, tap*15+co] = sum_ci x[q, ci] * w1[co, ci, kh, kw]
    z1_ref[...] = jnp.dot(x_ref[...], w1_ref[...], preferred_element_type=f32)
    acc1 = z1_ref[_OFFS[0]:_OFFS[0] + r1_rows, 0:_C1]
    for i in range(1, 9):
        d = _OFFS[i]
        acc1 = acc1 + z1_ref[d:d + r1_rows, i * _C1:(i + 1) * _C1]
    y1 = jnp.maximum(acc1 + b1_ref[...], 0.0)                      # (R1, 15)

    # ---- conv2 + relu -----------------------------------------------------
    z2_ref[...] = jnp.dot(y1, w2_ref[...], preferred_element_type=f32)
    acc2 = z2_ref[_OFFS[0]:_OFFS[0] + n_rows, 0:_C2]
    for i in range(1, 9):
        d = _OFFS[i]
        acc2 = acc2 + z2_ref[d:d + n_rows, i * _C2:(i + 1) * _C2]
    y2 = jnp.maximum(acc2 + b2_ref[...], 0.0)                      # (N, 15)

    # ---- 2x2/2 max-pool via gather matmul + 4-way elementwise max ---------
    # cand rows are ordered (k, s, b); pooled rows end up ordered (s, b).
    cand = jnp.dot(g_ref[...], y2, preferred_element_type=f32)     # (4*18*B, 15)
    blk = _NPOS * batch
    pooled = jnp.maximum(jnp.maximum(cand[0:blk], cand[blk:2 * blk]),
                         jnp.maximum(cand[2 * blk:3 * blk], cand[3 * blk:4 * blk]))

    # ---- fc1, decomposed over the 18 pooled spatial positions -------------
    # wf1 rows were pre-permuted to (s, c) order, so each position contributes
    # a dense (B,15)@(15,540) matmul -> no (18,15)->(1,270) reshape needed.
    h = bf1_ref[...] + jnp.dot(pooled[0:batch, :], wf1_ref[0:_C2, :],
                               preferred_element_type=f32)
    for s in range(1, _NPOS):
        h = h + jnp.dot(pooled[s * batch:(s + 1) * batch, :],
                        wf1_ref[s * _C2:(s + 1) * _C2, :],
                        preferred_element_type=f32)
    h = jnp.maximum(h, 0.0)                                        # (B, 540)

    # ---- fc2, fc3 ----------------------------------------------------------
    h = jnp.maximum(jnp.dot(h, wf2_ref[...], preferred_element_type=f32)
                    + bf2_ref[...], 0.0)                           # (B, 540)
    h = jnp.maximum(jnp.dot(h, wf3_ref[...], preferred_element_type=f32)
                    + bf3_ref[...], 0.0)                           # (B, 270)

    # ---- fused heads fc4 | fc4_2 -> single lane-dense (B, 340) store -------
    out_ref[...] = (jnp.dot(h, whd_ref[...], preferred_element_type=f32)
                    + bhd_ref[...])


# ---------------------------------------------------------------------------
# Parameter prep (done once): repack conv taps, permute fc1 rows, fuse heads.
# ---------------------------------------------------------------------------
def prepare_params(p):
    def cat_conv(w):  # PyTorch OIHW -> (Cin, 9*Cout), column = (kh*3+kw)*Cout + co
        cout, cin = w.shape[0], w.shape[1]
        return jnp.transpose(w, (1, 2, 3, 0)).reshape(cin, 9 * cout)

    # kernel feature order is s*15 + c; PyTorch flatten order is c*18 + s.
    perm = np.array([c * _NPOS + s for s in range(_NPOS) for c in range(_C2)],
                    dtype=np.int32)
    return {
        'w1': cat_conv(p['conv1_w']), 'b1': p['conv1_b'].reshape(1, _C1),
        'w2': cat_conv(p['conv2_w']), 'b2': p['conv2_b'].reshape(1, _C2),
        'wfc1': p['fc1_w'][perm, :], 'bfc1': p['fc1_b'].reshape(1, -1),
        'wfc2': p['fc2_w'], 'bfc2': p['fc2_b'].reshape(1, -1),
        'wfc3': p['fc3_w'], 'bfc3': p['fc3_b'].reshape(1, -1),
        'whd': jnp.concatenate([p['fc4_w'], p['fc4_2_w']], axis=1),   # (270, 340)
        'bhd': jnp.concatenate([p['fc4_b'], p['fc4_2_b']]).reshape(1, -1),
    }


def _pool_gather_matrix(batch):
    """(4*18*B, 170*B) 0/1 matrix; row (k, s, b) picks y2 row b*170 + r_k(s)."""
    n = _GRID * batch
    g = np.zeros((4 * _NPOS * batch, n), dtype=np.float32)
    for k in range(4):
        di, dj = k // 2, k % 2
        for s in range(_NPOS):
            si, sj = s // _POOL_W, s % _POOL_W
            r = (2 * si + di) * _W + (2 * sj + dj)
            for b in range(batch):
                g[(k * _NPOS + s) * batch + b, b * _GRID + r] = 1.0
    return jnp.asarray(g)


# ---------------------------------------------------------------------------
# Forward wrapper: one pallas_call for the whole network.
# ---------------------------------------------------------------------------
def qnet_forward(x, pp):
    x = x.astype(jnp.float32).reshape(-1, _GRID, _CIN)   # (B, 170, 9) NHWC, flattened grid
    batch = x.shape[0]
    n_rows = _GRID * batch                 # real rows
    r1_rows = n_rows + 36                  # conv1 output rows (covers conv2's taps)
    rin = ((n_rows + 72 + 7) // 8) * 8     # zero-padded input rows (covers conv1's taps)

    xflat = x.reshape(n_rows, _CIN)
    xext = jnp.pad(xflat, ((0, rin - n_rows), (0, 0)))
    gall = _pool_gather_matrix(batch)

    kernel = functools.partial(_qnet_fused_kernel,
                               batch=batch, n_rows=n_rows, r1_rows=r1_rows)
    out = pl.pallas_call(
        kernel,
        out_shape=jax.ShapeDtypeStruct((batch, 2 * 170), jnp.float32),
        in_specs=[pl.BlockSpec(memory_space=VMEM)] * 14,
        out_specs=pl.BlockSpec(memory_space=VMEM),
        scratch_shapes=[pltpu.VMEM((rin, 9 * _C1), jnp.float32),
                        pltpu.VMEM((r1_rows, 9 * _C2), jnp.float32)],
    )(xext, gall,
      pp['w1'], pp['b1'], pp['w2'], pp['b2'],
      pp['wfc1'], pp['bfc1'], pp['wfc2'], pp['bfc2'], pp['wfc3'], pp['bfc3'],
      pp['whd'], pp['bhd'])
    return out[:, :170], out[:, 170:]


# ---------------------------------------------------------------------------
# Deterministic parameter init (PyTorch-like uniform(-1/sqrt(fan_in), ...))
# ---------------------------------------------------------------------------
def init_params(key):
    def uni(k, shape, fan_in):
        bound = 1.0 / np.sqrt(fan_in)
        return jax.random.uniform(k, shape, jnp.float32, -bound, bound)

    ks = jax.random.split(key, 14)
    p = {}
    p['conv1_w'] = uni(ks[0], (15, 9, 3, 3), 9 * 9)        # PyTorch OIHW
    p['conv1_b'] = uni(ks[1], (15,), 9 * 9)
    p['conv2_w'] = uni(ks[2], (15, 15, 3, 3), 15 * 9)
    p['conv2_b'] = uni(ks[3], (15,), 15 * 9)
    p['fc1_w'] = uni(ks[4], (270, 540), 270)               # stored as (in, out)
    p['fc1_b'] = uni(ks[5], (540,), 270)
    p['fc2_w'] = uni(ks[6], (540, 540), 540)
    p['fc2_b'] = uni(ks[7], (540,), 540)
    p['fc3_w'] = uni(ks[8], (540, 270), 540)
    p['fc3_b'] = uni(ks[9], (270,), 540)
    p['fc4_w'] = uni(ks[10], (270, 170), 270)
    p['fc4_b'] = uni(ks[11], (170,), 270)
    p['fc4_2_w'] = uni(ks[12], (270, 170), 270)
    p['fc4_2_b'] = uni(ks[13], (170,), 270)
    return p


# ---------------------------------------------------------------------------
# Pure-JAX reference (matches PyTorch semantics) for correctness check
# ---------------------------------------------------------------------------
def reference_forward(x, p):
    x = x.astype(jnp.float32).reshape(-1, 10, 17, 9)
    x = jnp.transpose(x, (0, 3, 1, 2))                     # NCHW
    y = lax.conv_general_dilated(x, p['conv1_w'], (1, 1), 'VALID',
                                 dimension_numbers=('NCHW', 'OIHW', 'NCHW'))
    y = jax.nn.relu(y + p['conv1_b'][None, :, None, None])
    y = lax.conv_general_dilated(y, p['conv2_w'], (1, 1), 'VALID',
                                 dimension_numbers=('NCHW', 'OIHW', 'NCHW'))
    y = jax.nn.relu(y + p['conv2_b'][None, :, None, None])
    y = lax.reduce_window(y, -jnp.inf, lax.max, (1, 1, 2, 2), (1, 1, 2, 2), 'VALID')
    h = y.reshape(-1, 270)
    h = jax.nn.relu(h @ p['fc1_w'] + p['fc1_b'])
    h = jax.nn.relu(h @ p['fc2_w'] + p['fc2_b'])
    h = jax.nn.relu(h @ p['fc3_w'] + p['fc3_b'])
    return h @ p['fc4_w'] + p['fc4_b'], h @ p['fc4_2_w'] + p['fc4_2_b']


if __name__ == "__main__":
    key = jax.random.PRNGKey(0)
    kp, kx = jax.random.split(key)
    params = init_params(kp)
    packed = prepare_params(params)

    # Small deterministic input: batch=2 observations of shape (10, 17, 9).
    x = jax.random.uniform(kx, (2, 10, 17, 9), jnp.float32)

    fwd = jax.jit(qnet_forward)
    out1, out2 = fwd(x, packed)
    jax.block_until_ready((out1, out2))

    ref1, ref2 = reference_forward(x, params)
    np.testing.assert_allclose(np.asarray(out1), np.asarray(ref1), rtol=1e-4, atol=1e-4)
    np.testing.assert_allclose(np.asarray(out2), np.asarray(ref2), rtol=1e-4, atol=1e-4)
    assert out1.shape == (2, 170) and out2.shape == (2, 170)

    print("KERNEL_OK")
</pallas_src>

<mosaic_0001>
module attributes {stable_mosaic.version = 11 : i64} {
  func.func @_qnet_fused_kernel(%arg0: memref<416x9xf32, #tpu.memory_space<vmem>>, %arg1: memref<144x340xf32, #tpu.memory_space<vmem>>, %arg2: memref<9x135xf32, #tpu.memory_space<vmem>>, %arg3: memref<1x15xf32, #tpu.memory_space<vmem>>, %arg4: memref<15x135xf32, #tpu.memory_space<vmem>>, %arg5: memref<1x15xf32, #tpu.memory_space<vmem>>, %arg6: memref<270x540xf32, #tpu.memory_space<vmem>>, %arg7: memref<1x540xf32, #tpu.memory_space<vmem>>, %arg8: memref<540x540xf32, #tpu.memory_space<vmem>>, %arg9: memref<1x540xf32, #tpu.memory_space<vmem>>, %arg10: memref<540x270xf32, #tpu.memory_space<vmem>>, %arg11: memref<1x270xf32, #tpu.memory_space<vmem>>, %arg12: memref<270x340xf32, #tpu.memory_space<vmem>>, %arg13: memref<1x340xf32, #tpu.memory_space<vmem>>, %arg14: memref<2x340xf32, #tpu.memory_space<vmem>>, %arg15: memref<416x135xf32, #tpu.memory_space<vmem>>, %arg16: memref<376x135xf32, #tpu.memory_space<vmem>>) attributes {dimension_semantics = [], scalar_prefetch = 0 : i64, scratch_operands = 2 : i64, tpu.core_type = #tpu.core_type<tc>} {
    %c0 = arith.constant 0 : index
    %c0_0 = arith.constant 0 : index
    %0 = vector.load %arg0[%c0, %c0_0] : memref<416x9xf32, #tpu.memory_space<vmem>>, vector<416x9xf32>
    %c0_1 = arith.constant 0 : index
    %c0_2 = arith.constant 0 : index
    %1 = vector.load %arg2[%c0_1, %c0_2] : memref<9x135xf32, #tpu.memory_space<vmem>>, vector<9x135xf32>
    %cst = arith.constant dense<0.000000e+00> : vector<416x135xf32>
    %2 = tpu.matmul %0, %1, %cst {dimension_numbers = #tpu.dot_dimension_numbers<[1], [0], [0], [1], [0, 0, 1, 1], [], []>} : vector<416x9xf32>, vector<9x135xf32>, vector<416x135xf32> -> vector<416x135xf32>
    %c0_3 = arith.constant 0 : index
    %c0_4 = arith.constant 0 : index
    %3 = vector.load %arg15[%c0_3, %c0_4] : memref<416x135xf32, #tpu.memory_space<vmem>>, vector<416x135xf32>
    tpu.vector_store %arg15[%c0_3, %c0_4], %2 {strides = array<i32>} : memref<416x135xf32, #tpu.memory_space<vmem>>, vector<416x135xf32>,
    %c0_5 = arith.constant 0 : index
    %c0_6 = arith.constant 0 : index
    %4 = vector.load %arg15[%c0_5, %c0_6] : memref<416x135xf32, #tpu.memory_space<vmem>>, vector<376x15xf32>
    %c1 = arith.constant 1 : index
    %c15 = arith.constant 15 : index
    %5 = vector.load %arg15[%c1, %c15] : memref<416x135xf32, #tpu.memory_space<vmem>>, vector<376x15xf32>
    %6 = arith.addf %4, %5 : vector<376x15xf32>
    %c2 = arith.constant 2 : index
    %c30 = arith.constant 30 : index
    %7 = vector.load %arg15[%c2, %c30] : memref<416x135xf32, #tpu.memory_space<vmem>>, vector<376x15xf32>
    %8 = arith.addf %6, %7 : vector<376x15xf32>
    %c17 = arith.constant 17 : index
    %c45 = arith.constant 45 : index
    %9 = vector.load %arg15[%c17, %c45] : memref<416x135xf32, #tpu.memory_space<vmem>>, vector<376x15xf32>
    %10 = arith.addf %8, %9 : vector<376x15xf32>
    %c18 = arith.constant 18 : index
    %c60 = arith.constant 60 : index
    %11 = vector.load %arg15[%c18, %c60] : memref<416x135xf32, #tpu.memory_space<vmem>>, vector<376x15xf32>
    %12 = arith.addf %10, %11 : vector<376x15xf32>
    %c19 = arith.constant 19 : index
    %c75 = arith.constant 75 : index
    %13 = vector.load %arg15[%c19, %c75] : memref<416x135xf32, #tpu.memory_space<vmem>>, vector<376x15xf32>
    %14 = arith.addf %12, %13 : vector<376x15xf32>
    %c34 = arith.constant 34 : index
    %c90 = arith.constant 90 : index
    %15 = vector.load %arg15[%c34, %c90] : memref<416x135xf32, #tpu.memory_space<vmem>>, vector<376x15xf32>
    %16 = arith.addf %14, %15 : vector<376x15xf32>
    %c35 = arith.constant 35 : index
    %c105 = arith.constant 105 : index
    %17 = vector.load %arg15[%c35, %c105] : memref<416x135xf32, #tpu.memory_space<vmem>>, vector<376x15xf32>
    %18 = arith.addf %16, %17 : vector<376x15xf32>
    %c36 = arith.constant 36 : index
    %c120 = arith.constant 120 : index
    %19 = vector.load %arg15[%c36, %c120] : memref<416x135xf32, #tpu.memory_space<vmem>>, vector<376x15xf32>
    %20 = arith.addf %18, %19 : vector<376x15xf32>
    %c0_7 = arith.constant 0 : index
    %c0_8 = arith.constant 0 : index
    %21 = vector.load %arg3[%c0_7, %c0_8] : memref<1x15xf32, #tpu.memory_space<vmem>>, vector<1x15xf32>
    %22 = vector.broadcast %21 : vector<1x15xf32> to vector<376x15xf32>
    %23 = arith.addf %20, %22 : vector<376x15xf32>
    %cst_9 = arith.constant 0.000000e+00 : f32
    %24 = vector.broadcast %cst_9 : f32 to vector<376x15xf32>
    %25 = arith.maximumf %23, %24 : vector<376x15xf32>
    %c0_10 = arith.constant 0 : index
    %c0_11 = arith.constant 0 : index
    %26 = vector.load %arg4[%c0_10, %c0_11] : memref<15x135xf32, #tpu.memory_space<vmem>>, vector<15x135xf32>
    %cst_12 = arith.constant dense<0.000000e+00> : vector<376x135xf32>
    %27 = tpu.matmul %25, %26, %cst_12 {dimension_numbers = #tpu.dot_dimension_numbers<[1], [0], [0], [1], [0, 0, 1, 1], [], []>} : vector<376x15xf32>, vector<15x135xf32>, vector<376x135xf32> -> vector<376x135xf32>
    %c0_13 = arith.constant 0 : index
    %c0_14 = arith.constant 0 : index
    %28 = vector.load %arg16[%c0_13, %c0_14] : memref<376x135xf32, #tpu.memory_space<vmem>>, vector<376x135xf32>
    tpu.vector_store %arg16[%c0_13, %c0_14], %27 {strides = array<i32>} : memref<376x135xf32, #tpu.memory_space<vmem>>, vector<376x135xf32>,
    %c0_15 = arith.constant 0 : index
    %c0_16 = arith.constant 0 : index
    %29 = vector.load %arg16[%c0_15, %c0_16] : memref<376x135xf32, #tpu.memory_space<vmem>>, vector<340x15xf32>
    %c1_17 = arith.constant 1 : index
    %c15_18 = arith.constant 15 : index
    %30 = vector.load %arg16[%c1_17, %c15_18] : memref<376x135xf32, #tpu.memory_space<vmem>>, vector<340x15xf32>
    %31 = arith.addf %29, %30 : vector<340x15xf32>
    %c2_19 = arith.constant 2 : index
    %c30_20 = arith.constant 30 : index
    %32 = vector.load %arg16[%c2_19, %c30_20] : memref<376x135xf32, #tpu.memory_space<vmem>>, vector<340x15xf32>
    %33 = arith.addf %31, %32 : vector<340x15xf32>
    %c17_21 = arith.constant 17 : index
    %c45_22 = arith.constant 45 : index
    %34 = vector.load %arg16[%c17_21, %c45_22] : memref<376x135xf32, #tpu.memory_space<vmem>>, vector<340x15xf32>
    %35 = arith.addf %33, %34 : vector<340x15xf32>
    %c18_23 = arith.constant 18 : index
    %c60_24 = arith.constant 60 : index
    %36 = vector.load %arg16[%c18_23, %c60_24] : memref<376x135xf32, #tpu.memory_space<vmem>>, vector<340x15xf32>
    %37 = arith.addf %35, %36 : vector<340x15xf32>
    %c19_25 = arith.constant 19 : index
    %c75_26 = arith.constant 75 : index
    %38 = vector.load %arg16[%c19_25, %c75_26] : memref<376x135xf32, #tpu.memory_space<vmem>>, vector<340x15xf32>
    %39 = arith.addf %37, %38 : vector<340x15xf32>
    %c34_27 = arith.constant 34 : index
    %c90_28 = arith.constant 90 : index
    %40 = vector.load %arg16[%c34_27, %c90_28] : memref<376x135xf32, #tpu.memory_space<vmem>>, vector<340x15xf32>
    %41 = arith.addf %39, %40 : vector<340x15xf32>
    %c35_29 = arith.constant 35 : index
    %c105_30 = arith.constant 105 : index
    %42 = vector.load %arg16[%c35_29, %c105_30] : memref<376x135xf32, #tpu.memory_space<vmem>>, vector<340x15xf32>
    %43 = arith.addf %41, %42 : vector<340x15xf32>
    %c36_31 = arith.constant 36 : index
    %c120_32 = arith.constant 120 : index
    %44 = vector.load %arg16[%c36_31, %c120_32] : memref<376x135xf32, #tpu.memory_space<vmem>>, vector<340x15xf32>
    %45 = arith.addf %43, %44 : vector<340x15xf32>
    %c0_33 = arith.constant 0 : index
    %c0_34 = arith.constant 0 : index
    %46 = vector.load %arg5[%c0_33, %c0_34] : memref<1x15xf32, #tpu.memory_space<vmem>>, vector<1x15xf32>
    %47 = vector.broadcast %46 : vector<1x15xf32> to vector<340x15xf32>
    %48 = arith.addf %45, %47 : vector<340x15xf32>
    %cst_35 = arith.constant 0.000000e+00 : f32
    %49 = vector.broadcast %cst_35 : f32 to vector<340x15xf32>
    %50 = arith.maximumf %48, %49 : vector<340x15xf32>
    %c0_36 = arith.constant 0 : index
    %c0_37 = arith.constant 0 : index
    %51 = vector.load %arg1[%c0_36, %c0_37] : memref<144x340xf32, #tpu.memory_space<vmem>>, vector<144x340xf32>
    %cst_38 = arith.constant dense<0.000000e+00> : vector<144x15xf32>
    %52 = tpu.matmul %51, %50, %cst_38 {dimension_numbers = #tpu.dot_dimension_numbers<[1], [0], [0], [1], [0, 0, 1, 1], [], []>} : vector<144x340xf32>, vector<340x15xf32>, vector<144x15xf32> -> vector<144x15xf32>
    %53 = vector.extract_strided_slice %52 {offsets = [0, 0], sizes = [36, 15], strides = [1, 1]} : vector<144x15xf32> to vector<36x15xf32>
    %54 = vector.extract_strided_slice %52 {offsets = [36, 0], sizes = [36, 15], strides = [1, 1]} : vector<144x15xf32> to vector<36x15xf32>
    %55 = arith.maximumf %53, %54 : vector<36x15xf32>
    %56 = vector.extract_strided_slice %52 {offsets = [72, 0], sizes = [36, 15], strides = [1, 1]} : vector<144x15xf32> to vector<36x15xf32>
    %57 = vector.extract_strided_slice %52 {offsets = [108, 0], sizes = [36, 15], strides = [1, 1]} : vector<144x15xf32> to vector<36x15xf32>
    %58 = arith.maximumf %56, %57 : vector<36x15xf32>
    %59 = arith.maximumf %55, %58 : vector<36x15xf32>
    %c0_39 = arith.constant 0 : index
    %c0_40 = arith.constant 0 : index
    %60 = vector.load %arg7[%c0_39, %c0_40] : memref<1x540xf32, #tpu.memory_space<vmem>>, vector<1x540xf32>
    %61 = vector.extract_strided_slice %59 {offsets = [0, 0], sizes = [2, 15], strides = [1, 1]} : vector<36x15xf32> to vector<2x15xf32>
    %c0_41 = arith.constant 0 : index
    %c0_42 = arith.constant 0 : index
    %62 = vector.load %arg6[%c0_41, %c0_42] : memref<270x540xf32, #tpu.memory_space<vmem>>, vector<15x540xf32>
    %cst_43 = arith.constant dense<0.000000e+00> : vector<2x540xf32>
    %63 = tpu.matmul %61, %62, %cst_43 {dimension_numbers = #tpu.dot_dimension_numbers<[1], [0], [0], [1], [0, 0, 1, 1], [], []>} : vector<2x15xf32>, vector<15x540xf32>, vector<2x540xf32> -> vector<2x540xf32>
    %64 = vector.broadcast %60 : vector<1x540xf32> to vector<2x540xf32>
    %65 = arith.addf %64, %63 : vector<2x540xf32>
    %66 = vector.extract_strided_slice %59 {offsets = [2, 0], sizes = [2, 15], strides = [1, 1]} : vector<36x15xf32> to vector<2x15xf32>
    %c15_44 = arith.constant 15 : index
    %c0_45 = arith.constant 0 : index
    %67 = vector.load %arg6[%c15_44, %c0_45] : memref<270x540xf32, #tpu.memory_space<vmem>>, vector<15x540xf32>
    %cst_46 = arith.constant dense<0.000000e+00> : vector<2x540xf32>
    %68 = tpu.matmul %66, %67, %cst_46 {dimension_numbers = #tpu.dot_dimension_numbers<[1], [0], [0], [1], [0, 0, 1, 1], [], []>} : vector<2x15xf32>, vector<15x540xf32>, vector<2x540xf32> -> vector<2x540xf32>
    %69 = arith.addf %65, %68 : vector<2x540xf32>
    %70 = vector.extract_strided_slice %59 {offsets = [4, 0], sizes = [2, 15], strides = [1, 1]} : vector<36x15xf32> to vector<2x15xf32>
    %c30_47 = arith.constant 30 : index
    %c0_48 = arith.constant 0 : index
    %71 = vector.load %arg6[%c30_47, %c0_48] : memref<270x540xf32, #tpu.memory_space<vmem>>, vector<15x540xf32>
    %cst_49 = arith.constant dense<0.000000e+00> : vector<2x540xf32>
    %72 = tpu.matmul %70, %71, %cst_49 {dimension_numbers = #tpu.dot_dimension_numbers<[1], [0], [0], [1], [0, 0, 1, 1], [], []>} : vector<2x15xf32>, vector<15x540xf32>, vector<2x540xf32> -> vector<2x540xf32>
    %73 = arith.addf %69, %72 : vector<2x540xf32>
    %74 = vector.extract_strided_slice %59 {offsets = [6, 0], sizes = [2, 15], strides = [1, 1]} : vector<36x15xf32> to vector<2x15xf32>
    %c45_50 = arith.constant 45 : index
    %c0_51 = arith.constant 0 : index
    %75 = vector.load %arg6[%c45_50, %c0_51] : memref<270x540xf32, #tpu.memory_space<vmem>>, vector<15x540xf32>
    %cst_52 = arith.constant dense<0.000000e+00> : vector<2x540xf32>
    %76 = tpu.matmul %74, %75, %cst_52 {dimension_numbers = #tpu.dot_dimension_numbers<[1], [0], [0], [1], [0, 0, 1, 1], [], []>} : vector<2x15xf32>, vector<15x540xf32>, vector<2x540xf32> -> vector<2x540xf32>
    %77 = arith.addf %73, %76 : vector<2x540xf32>
    %78 = vector.extract_strided_slice %59 {offsets = [8, 0], sizes = [2, 15], strides = [1, 1]} : vector<36x15xf32> to vector<2x15xf32>
    %c60_53 = arith.constant 60 : index
    %c0_54 = arith.constant 0 : index
    %79 = vector.load %arg6[%c60_53, %c0_54] : memref<270x540xf32, #tpu.memory_space<vmem>>, vector<15x540xf32>
    %cst_55 = arith.constant dense<0.000000e+00> : vector<2x540xf32>
    %80 = tpu.matmul %78, %79, %cst_55 {dimension_numbers = #tpu.dot_dimension_numbers<[1], [0], [0], [1], [0, 0, 1, 1], [], []>} : vector<2x15xf32>, vector<15x540xf32>, vector<2x540xf32> -> vector<2x540xf32>
    %81 = arith.addf %77, %80 : vector<2x540xf32>
    %82 = vector.extract_strided_slice %59 {offsets = [10, 0], sizes = [2, 15], strides = [1, 1]} : vector<36x15xf32> to vector<2x15xf32>
    %c75_56 = arith.constant 75 : index
    %c0_57 = arith.constant 0 : index
    %83 = vector.load %arg6[%c75_56, %c0_57] : memref<270x540xf32, #tpu.memory_space<vmem>>, vector<15x540xf32>
    %cst_58 = arith.constant dense<0.000000e+00> : vector<2x540xf32>
    %84 = tpu.matmul %82, %83, %cst_58 {dimension_numbers = #tpu.dot_dimension_numbers<[1], [0], [0], [1], [0, 0, 1, 1], [], []>} : vector<2x15xf32>, vector<15x540xf32>, vector<2x540xf32> -> vector<2x540xf32>
    %85 = arith.addf %81, %84 : vector<2x540xf32>
    %86 = vector.extract_strided_slice %59 {offsets = [12, 0], sizes = [2, 15], strides = [1, 1]} : vector<36x15xf32> to vector<2x15xf32>
    %c90_59 = arith.constant 90 : index
    %c0_60 = arith.constant 0 : index
    %87 = vector.load %arg6[%c90_59, %c0_60] : memref<270x540xf32, #tpu.memory_space<vmem>>, vector<15x540xf32>
    %cst_61 = arith.constant dense<0.000000e+00> : vector<2x540xf32>
    %88 = tpu.matmul %86, %87, %cst_61 {dimension_numbers = #tpu.dot_dimension_numbers<[1], [0], [0], [1], [0, 0, 1, 1], [], []>} : vector<2x15xf32>, vector<15x540xf32>, vector<2x540xf32> -> vector<2x540xf32>
    %89 = arith.addf %85, %88 : vector<2x540xf32>
    %90 = vector.extract_strided_slice %59 {offsets = [14, 0], sizes = [2, 15], strides = [1, 1]} : vector<36x15xf32> to vector<2x15xf32>
    %c105_62 = arith.constant 105 : index
    %c0_63 = arith.constant 0 : index
    %91 = vector.load %arg6[%c105_62, %c0_63] : memref<270x540xf32, #tpu.memory_space<vmem>>, vector<15x540xf32>
    %cst_64 = arith.constant dense<0.000000e+00> : vector<2x540xf32>
    %92 = tpu.matmul %90, %91, %cst_64 {dimension_numbers = #tpu.dot_dimension_numbers<[1], [0], [0], [1], [0, 0, 1, 1], [], []>} : vector<2x15xf32>, vector<15x540xf32>, vector<2x540xf32> -> vector<2x540xf32>
    %93 = arith.addf %89, %92 : vector<2x540xf32>
    %94 = vector.extract_strided_slice %59 {offsets = [16, 0], sizes = [2, 15], strides = [1, 1]} : vector<36x15xf32> to vector<2x15xf32>
    %c120_65 = arith.constant 120 : index
    %c0_66 = arith.constant 0 : index
    %95 = vector.load %arg6[%c120_65, %c0_66] : memref<270x540xf32, #tpu.memory_space<vmem>>, vector<15x540xf32>
    %cst_67 = arith.constant dense<0.000000e+00> : vector<2x540xf32>
    %96 = tpu.matmul %94, %95, %cst_67 {dimension_numbers = #tpu.dot_dimension_numbers<[1], [0], [0], [1], [0, 0, 1, 1], [], []>} : vector<2x15xf32>, vector<15x540xf32>, vector<2x540xf32> -> vector<2x540xf32>
    %97 = arith.addf %93, %96 : vector<2x540xf32>
    %98 = vector.extract_strided_slice %59 {offsets = [18, 0], sizes = [2, 15], strides = [1, 1]} : vector<36x15xf32> to vector<2x15xf32>
    %c135 = arith.constant 135 : index
    %c0_68 = arith.constant 0 : index
    %99 = vector.load %arg6[%c135, %c0_68] : memref<270x540xf32, #tpu.memory_space<vmem>>, vector<15x540xf32>
    %cst_69 = arith.constant dense<0.000000e+00> : vector<2x540xf32>
    %100 = tpu.matmul %98, %99, %cst_69 {dimension_numbers = #tpu.dot_dimension_numbers<[1], [0], [0], [1], [0, 0, 1, 1], [], []>} : vector<2x15xf32>, vector<15x540xf32>, vector<2x540xf32> -> vector<2x540xf32>
    %101 = arith.addf %97, %100 : vector<2x540xf32>
    %102 = vector.extract_strided_slice %59 {offsets = [20, 0], sizes = [2, 15], strides = [1, 1]} : vector<36x15xf32> to vector<2x15xf32>
    %c150 = arith.constant 150 : index
    %c0_70 = arith.constant 0 : index
    %103 = vector.load %arg6[%c150, %c0_70] : memref<270x540xf32, #tpu.memory_space<vmem>>, vector<15x540xf32>
    %cst_71 = arith.constant dense<0.000000e+00> : vector<2x540xf32>
    %104 = tpu.matmul %102, %103, %cst_71 {dimension_numbers = #tpu.dot_dimension_numbers<[1], [0], [0], [1], [0, 0, 1, 1], [], []>} : vector<2x15xf32>, vector<15x540xf32>, vector<2x540xf32> -> vector<2x540xf32>
    %105 = arith.addf %101, %104 : vector<2x540xf32>
    %106 = vector.extract_strided_slice %59 {offsets = [22, 0], sizes = [2, 15], strides = [1, 1]} : vector<36x15xf32> to vector<2x15xf32>
    %c165 = arith.constant 165 : index
    %c0_72 = arith.constant 0 : index
    %107 = vector.load %arg6[%c165, %c0_72] : memref<270x540xf32, #tpu.memory_space<vmem>>, vector<15x540xf32>
    %cst_73 = arith.constant dense<0.000000e+00> : vector<2x540xf32>
    %108 = tpu.matmul %106, %107, %cst_73 {dimension_numbers = #tpu.dot_dimension_numbers<[1], [0], [0], [1], [0, 0, 1, 1], [], []>} : vector<2x15xf32>, vector<15x540xf32>, vector<2x540xf32> -> vector<2x540xf32>
    %109 = arith.addf %105, %108 : vector<2x540xf32>
    %110 = vector.extract_strided_slice %59 {offsets = [24, 0], sizes = [2, 15], strides = [1, 1]} : vector<36x15xf32> to vector<2x15xf32>
    %c180 = arith.constant 180 : index
    %c0_74 = arith.constant 0 : index
    %111 = vector.load %arg6[%c180, %c0_74] : memref<270x540xf32, #tpu.memory_space<vmem>>, vector<15x540xf32>
    %cst_75 = arith.constant dense<0.000000e+00> : vector<2x540xf32>
    %112 = tpu.matmul %110, %111, %cst_75 {dimension_numbers = #tpu.dot_dimension_numbers<[1], [0], [0], [1], [0, 0, 1, 1], [], []>} : vector<2x15xf32>, vector<15x540xf32>, vector<2x540xf32> -> vector<2x540xf32>
    %113 = arith.addf %109, %112 : vector<2x540xf32>
    %114 = vector.extract_strided_slice %59 {offsets = [26, 0], sizes = [2, 15], strides = [1, 1]} : vector<36x15xf32> to vector<2x15xf32>
    %c195 = arith.constant 195 : index
    %c0_76 = arith.constant 0 : index
    %115 = vector.load %arg6[%c195, %c0_76] : memref<270x540xf32, #tpu.memory_space<vmem>>, vector<15x540xf32>
    %cst_77 = arith.constant dense<0.000000e+00> : vector<2x540xf32>
    %116 = tpu.matmul %114, %115, %cst_77 {dimension_numbers = #tpu.dot_dimension_numbers<[1], [0], [0], [1], [0, 0, 1, 1], [], []>} : vector<2x15xf32>, vector<15x540xf32>, vector<2x540xf32> -> vector<2x540xf32>
    %117 = arith.addf %113, %116 : vector<2x540xf32>
    %118 = vector.extract_strided_slice %59 {offsets = [28, 0], sizes = [2, 15], strides = [1, 1]} : vector<36x15xf32> to vector<2x15xf32>
    %c210 = arith.constant 210 : index
    %c0_78 = arith.constant 0 : index
    %119 = vector.load %arg6[%c210, %c0_78] : memref<270x540xf32, #tpu.memory_space<vmem>>, vector<15x540xf32>
    %cst_79 = arith.constant dense<0.000000e+00> : vector<2x540xf32>
    %120 = tpu.matmul %118, %119, %cst_79 {dimension_numbers = #tpu.dot_dimension_numbers<[1], [0], [0], [1], [0, 0, 1, 1], [], []>} : vector<2x15xf32>, vector<15x540xf32>, vector<2x540xf32> -> vector<2x540xf32>
    %121 = arith.addf %117, %120 : vector<2x540xf32>
    %122 = vector.extract_strided_slice %59 {offsets = [30, 0], sizes = [2, 15], strides = [1, 1]} : vector<36x15xf32> to vector<2x15xf32>
    %c225 = arith.constant 225 : index
    %c0_80 = arith.constant 0 : index
    %123 = vector.load %arg6[%c225, %c0_80] : memref<270x540xf32, #tpu.memory_space<vmem>>, vector<15x540xf32>
    %cst_81 = arith.constant dense<0.000000e+00> : vector<2x540xf32>
    %124 = tpu.matmul %122, %123, %cst_81 {dimension_numbers = #tpu.dot_dimension_numbers<[1], [0], [0], [1], [0, 0, 1, 1], [], []>} : vector<2x15xf32>, vector<15x540xf32>, vector<2x540xf32> -> vector<2x540xf32>
    %125 = arith.addf %121, %124 : vector<2x540xf32>
    %126 = vector.extract_strided_slice %59 {offsets = [32, 0], sizes = [2, 15], strides = [1, 1]} : vector<36x15xf32> to vector<2x15xf32>
    %c240 = arith.constant 240 : index
    %c0_82 = arith.constant 0 : index
    %127 = vector.load %arg6[%c240, %c0_82] : memref<270x540xf32, #tpu.memory_space<vmem>>, vector<15x540xf32>
    %cst_83 = arith.constant dense<0.000000e+00> : vector<2x540xf32>
    %128 = tpu.matmul %126, %127, %cst_83 {dimension_numbers = #tpu.dot_dimension_numbers<[1], [0], [0], [1], [0, 0, 1, 1], [], []>} : vector<2x15xf32>, vector<15x540xf32>, vector<2x540xf32> -> vector<2x540xf32>
    %129 = arith.addf %125, %128 : vector<2x540xf32>
    %130 = vector.extract_strided_slice %59 {offsets = [34, 0], sizes = [2, 15], strides = [1, 1]} : vector<36x15xf32> to vector<2x15xf32>
    %c255 = arith.constant 255 : index
    %c0_84 = arith.constant 0 : index
    %131 = vector.load %arg6[%c255, %c0_84] : memref<270x540xf32, #tpu.memory_space<vmem>>, vector<15x540xf32>
    %cst_85 = arith.constant dense<0.000000e+00> : vector<2x540xf32>
    %132 = tpu.matmul %130, %131, %cst_85 {dimension_numbers = #tpu.dot_dimension_numbers<[1], [0], [0], [1], [0, 0, 1, 1], [], []>} : vector<2x15xf32>, vector<15x540xf32>, vector<2x540xf32> -> vector<2x540xf32>
    %133 = arith.addf %129, %132 : vector<2x540xf32>
    %cst_86 = arith.constant 0.000000e+00 : f32
    %134 = vector.broadcast %cst_86 : f32 to vector<2x540xf32>
    %135 = arith.maximumf %133, %134 : vector<2x540xf32>
    %c0_87 = arith.constant 0 : index
    %c0_88 = arith.constant 0 : index
    %136 = vector.load %arg8[%c0_87, %c0_88] : memref<540x540xf32, #tpu.memory_space<vmem>>, vector<540x540xf32>
    %cst_89 = arith.constant dense<0.000000e+00> : vector<2x540xf32>
    %137 = tpu.matmul %135, %136, %cst_89 {dimension_numbers = #tpu.dot_dimension_numbers<[1], [0], [0], [1], [0, 0, 1, 1], [], []>} : vector<2x540xf32>, vector<540x540xf32>, vector<2x540xf32> -> vector<2x540xf32>
    %c0_90 = arith.constant 0 : index
    %c0_91 = arith.constant 0 : index
    %138 = vector.load %arg9[%c0_90, %c0_91] : memref<1x540xf32, #tpu.memory_space<vmem>>, vector<1x540xf32>
    %139 = vector.broadcast %138 : vector<1x540xf32> to vector<2x540xf32>
    %140 = arith.addf %137, %139 : vector<2x540xf32>
    %cst_92 = arith.constant 0.000000e+00 : f32
    %141 = vector.broadcast %cst_92 : f32 to vector<2x540xf32>
    %142 = arith.maximumf %140, %141 : vector<2x540xf32>
    %c0_93 = arith.constant 0 : index
    %c0_94 = arith.constant 0 : index
    %143 = vector.load %arg10[%c0_93, %c0_94] : memref<540x270xf32, #tpu.memory_space<vmem>>, vector<540x270xf32>
    %cst_95 = arith.constant dense<0.000000e+00> : vector<2x270xf32>
    %144 = tpu.matmul %142, %143, %cst_95 {dimension_numbers = #tpu.dot_dimension_numbers<[1], [0], [0], [1], [0, 0, 1, 1], [], []>} : vector<2x540xf32>, vector<540x270xf32>, vector<2x270xf32> -> vector<2x270xf32>
    %c0_96 = arith.constant 0 : index
    %c0_97 = arith.constant 0 : index
    %145 = vector.load %arg11[%c0_96, %c0_97] : memref<1x270xf32, #tpu.memory_space<vmem>>, vector<1x270xf32>
    %146 = vector.broadcast %145 : vector<1x270xf32> to vector<2x270xf32>
    %147 = arith.addf %144, %146 : vector<2x270xf32>
    %cst_98 = arith.constant 0.000000e+00 : f32
    %148 = vector.broadcast %cst_98 : f32 to vector<2x270xf32>
    %149 = arith.maximumf %147, %148 : vector<2x270xf32>
    %c0_99 = arith.constant 0 : index
    %c0_100 = arith.constant 0 : index
    %150 = vector.load %arg12[%c0_99, %c0_100] : memref<270x340xf32, #tpu.memory_space<vmem>>, vector<270x340xf32>
    %cst_101 = arith.constant dense<0.000000e+00> : vector<2x340xf32>
    %151 = tpu.matmul %149, %150, %cst_101 {dimension_numbers = #tpu.dot_dimension_numbers<[1], [0], [0], [1], [0, 0, 1, 1], [], []>} : vector<2x270xf32>, vector<270x340xf32>, vector<2x340xf32> -> vector<2x340xf32>
    %c0_102 = arith.constant 0 : index
    %c0_103 = arith.constant 0 : index
    %152 = vector.load %arg13[%c0_102, %c0_103] : memref<1x340xf32, #tpu.memory_space<vmem>>, vector<1x340xf32>
    %153 = vector.broadcast %152 : vector<1x340xf32> to vector<2x340xf32>
    %154 = arith.addf %151, %153 : vector<2x340xf32>
    %c0_104 = arith.constant 0 : index
    %c0_105 = arith.constant 0 : index
    %155 = vector.load %arg14[%c0_104, %c0_105] : memref<2x340xf32, #tpu.memory_space<vmem>>, vector<2x340xf32>
    tpu.vector_store %arg14[%c0_104, %c0_105], %154 {strides = array<i32>} : memref<2x340xf32, #tpu.memory_space<vmem>>, vector<2x340xf32>,
    return
  }
}

</mosaic_0001>

<bundles_post_ra>
// kernel: qnet_forward.1
= control target key start
LH: loop header
LB: loop body
LE: loop exit
PB: predicated region body
PF: predicated region fallthrough
CT: control target
= control target key end

     0   :  { %19 = vsyncpa [#allocation5], 0  ;;  %s15837_s29 = smov [#allocation4]   ;;  %s24803_s0 = inlined_call_operand.vmem [shape: f32[416,9], index: 0, kind: input, shape index: {}]   ;;  %s24804_s1 = inlined_call_operand.hbm [shape: f32[144,340], index: 1, kind: input, shape index: {}]   ;;  %s24805_s2 = inlined_call_operand.vmem [shape: f32[9,135], index: 2, kind: input, shape index: {}]   ;;  %s24806_s3 = inlined_call_operand.vmem [shape: f32[1,15], index: 3, kind: input, shape index: {}]   ;;  %s24807_s4 = inlined_call_operand.vmem [shape: f32[15,135], index: 4, kind: input, shape index: {}]   ;;  %s24808_s5 = inlined_call_operand.vmem [shape: f32[1,15], index: 5, kind: input, shape index: {}]   ;;  %s24809_s6 = inlined_call_operand.vmem [shape: f32[270,540], index: 6, kind: input, shape index: {}]   ;;  %s24810_s7 = inlined_call_operand.vmem [shape: f32[1,540], index: 7, kind: input, shape index: {}]   ;;  %s24811_s8 = inlined_call_operand.vmem [shape: f32[540,540], index: 8, kind: input, shape index: {}]   ;;  %s24812_s9 = inlined_call_operand.vmem [shape: f32[1,540], index: 9, kind: input, shape index: {}]   ;;  %s24813_s10 = inlined_call_operand.vmem [shape: f32[540,270], index: 10, kind: input, shape index: {}]   ;;  %s24814_s11 = inlined_call_operand.vmem [shape: f32[1,270], index: 11, kind: input, shape index: {}]   ;;  %s24815_s12 = inlined_call_operand.vmem [shape: f32[270,340], index: 12, kind: input, shape index: {}]   ;;  %s24816_s13 = inlined_call_operand.vmem [shape: f32[1,340], index: 13, kind: input, shape index: {}]   ;;  %s24817_s14 = inlined_call_operand.vmem [shape: f32[2,340], index: 14, kind: output, shape index: {}]  }
   0x1   :  { %s27_s30 = sshll.u32 %s15837_s29, 4  ;;  %s15813_s17 = scalar_lea.hbm %s24804_s1, 6912  ;;  %s28_s30 = int_to_ptr.vmem [resolvable:$true] %s27_s30 }
   0x2   :  { %p15814_p0 = scmp.ne.s32.totalorder %s24804_s1, %s15813_s17  ;;  %p15817_p1 = scmp.lt.u32.totalorder %s15813_s17, %s24804_s1 }
   0x4   :  { %p15819_p2 = pnand %p15817_p1, %p15814_p0 }
   0x6   :  { %15822 = shalt.err (!%p15819_p2)
}
   0x7   :  { %s15823_s22 = scalar_lea.vmem %s28_s30, 6912  ;;  %p15828_p4 = scmp.lt.s32.totalorder %s28_s30, %s28_s30 }
   0x8   :  { %p15824_p3 = scmp.ne.s32.totalorder %s28_s30, %s15823_s22  ;;  %p15829_p5 = scmp.lt.s32.totalorder %s15823_s22, %s15823_s22 }
   0xa   :  { %p15830_p6 = por %p15829_p5, %p15828_p4 }
   0xc   :  { %p15831_p7 = pnand %p15830_p6, %p15824_p3 }
   0xe   :  { %15834 = shalt.err (!%p15831_p7)
}
   0xf   :  { %s15838_s23 = smov 384   ;;  %s15839_s24 = smov 24  }
  0x10   :  { %33 = dma.hbm_to_vmem [thread:$0]  %s24804_s1, 6912, %s28_s30, [#allocation5], %s15838_s23, %s15838_s23, %s15839_s24  }
  0x11   :  { %15835 = dma.done.wait [#allocation5], 6912  }
  0x12   :  { %15836 = vsyncadd [#allocation5], 4294960384  ;;  %v24818_v0 = vmov 0.0   ;;  %vm274_vm0 = vcmask 1040384   ;;  %vm15841_vm1 = vmmov 1   ;;  %v114_v1 = vld [vmem:[%s24805_s2 + $0x8] sm:$0xff] }
  0x13   :  { %345 = vmatprep.mubr.f32.mxu0 %v24818_v0  ;;  %645 = vmatprep.mubr.f32.mxu1 %v24818_v0  ;;  %vm14554_vm2 = vmpackc.low %vm274_vm0, %vm15841_vm1  ;;  %v116_v2 = vld [vmem:[%s24805_s2 + $0x18] sm:$0x1]  ;;  %v113_v3 = vld [vmem:[%s24805_s2] sm:$0xff]  ;;  %vm117_vm3 = vcmask 72704   ;;  %vm659_vm4 = vcmask 56320   ;;  %vm860_vm5 = vcmask 1046528  }
  0x14   :  { %v14553_v4 = vpack.c.bf16 %v116_v2, %v114_v1  ;;  %v115_v5 = vld [vmem:[%s24805_s2 + $0x10] sm:$0x1]  ;;  %v61_v7 = vld [vmem:[%s24803_s0] sm:$0xff]  ;;  %v62_v8 = vld [vmem:[%s24803_s0 + $0x8] sm:$0xff]  ;;  %vm1148_vm6 = vcmask 1045504   ;;  %s15842_s1 = smov 113  }
  0x15   :  { %v14556_v6 = vpack.c.bf16 %v115_v5, %v113_v3  ;;  %v63_v9 = vld [vmem:[%s24803_s0 + $0x10] sm:$0xff]  ;;  %v64_v10 = vld [vmem:[%s24803_s0 + $0x18] sm:$0xff]  ;;  %v65_v11 = vld [vmem:[%s24803_s0 + $0x20] sm:$0xff]  ;;  %s15843_s30 = smov 98   ;;  %vm1840_vm7 = vcmask 1044480   ;;  %s15844_s16 = smov 83  }
  0x16   :  { %14555 = vmatprep.subr.msk.bf16.mxu0 %vm14554_vm2, %v14553_v4  ;;  %15583 = vmatprep.subr.msk.bf16.mxu1 %vm14554_vm2, %v14553_v4  ;;  %v66_v12 = vld [vmem:[%s24803_s0 + $0x28] sm:$0xff]  ;;  %v67_v13 = vld [vmem:[%s24803_s0 + $0x30] sm:$0xff]  ;;  %v68_v14 = vld [vmem:[%s24803_s0 + $0x38] sm:$0xff]  ;;  %s15845_s19 = smov 68   ;;  %vm2628_vm8 = vcmask 1043456   ;;  %s15846_s20 = smov 53  }
  0x17   :  { %14558 = vmatpush1.bf16.msk.msra.mxu0 %vm14554_vm2, %v14556_v6  ;;  %15584 = vmatpush1.bf16.msk.msra.mxu1 %vm14554_vm2, %v14556_v6  ;;  %v69_v15 = vld [vmem:[%s24803_s0 + $0x40] sm:$0xff]  ;;  %v70_v16 = vld [vmem:[%s24803_s0 + $0x48] sm:$0xff]  ;;  %v71_v17 = vld [vmem:[%s24803_s0 + $0x50] sm:$0xff]  ;;  %s15847_s21 = smov 38   ;;  %s15848_s23 = smov 23   ;;  %vm3007_vm10 = vcmask 64512  }
  0x18   :  { %v72_v18 = vld [vmem:[%s24803_s0 + $0x58] sm:$0xff]  ;;  %v73_v19 = vld [vmem:[%s24803_s0 + $0x60] sm:$0xff]  ;;  %v74_v20 = vld [vmem:[%s24803_s0 + $0x68] sm:$0xff]  ;;  %s15849_s24 = smov 8   ;;  %vm3254_vm11 = vcmask 121856   ;;  %vm6162_vm12 = vcmask 687104  }
  0x19   :  { %v75_v21 = vld [vmem:[%s24803_s0 + $0x70] sm:$0xff]  ;;  %v76_v22 = vld [vmem:[%s24803_s0 + $0x78] sm:$0xff]  ;;  %v77_v23 = vld [vmem:[%s24803_s0 + $0x80] sm:$0xff]  ;;  %vm15851_vm13 = vmmov 0   ;;  %vm7176_vm14 = vcmask 1041408   ;;  %vm7467_vm15 = vcmask 1042432  }
  0x1a   :  { %13794 = vmatmul.mubr.msk.f32.vlgmr.msra.gmra.mrb[0].mxu0 %vm117_vm3, %v61_v7  ;;  %v78_v24 = vld [vmem:[%s24803_s0 + $0x88] sm:$0xff]  ;;  %v79_v25 = vld [vmem:[%s24803_s0 + $0x90] sm:$0xff]  ;;  %v80_v26 = vld [vmem:[%s24803_s0 + $0x98] sm:$0xff]  ;;  %vm12029_vm2 = vcmask 228352  }
  0x1b   :  { %351 = vmatprep.mubr.f32.mxu0 %v24818_v0  ;;  %v81_v27 = vld [vmem:[%s24803_s0 + $0xa0] sm:$0xff]  ;;  %v82_v28 = vld [vmem:[%s24803_s0 + $0xa8] sm:$0xff]  ;;  %v83_v29 = vld [vmem:[%s24803_s0 + $0xb0] sm:$0xff] }
  0x1c   :  { %v84_v30 = vld [vmem:[%s24803_s0 + $0xb8] sm:$0xff]  ;;  %v85_v35 = vld [vmem:[%s24803_s0 + $0xc0] sm:$0xff]  ;;  %vm16281_vm9 = vmpackc.low %vm860_vm5, %vm15841_vm1 }
  0x1e   :  { %13795 = vmatmul.mubr.msk.f32.gmra.mrb[2].mxu0 %vm117_vm3, %v62_v8 }
  0x1f   :  { %357 = vmatprep.mubr.f32.mxu0 %v24818_v0 }
  0x22   :  { %13796 = vmatmul.mubr.msk.f32.gmra.mrb[4].mxu0 %vm117_vm3, %v63_v9 }
  0x23   :  { %363 = vmatprep.mubr.f32.mxu0 %v24818_v0 }
  0x26   :  { %13797 = vmatmul.mubr.msk.f32.gmra.mrb[6].mxu0 %vm117_vm3, %v64_v10 }
  0x27   :  { %369 = vmatprep.mubr.f32.mxu0 %v24818_v0 }
  0x2a   :  { %13798 = vmatmul.mubr.msk.f32.gmra.mrb[8].mxu0 %vm117_vm3, %v65_v11 }
  0x2b   :  { %375 = vmatprep.mubr.f32.mxu0 %v24818_v0 }
  0x2e   :  { %13799 = vmatmul.mubr.msk.f32.gmra.mrb[10].mxu0 %vm117_vm3, %v66_v12 }
  0x2f   :  { %381 = vmatprep.mubr.f32.mxu0 %v24818_v0 }
  0x32   :  { %13800 = vmatmul.mubr.msk.f32.gmra.mrb[12].mxu0 %vm117_vm3, %v67_v13 }
  0x33   :  { %387 = vmatprep.mubr.f32.mxu0 %v24818_v0 }
  0x36   :  { %13801 = vmatmul.mubr.msk.f32.gmra.mrb[14].mxu0 %vm117_vm3, %v68_v14 }
  0x37   :  { %393 = vmatprep.mubr.f32.mxu0 %v24818_v0 }
  0x3a   :  { %13802 = vmatmul.mubr.msk.f32.gmra.mrb[16].mxu0 %vm117_vm3, %v69_v15 }
  0x3b   :  { %399 = vmatprep.mubr.f32.mxu0 %v24818_v0 }
  0x3e   :  { %13803 = vmatmul.mubr.msk.f32.gmra.mrb[18].mxu0 %vm117_vm3, %v70_v16 }
  0x3f   :  { %405 = vmatprep.mubr.f32.mxu0 %v24818_v0 }
  0x42   :  { %13804 = vmatmul.mubr.msk.f32.gmra.mrb[20].mxu0 %vm117_vm3, %v71_v17 }
  0x43   :  { %411 = vmatprep.mubr.f32.mxu0 %v24818_v0 }
  0x46   :  { %13805 = vmatmul.mubr.msk.f32.gmra.mrb[22].mxu0 %vm117_vm3, %v72_v18  ;;  %v86_v18 = vld [vmem:[%s24803_s0 + $0xc8] sm:$0xff] }
  0x47   :  { %417 = vmatprep.mubr.f32.mxu0 %v24818_v0 }
  0x4a   :  { %13806 = vmatmul.mubr.msk.f32.gmra.mrb[24].mxu0 %vm117_vm3, %v73_v19 }
  0x4b   :  { %423 = vmatprep.mubr.f32.mxu0 %v24818_v0 }
  0x4e   :  { %13807 = vmatmul.mubr.msk.f32.gmra.mrb[26].mxu0 %vm117_vm3, %v74_v20 }
  0x4f   :  { %429 = vmatprep.mubr.f32.mxu0 %v24818_v0 }
  0x52   :  { %13808 = vmatmul.mubr.msk.f32.gmra.mrb[28].mxu0 %vm117_vm3, %v75_v21 }
  0x53   :  { %435 = vmatprep.mubr.f32.mxu0 %v24818_v0 }
  0x56   :  { %13809 = vmatmul.mubr.msk.f32.gmra.mrb[30].mxu0 %vm117_vm3, %v76_v22 }
  0x57   :  { %441 = vmatprep.mubr.f32.mxu0 %v24818_v0 }
  0x5a   :  { %13810 = vmatmul.mubr.msk.f32.gmra.mrb[32].mxu0 %vm117_vm3, %v77_v23 }
  0x5b   :  { %447 = vmatprep.mubr.f32.mxu0 %v24818_v0 }
  0x5e   :  { %13811 = vmatmul.mubr.msk.f32.gmra.mrb[34].mxu0 %vm117_vm3, %v78_v24 }
  0x5f   :  { %453 = vmatprep.mubr.f32.mxu0 %v24818_v0 }
  0x62   :  { %13812 = vmatmul.mubr.msk.f32.gmra.mrb[36].mxu0 %vm117_vm3, %v79_v25 }
  0x63   :  { %459 = vmatprep.mubr.f32.mxu0 %v24818_v0 }
  0x66   :  { %13813 = vmatmul.mubr.msk.f32.gmra.mrb[38].mxu0 %vm117_vm3, %v80_v26 }
  0x67   :  { %465 = vmatprep.mubr.f32.mxu0 %v24818_v0 }
  0x6a   :  { %13814 = vmatmul.mubr.msk.f32.gmra.mrb[40].mxu0 %vm117_vm3, %v81_v27 }
  0x6b   :  { %471 = vmatprep.mubr.f32.mxu0 %v24818_v0 }
  0x6e   :  { %13815 = vmatmul.mubr.msk.f32.gmra.mrb[42].mxu0 %vm117_vm3, %v82_v28 }
  0x6f   :  { %477 = vmatprep.mubr.f32.mxu0 %v24818_v0 }
  0x72   :  { %13816 = vmatmul.mubr.msk.f32.gmra.mrb[44].mxu0 %vm117_vm3, %v83_v29 }
  0x73   :  { %483 = vmatprep.mubr.f32.mxu0 %v24818_v0 }
  0x76   :  { %13817 = vmatmul.mubr.msk.f32.gmra.mrb[46].mxu0 %vm117_vm3, %v84_v30 }
  0x77   :  { %489 = vmatprep.mubr.f32.mxu0 %v24818_v0 }
  0x7a   :  { %13818 = vmatmul.mubr.msk.f32.gmra.mrb[48].mxu0 %vm117_vm3, %v85_v35 }
  0x7b   :  { %495 = vmatprep.mubr.f32.mxu0 %v24818_v0 }
  0x7e   :  { %13819 = vmatmul.mubr.msk.f32.gmra.mrb[50].mxu0 %vm117_vm3, %v86_v18 }
  0x7f   :  { %501 = vmatprep.mubr.f32.mxu0 %v24818_v0 }
  0xed   :  { %v16076_v31 = vpop.f32.mrb[0].mxu0 }
  0xee   :  { %658 = vst [vmem:[#allocation2] sm:$0xff] %v16076_v31  ;;  %v349_v32 = vpop.f32.mrb[1].mxu0 }
  0xf1   :  { %v16079_v33 = vpop.f32.mrb[2].mxu0 }
  0xf2   :  { %v355_v34 = vpop.f32.mrb[3].mxu0  ;;  %v862_v38 = vrot.slane %v16079_v33, 1  ;;  %v1150_v42 = vrot.slane %v16079_v33, 2 }
  0xf5   :  { %v16084_v36 = vpop.f32.mrb[4].mxu0  ;;  %v810_v37 = vld [vmem:[#allocation2] sm:$0xfe] }
  0xf6   :  { %v1144_v39 = vld [vmem:[#allocation2] sm:$0xfc]  ;;  %663 = vst [vmem:[#allocation2 + $0x20] sm:$0xff] %v16084_v36  ;;  %v361_v40 = vpop.f32.mrb[5].mxu0  ;;  %v861_v41 = vrot.slane %v810_v37, 1  ;;  %v864_v43 = vrot.slane %v16084_v36, 1 }
  0xf7   :  { %v1152_v44 = vrot.slane %v16084_v36, 2  ;;  %v1149_v46 = vrot.slane %v1144_v39, 2 }
  0xf8   :  { %v863_v45 = vsel %vm860_vm5, %v861_v41, %v862_v38  ;;  %v865_v47 = vsel %vm860_vm5, %v862_v38, %v864_v43 }
  0xf9   :  { %v1153_v48 = vsel %vm1148_vm6, %v1150_v42, %v1152_v44  ;;  %v16096_v49 = vpop.f32.mrb[6].mxu0  ;;  %956 = vrot.lane.b32.xlu0 %v863_v45, %s15842_s1  ;;  %958 = vrot.lane.b32.xlu1 %v865_v47, %s15842_s1  ;;  %v1151_v53 = vsel %vm1148_vm6, %v1149_v46, %v1150_v42 }
  0xfa   :  { %665 = vst [vmem:[#allocation2 + $0x30] sm:$0xff] %v16096_v49  ;;  %v367_v50 = vpop.f32.mrb[7].mxu0  ;;  %v866_v51 = vrot.slane %v16096_v49, 1  ;;  %v1154_v52 = vrot.slane %v16096_v49, 2  ;;  %v1842_v59 = vrot.slane %v16096_v49, 3 }
  0xfc   :  { %v867_v54 = vsel %vm860_vm5, %v864_v43, %v866_v51  ;;  %v1155_v55 = vsel %vm1148_vm6, %v1152_v44, %v1154_v52 }
  0xfd   :  { %v371_v56 = vpop.f32.mrb[8].mxu0  ;;  %1244 = vrot.lane.b32.xlu0 %v1151_v53, %s15843_s30  ;;  %v1432_v57 = vld [vmem:[#allocation2 + $0x20] sm:$0xfe] }
  0xfe   :  { %v1636_v58 = vld [vmem:[#allocation2 + $0x20] sm:$0xfc]  ;;  %667 = vst [vmem:[#allocation2 + $0x40] sm:$0xff] %v371_v56  ;;  %v373_v60 = vpop.f32.mrb[9].mxu0  ;;  %v1440_v61 = vrot.slane %v1432_v57, 1  ;;  %v1156_v62 = vrot.slane %v371_v56, 2 }
  0xff   :  { %668 = vst.msk [vmem:[#allocation2 + $0x48] sm:$0xff] %vm659_vm4, %v373_v60  ;;  %v868_v63 = vrot.slane %v371_v56, 1  ;;  %v1844_v1 = vrot.slane %v371_v56, 3  ;;  %v1640_v3 = vrot.slane %v1636_v58, 2  ;;  %v1836_v4 = vld [vmem:[#allocation2 + $0x20] sm:$0xf8] }
 0x100   :  { %v1441_v2 = vsel %vm860_vm5, %v1440_v61, %v866_v51  ;;  %v16111_v5 = vsel %vm1148_vm6, %v1154_v52, %v1156_v62  ;;  %v1841_v13 = vrot.slane %v1836_v4, 3 }
 0x101   :  { %v16113_v6 = vpop.f32.mrb[10].mxu0  ;;  %1246 = vrot.lane.b32.xlu0 %v1153_v48, %s15843_s30  ;;  %1448 = vrot.lane.b32.xlu1 %v1441_v2, %s15844_s16  ;;  %v16118_v7 = vsel %vm860_vm5, %v866_v51, %v868_v63  ;;  %v16121_v8 = vsel %vm1840_vm7, %v1842_v59, %v1844_v1  ;;  %v1641_v14 = vsel %vm1148_vm6, %v1640_v3, %v1154_v52 }
 0x102   :  { %669 = vst [vmem:[#allocation2 + $0x50] sm:$0xff] %v16113_v6  ;;  %v379_v9 = vpop.f32.mrb[11].mxu0  ;;  %v1158_v10 = vrot.slane %v16113_v6, 2  ;;  %v870_v11 = vrot.slane %v16113_v6, 1  ;;  %v16127_v12 = vrot.slane %v16113_v6, 3  ;;  %v2630_v22 = vrot.slane %v16113_v6, 4 }
 0x103   :  { %670 = vst.msk [vmem:[#allocation2 + $0x58] sm:$0xff] %vm659_vm4, %v379_v9  ;;  %v1843_v27 = vsel %vm1840_vm7, %v1841_v13, %v1842_v59 }
 0x104   :  { %v16132_v15 = vsel %vm860_vm5, %v868_v63, %v870_v11  ;;  %v16135_v16 = vsel %vm1148_vm6, %v1156_v62, %v1158_v10  ;;  %v16139_v17 = vsel %vm1840_vm7, %v1844_v1, %v16127_v12 }
 0x105   :  { %v383_v19 = vpop.f32.mrb[12].mxu0  ;;  %1648 = vrot.lane.b32.xlu1 %v1641_v14, %s15845_s19  ;;  %960 = vrot.lane.b32.xlu0 %v867_v54, %s15842_s1  ;;  %v2124_v21 = vld [vmem:[#allocation2 + $0x40] sm:$0xfc] }
 0x106   :  { %671 = vst [vmem:[#allocation2 + $0x60] sm:$0xff] %v383_v19  ;;  %v385_v20 = vpop.f32.mrb[13].mxu0  ;;  %v1160_v23 = vrot.slane %v383_v19, 2  ;;  %v872_v24 = vrot.slane %v383_v19, 1  ;;  %v1848_v25 = vrot.slane %v383_v19, 3  ;;  %v2635_v26 = vrot.slane %v383_v19, 4 }
 0x107   :  { %672 = vst.msk [vmem:[#allocation2 + $0x68] sm:$0xff] %vm659_vm4, %v385_v20  ;;  %v2132_v29 = vrot.slane %v2124_v21, 2  ;;  %v2328_v53 = vld [vmem:[#allocation2 + $0x40] sm:$0xf8] }
 0x108   :  { %v16152_v28 = vsel %vm1148_vm6, %v1158_v10, %v1160_v23  ;;  %v16157_v32 = vsel %vm860_vm5, %v870_v11, %v872_v24  ;;  %v16161_v34 = vsel %vm1840_vm7, %v16127_v12, %v1848_v25  ;;  %v16166_v37 = vsel %vm2628_vm8, %v2630_v22, %v2635_v26  ;;  %v2528_v2 = vld [vmem:[#allocation2 + $0x40] sm:$0xf0] }
 0x109   :  { %1248 = vrot.lane.b32.xlu1 %v1155_v55, %s15843_s30  ;;  %1936 = vrot.lane.b32.xlu0 %v1843_v27, %s15846_s20  ;;  %v389_v30 = vpop.f32.mrb[14].mxu0  ;;  %v2133_v45 = vsel %vm1148_vm6, %v2132_v29, %v1158_v10  ;;  %v2332_v1 = vrot.slane %v2328_v53, 3  ;;  %v2629_v21 = vrot.slane %v2528_v2, 4 }
 0x10a   :  { %673 = vst [vmem:[#allocation2 + $0x70] sm:$0xff] %v389_v30  ;;  %v391_v35 = vpop.f32.mrb[15].mxu0  ;;  %v1162_v38 = vrot.slane %v389_v30, 2  ;;  %v874_v39 = vrot.slane %v389_v30, 1  ;;  %v1850_v40 = vrot.slane %v389_v30, 3  ;;  %v2639_v41 = vrot.slane %v389_v30, 4 }
 0x10b   :  { %674 = vst.msk [vmem:[#allocation2 + $0x78] sm:$0xff] %vm659_vm4, %v391_v35  ;;  %v2333_v20 = vsel %vm1840_vm7, %v2332_v1, %v16127_v12 }
 0x10c   :  { %v16170_v42 = vsel %vm1148_vm6, %v1160_v23, %v1162_v38  ;;  %v16173_v43 = vsel %vm860_vm5, %v872_v24, %v874_v39  ;;  %v16176_v44 = vsel %vm1840_vm7, %v1848_v25, %v1850_v40  ;;  %v16184_v47 = vsel %vm2628_vm8, %v2635_v26, %v2639_v41  ;;  %v87_v26 = vld [vmem:[%s24803_s0 + $0xd0] sm:$0xff] }
 0x10d   :  { %1650 = vrot.lane.b32.xlu0 %v16111_v5, %s15845_s19  ;;  %1450 = vrot.lane.b32.xlu1 %v16118_v7, %s15844_s16  ;;  %v395_v46 = vpop.f32.mrb[16].mxu0 }
 0x10e   :  { %675 = vst [vmem:[#allocation2 + $0x80] sm:$0xff] %v395_v46  ;;  %v397_v48 = vpop.f32.mrb[17].mxu0  ;;  %v1164_v49 = vrot.slane %v395_v46, 2  ;;  %v876_v50 = vrot.slane %v395_v46, 1  ;;  %v1852_v51 = vrot.slane %v395_v46, 3  ;;  %v2643_v52 = vrot.slane %v395_v46, 4  ;;  %13820 = vmatmul.mubr.msk.f32.gmra.mrb[52].mxu0 %vm117_vm3, %v87_v26 }
 0x10f   :  { %676 = vst.msk [vmem:[#allocation2 + $0x88] sm:$0xff] %vm659_vm4, %v397_v48  ;;  %507 = vmatprep.mubr.f32.mxu0 %v24818_v0 }
 0x110   :  { %v16188_v54 = vsel %vm1148_vm6, %v1162_v38, %v1164_v49  ;;  %v16191_v55 = vsel %vm860_vm5, %v874_v39, %v876_v50  ;;  %v16194_v56 = vsel %vm1840_vm7, %v1850_v40, %v1852_v51  ;;  %v16197_v57 = vsel %vm2628_vm8, %v2639_v41, %v2643_v52 }
 0x111   :  { %962 = vrot.lane.b32.xlu0 %v16118_v7, %s15842_s1  ;;  %2140 = vrot.lane.b32.xlu1 %v2133_v45, %s15847_s21  ;;  %v401_v58 = vpop.f32.mrb[18].mxu0  ;;  %v2631_v39 = vsel %vm2628_vm8, %v2629_v21, %v2630_v22  ;;  %v111_v22 = vld [vmem:[%s24803_s0 + $0x190] sm:$0xff] }
 0x112   :  { %677 = vst [vmem:[#allocation2 + $0x90] sm:$0xff] %v401_v58  ;;  %v403_v59 = vpop.f32.mrb[19].mxu0  ;;  %v1166_v60 = vrot.slane %v401_v58, 2  ;;  %v878_v61 = vrot.slane %v401_v58, 1  ;;  %v1854_v62 = vrot.slane %v401_v58, 3  ;;  %v2647_v63 = vrot.slane %v401_v58, 4  ;;  %13844 = vmatmul.mubr.msk.f32.vlgmr.msra.gmra.mrb[0].mxu1 %vm117_vm3, %v111_v22 }
 0x113   :  { %678 = vst.msk [vmem:[#allocation2 + $0x98] sm:$0xff] %vm659_vm4, %v403_v59  ;;  %651 = vmatprep.mubr.f32.mxu1 %v24818_v0 }
 0x114   :  { %v16204_v3 = vsel %vm1148_vm6, %v1164_v49, %v1166_v60  ;;  %v16207_v4 = vsel %vm860_vm5, %v876_v50, %v878_v61  ;;  %v16210_v7 = vsel %vm1840_vm7, %v1852_v51, %v1854_v62  ;;  %v16213_v9 = vsel %vm2628_vm8, %v2643_v52, %v2647_v63 }
 0x115   :  { %1938 = vrot.lane.b32.xlu0 %v16121_v8, %s15846_s20  ;;  %1452 = vrot.lane.b32.xlu1 %v16132_v15, %s15844_s16  ;;  %v407_v10 = vpop.f32.mrb[20].mxu0 }
 0x116   :  { %679 = vst [vmem:[#allocation2 + $0xa0] sm:$0xff] %v407_v10  ;;  %v409_v11 = vpop.f32.mrb[21].mxu0  ;;  %v1168_v13 = vrot.slane %v407_v10, 2  ;;  %v880_v14 = vrot.slane %v407_v10, 1  ;;  %v1856_v18 = vrot.slane %v407_v10, 3  ;;  %v2651_v19 = vrot.slane %v407_v10, 4 }
 0x117   :  { %680 = vst.msk [vmem:[#allocation2 + $0xa8] sm:$0xff] %vm659_vm4, %v409_v11  ;;  %v3252_v11 = vld [vmem:[%s24807_s4 + $0x10] sm:$0x7f] }
 0x118   :  { %v16223_v23 = vsel %vm1148_vm6, %v1166_v60, %v1168_v13  ;;  %v16226_v8 = vsel %vm860_vm5, %v878_v61, %v880_v14  ;;  %v16229_v24 = vsel %vm1840_vm7, %v1854_v62, %v1856_v18  ;;  %v16232_v25 = vsel %vm2628_vm8, %v2647_v63, %v2651_v19  ;;  %v3251_v62 = vld [vmem:[%s24807_s4 + $0x8] sm:$0xff]  ;;  %v3253_v63 = vld [vmem:[%s24807_s4 + $0x18] sm:$0x7f] }
 0x119   :  { %1250 = vrot.lane.b32.xlu0 %v16111_v5, %s15843_s30  ;;  %2340 = vrot.lane.b32.xlu1 %v2333_v20, %s15848_s23  ;;  %v413_v12 = vpop.f32.mrb[22].mxu0  ;;  %v24873_v60 = vmov 0  ;;  %v14559_v10 = vpack.c.bf16 %v3253_v63, %v3251_v62  ;;  %v2529_v20 = vld [vmem:[#allocation2 + $0x48] sm:$0xf0] }
 0x11a   :  { %681 = vst [vmem:[#allocation2 + $0xb0] sm:$0xff] %v413_v12  ;;  %v415_v27 = vpop.f32.mrb[23].mxu0  ;;  %v1170_v29 = vrot.slane %v413_v12, 2  ;;  %v882_v30 = vrot.slane %v413_v12, 1  ;;  %v1858_v35 = vrot.slane %v413_v12, 3  ;;  %v2655_v38 = vrot.slane %v413_v12, 4 }
 0x11b   :  { %682 = vst.msk [vmem:[#allocation2 + $0xb8] sm:$0xff] %vm659_vm4, %v415_v27  ;;  %v24874_v60 = vsel %vm16281_vm9, 4294967295, %v24873_v60  ;;  %14561 = vmatprep.subr.msk.bf16.mxu1 %vm16281_vm9, %v14559_v10  ;;  %v2530_v12 = vld [vmem:[#allocation2 + $0x58] sm:$0xff]  ;;  %v2632_v22 = vrot.slane %v2529_v20, 4 }
 0x11c   :  { %v16247_v5 = vsel %vm1148_vm6, %v1168_v13, %v1170_v29  ;;  %v16250_v40 = vsel %vm860_vm5, %v880_v14, %v882_v30  ;;  %v16253_v41 = vsel %vm1840_vm7, %v1856_v18, %v1858_v35  ;;  %v16256_v45 = vsel %vm2628_vm8, %v2651_v19, %v2655_v38  ;;  %24875 = vst [vmem:[#allocation7_spill] sm:$0xff] %v24874_v60  ;;  %v112_v13 = vld [vmem:[%s24803_s0 + $0x198] sm:$0xff] }
 0x11d   :  { %2819 = vrot.lane.b32.xlu0 %v2631_v39, %s15849_s24  ;;  %1652 = vrot.lane.b32.xlu1 %v16135_v16, %s15845_s19  ;;  %v419_v6 = vpop.f32.mrb[24].mxu0 }
 0x11e   :  { %683 = vst [vmem:[#allocation2 + $0xc0] sm:$0xff] %v419_v6  ;;  %v421_v46 = vpop.f32.mrb[25].mxu0  ;;  %v1172_v48 = vrot.slane %v419_v6, 2  ;;  %v884_v49 = vrot.slane %v419_v6, 1  ;;  %v1860_v50 = vrot.slane %v419_v6, 3  ;;  %v2659_v51 = vrot.slane %v419_v6, 4  ;;  %13845 = vmatmul.mubr.msk.f32.gmra.mrb[2].mxu1 %vm117_vm3, %v112_v13 }
 0x11f   :  { %684 = vst.msk [vmem:[#allocation2 + $0xc8] sm:$0xff] %vm659_vm4, %v421_v46  ;;  %3466 = vmatprep.mubr.f32.mxu1 %v24818_v0  ;;  %v2531_v13 = vld [vmem:[#allocation2 + $0x68] sm:$0xff] }
 0x120   :  { %v16268_v52 = vsel %vm1148_vm6, %v1170_v29, %v1172_v48  ;;  %v16271_v53 = vsel %vm860_vm5, %v882_v30, %v884_v49  ;;  %v16274_v58 = vsel %vm1840_vm7, %v1858_v35, %v1860_v50  ;;  %v16277_v59 = vsel %vm2628_vm8, %v2655_v38, %v2659_v51 }
 0x121   :  { %964 = vrot.lane.b32.xlu1 %v16132_v15, %s15842_s1  ;;  %2142 = vrot.lane.b32.xlu0 %v16152_v28, %s15847_s21  ;;  %v425_v61 = vpop.f32.mrb[26].mxu0  ;;  %v3250_v15 = vld [vmem:[%s24807_s4] sm:$0xff] }
 0x122   :  { %685 = vst [vmem:[#allocation2 + $0xd0] sm:$0xff] %v425_v61  ;;  %v427_v1 = vpop.f32.mrb[27].mxu0  ;;  %v1174_v2 = vrot.slane %v425_v61, 2  ;;  %v14562_v14 = vpack.c.bf16 %v3252_v11, %v3250_v15  ;;  %v886_v18 = vrot.slane %v425_v61, 1  ;;  %v1862_v19 = vrot.slane %v425_v61, 3 }
 0x123   :  { %686 = vst.msk [vmem:[#allocation2 + $0xd8] sm:$0xff] %vm659_vm4, %v427_v1  ;;  %v2663_v26 = vrot.slane %v425_v61, 4 }
 0x124   :  { %v16306_v21 = vsel %vm1148_vm6, %v1172_v48, %v1174_v2  ;;  %v16316_v29 = vsel %vm860_vm5, %v884_v49, %v886_v18  ;;  %v16319_v30 = vsel %vm1840_vm7, %v1860_v50, %v1862_v19  ;;  %14564 = vmatpush1.bf16.msk.msra.mxu1 %vm16281_vm9, %v14562_v14  ;;  %v2633_v48 = vrot.slane %v2530_v12, 4  ;;  %v88_v49 = vld [vmem:[%s24803_s0 + $0xd8] sm:$0xff]  ;;  %v89_v12 = vld [vmem:[%s24803_s0 + $0xe0] sm:$0xff] }
 0x125   :  { %1940 = vrot.lane.b32.xlu1 %v16139_v17, %s15846_s20  ;;  %1454 = vrot.lane.b32.xlu0 %v16157_v32, %s15844_s16  ;;  %v431_v27 = vpop.f32.mrb[28].mxu0  ;;  %v16325_v17 = vsel %vm2628_vm8, %v2659_v51, %v2663_v26 }
 0x126   :  { %687 = vst [vmem:[#allocation2 + $0xe0] sm:$0xff] %v431_v27  ;;  %v433_v35 = vpop.f32.mrb[29].mxu0  ;;  %v1176_v38 = vrot.slane %v431_v27, 2  ;;  %v888_v39 = vrot.slane %v431_v27, 1  ;;  %v1864_v6 = vrot.slane %v431_v27, 3  ;;  %v2667_v46 = vrot.slane %v431_v27, 4  ;;  %13821 = vmatmul.mubr.msk.f32.gmra.mrb[54].mxu0 %vm117_vm3, %v88_v49 }
 0x127   :  { %688 = vst.msk [vmem:[#allocation2 + $0xe8] sm:$0xff] %vm659_vm4, %v433_v35  ;;  %513 = vmatprep.mubr.f32.mxu0 %v24818_v0 }
 0x128   :  { %v16332_v50 = vsel %vm1148_vm6, %v1174_v2, %v1176_v38  ;;  %v16335_v61 = vsel %vm860_vm5, %v886_v18, %v888_v39  ;;  %v16338_v51 = vsel %vm1840_vm7, %v1862_v19, %v1864_v6  ;;  %v16345_v63 = vsel %vm2628_vm8, %v2663_v26, %v2667_v46 }
 0x129   :  { %1252 = vrot.lane.b32.xlu1 %v16135_v16, %s15843_s30  ;;  %2342 = vrot.lane.b32.xlu0 %v16161_v34, %s15848_s23  ;;  %v437_v62 = vpop.f32.mrb[30].mxu0  ;;  %v2634_v2 = vsel %vm2628_vm8, %v2632_v22, %v2633_v48  ;;  %v2637_v19 = vrot.slane %v2531_v13, 4 }
 0x12a   :  { %689 = vst [vmem:[#allocation2 + $0xf0] sm:$0xff] %v437_v62  ;;  %v439_v1 = vpop.f32.mrb[31].mxu0  ;;  %v1178_v16 = vrot.slane %v437_v62, 2  ;;  %v890_v10 = vrot.slane %v437_v62, 1  ;;  %v1866_v15 = vrot.slane %v437_v62, 3  ;;  %v2671_v11 = vrot.slane %v437_v62, 4  ;;  %13822 = vmatmul.mubr.msk.f32.gmra.mrb[56].mxu0 %vm117_vm3, %v89_v12 }
 0x12b   :  { %690 = vst.msk [vmem:[#allocation2 + $0xf8] sm:$0xff] %vm659_vm4, %v439_v1  ;;  %v2638_v26 = vsel %vm2628_vm8, %v2633_v48, %v2637_v19  ;;  %519 = vmatprep.mubr.f32.mxu0 %v24818_v0  ;;  %v90_v48 = vld [vmem:[%s24803_s0 + $0xe8] sm:$0xff] }
 0x12c   :  { %v16363_v14 = vsel %vm1148_vm6, %v1176_v38, %v1178_v16  ;;  %v16366_v18 = vsel %vm860_vm5, %v888_v39, %v890_v10 }
 0x12d   :  { %2821 = vrot.lane.b32.xlu1 %v2634_v2, %s15849_s24  ;;  %1654 = vrot.lane.b32.xlu0 %v16152_v28, %s15845_s19  ;;  %v443_v20 = vpop.f32.mrb[32].mxu0 }
 0x12e   :  { %691 = vst [vmem:[#allocation2 + $0x100] sm:$0xff] %v443_v20  ;;  %v892_v27 = vrot.slane %v443_v20, 1  ;;  %v1868_v35 = vrot.slane %v443_v20, 3  ;;  %v2675_v38 = vrot.slane %v443_v20, 4  ;;  %13823 = vmatmul.mubr.msk.f32.gmra.mrb[58].mxu0 %vm117_vm3, %v90_v48 }
 0x12f   :  { %525 = vmatprep.mubr.f32.mxu0 %v24818_v0 }
 0x130   :  { %v16406_v22 = vsel %vm2628_vm8, %v2671_v11, %v2675_v38 }
 0x131   :  { %2823 = vrot.lane.b32.xlu1 %v16166_v37, %s15849_s24  ;;  %966 = vrot.lane.b32.xlu0 %v16157_v32, %s15842_s1  ;;  %v16369_v37 = vsel %vm1840_vm7, %v1864_v6, %v1866_v15  ;;  %v16372_v32 = vsel %vm2628_vm8, %v2667_v46, %v2671_v11  ;;  %v16400_v6 = vsel %vm860_vm5, %v890_v10, %v892_v27  ;;  %v2533_v10 = vld [vmem:[#allocation2 + $0x88] sm:$0xff] }
 0x132   :  { %v2645_v13 = vrot.slane %v2533_v10, 4 }
 0x135   :  { %1942 = vrot.lane.b32.xlu0 %v16161_v34, %s15846_s20  ;;  %2144 = vrot.lane.b32.xlu1 %v16170_v42, %s15847_s21  ;;  %v445_v34 = vpop.f32.mrb[33].mxu0 }
 0x136   :  { %692 = vst.msk [vmem:[#allocation2 + $0x108] sm:$0xff] %vm659_vm4, %v445_v34  ;;  %v449_v49 = vpop.f32.mrb[34].mxu0  ;;  %v91_v34 = vld [vmem:[%s24803_s0 + $0xf0] sm:$0xff] }
 0x137   :  { %693 = vst [vmem:[#allocation2 + $0x110] sm:$0xff] %v449_v49  ;;  %v894_v1 = vrot.slane %v449_v49, 1  ;;  %v1870_v2 = vrot.slane %v449_v49, 3  ;;  %13824 = vmatmul.mubr.msk.f32.gmra.mrb[60].mxu0 %vm117_vm3, %v91_v34 }
 0x138   :  { %531 = vmatprep.mubr.f32.mxu0 %v24818_v0 }
 0x139   :  { %1254 = vrot.lane.b32.xlu0 %v16152_v28, %s15843_s30  ;;  %1456 = vrot.lane.b32.xlu1 %v16173_v43, %s15844_s16  ;;  %v1180_v28 = vrot.slane %v443_v20, 2  ;;  %v16438_v11 = vsel %vm860_vm5, %v892_v27, %v894_v1 }
 0x13b   :  { %v16397_v39 = vsel %vm1148_vm6, %v1178_v16, %v1180_v28  ;;  %v2679_v16 = vrot.slane %v449_v49, 4 }
 0x13d   :  { %2825 = vrot.lane.b32.xlu0 %v2638_v26, %s15849_s24  ;;  %2344 = vrot.lane.b32.xlu1 %v16176_v44, %s15848_s23 }
 0x141   :  { %2827 = vrot.lane.b32.xlu0 %v16184_v47, %s15849_s24  ;;  %1656 = vrot.lane.b32.xlu1 %v16170_v42, %s15845_s19  ;;  %v16403_v47 = vsel %vm1840_vm7, %v1866_v15, %v1868_v35 }
 0x145   :  { %968 = vrot.lane.b32.xlu1 %v16173_v43, %s15842_s1  ;;  %2146 = vrot.lane.b32.xlu0 %v16188_v54, %s15847_s21  ;;  %v2532_v43 = vld [vmem:[#allocation2 + $0x78] sm:$0xff] }
 0x146   :  { %v2641_v46 = vrot.slane %v2532_v43, 4 }
 0x148   :  { %v2642_v62 = vsel %vm2628_vm8, %v2637_v19, %v2641_v46  ;;  %v2646_v20 = vsel %vm2628_vm8, %v2641_v46, %v2645_v13 }
 0x149   :  { %1944 = vrot.lane.b32.xlu1 %v16176_v44, %s15846_s20  ;;  %1458 = vrot.lane.b32.xlu0 %v16191_v55, %s15844_s16  ;;  %v451_v44 = vpop.f32.mrb[35].mxu0 }
 0x14a   :  { %694 = vst.msk [vmem:[#allocation2 + $0x118] sm:$0xff] %vm659_vm4, %v451_v44  ;;  %v16446_v19 = vpop.f32.mrb[36].mxu0 }
 0x14b   :  { %695 = vst [vmem:[#allocation2 + $0x120] sm:$0xff] %v16446_v19  ;;  %v896_v26 = vrot.slane %v16446_v19, 1  ;;  %v1872_v12 = vrot.slane %v16446_v19, 3 }
 0x14d   :  { %1256 = vrot.lane.b32.xlu1 %v16170_v42, %s15843_s30  ;;  %2346 = vrot.lane.b32.xlu0 %v16194_v56, %s15848_s23  ;;  %v1182_v42 = vrot.slane %v449_v49, 2 }
 0x14f   :  { %v16435_v15 = vsel %vm1148_vm6, %v1180_v28, %v1182_v42  ;;  %v2683_v28 = vrot.slane %v16446_v19, 4 }
 0x151   :  { %2829 = vrot.lane.b32.xlu1 %v2642_v62, %s15849_s24  ;;  %1658 = vrot.lane.b32.xlu0 %v16188_v54, %s15845_s19 }
 0x155   :  { %2831 = vrot.lane.b32.xlu1 %v16197_v57, %s15849_s24  ;;  %970 = vrot.lane.b32.xlu0 %v16191_v55, %s15842_s1  ;;  %v16441_v57 = vsel %vm1840_vm7, %v1868_v35, %v1870_v2  ;;  %v16444_v55 = vsel %vm2628_vm8, %v2675_v38, %v2679_v16  ;;  %v16482_v35 = vsel %vm1840_vm7, %v1870_v2, %v1872_v12 }
 0x156   :  { %24877 = vst [vmem:[#allocation9_spill] sm:$0xff] %v16482_v35  ;;  %v16485_v38 = vsel %vm2628_vm8, %v2679_v16, %v2683_v28 }
 0x157   :  { %24878 = vst [vmem:[#allocation10_spill] sm:$0xff] %v16485_v38 }
 0x159   :  { %1946 = vrot.lane.b32.xlu0 %v16194_v56, %s15846_s20  ;;  %2148 = vrot.lane.b32.xlu1 %v16204_v3, %s15847_s21  ;;  %v457_v56 = vpop.f32.mrb[37].mxu0 }
 0x15a   :  { %696 = vst.msk [vmem:[#allocation2 + $0x128] sm:$0xff] %vm659_vm4, %v457_v56  ;;  %v16493_v46 = vpop.f32.mrb[38].mxu0 }
 0x15b   :  { %697 = vst [vmem:[#allocation2 + $0x130] sm:$0xff] %v16493_v46  ;;  %v463_v48 = vpop.f32.mrb[39].mxu0  ;;  %v898_v56 = vrot.slane %v16493_v46, 1  ;;  %v2687_v34 = vrot.slane %v16493_v46, 4 }
 0x15c   :  { %698 = vst.msk [vmem:[#allocation2 + $0x138] sm:$0xff] %vm659_vm4, %v463_v48 }
 0x15d   :  { %1258 = vrot.lane.b32.xlu0 %v16188_v54, %s15843_s30  ;;  %1460 = vrot.lane.b32.xlu1 %v16207_v4, %s15844_s16  ;;  %v1184_v54 = vrot.slane %v16446_v19, 2 }
 0x15f   :  { %v16476_v27 = vsel %vm1148_vm6, %v1182_v42, %v1184_v54 }
 0x161   :  { %2833 = vrot.lane.b32.xlu0 %v2646_v20, %s15849_s24  ;;  %2348 = vrot.lane.b32.xlu1 %v16210_v7, %s15848_s23  ;;  %v1874_v20 = vrot.slane %v16493_v46, 3 }
 0x163   :  { %v16547_v48 = vsel %vm1840_vm7, %v1872_v12, %v1874_v20 }
 0x164   :  { %24881 = vst [vmem:[#allocation13_spill] sm:$0xff] %v16547_v48 }
 0x165   :  { %2835 = vrot.lane.b32.xlu0 %v16213_v9, %s15849_s24  ;;  %1660 = vrot.lane.b32.xlu1 %v16204_v3, %s15845_s19  ;;  %v16479_v9 = vsel %vm860_vm5, %v894_v1, %v896_v26 }
 0x166   :  { %24876 = vst [vmem:[#allocation8_spill] sm:$0xff] %v16479_v9 }
 0x169   :  { %972 = vrot.lane.b32.xlu1 %v16207_v4, %s15842_s1  ;;  %2150 = vrot.lane.b32.xlu0 %v16223_v23, %s15847_s21  ;;  %v2534_v4 = vld [vmem:[#allocation2 + $0x98] sm:$0xff] }
 0x16a   :  { %v2649_v62 = vrot.slane %v2534_v4, 4  ;;  %v16544_v4 = vsel %vm860_vm5, %v896_v26, %v898_v56 }
 0x16b   :  { %v16487_v43 = vpop.permute.xlu0 %956  ;;  %v16498_v44 = vpop.permute.xlu1 %958  ;;  %24880 = vst [vmem:[#allocation12_spill] sm:$0xff] %v16544_v4 }
 0x16c   :  { %v2650_v2 = vsel %vm2628_vm8, %v2645_v13, %v2649_v62  ;;  %v1186_v13 = vrot.slane %v16493_v46, 2 }
 0x16d   :  { %1948 = vrot.lane.b32.xlu1 %v16210_v7, %s15846_s20  ;;  %1462 = vrot.lane.b32.xlu0 %v16226_v8, %s15844_s16  ;;  %v92_v7 = vld [vmem:[%s24803_s0 + $0xf8] sm:$0xff] }
 0x16e   :  { %13825 = vmatmul.mubr.msk.f32.gmra.mrb[62].mxu0 %vm117_vm3, %v92_v7  ;;  %v16550_v7 = vsel %vm2628_vm8, %v2683_v28, %v2687_v34 }
 0x16f   :  { %v16496_v49 = vpop.permute.xlu0 %1244  ;;  %537 = vmatprep.mubr.f32.mxu0 %v24818_v0  ;;  %24882 = vst [vmem:[#allocation14_spill] sm:$0xff] %v16550_v7  ;;  %v16557_v0 = vpop.f32.mrb[40].mxu0 }
 0x170   :  { %699 = vst [vmem:[#allocation2 + $0x140] sm:$0xff] %v16557_v0  ;;  %v1188_v7 = vrot.slane %v16557_v0, 2  ;;  %v900_v48 = vrot.slane %v16557_v0, 1  ;;  %v2691_v4 = vrot.slane %v16557_v0, 4 }
 0x171   :  { %1260 = vrot.lane.b32.xlu1 %v16204_v3, %s15843_s30  ;;  %2350 = vrot.lane.b32.xlu0 %v16229_v24, %s15848_s23 }
 0x172   :  { %v16604_v35 = vsel %vm2628_vm8, %v2687_v34, %v2691_v4 }
 0x173   :  { %v16509_v42 = vpop.permute.xlu0 %1246  ;;  %v16511_v1 = vpop.permute.xlu1 %1448  ;;  %24886 = vst [vmem:[#allocation17_spill] sm:$0xff] %v16604_v35 }
 0x175   :  { %2837 = vrot.lane.b32.xlu1 %v2650_v2, %s15849_s24  ;;  %1662 = vrot.lane.b32.xlu0 %v16223_v23, %s15845_s19 }
 0x177   :  { %v16518_v16 = vpop.permute.xlu1 %1648  ;;  %v16520_v3 = vpop.permute.xlu0 %960 }
 0x179   :  { %2839 = vrot.lane.b32.xlu1 %v16232_v25, %s15849_s24  ;;  %974 = vrot.lane.b32.xlu0 %v16226_v8, %s15842_s1  ;;  %v16538_v25 = vld [vmem:[#allocation2 + $0xa8] sm:$0xff]  ;;  %v16541_v8 = vsel %vm1148_vm6, %v1184_v54, %v1186_v13  ;;  %v469_v54 = vpop.f32.mrb[41].mxu0 }
 0x17a   :  { %24879 = vst [vmem:[#allocation11_spill] sm:$0xff] %v16541_v8  ;;  %v2653_v2 = vrot.slane %v16538_v25, 4  ;;  %700 = vst.msk [vmem:[#allocation2 + $0x148] sm:$0xff] %vm659_vm4, %v469_v54  ;;  %v93_v25 = vld [vmem:[%s24803_s0 + $0x100] sm:$0xff]  ;;  %v24883_v54 = vmov 0.0   ;;  %v16598_v8 = vsel %vm860_vm5, %v898_v56, %v900_v48  ;;  %v1097_v56 = vadd.f32 %v16487_v43, %v16076_v31 }
 0x17b   :  { %v16526_v10 = vpop.permute.xlu1 %1248  ;;  %v16528_v19 = vpop.permute.xlu0 %1936  ;;  %13826 = vmatmul.mubr.msk.f32.gmra.mrb[64].mxu0 %vm117_vm3, %v93_v25  ;;  %v1876_v25 = vrot.slane %v16557_v0, 3  ;;  %24884 = vst [vmem:[#allocation15_spill] sm:$0xff] %v16598_v8  ;;  %v94_v8 = vld [vmem:[%s24803_s0 + $0x108] sm:$0xff] }
 0x17c   :  { %v2654_v28 = vsel %vm2628_vm8, %v2649_v62, %v2653_v2  ;;  %543 = vmatprep.mubr.f32.mxu0 %v24883_v54 }
 0x17d   :  { %1950 = vrot.lane.b32.xlu0 %v16229_v24, %s15846_s20  ;;  %2152 = vrot.lane.b32.xlu1 %v16247_v5, %s15847_s21  ;;  %v16601_v38 = vsel %vm1840_vm7, %v1874_v20, %v1876_v25 }
 0x17e   :  { %24885 = vst [vmem:[#allocation16_spill] sm:$0xff] %v16601_v38 }
 0x17f   :  { %v16552_v46 = vpop.permute.xlu0 %1650  ;;  %v16554_v24 = vpop.permute.xlu1 %1450  ;;  %13827 = vmatmul.mubr.msk.f32.gmra.mrb[66].mxu0 %vm117_vm3, %v94_v8 }
 0x180   :  { %549 = vmatprep.mubr.f32.mxu0 %v24883_v54 }
 0x181   :  { %1262 = vrot.lane.b32.xlu0 %v16223_v23, %s15843_s30  ;;  %1464 = vrot.lane.b32.xlu1 %v16250_v40, %s15844_s16 }
 0x183   :  { %v16565_v26 = vpop.permute.xlu0 %962  ;;  %v2141_v12 = vpop.permute.xlu1 %2140 }
 0x185   :  { %2841 = vrot.lane.b32.xlu0 %v2654_v28, %s15849_s24  ;;  %2352 = vrot.lane.b32.xlu1 %v16253_v41, %s15848_s23 }
 0x187   :  { %v16575_v23 = vpop.permute.xlu0 %1938  ;;  %v16577_v60 = vpop.permute.xlu1 %1452 }
 0x189   :  { %2843 = vrot.lane.b32.xlu0 %v16256_v45, %s15849_s24  ;;  %1664 = vrot.lane.b32.xlu1 %v16247_v5, %s15845_s19  ;;  %v16595_v45 = vsel %vm1148_vm6, %v1186_v13, %v1188_v7  ;;  %v16614_v13 = vpop.f32.mrb[42].mxu0 }
 0x18a   :  { %701 = vst [vmem:[#allocation2 + $0x150] sm:$0xff] %v16614_v13  ;;  %v475_v20 = vpop.f32.mrb[43].mxu0 }
 0x18b   :  { %v16584_v62 = vpop.permute.xlu0 %1250  ;;  %v2341_v28 = vpop.permute.xlu1 %2340  ;;  %702 = vst.msk [vmem:[#allocation2 + $0x158] sm:$0xff] %vm659_vm4, %v475_v20 }
 0x18d   :  { %976 = vrot.lane.b32.xlu1 %v16250_v40, %s15842_s1  ;;  %2154 = vrot.lane.b32.xlu0 %v16268_v52, %s15847_s21  ;;  %v16612_v40 = vld [vmem:[#allocation2 + $0xb8] sm:$0xff] }
 0x18e   :  { %v2657_v38 = vrot.slane %v16612_v40, 4 }
 0x18f   :  { %v2820_v9 = vpop.permute.xlu0 %2819  ;;  %v16606_v0 = vpop.permute.xlu1 %1652 }
 0x190   :  { %v2658_v40 = vsel %vm2628_vm8, %v2653_v2, %v2657_v38 }
 0x191   :  { %1952 = vrot.lane.b32.xlu1 %v16253_v41, %s15846_s20  ;;  %1466 = vrot.lane.b32.xlu0 %v16271_v53, %s15844_s16  ;;  %v1385_v41 = vadd.f32 %v16496_v49, %v1097_v56 }
 0x193   :  { %v16619_v34 = vpop.permute.xlu1 %964  ;;  %v16621_v35 = vpop.permute.xlu0 %2142  ;;  %v1589_v31 = vadd.f32 %v16511_v1, %v1385_v41 }
 0x195   :  { %1264 = vrot.lane.b32.xlu1 %v16247_v5, %s15843_s30  ;;  %2354 = vrot.lane.b32.xlu0 %v16274_v58, %s15848_s23  ;;  %v1789_v49 = vadd.f32 %v16518_v16, %v1589_v31  ;;  %v1190_v31 = vrot.slane %v16614_v13, 2 }
 0x197   :  { %v16635_v43 = vpop.permute.xlu1 %1940  ;;  %v16637_v20 = vpop.permute.xlu0 %1454  ;;  %v2077_v5 = vadd.f32 %v16528_v19, %v1789_v49  ;;  %v2695_v19 = vrot.slane %v16614_v13, 4  ;;  %v1878_v49 = vrot.slane %v16614_v13, 3 }
 0x199   :  { %2845 = vrot.lane.b32.xlu1 %v2658_v40, %s15849_s24  ;;  %1666 = vrot.lane.b32.xlu0 %v16268_v52, %s15845_s19  ;;  %v2281_v56 = vadd.f32 %v2141_v12, %v2077_v5  ;;  %v902_v40 = vrot.slane %v16614_v13, 1  ;;  %v1098_v12 = vadd.f32 %v16498_v44, %v16079_v33  ;;  %v16670_v5 = vld [vmem:[#allocation2 + $0xc8] sm:$0xff]  ;;  %v16673_v13 = vsel %vm1148_vm6, %v1188_v7, %v1190_v31 }
 0x19a   :  { %v2661_v7 = vrot.slane %v16670_v5, 4 }
 0x19b   :  { %v16646_v1 = vpop.permute.xlu1 %1252  ;;  %v2343_v8 = vpop.permute.xlu0 %2342  ;;  %v2481_v16 = vadd.f32 %v2341_v28, %v2281_v56  ;;  %v16676_v33 = vsel %vm860_vm5, %v900_v48, %v902_v40  ;;  %v1386_v44 = vadd.f32 %v16509_v42, %v1098_v12  ;;  %v16680_v56 = vsel %vm2628_vm8, %v2691_v4, %v2695_v19  ;;  %v95_v12 = vld [vmem:[%s24803_s0 + $0x110] sm:$0xff] }
 0x19c   :  { %24887 = vst [vmem:[#allocation18_spill] sm:$0xff] %v16676_v33  ;;  %v16690_v48 = vpop.f32.mrb[44].mxu0  ;;  %13828 = vmatmul.mubr.msk.f32.gmra.mrb[68].mxu0 %vm117_vm3, %v95_v12 }
 0x19d   :  { %2847 = vrot.lane.b32.xlu1 %v16277_v59, %s15849_s24  ;;  %978 = vrot.lane.b32.xlu0 %v16271_v53, %s15842_s1  ;;  %v16663_v53 = vld [vmem:[%s24806_s3] ss:$0 sm:$0xff]  ;;  %703 = vst [vmem:[#allocation2 + $0x160] sm:$0xff] %v16690_v48  ;;  %v481_v42 = vpop.f32.mrb[45].mxu0 }
 0x19e   :  { %704 = vst.msk [vmem:[#allocation2 + $0x168] sm:$0xff] %vm659_vm4, %v481_v42  ;;  %555 = vmatprep.mubr.f32.mxu0 %v24883_v54  ;;  %v904_v42 = vrot.slane %v16690_v48, 1 }
 0x19f   :  { %v2822_v2 = vpop.permute.xlu1 %2821  ;;  %v16652_v41 = vpop.permute.xlu0 %1654 }
 0x1a0   :  { %v3008_v59 = vsel %vm3007_vm10, %v2820_v9, %v2822_v2  ;;  %v16683_v9 = vsel %vm1840_vm7, %v1876_v25, %v1878_v49 }
 0x1a1   :  { %v3102_v28 = vadd.f32 %v3008_v59, %v2481_v16  ;;  %1954 = vrot.lane.b32.xlu0 %v16274_v58, %s15846_s20  ;;  %2156 = vrot.lane.b32.xlu1 %v16306_v21, %s15847_s21  ;;  %v1590_v59 = vadd.f32 %v16554_v24, %v1386_v44 }
 0x1a3   :  { %v3156_v58 = vadd.f32 %v16663_v53, %v3102_v28  ;;  %v2824_v16 = vpop.permute.xlu1 %2823  ;;  %v16686_v2 = vpop.permute.xlu0 %966  ;;  %v1790_v25 = vadd.f32 %v16552_v46, %v1590_v59 }
 0x1a5   :  { %v3203_v33 = vmax.f32 %v3156_v58, 0.0  ;;  %1266 = vrot.lane.b32.xlu0 %v16268_v52, %s15843_s30  ;;  %1468 = vrot.lane.b32.xlu1 %v16316_v29, %s15844_s16  ;;  %v2662_v52 = vsel %vm2628_vm8, %v2657_v38, %v2661_v7  ;;  %v2078_v28 = vadd.f32 %v16575_v23, %v1790_v25  ;;  %v1192_v23 = vrot.slane %v16690_v48, 2 }
 0x1a6   :  { %v1880_v25 = vrot.slane %v16690_v48, 3 }
 0x1a7   :  { %13849 = vmatmul.mubr.msk.f32.vlgmr.msra.gmra.mrb[4].mxu1 %vm3254_vm11, %v3203_v33  ;;  %v16699_v4 = vpop.permute.xlu0 %1942  ;;  %v16701_v24 = vpop.permute.xlu1 %2144  ;;  %v2282_v38 = vadd.f32 %v16621_v35, %v2078_v28 }
 0x1a8   :  { %3472 = vmatprep.mubr.f32.mxu1 %v24883_v54  ;;  %v16744_v28 = vsel %vm1840_vm7, %v1878_v49, %v1880_v25 }
 0x1a9   :  { %2849 = vrot.lane.b32.xlu0 %v2662_v52, %s15849_s24  ;;  %2356 = vrot.lane.b32.xlu1 %v16319_v30, %s15848_s23  ;;  %v2482_v44 = vadd.f32 %v2343_v8, %v2282_v38  ;;  %v2699_v52 = vrot.slane %v16690_v48, 4  ;;  %v16739_v8 = vsel %vm860_vm5, %v902_v40, %v904_v42  ;;  %v16758_v40 = vpop.f32.mrb[46].mxu0 }
 0x1aa   :  { %705 = vst [vmem:[#allocation2 + $0x170] sm:$0xff] %v16758_v40  ;;  %v487_v49 = vpop.f32.mrb[47].mxu0 }
 0x1ab   :  { %v16716_v46 = vpop.permute.xlu0 %1254  ;;  %v16718_v33 = vpop.permute.xlu1 %1456  ;;  %706 = vst.msk [vmem:[#allocation2 + $0x178] sm:$0xff] %vm659_vm4, %v487_v49 }
 0x1ad   :  { %2851 = vrot.lane.b32.xlu0 %v16325_v17, %s15849_s24  ;;  %1668 = vrot.lane.b32.xlu1 %v16306_v21, %s15845_s19  ;;  %v16736_v17 = vsel %vm1148_vm6, %v1190_v31, %v1192_v23  ;;  %v16756_v31 = vld [vmem:[#allocation2 + $0xd8] sm:$0xff] }
 0x1af   :  { %v2826_v58 = vpop.permute.xlu0 %2825  ;;  %v2345_v59 = vpop.permute.xlu1 %2344 }
 0x1b0   :  { %v3009_v12 = vsel %vm3007_vm10, %v2824_v16, %v2826_v58  ;;  %v16747_v16 = vsel %vm2628_vm8, %v2695_v19, %v2699_v52  ;;  %v1099_v19 = vadd.f32 %v16520_v3, %v16084_v36  ;;  %v96_v36 = vld [vmem:[%s24803_s0 + $0x118] sm:$0xff] }
 0x1b1   :  { %v3103_v35 = vadd.f32 %v3009_v12, %v2482_v44  ;;  %980 = vrot.lane.b32.xlu1 %v16316_v29, %s15842_s1  ;;  %2158 = vrot.lane.b32.xlu0 %v16332_v50, %s15847_s21 }
 0x1b2   :  { %13829 = vmatmul.mubr.msk.f32.gmra.mrb[70].mxu0 %vm117_vm3, %v96_v36  ;;  %v1194_v36 = vrot.slane %v16758_v40, 2 }
 0x1b3   :  { %v3157_v38 = vadd.f32 %v16663_v53, %v3103_v35  ;;  %v2828_v29 = vpop.permute.xlu0 %2827  ;;  %v16750_v44 = vpop.permute.xlu1 %1656  ;;  %561 = vmatprep.mubr.f32.mxu0 %v24883_v54 }
 0x1b5   :  { %v3204_v58 = vmax.f32 %v3157_v38, 0.0  ;;  %1956 = vrot.lane.b32.xlu1 %v16319_v30, %s15846_s20  ;;  %1470 = vrot.lane.b32.xlu0 %v16335_v61, %s15844_s16  ;;  %v1387_v30 = vadd.f32 %v16526_v10, %v1099_v19  ;;  %v2665_v38 = vrot.slane %v16756_v31, 4 }
 0x1b7   :  { %13850 = vmatmul.mubr.msk.f32.gmra.mrb[6].mxu1 %vm3254_vm11, %v3204_v58  ;;  %v16764_v12 = vpop.permute.xlu1 %968  ;;  %v16766_v35 = vpop.permute.xlu0 %2146  ;;  %v1591_v3 = vadd.f32 %v16577_v60, %v1387_v30  ;;  %v2666_v19 = vsel %vm2628_vm8, %v2661_v7, %v2665_v38 }
 0x1b8   :  { %3478 = vmatprep.mubr.f32.mxu1 %v24883_v54 }
 0x1b9   :  { %1268 = vrot.lane.b32.xlu1 %v16306_v21, %s15843_s30  ;;  %2358 = vrot.lane.b32.xlu0 %v16338_v51, %s15848_s23  ;;  %v1791_v31 = vadd.f32 %v16606_v0, %v1591_v3  ;;  %v906_v3 = vrot.slane %v16758_v40, 1 }
 0x1bb   :  { %v16781_v58 = vpop.permute.xlu1 %1944  ;;  %v16783_v10 = vpop.permute.xlu0 %1458  ;;  %v2079_v60 = vadd.f32 %v16635_v43, %v1791_v31  ;;  %v2703_v43 = vrot.slane %v16758_v40, 4  ;;  %v1882_v31 = vrot.slane %v16758_v40, 3 }
 0x1bd   :  { %2853 = vrot.lane.b32.xlu1 %v2666_v19, %s15849_s24  ;;  %1670 = vrot.lane.b32.xlu0 %v16332_v50, %s15845_s19  ;;  %v2283_v30 = vadd.f32 %v16701_v24, %v2079_v60  ;;  %v15730_v60 = vld [vmem:[#allocation2 + $0x30] sm:$0xff] }
 0x1be   :  { %v1100_v40 = vadd.f32 %v15730_v60, %v16565_v26 }
 0x1bf   :  { %v16794_v21 = vpop.permute.xlu1 %1256  ;;  %v2347_v49 = vpop.permute.xlu0 %2346  ;;  %v2483_v0 = vadd.f32 %v2345_v59, %v2283_v30  ;;  %v16818_v59 = vsel %vm860_vm5, %v904_v42, %v906_v3 }
 0x1c1   :  { %2855 = vrot.lane.b32.xlu1 %v16345_v63, %s15849_s24  ;;  %982 = vrot.lane.b32.xlu0 %v16335_v61, %s15842_s1  ;;  %v16812_v61 = vld [vmem:[#allocation2 + $0xe8] sm:$0xff]  ;;  %v16815_v63 = vsel %vm1148_vm6, %v1192_v23, %v1194_v36  ;;  %v1388_v23 = vadd.f32 %v16584_v62, %v1100_v40 }
 0x1c2   :  { %v2669_v42 = vrot.slane %v16812_v61, 4 }
 0x1c3   :  { %v2830_v5 = vpop.permute.xlu1 %2829  ;;  %v16801_v7 = vpop.permute.xlu0 %1658 }
 0x1c4   :  { %v3010_v24 = vsel %vm3007_vm10, %v2828_v29, %v2830_v5  ;;  %v16822_v29 = vsel %vm2628_vm8, %v2699_v52, %v2703_v43 }
 0x1c5   :  { %v3104_v19 = vadd.f32 %v3010_v24, %v2483_v0  ;;  %1958 = vrot.lane.b32.xlu0 %v16338_v51, %s15846_s20  ;;  %2160 = vrot.lane.b32.xlu1 %v16363_v14, %s15847_s21  ;;  %v16827_v51 = vsel %vm1840_vm7, %v1880_v25, %v1882_v31  ;;  %v16834_v24 = vpop.f32.mrb[48].mxu0  ;;  %v1592_v25 = vadd.f32 %v16637_v20, %v1388_v23  ;;  %v97_v20 = vld [vmem:[%s24803_s0 + $0x120] sm:$0xff] }
 0x1c6   :  { %707 = vst [vmem:[#allocation2 + $0x180] sm:$0xff] %v16834_v24  ;;  %v493_v48 = vpop.f32.mrb[49].mxu0  ;;  %13830 = vmatmul.mubr.msk.f32.gmra.mrb[72].mxu0 %vm117_vm3, %v97_v20 }
 0x1c7   :  { %v3158_v30 = vadd.f32 %v16663_v53, %v3104_v19  ;;  %v2832_v0 = vpop.permute.xlu1 %2831  ;;  %v16830_v5 = vpop.permute.xlu0 %970  ;;  %708 = vst.msk [vmem:[#allocation2 + $0x188] sm:$0xff] %vm659_vm4, %v493_v48  ;;  %v1792_v19 = vadd.f32 %v16652_v41, %v1592_v25  ;;  %567 = vmatprep.mubr.f32.mxu0 %v24883_v54  ;;  %v908_v48 = vrot.slane %v16834_v24, 1  ;;  %v1884_v25 = vrot.slane %v16834_v24, 3 }
 0x1c9   :  { %v3205_v26 = vmax.f32 %v3158_v30, 0.0  ;;  %1270 = vrot.lane.b32.xlu0 %v16332_v50, %s15843_s30  ;;  %1472 = vrot.lane.b32.xlu1 %v16366_v18, %s15844_s16  ;;  %v2670_v50 = vsel %vm2628_vm8, %v2665_v38, %v2669_v42  ;;  %v2080_v60 = vadd.f32 %v16699_v4, %v1792_v19  ;;  %v1196_v4 = vrot.slane %v16834_v24, 2 }
 0x1ca   :  { %v2707_v19 = vrot.slane %v16834_v24, 4  ;;  %v16889_v20 = vsel %vm1840_vm7, %v1882_v31, %v1884_v25  ;;  %v16905_v31 = vpop.f32.mrb[50].mxu0 }
 0x1cb   :  { %13851 = vmatmul.mubr.msk.f32.gmra.mrb[8].mxu1 %vm3254_vm11, %v3205_v26  ;;  %v16844_v62 = vpop.permute.xlu0 %1946  ;;  %v16846_v52 = vpop.permute.xlu1 %2148  ;;  %v2284_v38 = vadd.f32 %v16766_v35, %v2080_v60  ;;  %709 = vst [vmem:[#allocation2 + $0x190] sm:$0xff] %v16905_v31 }
 0x1cc   :  { %3484 = vmatprep.mubr.f32.mxu1 %v24883_v54 }
 0x1cd   :  { %2857 = vrot.lane.b32.xlu0 %v2670_v50, %s15849_s24  ;;  %2360 = vrot.lane.b32.xlu1 %v16369_v37, %s15848_s23  ;;  %v2484_v30 = vadd.f32 %v2347_v49, %v2284_v38  ;;  %v16884_v49 = vsel %vm860_vm5, %v906_v3, %v908_v48  ;;  %v16903_v3 = vld [vmem:[#allocation2 + $0xf8] sm:$0xff] }
 0x1cf   :  { %v16861_v41 = vpop.permute.xlu0 %1258  ;;  %v16863_v40 = vpop.permute.xlu1 %1460 }
 0x1d1   :  { %2859 = vrot.lane.b32.xlu0 %v16372_v32, %s15849_s24  ;;  %1672 = vrot.lane.b32.xlu1 %v16363_v14, %s15845_s19  ;;  %v16881_v32 = vsel %vm1148_vm6, %v1194_v36, %v1196_v4 }
 0x1d3   :  { %v2834_v23 = vpop.permute.xlu0 %2833  ;;  %v2349_v26 = vpop.permute.xlu1 %2348 }
 0x1d4   :  { %v3011_v50 = vsel %vm3007_vm10, %v2832_v0, %v2834_v23  ;;  %v16894_v0 = vsel %vm2628_vm8, %v2703_v43, %v2707_v19  ;;  %v499_v23 = vpop.f32.mrb[51].mxu0 }
 0x1d5   :  { %v3105_v35 = vadd.f32 %v3011_v50, %v2484_v30  ;;  %984 = vrot.lane.b32.xlu1 %v16366_v18, %s15842_s1  ;;  %2162 = vrot.lane.b32.xlu0 %v16397_v39, %s15847_s21  ;;  %v15731_v30 = vld [vmem:[#allocation2 + $0x40] sm:$0xff]  ;;  %710 = vst.msk [vmem:[#allocation2 + $0x198] sm:$0xff] %vm659_vm4, %v499_v23 }
 0x1d6   :  { %v1101_v43 = vadd.f32 %v15731_v30, %v16619_v34  ;;  %v98_v34 = vld [vmem:[%s24803_s0 + $0x128] sm:$0xff] }
 0x1d7   :  { %v3159_v18 = vadd.f32 %v16663_v53, %v3105_v35  ;;  %v2836_v60 = vpop.permute.xlu0 %2835  ;;  %v16897_v38 = vpop.permute.xlu1 %1660  ;;  %13831 = vmatmul.mubr.msk.f32.gmra.mrb[74].mxu0 %vm117_vm3, %v98_v34  ;;  %v1198_v34 = vrot.slane %v16905_v31, 2 }
 0x1d8   :  { %573 = vmatprep.mubr.f32.mxu0 %v24883_v54 }
 0x1d9   :  { %v3206_v36 = vmax.f32 %v3159_v18, 0.0  ;;  %1960 = vrot.lane.b32.xlu1 %v16369_v37, %s15846_s20  ;;  %1474 = vrot.lane.b32.xlu0 %v16400_v6, %s15844_s16  ;;  %v1389_v37 = vadd.f32 %v16646_v1, %v1101_v43  ;;  %v2673_v18 = vrot.slane %v16903_v3, 4 }
 0x1db   :  { %13852 = vmatmul.mubr.msk.f32.gmra.mrb[10].mxu1 %vm3254_vm11, %v3206_v36  ;;  %v16910_v50 = vpop.permute.xlu1 %972  ;;  %v16912_v35 = vpop.permute.xlu0 %2150  ;;  %v1593_v36 = vadd.f32 %v16718_v33, %v1389_v37  ;;  %v2674_v43 = vsel %vm2628_vm8, %v2669_v42, %v2673_v18 }
 0x1dc   :  { %3490 = vmatprep.mubr.f32.mxu1 %v24883_v54 }
 0x1dd   :  { %1272 = vrot.lane.b32.xlu1 %v16363_v14, %s15843_s30  ;;  %2362 = vrot.lane.b32.xlu0 %v16403_v47, %s15848_s23  ;;  %v1793_v3 = vadd.f32 %v16750_v44, %v1593_v36  ;;  %v910_v36 = vrot.slane %v16905_v31, 1 }
 0x1df   :  { %v16927_v30 = vpop.permute.xlu1 %1948  ;;  %v16929_v1 = vpop.permute.xlu0 %1462  ;;  %v2081_v14 = vadd.f32 %v16781_v58, %v1793_v3  ;;  %v2711_v58 = vrot.slane %v16905_v31, 4  ;;  %v1886_v3 = vrot.slane %v16905_v31, 3 }
 0x1e1   :  { %2861 = vrot.lane.b32.xlu1 %v2674_v43, %s15849_s24  ;;  %1674 = vrot.lane.b32.xlu0 %v16397_v39, %s15845_s19  ;;  %v2285_v37 = vadd.f32 %v16846_v52, %v2081_v14  ;;  %v15732_v14 = vld [vmem:[#allocation2 + $0x50] sm:$0xff]  ;;  %v16990_v24 = vpop.f32.mrb[52].mxu0 }
 0x1e2   :  { %711 = vst [vmem:[#allocation2 + $0x1a0] sm:$0xff] %v16990_v24 }
 0x1e3   :  { %v16940_v33 = vpop.permute.xlu1 %1260  ;;  %v2351_v23 = vpop.permute.xlu0 %2350  ;;  %v2485_v44 = vadd.f32 %v2349_v26, %v2285_v37  ;;  %v16964_v26 = vsel %vm860_vm5, %v908_v48, %v910_v36  ;;  %v1102_v37 = vadd.f32 %v15732_v14, %v16686_v2 }
 0x1e5   :  { %2863 = vrot.lane.b32.xlu1 %v16406_v22, %s15849_s24  ;;  %986 = vrot.lane.b32.xlu0 %v16400_v6, %s15842_s1  ;;  %v16958_v6 = vld [vmem:[#allocation2 + $0x108] sm:$0xff]  ;;  %v16961_v22 = vsel %vm1148_vm6, %v1196_v4, %v1198_v34  ;;  %v16979_v4 = vsel %vm1840_vm7, %v1884_v25, %v1886_v3  ;;  %v1390_v2 = vadd.f32 %v16716_v46, %v1102_v37 }
 0x1e7   :  { %v2838_v61 = vpop.permute.xlu1 %2837  ;;  %v16947_v42 = vpop.permute.xlu0 %1662  ;;  %v1594_v25 = vadd.f32 %v16783_v10, %v1390_v2  ;;  %v99_v10 = vld [vmem:[%s24803_s0 + $0x130] sm:$0xff] }
 0x1e8   :  { %v3012_v52 = vsel %vm3007_vm10, %v2836_v60, %v2838_v61  ;;  %v2677_v61 = vrot.slane %v16958_v6, 4  ;;  %13832 = vmatmul.mubr.msk.f32.gmra.mrb[76].mxu0 %vm117_vm3, %v99_v10  ;;  %v647_v2 = vpop.f32.mrb[0].mxu1  ;;  %v24831_v10 = vrot.slane %v16990_v24, 4 }
 0x1e9   :  { %v3106_v43 = vadd.f32 %v3012_v52, %v2485_v44  ;;  %1962 = vrot.lane.b32.xlu0 %v16403_v47, %s15846_s20  ;;  %2164 = vrot.lane.b32.xlu1 %v16435_v15, %s15847_s21  ;;  %v16972_v47 = vsel %vm2628_vm8, %v2707_v19, %v2711_v58  ;;  %v505_v19 = vpop.f32.mrb[53].mxu0  ;;  %759 = vst [vmem:[#allocation2 + $0x320] sm:$0xff] %v647_v2 }
 0x1ea   :  { %712 = vst.msk [vmem:[#allocation2 + $0x1a8] sm:$0xff] %vm659_vm4, %v505_v19  ;;  %v2678_v14 = vsel %vm2628_vm8, %v2673_v18, %v2677_v61  ;;  %579 = vmatprep.mubr.f32.mxu0 %v24883_v54 }
 0x1eb   :  { %v3160_v48 = vadd.f32 %v16663_v53, %v3106_v43  ;;  %v2840_v60 = vpop.permute.xlu1 %2839  ;;  %v16982_v44 = vpop.permute.xlu0 %974 }
 0x1ed   :  { %v3207_v52 = vmax.f32 %v3160_v48, 0.0  ;;  %1274 = vrot.lane.b32.xlu0 %v16397_v39, %s15843_s30  ;;  %1476 = vrot.lane.b32.xlu1 %v16438_v11, %s15844_s16  ;;  %v1794_v39 = vadd.f32 %v16801_v7, %v1594_v25 }
 0x1ef   :  { %13853 = vmatmul.mubr.msk.f32.gmra.mrb[12].mxu1 %vm3254_vm11, %v3207_v52  ;;  %v16995_v43 = vpop.permute.xlu0 %1950  ;;  %v16997_v46 = vpop.permute.xlu1 %2152  ;;  %v2082_v37 = vadd.f32 %v16844_v62, %v1794_v39  ;;  %v1200_v39 = vrot.slane %v16990_v24, 2 }
 0x1f0   :  { %3496 = vmatprep.mubr.f32.mxu1 %v24883_v54  ;;  %v649_v62 = vpop.f32.mrb[1].mxu1 }
 0x1f1   :  { %2865 = vrot.lane.b32.xlu0 %v2678_v14, %s15849_s24  ;;  %2364 = vrot.lane.b32.xlu1 %v16441_v57, %s15848_s23  ;;  %v2286_v18 = vadd.f32 %v16912_v35, %v2082_v37  ;;  %760 = vst.msk [vmem:[#allocation2 + $0x328] sm:$0xff] %vm659_vm4, %v649_v62  ;;  %v912_v14 = vrot.slane %v16990_v24, 1  ;;  %v24830_v35 = vrot.slane %v16990_v24, 3 }
 0x1f3   :  { %v17013_v7 = vpop.permute.xlu0 %1262  ;;  %v17015_v48 = vpop.permute.xlu1 %1464  ;;  %v2486_v52 = vadd.f32 %v2351_v23, %v2286_v18  ;;  %v17036_v18 = vsel %vm1148_vm6, %v1198_v34, %v1200_v39  ;;  %v17041_v2 = vsel %vm860_vm5, %v910_v36, %v912_v14  ;;  %v17055_v34 = vsel %vm2628_vm8, %v2711_v58, %v24831_v10  ;;  %v15733_v58 = vld [vmem:[#allocation2 + $0x60] sm:$0xff]  ;;  %v24891_v10 = vld [vmem:[#allocation10_spill] sm:$0xff] }
 0x1f4   :  { %v653_v23 = vpop.f32.mrb[2].mxu1  ;;  %24888 = vst [vmem:[#allocation19_spill] sm:$0xff] %v17055_v34 }
 0x1f5   :  { %2867 = vrot.lane.b32.xlu0 %v16444_v55, %s15849_s24  ;;  %1676 = vrot.lane.b32.xlu1 %v16435_v15, %s15845_s19  ;;  %761 = vst [vmem:[#allocation2 + $0x330] sm:$0xff] %v653_v23  ;;  %v1103_v23 = vadd.f32 %v15733_v58, %v16764_v12  ;;  %v24890_v12 = vld [vmem:[#allocation9_spill] sm:$0xff] }
 0x1f7   :  { %v2842_v25 = vpop.permute.xlu0 %2841  ;;  %v2353_v19 = vpop.permute.xlu1 %2352 }
 0x1f8   :  { %v3013_v55 = vsel %vm3007_vm10, %v2840_v60, %v2842_v25  ;;  %v655_v60 = vpop.f32.mrb[3].mxu1 }
 0x1f9   :  { %v3107_v37 = vadd.f32 %v3013_v55, %v2486_v52  ;;  %988 = vrot.lane.b32.xlu1 %v16438_v11, %s15842_s1  ;;  %2166 = vrot.lane.b32.xlu0 %v16476_v27, %s15847_s21  ;;  %v17048_v11 = vsel %vm1840_vm7, %v1886_v3, %v24830_v35  ;;  %762 = vst.msk [vmem:[#allocation2 + $0x338] sm:$0xff] %vm659_vm4, %v655_v60  ;;  %v24889_v3 = vld [vmem:[#allocation8_spill] sm:$0xff]  ;;  %v17065_v55 = vld [vmem:[#allocation2 + $0x118] sm:$0xff]  ;;  %v17067_v31 = vpop.f32.mrb[54].mxu0 }
 0x1fa   :  { %713 = vst [vmem:[#allocation2 + $0x1b0] sm:$0xff] %v17067_v31  ;;  %v2681_v35 = vrot.slane %v17065_v55, 4 }
 0x1fb   :  { %v3161_v52 = vadd.f32 %v16663_v53, %v3107_v37  ;;  %v2844_v36 = vpop.permute.xlu0 %2843  ;;  %v17058_v62 = vpop.permute.xlu1 %1664 }
 0x1fc   :  { %v511_v37 = vpop.f32.mrb[55].mxu0 }
 0x1fd   :  { %v3208_v25 = vmax.f32 %v3161_v52, 0.0  ;;  %1964 = vrot.lane.b32.xlu1 %v16441_v57, %s15846_s20  ;;  %1478 = vrot.lane.b32.xlu0 %v24889_v3, %s15844_s16  ;;  %714 = vst.msk [vmem:[#allocation2 + $0x1b8] sm:$0xff] %vm659_vm4, %v511_v37  ;;  %v1391_v57 = vadd.f32 %v16794_v21, %v1103_v23 }
 0x1ff   :  { %13854 = vmatmul.mubr.msk.f32.gmra.mrb[14].mxu1 %vm3254_vm11, %v3208_v25  ;;  %v17072_v60 = vpop.permute.xlu1 %976  ;;  %v17074_v52 = vpop.permute.xlu0 %2154  ;;  %v100_v25 = vld [vmem:[%s24803_s0 + $0x138] sm:$0xff]  ;;  %v1595_v58 = vadd.f32 %v16863_v40, %v1391_v57 }
 0x200   :  { %3502 = vmatprep.mubr.f32.mxu1 %v24883_v54  ;;  %13833 = vmatmul.mubr.msk.f32.gmra.mrb[78].mxu0 %vm117_vm3, %v100_v25 }
 0x201   :  { %1276 = vrot.lane.b32.xlu1 %v16435_v15, %s15843_s30  ;;  %2366 = vrot.lane.b32.xlu0 %v24890_v12, %s15848_s23  ;;  %v1795_v55 = vadd.f32 %v16897_v38, %v1595_v58  ;;  %v2682_v15 = vsel %vm2628_vm8, %v2677_v61, %v2681_v35  ;;  %v1202_v58 = vrot.slane %v17067_v31, 2 }
 0x202   :  { %585 = vmatprep.mubr.f32.mxu0 %v24883_v54 }
 0x203   :  { %v17089_v37 = vpop.permute.xlu1 %1952  ;;  %v17091_v21 = vpop.permute.xlu0 %1466  ;;  %v2083_v40 = vadd.f32 %v16927_v30, %v1795_v55  ;;  %v2719_v30 = vrot.slane %v17067_v31, 4  ;;  %v1890_v55 = vrot.slane %v17067_v31, 3 }
 0x205   :  { %2869 = vrot.lane.b32.xlu1 %v2682_v15, %s15849_s24  ;;  %1678 = vrot.lane.b32.xlu0 %v16476_v27, %s15845_s19  ;;  %v2287_v25 = vadd.f32 %v16997_v46, %v2083_v40  ;;  %v914_v15 = vrot.slane %v17067_v31, 1 }
 0x207   :  { %v17102_v23 = vpop.permute.xlu1 %1264  ;;  %v2355_v57 = vpop.permute.xlu0 %2354  ;;  %v2487_v38 = vadd.f32 %v2353_v19, %v2287_v25  ;;  %v17120_v19 = vld [vmem:[#allocation2 + $0x128] sm:$0xff]  ;;  %v17130_v31 = vsel %vm860_vm5, %v912_v14, %v914_v15 }
 0x208   :  { %24894 = vst [vmem:[#allocation9_spill] sm:$0xff] %v17130_v31  ;;  %v24834_v31 = vrot.slane %v17120_v19, 4 }
 0x209   :  { %2871 = vrot.lane.b32.xlu1 %v24891_v10, %s15849_s24  ;;  %990 = vrot.lane.b32.xlu0 %v24889_v3, %s15842_s1  ;;  %v24892_v10 = vld [vmem:[#allocation11_spill] sm:$0xff]  ;;  %v17125_v3 = vsel %vm1148_vm6, %v1200_v39, %v1202_v58 }
 0x20a   :  { %24893 = vst [vmem:[#allocation8_spill] sm:$0xff] %v17125_v3 }
 0x20b   :  { %v2846_v6 = vpop.permute.xlu1 %2845  ;;  %v17109_v61 = vpop.permute.xlu0 %1666 }
 0x20c   :  { %v3014_v46 = vsel %vm3007_vm10, %v2844_v36, %v2846_v6  ;;  %v15734_v36 = vld [vmem:[#allocation2 + $0x70] sm:$0xff]  ;;  %v24897_v6 = vrot.slane %v16990_v24, 3 }
 0x20d   :  { %v3108_v40 = vadd.f32 %v3014_v46, %v2487_v38  ;;  %1966 = vrot.lane.b32.xlu0 %v24890_v12, %s15846_s20  ;;  %2168 = vrot.lane.b32.xlu1 %v24892_v10, %s15847_s21  ;;  %v1104_v25 = vadd.f32 %v15734_v36, %v16830_v5  ;;  %v24895_v12 = vrot.slane %v16990_v24, 4  ;;  %v24899_v36 = vld [vmem:[#allocation12_spill] sm:$0xff]  ;;  %v17152_v24 = vpop.f32.mrb[56].mxu0 }
 0x20e   :  { %v17141_v46 = vsel %vm1840_vm7, %v24897_v6, %v1890_v55  ;;  %715 = vst [vmem:[#allocation2 + $0x1c0] sm:$0xff] %v17152_v24 }
 0x20f   :  { %v17136_v38 = vsel %vm2628_vm8, %v24895_v12, %v2719_v30  ;;  %24898 = vst [vmem:[#allocation11_spill] sm:$0xff] %v17141_v46  ;;  %v3162_v39 = vadd.f32 %v16663_v53, %v3108_v40  ;;  %v2848_v3 = vpop.permute.xlu1 %2847  ;;  %v17144_v34 = vpop.permute.xlu0 %978  ;;  %v1392_v14 = vadd.f32 %v16861_v41, %v1104_v25  ;;  %v2686_v25 = vsel %vm2628_vm8, %v2681_v35, %v24834_v31 }
 0x210   :  { %24896 = vst [vmem:[#allocation10_spill] sm:$0xff] %v17136_v38  ;;  %v517_v40 = vpop.f32.mrb[57].mxu0  ;;  %v24837_v46 = vrot.slane %v17152_v24, 4 }
 0x211   :  { %v3209_v5 = vmax.f32 %v3162_v39, 0.0  ;;  %1278 = vrot.lane.b32.xlu0 %v16476_v27, %s15843_s30  ;;  %1480 = vrot.lane.b32.xlu1 %v24899_v36, %s15844_s16  ;;  %v1596_v12 = vadd.f32 %v16929_v1, %v1392_v14  ;;  %716 = vst.msk [vmem:[#allocation2 + $0x1c8] sm:$0xff] %vm659_vm4, %v517_v40  ;;  %v24900_v1 = vld [vmem:[#allocation13_spill] sm:$0xff]  ;;  %v101_v39 = vld [vmem:[%s24803_s0 + $0x140] sm:$0xff] }
 0x212   :  { %13834 = vmatmul.mubr.msk.f32.gmra.mrb[80].mxu0 %vm117_vm3, %v101_v39  ;;  %v24836_v39 = vrot.slane %v17152_v24, 3 }
 0x213   :  { %13855 = vmatmul.mubr.msk.f32.gmra.mrb[16].mxu1 %vm3254_vm11, %v3209_v5  ;;  %v17157_v6 = vpop.permute.xlu0 %1954  ;;  %v17159_v41 = vpop.permute.xlu1 %2156  ;;  %v1796_v27 = vadd.f32 %v16947_v42, %v1596_v12  ;;  %591 = vmatprep.mubr.f32.mxu0 %v24883_v54  ;;  %v24901_v12 = vld [vmem:[#allocation14_spill] sm:$0xff] }
 0x214   :  { %3508 = vmatprep.mubr.f32.mxu1 %v24883_v54 }
 0x215   :  { %2873 = vrot.lane.b32.xlu0 %v2686_v25, %s15849_s24  ;;  %2368 = vrot.lane.b32.xlu1 %v24900_v1, %s15848_s23  ;;  %v2084_v14 = vadd.f32 %v16995_v43, %v1796_v27  ;;  %v24839_v43 = vrot.slane %v17152_v24, 2  ;;  %v24838_v27 = vrot.slane %v17152_v24, 1 }
 0x217   :  { %v17175_v42 = vpop.permute.xlu0 %1266  ;;  %v17177_v5 = vpop.permute.xlu1 %1468  ;;  %v2288_v35 = vadd.f32 %v17074_v52, %v2084_v14  ;;  %v17202_v14 = vsel %vm860_vm5, %v914_v15, %v24838_v27  ;;  %v24904_v15 = vld [vmem:[#allocation15_spill] sm:$0xff] }
 0x219   :  { %2875 = vrot.lane.b32.xlu0 %v24901_v12, %s15849_s24  ;;  %1680 = vrot.lane.b32.xlu1 %v24892_v10, %s15845_s19  ;;  %v2488_v40 = vadd.f32 %v2355_v57, %v2288_v35  ;;  %v17197_v57 = vsel %vm1148_vm6, %v1202_v58, %v24839_v43  ;;  %v24907_v43 = vld [vmem:[#allocation17_spill] sm:$0xff] }
 0x21b   :  { %v2850_v25 = vpop.permute.xlu0 %2849  ;;  %v2357_v31 = vpop.permute.xlu1 %2356 }
 0x21c   :  { %v3015_v38 = vsel %vm3007_vm10, %v2848_v3, %v2850_v25  ;;  %v17207_v3 = vsel %vm1840_vm7, %v1890_v55, %v24836_v39  ;;  %v17221_v55 = vpop.f32.mrb[58].mxu0  ;;  %v15735_v25 = vld [vmem:[#allocation2 + $0x80] sm:$0xff] }
 0x21d   :  { %v3109_v52 = vadd.f32 %v3015_v38, %v2488_v40  ;;  %992 = vrot.lane.b32.xlu1 %v24899_v36, %s15842_s1  ;;  %2170 = vrot.lane.b32.xlu0 %v16595_v45, %s15847_s21  ;;  %24902 = vst [vmem:[#allocation12_spill] sm:$0xff] %v17207_v3  ;;  %v17212_v38 = vsel %vm2628_vm8, %v2719_v30, %v24837_v46  ;;  %v2544_v40 = vld [vmem:[#allocation2 + $0x138] sm:$0xff]  ;;  %717 = vst [vmem:[#allocation2 + $0x1d0] sm:$0xff] %v17221_v55  ;;  %v523_v30 = vpop.f32.mrb[59].mxu0 }
 0x21e   :  { %24903 = vst [vmem:[#allocation13_spill] sm:$0xff] %v17212_v38  ;;  %v1105_v39 = vadd.f32 %v15735_v25, %v16910_v50  ;;  %718 = vst.msk [vmem:[#allocation2 + $0x1d8] sm:$0xff] %vm659_vm4, %v523_v30  ;;  %v2689_v46 = vrot.slane %v2544_v40, 4  ;;  %v24905_v50 = vld [vmem:[#allocation16_spill] sm:$0xff]  ;;  %v1894_v38 = vrot.slane %v17221_v55, 3 }
 0x21f   :  { %v3163_v36 = vadd.f32 %v16663_v53, %v3109_v52  ;;  %v2852_v35 = vpop.permute.xlu0 %2851  ;;  %v17215_v58 = vpop.permute.xlu1 %1668 }
 0x221   :  { %v3210_v12 = vmax.f32 %v3163_v36, 0.0  ;;  %1968 = vrot.lane.b32.xlu1 %v24900_v1, %s15846_s20  ;;  %1482 = vrot.lane.b32.xlu0 %v24904_v15, %s15844_s16  ;;  %v1393_v1 = vadd.f32 %v16940_v33, %v1105_v39 }
 0x223   :  { %13856 = vmatmul.mubr.msk.f32.gmra.mrb[18].mxu1 %vm3254_vm11, %v3210_v12  ;;  %v17226_v52 = vpop.permute.xlu1 %980  ;;  %v17228_v36 = vpop.permute.xlu0 %2158  ;;  %v102_v12 = vld [vmem:[%s24803_s0 + $0x148] sm:$0xff]  ;;  %v1597_v25 = vadd.f32 %v17015_v48, %v1393_v1 }
 0x224   :  { %3514 = vmatprep.mubr.f32.mxu1 %v24883_v54  ;;  %13835 = vmatmul.mubr.msk.f32.gmra.mrb[82].mxu0 %vm117_vm3, %v102_v12 }
 0x225   :  { %1280 = vrot.lane.b32.xlu1 %v24892_v10, %s15843_s30  ;;  %2370 = vrot.lane.b32.xlu0 %v24905_v50, %s15848_s23  ;;  %v1797_v39 = vadd.f32 %v17058_v62, %v1597_v25  ;;  %v24906_v10 = vrot.slane %v17120_v19, 4  ;;  %v2545_v62 = vld [vmem:[#allocation2 + $0x148] sm:$0xff] }
 0x226   :  { %597 = vmatprep.mubr.f32.mxu0 %v24883_v54 }
 0x227   :  { %v17242_v30 = vpop.permute.xlu1 %1956  ;;  %v17244_v33 = vpop.permute.xlu0 %1470  ;;  %v2690_v40 = vsel %vm2628_vm8, %v24906_v10, %v2689_v46  ;;  %v2085_v48 = vadd.f32 %v17089_v37, %v1797_v39  ;;  %v918_v37 = vrot.slane %v17221_v55, 1  ;;  %v2727_v39 = vrot.slane %v17221_v55, 4 }
 0x229   :  { %2877 = vrot.lane.b32.xlu1 %v2690_v40, %s15849_s24  ;;  %1682 = vrot.lane.b32.xlu0 %v16595_v45, %s15845_s19  ;;  %v2289_v27 = vadd.f32 %v17159_v41, %v2085_v48  ;;  %v1206_v40 = vrot.slane %v17221_v55, 2  ;;  %v2693_v48 = vrot.slane %v2545_v62, 4  ;;  %v15736_v55 = vld [vmem:[#allocation2 + $0x90] sm:$0xff]  ;;  %v24912_v62 = vrot.slane %v17152_v24, 4 }
 0x22b   :  { %v17255_v1 = vpop.permute.xlu1 %1268  ;;  %v2359_v12 = vpop.permute.xlu0 %2358  ;;  %v2489_v19 = vadd.f32 %v2357_v31, %v2289_v27  ;;  %v24908_v31 = vrot.slane %v17152_v24, 2 }
 0x22d   :  { %2879 = vrot.lane.b32.xlu1 %v24907_v43, %s15849_s24  ;;  %994 = vrot.lane.b32.xlu0 %v24904_v15, %s15842_s1  ;;  %v17276_v27 = vsel %vm1148_vm6, %v24908_v31, %v1206_v40  ;;  %v24910_v15 = vrot.slane %v17152_v24, 1 }
 0x22e   :  { %24909 = vst [vmem:[#allocation14_spill] sm:$0xff] %v17276_v27 }
 0x22f   :  { %v2854_v25 = vpop.permute.xlu1 %2853  ;;  %v17262_v10 = vpop.permute.xlu0 %1670  ;;  %v17281_v3 = vsel %vm860_vm5, %v24910_v15, %v918_v37 }
 0x230   :  { %v3016_v41 = vsel %vm3007_vm10, %v2852_v35, %v2854_v25  ;;  %24911 = vst [vmem:[#allocation15_spill] sm:$0xff] %v17281_v3  ;;  %v1106_v35 = vadd.f32 %v15736_v55, %v16982_v44  ;;  %v2694_v3 = vsel %vm2628_vm8, %v2689_v46, %v2693_v48  ;;  %v24915_v55 = vld [vmem:[#allocation18_spill] sm:$0xff] }
 0x231   :  { %v3110_v43 = vadd.f32 %v3016_v41, %v2489_v19  ;;  %1970 = vrot.lane.b32.xlu0 %v24905_v50, %s15846_s20  ;;  %2172 = vrot.lane.b32.xlu1 %v16673_v13, %s15847_s21  ;;  %v17287_v50 = vsel %vm2628_vm8, %v24912_v62, %v2727_v39  ;;  %v24913_v19 = vrot.slane %v17152_v24, 3  ;;  %v17302_v62 = vld [vmem:[#allocation2 + $0x158] sm:$0xff]  ;;  %v17304_v24 = vpop.f32.mrb[60].mxu0 }
 0x232   :  { %v1394_v15 = vadd.f32 %v17013_v7, %v1106_v35  ;;  %719 = vst [vmem:[#allocation2 + $0x1e0] sm:$0xff] %v17304_v24  ;;  %v2697_v35 = vrot.slane %v17302_v62, 4 }
 0x233   :  { %v17292_v25 = vsel %vm1840_vm7, %v24913_v19, %v1894_v38  ;;  %v3164_v41 = vadd.f32 %v16663_v53, %v3110_v43  ;;  %v2856_v31 = vpop.permute.xlu1 %2855  ;;  %v17295_v27 = vpop.permute.xlu0 %982 }
 0x234   :  { %24914 = vst [vmem:[#allocation16_spill] sm:$0xff] %v17292_v25  ;;  %v1598_v19 = vadd.f32 %v17091_v21, %v1394_v15  ;;  %v529_v43 = vpop.f32.mrb[61].mxu0  ;;  %v103_v21 = vld [vmem:[%s24803_s0 + $0x150] sm:$0xff]  ;;  %v2731_v25 = vrot.slane %v17304_v24, 4 }
 0x235   :  { %v3211_v44 = vmax.f32 %v3164_v41, 0.0  ;;  %2881 = vrot.lane.b32.xlu0 %v2694_v3, %s15849_s24  ;;  %1484 = vrot.lane.b32.xlu1 %v24915_v55, %s15844_s16  ;;  %720 = vst.msk [vmem:[#allocation2 + $0x1e8] sm:$0xff] %vm659_vm4, %v529_v43  ;;  %v1208_v43 = vrot.slane %v17304_v24, 2 }
 0x236   :  { %v1798_v3 = vadd.f32 %v17109_v61, %v1598_v19  ;;  %13836 = vmatmul.mubr.msk.f32.gmra.mrb[84].mxu0 %vm117_vm3, %v103_v21  ;;  %v24844_v21 = vrot.slane %v17304_v24, 3 }
 0x237   :  { %13857 = vmatmul.mubr.msk.f32.gmra.mrb[20].mxu1 %vm3254_vm11, %v3211_v44  ;;  %v17309_v7 = vpop.permute.xlu0 %1958  ;;  %v17311_v46 = vpop.permute.xlu1 %2160  ;;  %603 = vmatprep.mubr.f32.mxu0 %v24883_v54 }
 0x238   :  { %3520 = vmatprep.mubr.f32.mxu1 %v24883_v54  ;;  %v2086_v41 = vadd.f32 %v17157_v6, %v1798_v3  ;;  %v920_v3 = vrot.slane %v17304_v24, 1 }
 0x239   :  { %2883 = vrot.lane.b32.xlu0 %v16680_v56, %s15849_s24  ;;  %2372 = vrot.lane.b32.xlu1 %v16683_v9, %s15848_s23  ;;  %v2698_v56 = vsel %vm2628_vm8, %v2693_v48, %v2697_v35  ;;  %v17354_v48 = vsel %vm1840_vm7, %v1894_v38, %v24844_v21 }
 0x23a   :  { %v2290_v44 = vadd.f32 %v17228_v36, %v2086_v41 }
 0x23b   :  { %v17326_v15 = vpop.permute.xlu0 %1270  ;;  %v17328_v61 = vpop.permute.xlu1 %1472 }
 0x23c   :  { %v2490_v62 = vadd.f32 %v2359_v12, %v2290_v44  ;;  %v17349_v12 = vsel %vm860_vm5, %v918_v37, %v920_v3  ;;  %v15737_v37 = vld [vmem:[#allocation2 + $0xa0] sm:$0xff] }
 0x23d   :  { %1282 = vrot.lane.b32.xlu0 %v16595_v45, %s15843_s30  ;;  %2885 = vrot.lane.b32.xlu1 %v2698_v56, %s15849_s24  ;;  %v17346_v45 = vsel %vm1148_vm6, %v1206_v40, %v1208_v43  ;;  %v17366_v40 = vld [vmem:[#allocation2 + $0x168] sm:$0xff]  ;;  %v1107_v38 = vadd.f32 %v15737_v37, %v17072_v60  ;;  %v104_v60 = vld [vmem:[%s24803_s0 + $0x158] sm:$0xff] }
 0x23e   :  { %13837 = vmatmul.mubr.msk.f32.gmra.mrb[86].mxu0 %vm117_vm3, %v104_v60 }
 0x23f   :  { %v2858_v19 = vpop.permute.xlu0 %2857  ;;  %v2361_v6 = vpop.permute.xlu1 %2360  ;;  %609 = vmatprep.mubr.f32.mxu0 %v24883_v54 }
 0x240   :  { %v3017_v36 = vsel %vm3007_vm10, %v2856_v31, %v2858_v19  ;;  %v17357_v31 = vsel %vm2628_vm8, %v2727_v39, %v2731_v25 }
 0x241   :  { %v3111_v41 = vadd.f32 %v3017_v36, %v2490_v62  ;;  %1684 = vrot.lane.b32.xlu1 %v16673_v13, %s15845_s19  ;;  %2174 = vrot.lane.b32.xlu0 %v16736_v17, %s15847_s21  ;;  %v17369_v36 = vpop.f32.mrb[62].mxu0 }
 0x242   :  { %721 = vst [vmem:[#allocation2 + $0x1f0] sm:$0xff] %v17369_v36  ;;  %v535_v21 = vpop.f32.mrb[63].mxu0 }
 0x243   :  { %v3165_v44 = vadd.f32 %v16663_v53, %v3111_v41  ;;  %v2860_v56 = vpop.permute.xlu0 %2859  ;;  %v17360_v62 = vpop.permute.xlu1 %1672  ;;  %722 = vst.msk [vmem:[#allocation2 + $0x1f8] sm:$0xff] %vm659_vm4, %v535_v21 }
 0x245   :  { %v3212_v19 = vmax.f32 %v3165_v44, 0.0  ;;  %996 = vrot.lane.b32.xlu1 %v24915_v55, %s15842_s1  ;;  %1486 = vrot.lane.b32.xlu0 %v16739_v8, %s15844_s16  ;;  %v1395_v55 = vadd.f32 %v17102_v23, %v1107_v38  ;;  %v24845_v44 = vrot.slane %v17366_v40, 4 }
 0x247   :  { %13858 = vmatmul.mubr.msk.f32.gmra.mrb[22].mxu1 %vm3254_vm11, %v3212_v19  ;;  %v17372_v39 = vpop.permute.xlu1 %984  ;;  %v17374_v41 = vpop.permute.xlu0 %2162  ;;  %v1599_v19 = vadd.f32 %v17177_v5, %v1395_v55  ;;  %v2702_v21 = vsel %vm2628_vm8, %v2697_v35, %v24845_v44 }
 0x248   :  { %3526 = vmatprep.mubr.f32.mxu1 %v24883_v54 }
 0x249   :  { %1972 = vrot.lane.b32.xlu1 %v16683_v9, %s15846_s20  ;;  %2374 = vrot.lane.b32.xlu0 %v16744_v28, %s15848_s23  ;;  %v1799_v9 = vadd.f32 %v17215_v58, %v1599_v19 }
 0x24b   :  { %v17390_v23 = vpop.permute.xlu1 %1960  ;;  %v17392_v37 = vpop.permute.xlu0 %1474  ;;  %v2087_v5 = vadd.f32 %v17242_v30, %v1799_v9  ;;  %v2735_v30 = vrot.slane %v17369_v36, 4  ;;  %v1898_v9 = vrot.slane %v17369_v36, 3 }
 0x24d   :  { %2887 = vrot.lane.b32.xlu1 %v16747_v16, %s15849_s24  ;;  %2889 = vrot.lane.b32.xlu0 %v2702_v21, %s15849_s24  ;;  %v2291_v60 = vadd.f32 %v17311_v46, %v2087_v5  ;;  %v1210_v16 = vrot.slane %v17369_v36, 2  ;;  %v922_v21 = vrot.slane %v17369_v36, 1  ;;  %v17429_v36 = vsel %vm2628_vm8, %v2731_v25, %v2735_v30 }
 0x24e   :  { %v17446_v25 = vpop.f32.mrb[64].mxu0 }
 0x24f   :  { %v17403_v38 = vpop.permute.xlu1 %1272  ;;  %v2363_v55 = vpop.permute.xlu0 %2362  ;;  %v2491_v58 = vadd.f32 %v2361_v6, %v2291_v60  ;;  %v17425_v6 = vsel %vm860_vm5, %v920_v3, %v922_v21  ;;  %v15738_v60 = vld [vmem:[#allocation2 + $0xb0] sm:$0xff]  ;;  %723 = vst [vmem:[#allocation2 + $0x200] sm:$0xff] %v17446_v25 }
 0x250   :  { %v1108_v44 = vadd.f32 %v15738_v60, %v17144_v34  ;;  %v17444_v34 = vld [vmem:[#allocation2 + $0x178] sm:$0xff] }
 0x251   :  { %1284 = vrot.lane.b32.xlu1 %v16673_v13, %s15843_s30  ;;  %1686 = vrot.lane.b32.xlu0 %v16736_v17, %s15845_s19  ;;  %v17422_v13 = vsel %vm1148_vm6, %v1208_v43, %v1210_v16 }
 0x252   :  { %v1396_v43 = vadd.f32 %v17175_v42, %v1108_v44  ;;  %v2705_v44 = vrot.slane %v17444_v34, 4 }
 0x253   :  { %v2862_v35 = vpop.permute.xlu1 %2861  ;;  %v17410_v19 = vpop.permute.xlu0 %1674 }
 0x254   :  { %v3018_v46 = vsel %vm3007_vm10, %v2860_v56, %v2862_v35  ;;  %v24916_v56 = vrot.slane %v17304_v24, 3  ;;  %v1600_v24 = vadd.f32 %v17244_v33, %v1396_v43  ;;  %v105_v33 = vld [vmem:[%s24803_s0 + $0x160] sm:$0xff] }
 0x255   :  { %v3112_v5 = vadd.f32 %v3018_v46, %v2491_v58  ;;  %998 = vrot.lane.b32.xlu0 %v16739_v8, %s15842_s1  ;;  %2176 = vrot.lane.b32.xlu1 %v16815_v63, %s15847_s21 }
 0x256   :  { %v17434_v58 = vsel %vm1840_vm7, %v24916_v56, %v1898_v9  ;;  %13838 = vmatmul.mubr.msk.f32.gmra.mrb[88].mxu0 %vm117_vm3, %v105_v33 }
 0x257   :  { %v3166_v8 = vadd.f32 %v16663_v53, %v3112_v5  ;;  %v2864_v35 = vpop.permute.xlu1 %2863  ;;  %v17437_v46 = vpop.permute.xlu0 %986  ;;  %615 = vmatprep.mubr.f32.mxu0 %v24883_v54 }
 0x258   :  { %v541_v53 = vpop.f32.mrb[65].mxu0 }
 0x259   :  { %v3213_v3 = vmax.f32 %v3166_v8, 0.0  ;;  %1974 = vrot.lane.b32.xlu0 %v16744_v28, %s15846_s20  ;;  %1488 = vrot.lane.b32.xlu1 %v16818_v59, %s15844_s16  ;;  %724 = vst.msk [vmem:[#allocation2 + $0x208] sm:$0xff] %vm659_vm4, %v541_v53  ;;  %v1800_v28 = vadd.f32 %v17262_v10, %v1600_v24  ;;  %v1212_v24 = vrot.slane %v17446_v25, 2  ;;  %v924_v53 = vrot.slane %v17446_v25, 1 }
 0x25b   :  { %13859 = vmatmul.mubr.msk.f32.gmra.mrb[24].mxu1 %vm3254_vm11, %v3213_v3  ;;  %v17451_v5 = vpop.permute.xlu0 %1962  ;;  %v17453_v42 = vpop.permute.xlu1 %2164  ;;  %v2088_v60 = vadd.f32 %v17309_v7, %v1800_v28  ;;  %v24846_v28 = vrot.slane %v17446_v25, 3 }
 0x25c   :  { %3532 = vmatprep.mubr.f32.mxu1 %v24883_v54 }
 0x25d   :  { %2891 = vrot.lane.b32.xlu0 %v16822_v29, %s15849_s24  ;;  %2376 = vrot.lane.b32.xlu1 %v16827_v51, %s15848_s23  ;;  %v2292_v8 = vadd.f32 %v17374_v41, %v2088_v60  ;;  %v24917_v29 = vrot.slane %v17366_v40, 4  ;;  %v2739_v41 = vrot.slane %v17446_v25, 4  ;;  %v17498_v60 = vsel %vm1840_vm7, %v1898_v9, %v24846_v28  ;;  %v17515_v9 = vld [vmem:[#allocation2 + $0x188] sm:$0xff] }
 0x25f   :  { %v17468_v56 = vpop.permute.xlu0 %1274  ;;  %v17470_v10 = vpop.permute.xlu1 %1476  ;;  %v2706_v43 = vsel %vm2628_vm8, %v24917_v29, %v2705_v44  ;;  %v2492_v7 = vadd.f32 %v2363_v55, %v2292_v8  ;;  %v17493_v55 = vsel %vm860_vm5, %v922_v21, %v924_v53  ;;  %v17506_v8 = vld [vmem:[%s24806_s3] ss:$0 sm:$0xff] }
 0x261   :  { %1286 = vrot.lane.b32.xlu0 %v16736_v17, %s15843_s30  ;;  %2893 = vrot.lane.b32.xlu1 %v2706_v43, %s15849_s24  ;;  %v17490_v17 = vsel %vm1148_vm6, %v1210_v16, %v1212_v24 }
 0x263   :  { %v2866_v3 = vpop.permute.xlu0 %2865  ;;  %v2365_v34 = vpop.permute.xlu1 %2364 }
 0x264   :  { %v3019_v40 = vsel %vm3007_vm10, %v2864_v35, %v2866_v3  ;;  %v17501_v35 = vsel %vm2628_vm8, %v2735_v30, %v2739_v41  ;;  %v15740_v30 = vld [vmem:[#allocation2 + $0xc0] sm:$0xff]  ;;  %v17518_v3 = vpop.f32.mrb[66].mxu0 }
 0x265   :  { %v3113_v33 = vadd.f32 %v3019_v40, %v2492_v7  ;;  %1688 = vrot.lane.b32.xlu1 %v16815_v63, %s15845_s19  ;;  %2178 = vrot.lane.b32.xlu0 %v16881_v32, %s15847_s21  ;;  %v1109_v7 = vadd.f32 %v15740_v30, %v17226_v52  ;;  %725 = vst [vmem:[#allocation2 + $0x210] sm:$0xff] %v17518_v3  ;;  %v547_v28 = vpop.f32.mrb[67].mxu0  ;;  %v106_v52 = vld [vmem:[%s24803_s0 + $0x168] sm:$0xff] }
 0x266   :  { %726 = vst.msk [vmem:[#allocation2 + $0x218] sm:$0xff] %vm659_vm4, %v547_v28  ;;  %13839 = vmatmul.mubr.msk.f32.gmra.mrb[90].mxu0 %vm117_vm3, %v106_v52 }
 0x267   :  { %v3167_v29 = vadd.f32 %v17506_v8, %v3113_v33  ;;  %v2868_v16 = vpop.permute.xlu0 %2867  ;;  %v17509_v43 = vpop.permute.xlu1 %1676  ;;  %621 = vmatprep.mubr.f32.mxu0 %v24883_v54 }
 0x269   :  { %v3214_v21 = vmax.f32 %v3167_v29, 0.0  ;;  %1000 = vrot.lane.b32.xlu1 %v16818_v59, %s15842_s1  ;;  %1490 = vrot.lane.b32.xlu0 %v16884_v49, %s15844_s16  ;;  %v1397_v59 = vadd.f32 %v17255_v1, %v1109_v7  ;;  %v24847_v29 = vrot.slane %v17515_v9, 4 }
 0x26b   :  { %13860 = vmatmul.mubr.msk.f32.gmra.mrb[26].mxu1 %vm3254_vm11, %v3214_v21  ;;  %v17521_v40 = vpop.permute.xlu1 %988  ;;  %v17523_v33 = vpop.permute.xlu0 %2166  ;;  %v1601_v21 = vadd.f32 %v17328_v61, %v1397_v59  ;;  %v2710_v28 = vsel %vm2628_vm8, %v2705_v44, %v24847_v29 }
 0x26c   :  { %3538 = vmatprep.mubr.f32.mxu1 %v24883_v54 }
 0x26d   :  { %1976 = vrot.lane.b32.xlu1 %v16827_v51, %s15846_s20  ;;  %2378 = vrot.lane.b32.xlu0 %v16889_v20, %s15848_s23  ;;  %v1801_v51 = vadd.f32 %v17360_v62, %v1601_v21 }
 0x26f   :  { %v17539_v1 = vpop.permute.xlu1 %1964  ;;  %v17541_v30 = vpop.permute.xlu0 %1478  ;;  %v2089_v61 = vadd.f32 %v17390_v23, %v1801_v51  ;;  %v2743_v23 = vrot.slane %v17518_v3, 4  ;;  %v1902_v51 = vrot.slane %v17518_v3, 3 }
 0x271   :  { %2895 = vrot.lane.b32.xlu1 %v16894_v0, %s15849_s24  ;;  %2897 = vrot.lane.b32.xlu0 %v2710_v28, %s15849_s24  ;;  %v2293_v52 = vadd.f32 %v17453_v42, %v2089_v61  ;;  %v1214_v0 = vrot.slane %v17518_v3, 2  ;;  %v926_v28 = vrot.slane %v17518_v3, 1  ;;  %v17577_v29 = vsel %vm2628_vm8, %v2739_v41, %v2743_v23  ;;  %v17594_v41 = vpop.f32.mrb[68].mxu0 }
 0x272   :  { %v24919_v3 = vrot.slane %v17446_v25, 3  ;;  %v17592_v25 = vld [vmem:[#allocation2 + $0x198] sm:$0xff]  ;;  %727 = vst [vmem:[#allocation2 + $0x220] sm:$0xff] %v17594_v41 }
 0x273   :  { %v17552_v7 = vpop.permute.xlu1 %1276  ;;  %v2367_v59 = vpop.permute.xlu0 %2366  ;;  %v2493_v62 = vadd.f32 %v2365_v34, %v2293_v52  ;;  %v17574_v34 = vsel %vm860_vm5, %v924_v53, %v926_v28 }
 0x275   :  { %1288 = vrot.lane.b32.xlu1 %v16815_v63, %s15843_s30  ;;  %1690 = vrot.lane.b32.xlu0 %v16881_v32, %s15845_s19  ;;  %v17571_v63 = vsel %vm1148_vm6, %v1212_v24, %v1214_v0 }
 0x276   :  { %24918 = vst [vmem:[#allocation17_spill] sm:$0xff] %v17571_v63 }
 0x277   :  { %v2870_v44 = vpop.permute.xlu1 %2869  ;;  %v17559_v21 = vpop.permute.xlu0 %1678 }
 0x278   :  { %v3020_v42 = vsel %vm3007_vm10, %v2868_v16, %v2870_v44  ;;  %v17582_v16 = vsel %vm1840_vm7, %v24919_v3, %v1902_v51 }
 0x279   :  { %v3114_v61 = vadd.f32 %v3020_v42, %v2493_v62  ;;  %1002 = vrot.lane.b32.xlu0 %v16884_v49, %s15842_s1  ;;  %2180 = vrot.lane.b32.xlu1 %v16961_v22, %s15847_s21  ;;  %v15741_v42 = vld [vmem:[#allocation2 + $0xd0] sm:$0xff] }
 0x27a   :  { %v3468_v52 = vpop.f32.mrb[4].mxu1  ;;  %v1110_v24 = vadd.f32 %v15741_v42, %v17295_v27 }
 0x27b   :  { %v3168_v49 = vadd.f32 %v17506_v8, %v3114_v61  ;;  %3749 = vst [vmem:[#allocation3] sm:$0xff] %v3468_v52  ;;  %v3470_v62 = vpop.f32.mrb[5].mxu1  ;;  %v2872_v44 = vpop.permute.xlu1 %2871 }
 0x27c   :  { %v17586_v63 = vpop.permute.xlu0 %990  ;;  %v1398_v61 = vadd.f32 %v17326_v15, %v1110_v24  ;;  %v553_v52 = vpop.f32.mrb[69].mxu0  ;;  %v107_v15 = vld [vmem:[%s24803_s0 + $0x170] sm:$0xff] }
 0x27d   :  { %v3215_v53 = vmax.f32 %v3168_v49, 0.0  ;;  %1978 = vrot.lane.b32.xlu0 %v16889_v20, %s15846_s20  ;;  %1492 = vrot.lane.b32.xlu1 %v16964_v26, %s15844_s16  ;;  %728 = vst.msk [vmem:[#allocation2 + $0x228] sm:$0xff] %vm659_vm4, %v553_v52  ;;  %v2713_v49 = vrot.slane %v17592_v25, 4  ;;  %v928_v52 = vrot.slane %v17594_v41, 1 }
 0x27e   :  { %v1602_v20 = vadd.f32 %v17392_v37, %v1398_v61  ;;  %13840 = vmatmul.mubr.msk.f32.gmra.mrb[92].mxu0 %vm117_vm3, %v107_v15  ;;  %v1216_v61 = vrot.slane %v17594_v41, 2 }
 0x27f   :  { %13861 = vmatmul.mubr.msk.f32.gmra.mrb[28].mxu1 %vm3254_vm11, %v3215_v53  ;;  %v17599_v27 = vpop.permute.xlu1 %2168  ;;  %627 = vmatprep.mubr.f32.mxu0 %v24883_v54 }
 0x280   :  { %v17603_v3 = vpop.permute.xlu0 %1966  ;;  %3544 = vmatprep.mubr.f32.mxu1 %v24883_v54  ;;  %v1802_v62 = vadd.f32 %v17410_v19, %v1602_v20  ;;  %v2747_v20 = vrot.slane %v17594_v41, 4 }
 0x281   :  { %2899 = vrot.lane.b32.xlu0 %v16972_v47, %s15849_s24  ;;  %2380 = vrot.lane.b32.xlu1 %v16979_v4, %s15848_s23  ;;  %v24920_v47 = vrot.slane %v17515_v9, 4 }
 0x282   :  { %v2090_v42 = vadd.f32 %v17451_v5, %v1802_v62  ;;  %v24849_v5 = vrot.slane %v17594_v41, 3 }
 0x283   :  { %v17616_v37 = vpop.permute.xlu1 %1480  ;;  %v2714_v53 = vsel %vm2628_vm8, %v24920_v47, %v2713_v49  ;;  %v17656_v47 = vsel %vm2628_vm8, %v2743_v23, %v2747_v20 }
 0x284   :  { %v17620_v24 = vpop.permute.xlu0 %1278  ;;  %v2294_v19 = vadd.f32 %v17523_v33, %v2090_v42  ;;  %v17646_v33 = vsel %vm860_vm5, %v926_v28, %v928_v52 }
 0x285   :  { %1290 = vrot.lane.b32.xlu0 %v16881_v32, %s15843_s30  ;;  %2901 = vrot.lane.b32.xlu1 %v2714_v53, %s15849_s24  ;;  %v17641_v32 = vsel %vm1148_vm6, %v1214_v0, %v1216_v61 }
 0x286   :  { %v2494_v15 = vadd.f32 %v2367_v59, %v2294_v19 }
 0x287   :  { %v2369_v25 = vpop.permute.xlu1 %2368 }
 0x288   :  { %v2874_v9 = vpop.permute.xlu0 %2873 }
 0x289   :  { %v3021_v62 = vsel %vm3007_vm10, %v2872_v44, %v2874_v9  ;;  %1692 = vrot.lane.b32.xlu1 %v16961_v22, %s15845_s19  ;;  %2182 = vrot.lane.b32.xlu0 %v17036_v18, %s15847_s21  ;;  %v17651_v44 = vsel %vm1840_vm7, %v1902_v51, %v24849_v5  ;;  %v17665_v51 = vld [vmem:[#allocation2 + $0x1a8] sm:$0xff] }
 0x28a   :  { %v3115_v59 = vadd.f32 %v3021_v62, %v2494_v15  ;;  %v3474_v42 = vpop.f32.mrb[6].mxu1  ;;  %v15742_v15 = vld [vmem:[#allocation2 + $0xe0] sm:$0xff]  ;;  %v17668_v62 = vpop.f32.mrb[70].mxu0  ;;  %v24850_v5 = vrot.slane %v17665_v51, 4 }
 0x28b   :  { %3751 = vst [vmem:[#allocation3 + $0x10] sm:$0xff] %v3474_v42  ;;  %v3476_v0 = vpop.f32.mrb[7].mxu1  ;;  %v17658_v53 = vpop.permute.xlu1 %1680  ;;  %v1111_v9 = vadd.f32 %v15742_v15, %v17372_v39  ;;  %729 = vst [vmem:[#allocation2 + $0x230] sm:$0xff] %v17668_v62  ;;  %v108_v39 = vld [vmem:[%s24803_s0 + $0x178] sm:$0xff] }
 0x28c   :  { %v3169_v19 = vadd.f32 %v17506_v8, %v3115_v59  ;;  %v2876_v28 = vpop.permute.xlu0 %2875  ;;  %v559_v59 = vpop.f32.mrb[71].mxu0  ;;  %13841 = vmatmul.mubr.msk.f32.gmra.mrb[94].mxu0 %vm117_vm3, %v108_v39 }
 0x28d   :  { %1004 = vrot.lane.b32.xlu1 %v16964_v26, %s15842_s1  ;;  %1494 = vrot.lane.b32.xlu0 %v17041_v2, %s15844_s16  ;;  %v1399_v0 = vadd.f32 %v17403_v38, %v1111_v9  ;;  %730 = vst.msk [vmem:[#allocation2 + $0x238] sm:$0xff] %vm659_vm4, %v559_v59  ;;  %v2718_v9 = vsel %vm2628_vm8, %v2713_v49, %v24850_v5 }
 0x28e   :  { %v3216_v23 = vmax.f32 %v3169_v19, 0.0  ;;  %633 = vmatprep.mubr.f32.mxu0 %v24883_v54 }
 0x28f   :  { %v17670_v42 = vpop.permute.xlu1 %992  ;;  %v1603_v38 = vadd.f32 %v17470_v10, %v1399_v0 }
 0x290   :  { %13862 = vmatmul.mubr.msk.f32.gmra.mrb[30].mxu1 %vm3254_vm11, %v3216_v23  ;;  %v17675_v26 = vpop.permute.xlu0 %2170  ;;  %v24921_v23 = vld [vmem:[#allocation19_spill] sm:$0xff] }
 0x291   :  { %1980 = vrot.lane.b32.xlu1 %v16979_v4, %s15846_s20  ;;  %2382 = vrot.lane.b32.xlu0 %v17048_v11, %s15848_s23  ;;  %v1803_v15 = vadd.f32 %v17509_v43, %v1603_v38  ;;  %v1218_v38 = vrot.slane %v17668_v62, 2 }
 0x292   :  { %3550 = vmatprep.mubr.f32.mxu1 %v24883_v54 }
 0x293   :  { %v17689_v19 = vpop.permute.xlu1 %1968  ;;  %v2091_v10 = vadd.f32 %v17539_v1, %v1803_v15  ;;  %v24853_v1 = vrot.slane %v17668_v62, 3  ;;  %v15743_v15 = vld [vmem:[#allocation2 + $0xf0] sm:$0xff] }
 0x294   :  { %v17693_v4 = vpop.permute.xlu0 %1482 }
 0x295   :  { %2903 = vrot.lane.b32.xlu1 %v24921_v23, %s15849_s24  ;;  %2905 = vrot.lane.b32.xlu0 %v2718_v9, %s15849_s24  ;;  %v2295_v0 = vadd.f32 %v17599_v27, %v2091_v10  ;;  %v24851_v23 = vrot.slane %v17668_v62, 1  ;;  %v24852_v9 = vrot.slane %v17668_v62, 4  ;;  %v1112_v27 = vadd.f32 %v15743_v15, %v17437_v46 }
 0x297   :  { %v17702_v59 = vpop.permute.xlu1 %1280  ;;  %v2495_v43 = vadd.f32 %v2369_v25, %v2295_v0  ;;  %v24922_v25 = vld [vmem:[#allocation8_spill] sm:$0xff]  ;;  %v17726_v0 = vsel %vm1148_vm6, %v1216_v61, %v1218_v38  ;;  %v1400_v46 = vadd.f32 %v17468_v56, %v1112_v27  ;;  %v24923_v61 = vrot.slane %v17594_v41, 3  ;;  %v17758_v41 = vld [vmem:[#allocation2 + $0x1b8] sm:$0xff] }
 0x298   :  { %v2371_v39 = vpop.permute.xlu0 %2370 }
 0x299   :  { %1292 = vrot.lane.b32.xlu1 %v16961_v22, %s15843_s30  ;;  %1694 = vrot.lane.b32.xlu0 %v17036_v18, %s15845_s19  ;;  %v17748_v56 = vsel %vm1840_vm7, %v24923_v61, %v24853_v1  ;;  %v1604_v27 = vadd.f32 %v17541_v30, %v1400_v46  ;;  %v17760_v61 = vpop.f32.mrb[72].mxu0  ;;  %v2721_v1 = vrot.slane %v17758_v41, 4 }
 0x29a   :  { %731 = vst [vmem:[#allocation2 + $0x240] sm:$0xff] %v17760_v61  ;;  %v565_v30 = vpop.f32.mrb[73].mxu0 }
 0x29b   :  { %v2878_v49 = vpop.permute.xlu1 %2877  ;;  %732 = vst.msk [vmem:[#allocation2 + $0x248] sm:$0xff] %vm659_vm4, %v565_v30  ;;  %v24927_v30 = vrot.slane %v17665_v51, 4  ;;  %v2755_v51 = vrot.slane %v17760_v61, 4 }
 0x29c   :  { %v3022_v10 = vsel %vm3007_vm10, %v2876_v28, %v2878_v49  ;;  %v17715_v5 = vpop.permute.xlu0 %1682  ;;  %v17734_v28 = vsel %vm860_vm5, %v928_v52, %v24851_v23 }
 0x29d   :  { %v3116_v22 = vadd.f32 %v3022_v10, %v2495_v43  ;;  %1006 = vrot.lane.b32.xlu0 %v17041_v2, %s15842_s1  ;;  %2184 = vrot.lane.b32.xlu1 %v24922_v25, %s15847_s21  ;;  %v17741_v2 = vsel %vm2628_vm8, %v2747_v20, %v24852_v9  ;;  %v24924_v20 = vld [vmem:[#allocation9_spill] sm:$0xff]  ;;  %v15744_v9 = vld [vmem:[#allocation2 + $0x100] sm:$0xff] }
 0x29e   :  { %v3480_v15 = vpop.f32.mrb[8].mxu1 }
 0x29f   :  { %v3170_v43 = vadd.f32 %v17506_v8, %v3116_v22  ;;  %3753 = vst [vmem:[#allocation3 + $0x20] sm:$0xff] %v3480_v15  ;;  %v3482_v49 = vpop.f32.mrb[9].mxu1  ;;  %v2880_v52 = vpop.permute.xlu1 %2879  ;;  %v1113_v22 = vadd.f32 %v15744_v9, %v17521_v40  ;;  %v1804_v15 = vadd.f32 %v17559_v21, %v1604_v27  ;;  %v24925_v40 = vld [vmem:[#allocation10_spill] sm:$0xff]  ;;  %v24926_v21 = vld [vmem:[#allocation11_spill] sm:$0xff] }
 0x2a0   :  { %v17752_v10 = vpop.permute.xlu0 %994 }
 0x2a1   :  { %v3217_v23 = vmax.f32 %v3170_v43, 0.0  ;;  %1982 = vrot.lane.b32.xlu0 %v17048_v11, %s15846_s20  ;;  %1496 = vrot.lane.b32.xlu1 %v24924_v20, %s15844_s16  ;;  %v1401_v11 = vadd.f32 %v17552_v7, %v1113_v22  ;;  %v2092_v43 = vadd.f32 %v17603_v3, %v1804_v15 }
 0x2a3   :  { %13863 = vmatmul.mubr.msk.f32.gmra.mrb[32].mxu1 %vm3254_vm11, %v3217_v23  ;;  %v2173_v46 = vpop.permute.xlu1 %2172  ;;  %v109_v23 = vld [vmem:[%s24803_s0 + $0x180] sm:$0xff]  ;;  %v1605_v7 = vadd.f32 %v17616_v37, %v1401_v11  ;;  %v2296_v3 = vadd.f32 %v17675_v26, %v2092_v43 }
 0x2a4   :  { %v17769_v49 = vpop.permute.xlu0 %1970  ;;  %3556 = vmatprep.mubr.f32.mxu1 %v24883_v54  ;;  %13842 = vmatmul.mubr.msk.f32.gmra.mrb[96].mxu0 %vm117_vm3, %v109_v23  ;;  %v24854_v23 = vrot.slane %v17760_v61, 3 }
 0x2a5   :  { %2907 = vrot.lane.b32.xlu0 %v24925_v40, %s15849_s24  ;;  %2384 = vrot.lane.b32.xlu1 %v24926_v21, %s15848_s23  ;;  %v1805_v27 = vadd.f32 %v17658_v53, %v1605_v7  ;;  %v2496_v22 = vadd.f32 %v2371_v39, %v2296_v3  ;;  %v2722_v40 = vsel %vm2628_vm8, %v24927_v30, %v2721_v1  ;;  %v1220_v53 = vrot.slane %v17760_v61, 2 }
 0x2a6   :  { %639 = vmatprep.mubr.f32.mxu0 %v24883_v54  ;;  %v932_v39 = vrot.slane %v17760_v61, 1 }
 0x2a7   :  { %v17783_v9 = vpop.permute.xlu1 %1484  ;;  %v2093_v26 = vadd.f32 %v17689_v19, %v1805_v27  ;;  %v24928_v19 = vrot.slane %v17668_v62, 1  ;;  %v24929_v27 = vrot.slane %v17668_v62, 3 }
 0x2a8   :  { %v2882_v15 = vpop.permute.xlu0 %2881 }
 0x2a9   :  { %v3023_v37 = vsel %vm3007_vm10, %v2880_v52, %v2882_v15  ;;  %1294 = vrot.lane.b32.xlu0 %v17036_v18, %s15843_s30  ;;  %2909 = vrot.lane.b32.xlu1 %v2722_v40, %s15849_s24  ;;  %v2297_v7 = vadd.f32 %v2173_v46, %v2093_v26  ;;  %v17811_v18 = vsel %vm1148_vm6, %v1218_v38, %v1220_v53  ;;  %v24930_v38 = vrot.slane %v17668_v62, 4  ;;  %v17842_v62 = vld [vmem:[#allocation2 + $0x1c8] sm:$0xff] }
 0x2aa   :  { %v3117_v11 = vadd.f32 %v3023_v37, %v2496_v22  ;;  %v17818_v46 = vsel %vm860_vm5, %v24928_v19, %v932_v39  ;;  %v17825_v22 = vsel %vm1840_vm7, %v24929_v27, %v24854_v23 }
 0x2ab   :  { %v2373_v43 = vpop.permute.xlu1 %2372  ;;  %v17832_v40 = vsel %vm2628_vm8, %v24930_v38, %v2755_v51  ;;  %v24855_v38 = vrot.slane %v17842_v62, 4 }
 0x2ac   :  { %v3171_v52 = vadd.f32 %v17506_v8, %v3117_v11  ;;  %v2884_v3 = vpop.permute.xlu0 %2883  ;;  %v2497_v37 = vadd.f32 %v2373_v43, %v2297_v7  ;;  %v17845_v43 = vpop.f32.mrb[74].mxu0 }
 0x2ad   :  { %1696 = vrot.lane.b32.xlu1 %v24922_v25, %s15845_s19  ;;  %2186 = vrot.lane.b32.xlu0 %v17197_v57, %s15847_s21  ;;  %733 = vst [vmem:[#allocation2 + $0x250] sm:$0xff] %v17845_v43 }
 0x2ae   :  { %v3218_v15 = vmax.f32 %v3171_v52, 0.0  ;;  %v3486_v30 = vpop.f32.mrb[10].mxu1 }
 0x2af   :  { %3755 = vst [vmem:[#allocation3 + $0x30] sm:$0xff] %v3486_v30  ;;  %v3488_v26 = vpop.f32.mrb[11].mxu1  ;;  %v2886_v11 = vpop.permute.xlu1 %2885 }
 0x2b0   :  { %13864 = vmatmul.mubr.msk.f32.gmra.mrb[34].mxu1 %vm3254_vm11, %v3218_v15  ;;  %v17835_v19 = vpop.permute.xlu0 %1282  ;;  %v3024_v27 = vsel %vm3007_vm10, %v2884_v3, %v2886_v11  ;;  %v571_v3 = vpop.f32.mrb[75].mxu0  ;;  %v15745_v15 = vld [vmem:[#allocation2 + $0x110] sm:$0xff]  ;;  %v24931_v26 = vld [vmem:[#allocation12_spill] sm:$0xff] }
 0x2b1   :  { %v3118_v23 = vadd.f32 %v3024_v27, %v2497_v37  ;;  %1008 = vrot.lane.b32.xlu1 %v24924_v20, %s15842_s1  ;;  %1498 = vrot.lane.b32.xlu0 %v17202_v14, %s15844_s16  ;;  %v1114_v30 = vadd.f32 %v15745_v15, %v17586_v63  ;;  %734 = vst.msk [vmem:[#allocation2 + $0x258] sm:$0xff] %vm659_vm4, %v571_v3 }
 0x2b2   :  { %3562 = vmatprep.mubr.f32.mxu1 %v24883_v54 }
 0x2b3   :  { %v3172_v7 = vadd.f32 %v17506_v8, %v3118_v23  ;;  %v17848_v52 = vpop.permute.xlu1 %1684  ;;  %v110_v23 = vld [vmem:[%s24803_s0 + $0x188] sm:$0xff]  ;;  %v1402_v11 = vadd.f32 %v17620_v24, %v1114_v30  ;;  %v24932_v24 = vld [vmem:[#allocation13_spill] sm:$0xff] }
 0x2b4   :  { %v2175_v20 = vpop.permute.xlu0 %2174  ;;  %13843 = vmatmul.mubr.msk.f32.gmra.mrb[98].mxu0 %vm117_vm3, %v110_v23  ;;  %v934_v23 = vrot.slane %v17845_v43, 1  ;;  %vm24759_vm3 = vmpackc.low %vm1148_vm6, %vm15841_vm1 }
 0x2b5   :  { %v3219_v37 = vmax.f32 %v3172_v7, 0.0  ;;  %1984 = vrot.lane.b32.xlu1 %v24926_v21, %s15846_s20  ;;  %2386 = vrot.lane.b32.xlu0 %v24931_v26, %s15848_s23  ;;  %v1606_v27 = vadd.f32 %v17693_v4, %v1402_v11  ;;  %v2726_v21 = vsel %vm2628_vm8, %v2721_v1, %v24855_v38  ;;  %v2759_v11 = vrot.slane %v17845_v43, 4 }
 0x2b7   :  { %13865 = vmatmul.mubr.msk.f32.gmra.mrb[36].mxu1 %vm3254_vm11, %v3219_v37  ;;  %v17864_v63 = vpop.permute.xlu1 %996  ;;  %v1806_v3 = vadd.f32 %v17715_v5, %v1606_v27  ;;  %v1222_v37 = vrot.slane %v17845_v43, 2  ;;  %v1910_v5 = vrot.slane %v17845_v43, 3 }
 0x2b8   :  { %v17867_v7 = vpop.permute.xlu0 %1486  ;;  %3568 = vmatprep.mubr.f32.mxu1 %v24883_v54 }
 0x2b9   :  { %2911 = vrot.lane.b32.xlu1 %v24932_v24, %s15849_s24  ;;  %2913 = vrot.lane.b32.xlu0 %v2726_v21, %s15849_s24  ;;  %v2094_v4 = vadd.f32 %v17769_v49, %v1806_v3  ;;  %v17901_v24 = vsel %vm860_vm5, %v932_v39, %v934_v23 }
 0x2bb   :  { %v1973_v15 = vpop.permute.xlu1 %1972  ;;  %v2298_v1 = vadd.f32 %v2175_v20, %v2094_v4  ;;  %v17896_v20 = vsel %vm1148_vm6, %v1220_v53, %v1222_v37  ;;  %v17906_v4 = vsel %vm2628_vm8, %v2755_v51, %v2759_v11  ;;  %v24937_v51 = vld [vmem:[#allocation15_spill] sm:$0xff] }
 0x2bc   :  { %v2375_v30 = vpop.permute.xlu0 %2374  ;;  %24934 = vst [vmem:[#allocation18_spill] sm:$0xff] %v17906_v4 }
 0x2bd   :  { %1296 = vrot.lane.b32.xlu1 %v24922_v25, %s15843_s30  ;;  %1698 = vrot.lane.b32.xlu0 %v17197_v57, %s15845_s19  ;;  %v2498_v27 = vadd.f32 %v2375_v30, %v2298_v1  ;;  %v24933_v25 = vld [vmem:[#allocation14_spill] sm:$0xff] }
 0x2bf   :  { %v2888_v41 = vpop.permute.xlu1 %2887 }
 0x2c0   :  { %v2890_v21 = vpop.permute.xlu0 %2889 }
 0x2c1   :  { %v3025_v49 = vsel %vm3007_vm10, %v2888_v41, %v2890_v21  ;;  %1010 = vrot.lane.b32.xlu0 %v17202_v14, %s15842_s1  ;;  %2188 = vrot.lane.b32.xlu1 %v24933_v25, %s15847_s21  ;;  %v24935_v14 = vrot.slane %v17760_v61, 3  ;;  %v17923_v61 = vld [vmem:[#allocation2 + $0x1d8] sm:$0xff]  ;;  %v15746_v21 = vld [vmem:[#allocation2 + $0x120] sm:$0xff] }
 0x2c2   :  { %v3119_v43 = vadd.f32 %v3025_v49, %v2498_v27  ;;  %v3492_v3 = vpop.f32.mrb[12].mxu1  ;;  %v17925_v27 = vpop.f32.mrb[76].mxu0  ;;  %v1115_v49 = vadd.f32 %v15746_v21, %v17670_v42  ;;  %v2729_v38 = vrot.slane %v17923_v61, 4  ;;  %v24938_v42 = vld [vmem:[#allocation16_spill] sm:$0xff] }
 0x2c3   :  { %v17911_v30 = vsel %vm1840_vm7, %v24935_v14, %v1910_v5  ;;  %3757 = vst [vmem:[#allocation3 + $0x40] sm:$0xff] %v3492_v3  ;;  %v3494_v53 = vpop.f32.mrb[13].mxu1  ;;  %v17913_v1 = vpop.permute.xlu1 %1284  ;;  %735 = vst [vmem:[#allocation2 + $0x260] sm:$0xff] %v17925_v27 }
 0x2c4   :  { %24936 = vst [vmem:[#allocation19_spill] sm:$0xff] %v17911_v30  ;;  %v3173_v41 = vadd.f32 %v17506_v8, %v3119_v43  ;;  %3758 = vst.msk [vmem:[#allocation3 + $0x48] sm:$0xff] %vm659_vm4, %v3494_v53  ;;  %v17917_v39 = vpop.permute.xlu0 %1686  ;;  %v577_v43 = vpop.f32.mrb[77].mxu0  ;;  %v1403_v53 = vadd.f32 %v17702_v59, %v1115_v49  ;;  %v1912_v30 = vrot.slane %v17925_v27, 3 }
 0x2c5   :  { %1986 = vrot.lane.b32.xlu0 %v24931_v26, %s15846_s20  ;;  %1500 = vrot.lane.b32.xlu1 %v24937_v51, %s15844_s16  ;;  %736 = vst.msk [vmem:[#allocation2 + $0x268] sm:$0xff] %vm659_vm4, %v577_v43 }
 0x2c6   :  { %v3220_v3 = vmax.f32 %v3173_v41, 0.0  ;;  %v1607_v41 = vadd.f32 %v17783_v9, %v1403_v53  ;;  %v1224_v9 = vrot.slane %v17925_v27, 2  ;;  %v24857_v53 = vrot.slane %v17925_v27, 1 }
 0x2c7   :  { %v2177_v14 = vpop.permute.xlu1 %2176 }
 0x2c8   :  { %13866 = vmatmul.mubr.msk.f32.gmra.mrb[38].mxu1 %vm3254_vm11, %v3220_v3  ;;  %v17932_v26 = vpop.permute.xlu0 %998  ;;  %v1807_v59 = vadd.f32 %v17848_v52, %v1607_v41  ;;  %v24939_v3 = vrot.slane %v17842_v62, 4  ;;  %v2763_v52 = vrot.slane %v17925_v27, 4  ;;  %v17966_v62 = vsel %vm860_vm5, %v934_v23, %v24857_v53 }
 0x2c9   :  { %2915 = vrot.lane.b32.xlu0 %v17287_v50, %s15849_s24  ;;  %2388 = vrot.lane.b32.xlu1 %v24938_v42, %s15848_s23 }
 0x2ca   :  { %3574 = vmatprep.mubr.f32.mxu1 %v24883_v54  ;;  %v2730_v43 = vsel %vm2628_vm8, %v24939_v3, %v2729_v38  ;;  %v2095_v50 = vadd.f32 %v1973_v15, %v1807_v59  ;;  %v17971_v15 = vsel %vm1840_vm7, %v1910_v5, %v1912_v30  ;;  %v17976_v59 = vsel %vm2628_vm8, %v2759_v11, %v2763_v52  ;;  %v17986_v5 = vld [vmem:[#allocation2 + $0x1e8] sm:$0xff] }
 0x2cb   :  { %v17941_v21 = vpop.permute.xlu1 %1488 }
 0x2cc   :  { %v1975_v49 = vpop.permute.xlu0 %1974  ;;  %v2299_v41 = vadd.f32 %v2177_v14, %v2095_v50 }
 0x2cd   :  { %1298 = vrot.lane.b32.xlu0 %v17197_v57, %s15843_s30  ;;  %2917 = vrot.lane.b32.xlu1 %v2730_v43, %s15849_s24  ;;  %v17961_v57 = vsel %vm1148_vm6, %v1222_v37, %v1224_v9 }
 0x2cf   :  { %v2377_v61 = vpop.permute.xlu1 %2376 }
 0x2d0   :  { %v2892_v4 = vpop.permute.xlu0 %2891  ;;  %v2499_v3 = vadd.f32 %v2377_v61, %v2299_v41 }
 0x2d1   :  { %1700 = vrot.lane.b32.xlu1 %v24933_v25, %s15845_s19  ;;  %2190 = vrot.lane.b32.xlu0 %v17346_v45, %s15847_s21 }
 0x2d2   :  { %v3498_v14 = vpop.f32.mrb[14].mxu1 }
 0x2d3   :  { %3759 = vst [vmem:[#allocation3 + $0x50] sm:$0xff] %v3498_v14  ;;  %v3500_v37 = vpop.f32.mrb[15].mxu1  ;;  %v2894_v43 = vpop.permute.xlu1 %2893 }
 0x2d4   :  { %3760 = vst.msk [vmem:[#allocation3 + $0x58] sm:$0xff] %vm659_vm4, %v3500_v37  ;;  %v17979_v50 = vpop.permute.xlu0 %1286  ;;  %v3026_v23 = vsel %vm3007_vm10, %v2892_v4, %v2894_v43  ;;  %v17988_v11 = vpop.f32.mrb[78].mxu0  ;;  %v15747_v37 = vld [vmem:[#allocation2 + $0x130] sm:$0xff] }
 0x2d5   :  { %v3120_v53 = vadd.f32 %v3026_v23, %v2499_v3  ;;  %1012 = vrot.lane.b32.xlu1 %v24937_v51, %s15842_s1  ;;  %1502 = vrot.lane.b32.xlu0 %v17349_v12, %s15844_s16  ;;  %737 = vst [vmem:[#allocation2 + $0x270] sm:$0xff] %v17988_v11  ;;  %v583_v14 = vpop.f32.mrb[79].mxu0  ;;  %v1116_v4 = vadd.f32 %v15747_v37, %v17752_v10  ;;  %v2733_v51 = vrot.slane %v17986_v5, 4 }
 0x2d6   :  { %738 = vst.msk [vmem:[#allocation2 + $0x278] sm:$0xff] %vm659_vm4, %v583_v14 }
 0x2d7   :  { %v3174_v61 = vadd.f32 %v17506_v8, %v3120_v53  ;;  %v17991_v41 = vpop.permute.xlu1 %1688  ;;  %v1404_v53 = vadd.f32 %v17835_v19, %v1116_v4 }
 0x2d8   :  { %v2179_v3 = vpop.permute.xlu0 %2178 }
 0x2d9   :  { %v3221_v43 = vmax.f32 %v3174_v61, 0.0  ;;  %1988 = vrot.lane.b32.xlu1 %v24938_v42, %s15846_s20  ;;  %2390 = vrot.lane.b32.xlu0 %v17354_v48, %s15848_s23  ;;  %v1608_v10 = vadd.f32 %v17867_v7, %v1404_v53  ;;  %v2734_v61 = vsel %vm2628_vm8, %v2729_v38, %v2733_v51  ;;  %v938_v53 = vrot.slane %v17988_v11, 1 }
 0x2db   :  { %13867 = vmatmul.mubr.msk.f32.gmra.mrb[40].mxu1 %vm3254_vm11, %v3221_v43  ;;  %v18003_v23 = vpop.permute.xlu1 %1000  ;;  %v1808_v19 = vadd.f32 %v17917_v39, %v1608_v10  ;;  %v1226_v43 = vrot.slane %v17988_v11, 2 }
 0x2dc   :  { %v18006_v37 = vpop.permute.xlu0 %1490  ;;  %3580 = vmatprep.mubr.f32.mxu1 %v24883_v54 }
 0x2dd   :  { %2919 = vrot.lane.b32.xlu1 %v17357_v31, %s15849_s24  ;;  %2921 = vrot.lane.b32.xlu0 %v2734_v61, %s15849_s24  ;;  %v2096_v14 = vadd.f32 %v1975_v49, %v1808_v19  ;;  %v2767_v31 = vrot.slane %v17988_v11, 4  ;;  %v1914_v61 = vrot.slane %v17988_v11, 3 }
 0x2df   :  { %v1977_v42 = vpop.permute.xlu1 %1976  ;;  %v2300_v7 = vadd.f32 %v2179_v3, %v2096_v14  ;;  %v24940_v3 = vrot.slane %v17925_v27, 1  ;;  %v18059_v27 = vld [vmem:[#allocation2 + $0x1f8] sm:$0xff] }
 0x2e0   :  { %v2379_v4 = vpop.permute.xlu0 %2378 }
 0x2e1   :  { %1300 = vrot.lane.b32.xlu1 %v24933_v25, %s15843_s30  ;;  %1702 = vrot.lane.b32.xlu0 %v17346_v45, %s15845_s19  ;;  %v2500_v39 = vadd.f32 %v2379_v4, %v2300_v7  ;;  %v18032_v25 = vsel %vm1148_vm6, %v1224_v9, %v1226_v43  ;;  %v18037_v19 = vsel %vm860_vm5, %v24940_v3, %v938_v53 }
 0x2e2   :  { %v18042_v4 = vsel %vm2628_vm8, %v2763_v52, %v2767_v31  ;;  %v15748_v52 = vld [vmem:[#allocation2 + $0x140] sm:$0xff] }
 0x2e3   :  { %v2896_v38 = vpop.permute.xlu1 %2895 }
 0x2e4   :  { %v2898_v10 = vpop.permute.xlu0 %2897 }
 0x2e5   :  { %v3027_v49 = vsel %vm3007_vm10, %v2896_v38, %v2898_v10  ;;  %1014 = vrot.lane.b32.xlu0 %v17349_v12, %s15842_s1  ;;  %2192 = vrot.lane.b32.xlu1 %v17422_v13, %s15847_s21  ;;  %v18047_v12 = vsel %vm1840_vm7, %v1912_v30, %v1914_v61  ;;  %v18061_v30 = vpop.f32.mrb[80].mxu0  ;;  %v1117_v10 = vadd.f32 %v15748_v52, %v17864_v63 }
 0x2e6   :  { %v3121_v11 = vadd.f32 %v3027_v49, %v2500_v39  ;;  %v3504_v14 = vpop.f32.mrb[16].mxu1  ;;  %739 = vst [vmem:[#allocation2 + $0x280] sm:$0xff] %v18061_v30  ;;  %v589_v3 = vpop.f32.mrb[81].mxu0 }
 0x2e7   :  { %3761 = vst [vmem:[#allocation3 + $0x60] sm:$0xff] %v3504_v14  ;;  %v3506_v9 = vpop.f32.mrb[17].mxu1  ;;  %v18049_v7 = vpop.permute.xlu1 %1288  ;;  %740 = vst.msk [vmem:[#allocation2 + $0x288] sm:$0xff] %vm659_vm4, %v589_v3  ;;  %v1405_v14 = vadd.f32 %v17913_v1, %v1117_v10  ;;  %v1916_v3 = vrot.slane %v18061_v30, 3 }
 0x2e8   :  { %v3175_v38 = vadd.f32 %v17506_v8, %v3121_v11  ;;  %3762 = vst.msk [vmem:[#allocation3 + $0x68] sm:$0xff] %vm659_vm4, %v3506_v9  ;;  %v18053_v39 = vpop.permute.xlu0 %1690  ;;  %v2737_v9 = vrot.slane %v18059_v27, 4 }
 0x2e9   :  { %1990 = vrot.lane.b32.xlu0 %v17354_v48, %s15846_s20  ;;  %1504 = vrot.lane.b32.xlu1 %v17425_v6, %s15844_s16  ;;  %v1609_v63 = vadd.f32 %v17941_v21, %v1405_v14  ;;  %v1228_v21 = vrot.slane %v18061_v30, 2 }
 0x2ea   :  { %v3222_v49 = vmax.f32 %v3175_v38, 0.0  ;;  %v2738_v10 = vsel %vm2628_vm8, %v2733_v51, %v2737_v9  ;;  %v18107_v51 = vsel %vm1840_vm7, %v1914_v61, %v1916_v3  ;;  %v18122_v61 = vld [vmem:[#allocation2 + $0x208] sm:$0xff] }
 0x2eb   :  { %v2181_v11 = vpop.permute.xlu1 %2180  ;;  %v1809_v1 = vadd.f32 %v17991_v41, %v1609_v63  ;;  %v2771_v41 = vrot.slane %v18061_v30, 4 }
 0x2ec   :  { %13868 = vmatmul.mubr.msk.f32.gmra.mrb[42].mxu1 %vm3254_vm11, %v3222_v49  ;;  %v18068_v48 = vpop.permute.xlu0 %1002  ;;  %v24858_v49 = vrot.slane %v18061_v30, 1 }
 0x2ed   :  { %2923 = vrot.lane.b32.xlu0 %v17429_v36, %s15849_s24  ;;  %2392 = vrot.lane.b32.xlu1 %v17434_v58, %s15848_s23  ;;  %v2097_v36 = vadd.f32 %v1977_v42, %v1809_v1 }
 0x2ee   :  { %3586 = vmatprep.mubr.f32.mxu1 %v24883_v54  ;;  %v18102_v5 = vsel %vm860_vm5, %v938_v53, %v24858_v49 }
 0x2ef   :  { %v18077_v38 = vpop.permute.xlu1 %1492  ;;  %v2301_v14 = vadd.f32 %v2181_v11, %v2097_v36  ;;  %v18112_v11 = vsel %vm2628_vm8, %v2767_v31, %v2771_v41 }
 0x2f0   :  { %v1979_v52 = vpop.permute.xlu0 %1978 }
 0x2f1   :  { %1302 = vrot.lane.b32.xlu0 %v17346_v45, %s15843_s30  ;;  %2925 = vrot.lane.b32.xlu1 %v2738_v10, %s15849_s24  ;;  %v18097_v45 = vsel %vm1148_vm6, %v1226_v43, %v1228_v21 }
 0x2f3   :  { %v2381_v27 = vpop.permute.xlu1 %2380 }
 0x2f4   :  { %v2900_v63 = vpop.permute.xlu0 %2899  ;;  %v2501_v1 = vadd.f32 %v2381_v27, %v2301_v14 }
 0x2f5   :  { %1704 = vrot.lane.b32.xlu1 %v17422_v13, %s15845_s19  ;;  %2194 = vrot.lane.b32.xlu0 %v17490_v17, %s15847_s21 }
 0x2f6   :  { %v3510_v42 = vpop.f32.mrb[18].mxu1 }
 0x2f7   :  { %3763 = vst [vmem:[#allocation3 + $0x70] sm:$0xff] %v3510_v42  ;;  %v3512_v43 = vpop.f32.mrb[19].mxu1  ;;  %v2902_v10 = vpop.permute.xlu1 %2901 }
 0x2f8   :  { %3764 = vst.msk [vmem:[#allocation3 + $0x78] sm:$0xff] %vm659_vm4, %v3512_v43  ;;  %v18115_v36 = vpop.permute.xlu0 %1290  ;;  %v3028_v53 = vsel %vm3007_vm10, %v2900_v63, %v2902_v10  ;;  %v18124_v31 = vpop.f32.mrb[82].mxu0  ;;  %v15749_v43 = vld [vmem:[#allocation2 + $0x150] sm:$0xff] }
 0x2f9   :  { %v3122_v49 = vadd.f32 %v3028_v53, %v2501_v1  ;;  %1016 = vrot.lane.b32.xlu1 %v17425_v6, %s15842_s1  ;;  %1506 = vrot.lane.b32.xlu0 %v17493_v55, %s15844_s16  ;;  %741 = vst [vmem:[#allocation2 + $0x290] sm:$0xff] %v18124_v31  ;;  %v595_v42 = vpop.f32.mrb[83].mxu0  ;;  %v1118_v63 = vadd.f32 %v15749_v43, %v17932_v26  ;;  %v2741_v6 = vrot.slane %v18122_v61, 4 }
 0x2fa   :  { %742 = vst.msk [vmem:[#allocation2 + $0x298] sm:$0xff] %vm659_vm4, %v595_v42 }
 0x2fb   :  { %v3176_v27 = vadd.f32 %v17506_v8, %v3122_v49  ;;  %v18127_v14 = vpop.permute.xlu1 %1692  ;;  %v1406_v49 = vadd.f32 %v17979_v50, %v1118_v63 }
 0x2fc   :  { %v2183_v1 = vpop.permute.xlu0 %2182 }
 0x2fd   :  { %v3223_v10 = vmax.f32 %v3176_v27, 0.0  ;;  %1992 = vrot.lane.b32.xlu1 %v17434_v58, %s15846_s20  ;;  %2394 = vrot.lane.b32.xlu0 %v17498_v60, %s15848_s23  ;;  %v1610_v26 = vadd.f32 %v18006_v37, %v1406_v49  ;;  %v2742_v27 = vsel %vm2628_vm8, %v2737_v9, %v2741_v6  ;;  %v942_v49 = vrot.slane %v18124_v31, 1 }
 0x2ff   :  { %13869 = vmatmul.mubr.msk.f32.gmra.mrb[44].mxu1 %vm3254_vm11, %v3223_v10  ;;  %v18139_v53 = vpop.permute.xlu1 %1004  ;;  %v1810_v58 = vadd.f32 %v18053_v39, %v1610_v26  ;;  %v1230_v10 = vrot.slane %v18124_v31, 2 }
 0x300   :  { %v18142_v43 = vpop.permute.xlu0 %1494  ;;  %3592 = vmatprep.mubr.f32.mxu1 %v24883_v54 }
 0x301   :  { %2927 = vrot.lane.b32.xlu1 %v17501_v35, %s15849_s24  ;;  %2929 = vrot.lane.b32.xlu0 %v2742_v27, %s15849_s24  ;;  %v2098_v42 = vadd.f32 %v1979_v52, %v1810_v58  ;;  %v2775_v35 = vrot.slane %v18124_v31, 4  ;;  %v1918_v27 = vrot.slane %v18124_v31, 3  ;;  %v24942_v58 = vrot.slane %v18061_v30, 1  ;;  %v18195_v30 = vld [vmem:[#allocation2 + $0x218] sm:$0xff] }
 0x303   :  { %v1981_v50 = vpop.permute.xlu1 %1980  ;;  %v2302_v37 = vadd.f32 %v2183_v1, %v2098_v42  ;;  %v18168_v1 = vsel %vm1148_vm6, %v1228_v21, %v1230_v10  ;;  %v18173_v42 = vsel %vm860_vm5, %v24942_v58, %v942_v49 }
 0x304   :  { %v2383_v63 = vpop.permute.xlu0 %2382 }
 0x305   :  { %1304 = vrot.lane.b32.xlu1 %v17422_v13, %s15843_s30  ;;  %1706 = vrot.lane.b32.xlu0 %v17490_v17, %s15845_s19  ;;  %v2502_v39 = vadd.f32 %v2383_v63, %v2302_v37  ;;  %v24941_v13 = vld [vmem:[#allocation17_spill] sm:$0xff]  ;;  %v18178_v37 = vsel %vm2628_vm8, %v2771_v41, %v2775_v35  ;;  %v15750_v41 = vld [vmem:[#allocation2 + $0x160] sm:$0xff] }
 0x307   :  { %v2904_v9 = vpop.permute.xlu1 %2903 }
 0x308   :  { %v2906_v26 = vpop.permute.xlu0 %2905 }
 0x309   :  { %v3029_v52 = vsel %vm3007_vm10, %v2904_v9, %v2906_v26  ;;  %1018 = vrot.lane.b32.xlu0 %v17493_v55, %s15842_s1  ;;  %2196 = vrot.lane.b32.xlu1 %v24941_v13, %s15847_s21  ;;  %v18183_v55 = vsel %vm1840_vm7, %v1916_v3, %v1918_v27  ;;  %v18197_v3 = vpop.f32.mrb[84].mxu0 }
 0x30a   :  { %v3123_v31 = vadd.f32 %v3029_v52, %v2502_v39  ;;  %v3516_v63 = vpop.f32.mrb[20].mxu1  ;;  %v1119_v52 = vadd.f32 %v15750_v41, %v18003_v23  ;;  %743 = vst [vmem:[#allocation2 + $0x2a0] sm:$0xff] %v18197_v3 }
 0x30b   :  { %3765 = vst [vmem:[#allocation3 + $0x80] sm:$0xff] %v3516_v63  ;;  %v3518_v21 = vpop.f32.mrb[21].mxu1  ;;  %v18185_v9 = vpop.permute.xlu1 %1292 }
 0x30c   :  { %v3177_v26 = vadd.f32 %v17506_v8, %v3123_v31  ;;  %3766 = vst.msk [vmem:[#allocation3 + $0x88] sm:$0xff] %vm659_vm4, %v3518_v21  ;;  %v18189_v39 = vpop.permute.xlu0 %1694  ;;  %v601_v8 = vpop.f32.mrb[85].mxu0  ;;  %v1407_v63 = vadd.f32 %v18049_v7, %v1119_v52  ;;  %v2745_v21 = vrot.slane %v18195_v30, 4 }
 0x30d   :  { %1994 = vrot.lane.b32.xlu0 %v17498_v60, %s15846_s20  ;;  %1508 = vrot.lane.b32.xlu1 %v17574_v34, %s15844_s16  ;;  %744 = vst.msk [vmem:[#allocation2 + $0x2a8] sm:$0xff] %vm659_vm4, %v601_v8  ;;  %v24860_v8 = vrot.slane %v18197_v3, 3 }
 0x30e   :  { %v3224_v58 = vmax.f32 %v3177_v26, 0.0  ;;  %v1611_v23 = vadd.f32 %v18077_v38, %v1407_v63  ;;  %v2746_v52 = vsel %vm2628_vm8, %v2741_v6, %v2745_v21  ;;  %v1232_v38 = vrot.slane %v18197_v3, 2 }
 0x30f   :  { %v2185_v31 = vpop.permute.xlu1 %2184  ;;  %v18243_v6 = vsel %vm1840_vm7, %v1918_v27, %v24860_v8  ;;  %v18258_v27 = vld [vmem:[#allocation2 + $0x228] sm:$0xff] }
 0x310   :  { %13870 = vmatmul.mubr.msk.f32.gmra.mrb[46].mxu1 %vm3254_vm11, %v3224_v58  ;;  %v18204_v60 = vpop.permute.xlu0 %1006  ;;  %v1811_v7 = vadd.f32 %v18127_v14, %v1611_v23  ;;  %v24859_v58 = vrot.slane %v18197_v3, 1  ;;  %v2779_v14 = vrot.slane %v18197_v3, 4 }
 0x311   :  { %2931 = vrot.lane.b32.xlu0 %v17577_v29, %s15849_s24  ;;  %2396 = vrot.lane.b32.xlu1 %v17582_v16, %s15848_s23 }
 0x312   :  { %3598 = vmatprep.mubr.f32.mxu1 %v24883_v54  ;;  %v2099_v29 = vadd.f32 %v1981_v50, %v1811_v7  ;;  %v18238_v61 = vsel %vm860_vm5, %v942_v49, %v24859_v58 }
 0x313   :  { %v18213_v26 = vpop.permute.xlu1 %1496 }
 0x314   :  { %v1983_v41 = vpop.permute.xlu0 %1982  ;;  %v2303_v63 = vadd.f32 %v2185_v31, %v2099_v29  ;;  %v18248_v31 = vsel %vm2628_vm8, %v2775_v35, %v2779_v14  ;;  %v18260_v35 = vpop.f32.mrb[86].mxu0 }
 0x315   :  { %1306 = vrot.lane.b32.xlu0 %v17490_v17, %s15843_s30  ;;  %2933 = vrot.lane.b32.xlu1 %v2746_v52, %s15849_s24  ;;  %v18233_v17 = vsel %vm1148_vm6, %v1230_v10, %v1232_v38  ;;  %745 = vst [vmem:[#allocation2 + $0x2b0] sm:$0xff] %v18260_v35 }
 0x317   :  { %v2385_v30 = vpop.permute.xlu1 %2384 }
 0x318   :  { %v2908_v23 = vpop.permute.xlu0 %2907  ;;  %v2503_v7 = vadd.f32 %v2385_v30, %v2303_v63  ;;  %v18265_v30 = vld [vmem:[%s24806_s3] ss:$0 sm:$0xff] }
 0x319   :  { %1708 = vrot.lane.b32.xlu1 %v24941_v13, %s15845_s19  ;;  %2198 = vrot.lane.b32.xlu0 %v17641_v32, %s15847_s21 }
 0x31a   :  { %v3522_v50 = vpop.f32.mrb[22].mxu1 }
 0x31b   :  { %3767 = vst [vmem:[#allocation3 + $0x90] sm:$0xff] %v3522_v50  ;;  %v3524_v10 = vpop.f32.mrb[23].mxu1  ;;  %v2910_v52 = vpop.permute.xlu1 %2909 }
 0x31c   :  { %3768 = vst.msk [vmem:[#allocation3 + $0x98] sm:$0xff] %vm659_vm4, %v3524_v10  ;;  %v18251_v29 = vpop.permute.xlu0 %1294  ;;  %v3030_v49 = vsel %vm3007_vm10, %v2908_v23, %v2910_v52  ;;  %v607_v23 = vpop.f32.mrb[87].mxu0  ;;  %v24861_v52 = vrot.slane %v18258_v27, 4 }
 0x31d   :  { %v3124_v58 = vadd.f32 %v3030_v49, %v2503_v7  ;;  %1020 = vrot.lane.b32.xlu1 %v17574_v34, %s15842_s1  ;;  %1510 = vrot.lane.b32.xlu0 %v17646_v33, %s15844_s16  ;;  %v15752_v34 = vld [vmem:[#allocation2 + $0x170] sm:$0xff]  ;;  %746 = vst.msk [vmem:[#allocation2 + $0x2b8] sm:$0xff] %vm659_vm4, %v607_v23 }
 0x31e   :  { %v1120_v7 = vadd.f32 %v15752_v34, %v18068_v48 }
 0x31f   :  { %v3178_v63 = vadd.f32 %v18265_v30, %v3124_v58  ;;  %v18268_v50 = vpop.permute.xlu1 %1696 }
 0x320   :  { %v2187_v10 = vpop.permute.xlu0 %2186  ;;  %v1408_v58 = vadd.f32 %v18115_v36, %v1120_v7 }
 0x321   :  { %v3225_v49 = vmax.f32 %v3178_v63, 0.0  ;;  %1996 = vrot.lane.b32.xlu1 %v17582_v16, %s15846_s20  ;;  %2398 = vrot.lane.b32.xlu0 %v17651_v44, %s15848_s23  ;;  %v2750_v63 = vsel %vm2628_vm8, %v2745_v21, %v24861_v52 }
 0x322   :  { %v1612_v48 = vadd.f32 %v18142_v43, %v1408_v58  ;;  %v946_v58 = vrot.slane %v18260_v35, 1 }
 0x323   :  { %13871 = vmatmul.mubr.msk.f32.gmra.mrb[48].mxu1 %vm3254_vm11, %v3225_v49  ;;  %v18280_v8 = vpop.permute.xlu1 %1008  ;;  %v1234_v49 = vrot.slane %v18260_v35, 2 }
 0x324   :  { %v18283_v34 = vpop.permute.xlu0 %1498  ;;  %3604 = vmatprep.mubr.f32.mxu1 %v24883_v54  ;;  %v1812_v16 = vadd.f32 %v18189_v39, %v1612_v48 }
 0x325   :  { %2935 = vrot.lane.b32.xlu1 %v17656_v47, %s15849_s24  ;;  %2937 = vrot.lane.b32.xlu0 %v2750_v63, %s15849_s24  ;;  %v2783_v47 = vrot.slane %v18260_v35, 4  ;;  %v1922_v63 = vrot.slane %v18260_v35, 3 }
 0x326   :  { %v2100_v23 = vadd.f32 %v1983_v41, %v1812_v16 }
 0x327   :  { %v1985_v36 = vpop.permute.xlu1 %1984 }
 0x328   :  { %v2387_v7 = vpop.permute.xlu0 %2386  ;;  %v2304_v43 = vadd.f32 %v2187_v10, %v2100_v23  ;;  %v24943_v10 = vrot.slane %v18197_v3, 1 }
 0x329   :  { %1308 = vrot.lane.b32.xlu1 %v24941_v13, %s15843_s30  ;;  %1710 = vrot.lane.b32.xlu0 %v17641_v32, %s15845_s19  ;;  %v18309_v13 = vsel %vm1148_vm6, %v1232_v38, %v1234_v49 }
 0x32a   :  { %v2504_v39 = vadd.f32 %v2387_v7, %v2304_v43  ;;  %v18314_v16 = vsel %vm860_vm5, %v24943_v10, %v946_v58  ;;  %v18319_v7 = vsel %vm2628_vm8, %v2779_v14, %v2783_v47  ;;  %v18338_v14 = vpop.f32.mrb[88].mxu0 }
 0x32b   :  { %v2912_v21 = vpop.permute.xlu1 %2911  ;;  %747 = vst [vmem:[#allocation2 + $0x2c0] sm:$0xff] %v18338_v14 }
 0x32c   :  { %v2914_v48 = vpop.permute.xlu0 %2913 }
 0x32d   :  { %v3031_v41 = vsel %vm3007_vm10, %v2912_v21, %v2914_v48  ;;  %1022 = vrot.lane.b32.xlu0 %v17646_v33, %s15842_s1  ;;  %2200 = vrot.lane.b32.xlu1 %v17726_v0, %s15847_s21  ;;  %v24944_v33 = vrot.slane %v18197_v3, 3  ;;  %v18336_v3 = vld [vmem:[#allocation2 + $0x238] sm:$0xff] }
 0x32e   :  { %v3125_v35 = vadd.f32 %v3031_v41, %v2504_v39  ;;  %v3528_v23 = vpop.f32.mrb[24].mxu1  ;;  %v15753_v41 = vld [vmem:[#allocation2 + $0x180] sm:$0xff]  ;;  %v2753_v52 = vrot.slane %v18336_v3, 4 }
 0x32f   :  { %v18324_v43 = vsel %vm1840_vm7, %v24944_v33, %v1922_v63  ;;  %3769 = vst [vmem:[#allocation3 + $0xa0] sm:$0xff] %v3528_v23  ;;  %v3530_v38 = vpop.f32.mrb[25].mxu1  ;;  %v18326_v21 = vpop.permute.xlu1 %1296  ;;  %v1121_v10 = vadd.f32 %v15753_v41, %v18139_v53 }
 0x330   :  { %24945 = vst [vmem:[#allocation8_spill] sm:$0xff] %v18324_v43  ;;  %v3179_v48 = vadd.f32 %v18265_v30, %v3125_v35  ;;  %3770 = vst.msk [vmem:[#allocation3 + $0xa8] sm:$0xff] %vm659_vm4, %v3530_v38  ;;  %v18330_v39 = vpop.permute.xlu0 %1698  ;;  %v613_v35 = vpop.f32.mrb[89].mxu0 }
 0x331   :  { %1998 = vrot.lane.b32.xlu0 %v17651_v44, %s15846_s20  ;;  %1512 = vrot.lane.b32.xlu1 %v17734_v28, %s15844_s16  ;;  %748 = vst.msk [vmem:[#allocation2 + $0x2c8] sm:$0xff] %vm659_vm4, %v613_v35  ;;  %v1409_v38 = vadd.f32 %v18185_v9, %v1121_v10  ;;  %v24946_v10 = vrot.slane %v18258_v27, 4  ;;  %v24863_v35 = vrot.slane %v18338_v14, 1 }
 0x332   :  { %v3226_v23 = vmax.f32 %v3179_v48, 0.0 }
 0x333   :  { %v2189_v33 = vpop.permute.xlu1 %2188  ;;  %v1613_v53 = vadd.f32 %v18213_v26, %v1409_v38  ;;  %v1236_v26 = vrot.slane %v18338_v14, 2  ;;  %v1924_v38 = vrot.slane %v18338_v14, 3  ;;  %v18379_v27 = vsel %vm860_vm5, %v946_v58, %v24863_v35 }
 0x334   :  { %13872 = vmatmul.mubr.msk.f32.gmra.mrb[50].mxu1 %vm3254_vm11, %v3226_v23  ;;  %v18345_v44 = vpop.permute.xlu0 %1010  ;;  %v2754_v23 = vsel %vm2628_vm8, %v24946_v10, %v2753_v52 }
 0x335   :  { %2939 = vrot.lane.b32.xlu0 %v17741_v2, %s15849_s24  ;;  %2400 = vrot.lane.b32.xlu1 %v17748_v56, %s15848_s23  ;;  %v1813_v9 = vadd.f32 %v18268_v50, %v1613_v53  ;;  %v2787_v50 = vrot.slane %v18338_v14, 4 }
 0x336   :  { %3610 = vmatprep.mubr.f32.mxu1 %v24883_v54 }
 0x337   :  { %v18354_v48 = vpop.permute.xlu1 %1500  ;;  %v2101_v2 = vadd.f32 %v1985_v36, %v1813_v9  ;;  %v18384_v36 = vsel %vm1840_vm7, %v1922_v63, %v1924_v38  ;;  %v18389_v9 = vsel %vm2628_vm8, %v2783_v47, %v2787_v50  ;;  %v18399_v63 = vld [vmem:[#allocation2 + $0x248] sm:$0xff] }
 0x338   :  { %v1987_v41 = vpop.permute.xlu0 %1986 }
 0x339   :  { %1310 = vrot.lane.b32.xlu0 %v17641_v32, %s15843_s30  ;;  %2941 = vrot.lane.b32.xlu1 %v2754_v23, %s15849_s24  ;;  %v2305_v53 = vadd.f32 %v2189_v33, %v2101_v2  ;;  %v18374_v32 = vsel %vm1148_vm6, %v1234_v49, %v1236_v26  ;;  %v18401_v47 = vpop.f32.mrb[90].mxu0 }
 0x33a   :  { %749 = vst [vmem:[#allocation2 + $0x2d0] sm:$0xff] %v18401_v47 }
 0x33b   :  { %v2389_v3 = vpop.permute.xlu1 %2388 }
 0x33c   :  { %v2916_v43 = vpop.permute.xlu0 %2915  ;;  %v2505_v10 = vadd.f32 %v2389_v3, %v2305_v53 }
 0x33d   :  { %1712 = vrot.lane.b32.xlu1 %v17726_v0, %s15845_s19  ;;  %2202 = vrot.lane.b32.xlu0 %v17811_v18, %s15847_s21 }
 0x33e   :  { %v3534_v33 = vpop.f32.mrb[26].mxu1 }
 0x33f   :  { %3771 = vst [vmem:[#allocation3 + $0xb0] sm:$0xff] %v3534_v33  ;;  %v3536_v49 = vpop.f32.mrb[27].mxu1  ;;  %v2918_v23 = vpop.permute.xlu1 %2917 }
 0x340   :  { %3772 = vst.msk [vmem:[#allocation3 + $0xb8] sm:$0xff] %vm659_vm4, %v3536_v49  ;;  %v18392_v2 = vpop.permute.xlu0 %1298  ;;  %v3032_v58 = vsel %vm3007_vm10, %v2916_v43, %v2918_v23  ;;  %v619_v33 = vpop.f32.mrb[91].mxu0  ;;  %v15754_v49 = vld [vmem:[#allocation2 + $0x190] sm:$0xff] }
 0x341   :  { %v3126_v35 = vadd.f32 %v3032_v58, %v2505_v10  ;;  %1024 = vrot.lane.b32.xlu1 %v17734_v28, %s15842_s1  ;;  %1514 = vrot.lane.b32.xlu0 %v17818_v46, %s15844_s16  ;;  %v1122_v43 = vadd.f32 %v15754_v49, %v18204_v60  ;;  %v24864_v28 = vrot.slane %v18399_v63, 4  ;;  %750 = vst.msk [vmem:[#allocation2 + $0x2d8] sm:$0xff] %vm659_vm4, %v619_v33 }
 0x343   :  { %v3180_v3 = vadd.f32 %v18265_v30, %v3126_v35  ;;  %v18404_v53 = vpop.permute.xlu1 %1700  ;;  %v1410_v35 = vadd.f32 %v18251_v29, %v1122_v43 }
 0x344   :  { %v2191_v10 = vpop.permute.xlu0 %2190 }
 0x345   :  { %v3227_v23 = vmax.f32 %v3180_v3, 0.0  ;;  %2000 = vrot.lane.b32.xlu1 %v17748_v56, %s15846_s20  ;;  %2402 = vrot.lane.b32.xlu0 %v17825_v22, %s15848_s23  ;;  %v1614_v60 = vadd.f32 %v18283_v34, %v1410_v35  ;;  %v2758_v3 = vsel %vm2628_vm8, %v2753_v52, %v24864_v28  ;;  %v950_v35 = vrot.slane %v18401_v47, 1  ;;  %v24949_v28 = vld [vmem:[#allocation18_spill] sm:$0xff] }
 0x347   :  { %13873 = vmatmul.mubr.msk.f32.gmra.mrb[52].mxu1 %vm3254_vm11, %v3227_v23  ;;  %v18416_v58 = vpop.permute.xlu1 %1012  ;;  %v1814_v56 = vadd.f32 %v18330_v39, %v1614_v60  ;;  %v1238_v23 = vrot.slane %v18401_v47, 2 }
 0x348   :  { %v18419_v49 = vpop.permute.xlu0 %1502  ;;  %3616 = vmatprep.mubr.f32.mxu1 %v24883_v54 }
 0x349   :  { %2943 = vrot.lane.b32.xlu1 %v17832_v40, %s15849_s24  ;;  %2945 = vrot.lane.b32.xlu0 %v2758_v3, %s15849_s24  ;;  %v2102_v33 = vadd.f32 %v1987_v41, %v1814_v56  ;;  %v2791_v40 = vrot.slane %v18401_v47, 4  ;;  %v1926_v3 = vrot.slane %v18401_v47, 3 }
 0x34b   :  { %v1989_v29 = vpop.permute.xlu1 %1988  ;;  %v2306_v34 = vadd.f32 %v2191_v10, %v2102_v33  ;;  %v24947_v10 = vrot.slane %v18338_v14, 1  ;;  %v18472_v14 = vld [vmem:[#allocation2 + $0x258] sm:$0xff] }
 0x34c   :  { %v2391_v43 = vpop.permute.xlu0 %2390 }
 0x34d   :  { %1312 = vrot.lane.b32.xlu1 %v17726_v0, %s15843_s30  ;;  %1714 = vrot.lane.b32.xlu0 %v17811_v18, %s15845_s19  ;;  %v2506_v39 = vadd.f32 %v2391_v43, %v2306_v34  ;;  %v18445_v0 = vsel %vm1148_vm6, %v1236_v26, %v1238_v23  ;;  %v18450_v56 = vsel %vm860_vm5, %v24947_v10, %v950_v35 }
 0x34e   :  { %v18455_v43 = vsel %vm2628_vm8, %v2787_v50, %v2791_v40  ;;  %v15755_v50 = vld [vmem:[#allocation2 + $0x1a0] sm:$0xff] }
 0x34f   :  { %v2920_v52 = vpop.permute.xlu1 %2919 }
 0x350   :  { %v2922_v60 = vpop.permute.xlu0 %2921 }
 0x351   :  { %v3033_v41 = vsel %vm3007_vm10, %v2920_v52, %v2922_v60  ;;  %1026 = vrot.lane.b32.xlu0 %v17818_v46, %s15842_s1  ;;  %2204 = vrot.lane.b32.xlu1 %v17896_v20, %s15847_s21  ;;  %v18460_v46 = vsel %vm1840_vm7, %v1924_v38, %v1926_v3  ;;  %v18474_v38 = vpop.f32.mrb[92].mxu0  ;;  %v1123_v60 = vadd.f32 %v15755_v50, %v18280_v8  ;;  %v24950_v8 = vld [vmem:[#allocation19_spill] sm:$0xff] }
 0x352   :  { %v3127_v47 = vadd.f32 %v3033_v41, %v2506_v39  ;;  %v3540_v33 = vpop.f32.mrb[28].mxu1  ;;  %24948 = vst [vmem:[#allocation9_spill] sm:$0xff] %v18460_v46  ;;  %751 = vst [vmem:[#allocation2 + $0x2e0] sm:$0xff] %v18474_v38  ;;  %v625_v10 = vpop.f32.mrb[93].mxu0 }
 0x353   :  { %3773 = vst [vmem:[#allocation3 + $0xc0] sm:$0xff] %v3540_v33  ;;  %v3542_v26 = vpop.f32.mrb[29].mxu1  ;;  %v18462_v34 = vpop.permute.xlu1 %1300  ;;  %752 = vst.msk [vmem:[#allocation2 + $0x2e8] sm:$0xff] %vm659_vm4, %v625_v10  ;;  %v1411_v33 = vadd.f32 %v18326_v21, %v1123_v60 }
 0x354   :  { %v3181_v52 = vadd.f32 %v18265_v30, %v3127_v47  ;;  %3774 = vst.msk [vmem:[#allocation3 + $0xc8] sm:$0xff] %vm659_vm4, %v3542_v26  ;;  %v18466_v39 = vpop.permute.xlu0 %1702  ;;  %v2761_v26 = vrot.slane %v18472_v14, 4 }
 0x355   :  { %2002 = vrot.lane.b32.xlu0 %v17825_v22, %s15846_s20  ;;  %1516 = vrot.lane.b32.xlu1 %v17901_v24, %s15844_s16 }
 0x356   :  { %v3228_v41 = vmax.f32 %v3181_v52, 0.0  ;;  %v1615_v52 = vadd.f32 %v18354_v48, %v1411_v33  ;;  %v18500_v48 = vrot.slane %v18474_v38, 2  ;;  %v18503_v33 = vrot.slane %v18474_v38, 1 }
 0x357   :  { %v2193_v47 = vpop.permute.xlu1 %2192 }
 0x358   :  { %13874 = vmatmul.mubr.msk.f32.gmra.mrb[54].mxu1 %vm3254_vm11, %v3228_v41  ;;  %v18481_v22 = vpop.permute.xlu0 %1014  ;;  %v1815_v21 = vadd.f32 %v18404_v53, %v1615_v52  ;;  %v24951_v41 = vrot.slane %v18399_v63, 4  ;;  %24952 = vst [vmem:[#allocation10_spill] sm:$0xff] %v18500_v48  ;;  %v1928_v53 = vrot.slane %v18474_v38, 3  ;;  %v2795_v52 = vrot.slane %v18474_v38, 4  ;;  %v18608_v38 = vld [vmem:[#allocation2 + $0x278] sm:$0xff] }
 0x359   :  { %2947 = vrot.lane.b32.xlu0 %v24949_v28, %s15849_s24  ;;  %2404 = vrot.lane.b32.xlu1 %v24950_v8, %s15848_s23 }
 0x35a   :  { %3622 = vmatprep.mubr.f32.mxu1 %v24883_v54  ;;  %v2762_v10 = vsel %vm2628_vm8, %v24951_v41, %v2761_v26  ;;  %v2103_v28 = vadd.f32 %v1989_v29, %v1815_v21  ;;  %v18517_v29 = vsel %vm860_vm5, %v950_v35, %v18503_v33  ;;  %v18522_v21 = vsel %vm1840_vm7, %v1926_v3, %v1928_v53 }
 0x35b   :  { %v18490_v50 = vpop.permute.xlu1 %1504  ;;  %24954 = vst [vmem:[#allocation12_spill] sm:$0xff] %v18517_v29 }
 0x35c   :  { %v1991_v60 = vpop.permute.xlu0 %1990  ;;  %v2307_v63 = vadd.f32 %v2193_v47, %v2103_v28  ;;  %v18527_v47 = vsel %vm2628_vm8, %v2791_v40, %v2795_v52  ;;  %v18537_v40 = vld [vmem:[#allocation2 + $0x268] sm:$0xff] }
 0x35d   :  { %1314 = vrot.lane.b32.xlu0 %v17811_v18, %s15843_s30  ;;  %2949 = vrot.lane.b32.xlu1 %v2762_v10, %s15849_s24  ;;  %v18513_v18 = vsel %vm1148_vm6, %v1238_v23, %v18500_v48 }
 0x35e   :  { %24953 = vst [vmem:[#allocation11_spill] sm:$0xff] %v18513_v18 }
 0x35f   :  { %v2393_v14 = vpop.permute.xlu1 %2392  ;;  %v18539_v3 = vpop.f32.mrb[94].mxu0 }
 0x360   :  { %v2924_v46 = vpop.permute.xlu0 %2923  ;;  %v2507_v41 = vadd.f32 %v2393_v14, %v2307_v63  ;;  %753 = vst [vmem:[#allocation2 + $0x2f0] sm:$0xff] %v18539_v3 }
 0x361   :  { %1716 = vrot.lane.b32.xlu1 %v17896_v20, %s15845_s19  ;;  %2206 = vrot.lane.b32.xlu0 %v17961_v57, %s15847_s21 }
 0x363   :  { %v3546_v10 = vpop.f32.mrb[30].mxu1  ;;  %v2926_v28 = vpop.permute.xlu1 %2925 }
 0x364   :  { %3775 = vst [vmem:[#allocation3 + $0xd0] sm:$0xff] %v3546_v10  ;;  %v3548_v23 = vpop.f32.mrb[31].mxu1  ;;  %v18529_v18 = vpop.permute.xlu0 %1302  ;;  %v3034_v35 = vsel %vm3007_vm10, %v2924_v46, %v2926_v28  ;;  %v15756_v10 = vld [vmem:[#allocation2 + $0x1b0] sm:$0xff] }
 0x365   :  { %3776 = vst.msk [vmem:[#allocation3 + $0xd8] sm:$0xff] %vm659_vm4, %v3548_v23  ;;  %v3128_v29 = vadd.f32 %v3034_v35, %v2507_v41  ;;  %1028 = vrot.lane.b32.xlu1 %v17901_v24, %s15842_s1  ;;  %1518 = vrot.lane.b32.xlu0 %v17966_v62, %s15844_s16  ;;  %v631_v46 = vpop.f32.mrb[95].mxu0  ;;  %v1124_v41 = vadd.f32 %v15756_v10, %v18345_v44  ;;  %v24868_v24 = vrot.slane %v18537_v40, 4 }
 0x366   :  { %754 = vst.msk [vmem:[#allocation2 + $0x2f8] sm:$0xff] %vm659_vm4, %v631_v46 }
 0x367   :  { %v3182_v14 = vadd.f32 %v18265_v30, %v3128_v29  ;;  %v18542_v63 = vpop.permute.xlu1 %1704  ;;  %v1412_v29 = vadd.f32 %v18392_v2, %v1124_v41 }
 0x368   :  { %v2195_v28 = vpop.permute.xlu0 %2194 }
 0x369   :  { %v3229_v23 = vmax.f32 %v3182_v14, 0.0  ;;  %2004 = vrot.lane.b32.xlu1 %v24950_v8, %s15846_s20  ;;  %2406 = vrot.lane.b32.xlu0 %v17971_v15, %s15848_s23  ;;  %v1616_v44 = vadd.f32 %v18419_v49, %v1412_v29  ;;  %v2766_v14 = vsel %vm2628_vm8, %v2761_v26, %v24868_v24  ;;  %v1442_v29 = vrot.slane %v18539_v3, 1 }
 0x36a   :  { %v2769_v24 = vrot.slane %v18608_v38, 4 }
 0x36b   :  { %13875 = vmatmul.mubr.msk.f32.gmra.mrb[56].mxu1 %vm3254_vm11, %v3229_v23  ;;  %v18554_v35 = vpop.permute.xlu1 %1016  ;;  %v1816_v2 = vadd.f32 %v18466_v39, %v1616_v44  ;;  %v1642_v23 = vrot.slane %v18539_v3, 2 }
 0x36c   :  { %v18557_v10 = vpop.permute.xlu0 %1506  ;;  %3628 = vmatprep.mubr.f32.mxu1 %v24883_v54 }
 0x36d   :  { %2951 = vrot.lane.b32.xlu1 %v17976_v59, %s15849_s24  ;;  %2953 = vrot.lane.b32.xlu0 %v2766_v14, %s15849_s24  ;;  %v2104_v46 = vadd.f32 %v1991_v60, %v1816_v2  ;;  %v2799_v59 = vrot.slane %v18539_v3, 4  ;;  %v1930_v14 = vrot.slane %v18539_v3, 3 }
 0x36f   :  { %v1993_v8 = vpop.permute.xlu1 %1992  ;;  %v2308_v49 = vadd.f32 %v2195_v28, %v2104_v46  ;;  %v18586_v28 = vsel %vm860_vm5, %v18503_v33, %v1442_v29  ;;  %v18591_v46 = vsel %vm2628_vm8, %v2795_v52, %v2799_v59  ;;  %v15757_v52 = vld [vmem:[#allocation2 + $0x1c0] sm:$0xff] }
 0x370   :  { %v2395_v41 = vpop.permute.xlu0 %2394 }
 0x371   :  { %1316 = vrot.lane.b32.xlu1 %v17896_v20, %s15843_s30  ;;  %1718 = vrot.lane.b32.xlu0 %v17961_v57, %s15845_s19  ;;  %v2508_v39 = vadd.f32 %v2395_v41, %v2308_v49  ;;  %v18582_v20 = vsel %vm1148_vm6, %v18500_v48, %v1642_v23 }
 0x373   :  { %v2928_v26 = vpop.permute.xlu1 %2927 }
 0x374   :  { %v2930_v44 = vpop.permute.xlu0 %2929 }
 0x375   :  { %v3035_v60 = vsel %vm3007_vm10, %v2928_v26, %v2930_v44  ;;  %1030 = vrot.lane.b32.xlu0 %v17966_v62, %s15842_s1  ;;  %2208 = vrot.lane.b32.xlu1 %v18032_v25, %s15847_s21  ;;  %v18596_v62 = vsel %vm1840_vm7, %v1928_v53, %v1930_v14  ;;  %v1125_v44 = vadd.f32 %v15757_v52, %v18416_v58 }
 0x376   :  { %v3129_v2 = vadd.f32 %v3035_v60, %v2508_v39  ;;  %v3552_v3 = vpop.f32.mrb[32].mxu1 }
 0x377   :  { %3777 = vst [vmem:[#allocation3 + $0xe0] sm:$0xff] %v3552_v3  ;;  %v3554_v41 = vpop.f32.mrb[33].mxu1  ;;  %v18598_v49 = vpop.permute.xlu1 %1304 }
 0x378   :  { %v3183_v26 = vadd.f32 %v18265_v30, %v3129_v2  ;;  %3778 = vst.msk [vmem:[#allocation3 + $0xe8] sm:$0xff] %vm659_vm4, %v3554_v41  ;;  %v18602_v39 = vpop.permute.xlu0 %1706  ;;  %v18610_v53 = vpop.f32.mrb[96].mxu0  ;;  %v1413_v41 = vadd.f32 %v18462_v34, %v1125_v44  ;;  %v24955_v44 = vrot.slane %v18537_v40, 4 }
 0x379   :  { %2006 = vrot.lane.b32.xlu0 %v17971_v15, %s15846_s20  ;;  %1520 = vrot.lane.b32.xlu1 %v18037_v19, %s15844_s16  ;;  %v637_v3 = vpop.f32.mrb[97].mxu0  ;;  %v24871_v40 = vrot.slane %v18610_v53, 4 }
 0x37a   :  { %v3230_v60 = vmax.f32 %v3183_v26, 0.0  ;;  %756 = vst.msk [vmem:[#allocation2 + $0x308] sm:$0xff] %vm659_vm4, %v637_v3  ;;  %v1617_v58 = vadd.f32 %v18490_v50, %v1413_v41  ;;  %v18635_v50 = vrot.slane %v18610_v53, 2  ;;  %v24870_v41 = vrot.slane %v18610_v53, 1 }
 0x37b   :  { %v2197_v2 = vpop.permute.xlu1 %2196 }
 0x37c   :  { %13876 = vmatmul.mubr.msk.f32.gmra.mrb[58].mxu1 %vm3254_vm11, %v3230_v60  ;;  %v18616_v15 = vpop.permute.xlu0 %1018  ;;  %v1817_v34 = vadd.f32 %v18542_v63, %v1617_v58  ;;  %v2770_v60 = vsel %vm2628_vm8, %v24955_v44, %v2769_v24  ;;  %v18639_v63 = vrot.slane %v18610_v53, 3 }
 0x37d   :  { %2955 = vrot.lane.b32.xlu0 %v18042_v4, %s15849_s24  ;;  %2408 = vrot.lane.b32.xlu1 %v18047_v12, %s15848_s23 }
 0x37e   :  { %3634 = vmatprep.mubr.f32.mxu1 %v24883_v54  ;;  %v2105_v4 = vadd.f32 %v1993_v8, %v1817_v34  ;;  %v18654_v8 = vsel %vm860_vm5, %v1442_v29, %v24870_v41  ;;  %v18663_v34 = vsel %vm2628_vm8, %v2799_v59, %v24871_v40  ;;  %v18672_v29 = vld [vmem:[#allocation2 + $0x288] sm:$0xff] }
 0x37f   :  { %v18625_v26 = vpop.permute.xlu1 %1508 }
 0x380   :  { %v1995_v52 = vpop.permute.xlu0 %1994  ;;  %v2309_v58 = vadd.f32 %v2197_v2, %v2105_v4  ;;  %v18658_v2 = vsel %vm1840_vm7, %v1930_v14, %v18639_v63 }
 0x381   :  { %1318 = vrot.lane.b32.xlu0 %v17961_v57, %s15843_s30  ;;  %2957 = vrot.lane.b32.xlu1 %v2770_v60, %s15849_s24  ;;  %v18649_v57 = vsel %vm1148_vm6, %v1642_v23, %v18635_v50 }
 0x383   :  { %v3558_v38 = vpop.f32.mrb[34].mxu1  ;;  %v2397_v3 = vpop.permute.xlu1 %2396 }
 0x384   :  { %3779 = vst [vmem:[#allocation3 + $0xf0] sm:$0xff] %v3558_v38  ;;  %v3560_v44 = vpop.f32.mrb[35].mxu1  ;;  %v2932_v48 = vpop.permute.xlu0 %2931  ;;  %v2509_v60 = vadd.f32 %v2397_v3, %v2309_v58 }
 0x385   :  { %3780 = vst.msk [vmem:[#allocation3 + $0xf8] sm:$0xff] %vm659_vm4, %v3560_v44  ;;  %1720 = vrot.lane.b32.xlu1 %v18032_v25, %s15845_s19  ;;  %2210 = vrot.lane.b32.xlu0 %v18097_v45, %s15847_s21 }
 0x387   :  { %v2934_v4 = vpop.permute.xlu1 %2933  ;;  %v18674_v41 = vpop.f32.mrb[98].mxu0 }
 0x388   :  { %v18665_v38 = vpop.permute.xlu0 %1306  ;;  %v3036_v23 = vsel %vm3007_vm10, %v2932_v48, %v2934_v4  ;;  %757 = vst [vmem:[#allocation2 + $0x310] sm:$0xff] %v18674_v41  ;;  %v15758_v48 = vld [vmem:[#allocation2 + $0x1d0] sm:$0xff]  ;;  %v2773_v4 = vrot.slane %v18672_v29, 4 }
 0x389   :  { %v3130_v44 = vadd.f32 %v3036_v23, %v2509_v60  ;;  %1032 = vrot.lane.b32.xlu1 %v18037_v19, %s15842_s1  ;;  %1522 = vrot.lane.b32.xlu0 %v18102_v5, %s15844_s16  ;;  %v1126_v60 = vadd.f32 %v15758_v48, %v18481_v22  ;;  %v643_v23 = vpop.f32.mrb[99].mxu0  ;;  %v2134_v48 = vrot.slane %v18674_v41, 2 }
 0x38a   :  { %v3564_v14 = vpop.f32.mrb[36].mxu1  ;;  %758 = vst.msk [vmem:[#allocation2 + $0x318] sm:$0xff] %vm659_vm4, %v643_v23  ;;  %v2774_v29 = vsel %vm2628_vm8, %v2769_v24, %v2773_v4 }
 0x38b   :  { %v3184_v59 = vadd.f32 %v18265_v30, %v3130_v44  ;;  %3781 = vst [vmem:[#allocation3 + $0x100] sm:$0xff] %v3564_v14  ;;  %v3566_v3 = vpop.f32.mrb[37].mxu1  ;;  %v18677_v58 = vpop.permute.xlu1 %1708  ;;  %v1414_v44 = vadd.f32 %v18529_v18, %v1126_v60  ;;  %v2334_v60 = vrot.slane %v18674_v41, 3 }
 0x38c   :  { %3782 = vst.msk [vmem:[#allocation3 + $0x108] sm:$0xff] %vm659_vm4, %v3566_v3  ;;  %v2199_v19 = vpop.permute.xlu0 %2198 }
 0x38d   :  { %v3231_v40 = vmax.f32 %v3184_v59, 0.0  ;;  %2008 = vrot.lane.b32.xlu1 %v18047_v12, %s15846_s20  ;;  %2410 = vrot.lane.b32.xlu0 %v18107_v51, %s15848_s23  ;;  %v1618_v14 = vadd.f32 %v18557_v10, %v1414_v44 }
 0x38f   :  { %13877 = vmatmul.mubr.msk.f32.gmra.mrb[60].mxu1 %vm3254_vm11, %v3231_v40  ;;  %v18690_v22 = vpop.permute.xlu1 %1020  ;;  %v1818_v12 = vadd.f32 %v18602_v39, %v1618_v14 }
 0x390   :  { %v18693_v3 = vpop.permute.xlu0 %1510  ;;  %3640 = vmatprep.mubr.f32.mxu1 %v24883_v54 }
 0x391   :  { %2959 = vrot.lane.b32.xlu1 %v18112_v11, %s15849_s24  ;;  %2961 = vrot.lane.b32.xlu0 %v2774_v29, %s15849_s24  ;;  %v2106_v59 = vadd.f32 %v1995_v52, %v1818_v12  ;;  %v24872_v11 = vrot.slane %v18674_v41, 4 }
 0x393   :  { %v1997_v18 = vpop.permute.xlu1 %1996  ;;  %v2310_v10 = vadd.f32 %v2199_v19, %v2106_v59  ;;  %v18723_v19 = vsel %vm1840_vm7, %v18639_v63, %v2334_v60 }
 0x394   :  { %v2399_v40 = vpop.permute.xlu0 %2398 }
 0x395   :  { %1320 = vrot.lane.b32.xlu1 %v18032_v25, %s15843_s30  ;;  %1722 = vrot.lane.b32.xlu0 %v18097_v45, %s15845_s19  ;;  %v2510_v23 = vadd.f32 %v2399_v40, %v2310_v10  ;;  %v18717_v25 = vsel %vm1148_vm6, %v18635_v50, %v2134_v48 }
 0x397   :  { %v2936_v24 = vpop.permute.xlu1 %2935 }
 0x398   :  { %v2938_v44 = vpop.permute.xlu0 %2937 }
 0x399   :  { %v3037_v39 = vsel %vm3007_vm10, %v2936_v24, %v2938_v44  ;;  %1034 = vrot.lane.b32.xlu0 %v18102_v5, %s15842_s1  ;;  %2212 = vrot.lane.b32.xlu1 %v18168_v1, %s15847_s21  ;;  %v24956_v5 = vrot.slane %v18610_v53, 4  ;;  %v2566_v24 = vld [vmem:[#allocation2 + $0x298] sm:$0xff]  ;;  %v15759_v44 = vld [vmem:[#allocation2 + $0x1e0] sm:$0xff] }
 0x39a   :  { %v3131_v52 = vadd.f32 %v3037_v39, %v2510_v23  ;;  %v1127_v39 = vadd.f32 %v15759_v44, %v18554_v35 }
 0x39b   :  { %v18730_v14 = vsel %vm2628_vm8, %v24956_v5, %v24872_v11  ;;  %v3570_v29 = vpop.f32.mrb[38].mxu1  ;;  %v18732_v12 = vpop.permute.xlu1 %1308 }
 0x39c   :  { %v3185_v59 = vadd.f32 %v18265_v30, %v3131_v52  ;;  %3783 = vst [vmem:[#allocation3 + $0x110] sm:$0xff] %v3570_v29  ;;  %v3572_v40 = vpop.f32.mrb[39].mxu1  ;;  %v1711_v10 = vpop.permute.xlu0 %1710  ;;  %v2777_v29 = vrot.slane %v2566_v24, 4  ;;  %v1415_v11 = vadd.f32 %v18598_v49, %v1127_v39 }
 0x39d   :  { %3784 = vst.msk [vmem:[#allocation3 + $0x118] sm:$0xff] %vm659_vm4, %v3572_v40  ;;  %2010 = vrot.lane.b32.xlu0 %v18107_v51, %s15846_s20  ;;  %1524 = vrot.lane.b32.xlu1 %v18173_v42, %s15844_s16 }
 0x39e   :  { %v3232_v23 = vmax.f32 %v3185_v59, 0.0  ;;  %v1619_v51 = vadd.f32 %v18625_v26, %v1415_v11  ;;  %v2778_v40 = vsel %vm2628_vm8, %v2773_v4, %v2777_v29 }
 0x39f   :  { %v2201_v5 = vpop.permute.xlu1 %2200 }
 0x3a0   :  { %13878 = vmatmul.mubr.msk.f32.gmra.mrb[62].mxu1 %vm3254_vm11, %v3232_v23  ;;  %v18742_v52 = vpop.permute.xlu0 %1022  ;;  %v1819_v23 = vadd.f32 %v18677_v58, %v1619_v51 }
 0x3a1   :  { %2963 = vrot.lane.b32.xlu0 %v18178_v37, %s15849_s24  ;;  %2412 = vrot.lane.b32.xlu1 %v18183_v55, %s15848_s23 }
 0x3a2   :  { %3646 = vmatprep.mubr.f32.mxu1 %v24883_v54  ;;  %v2107_v37 = vadd.f32 %v1997_v18, %v1819_v23  ;;  %v15760_v23 = vld [vmem:[#allocation2 + $0x1f0] sm:$0xff] }
 0x3a3   :  { %v18751_v59 = vpop.permute.xlu1 %1512 }
 0x3a4   :  { %v1999_v35 = vpop.permute.xlu0 %1998  ;;  %v2311_v44 = vadd.f32 %v2201_v5, %v2107_v37  ;;  %v1128_v37 = vadd.f32 %v15760_v23, %v18616_v15 }
 0x3a5   :  { %1322 = vrot.lane.b32.xlu0 %v18097_v45, %s15843_s30  ;;  %2965 = vrot.lane.b32.xlu1 %v2778_v40, %s15849_s24  ;;  %v18769_v45 = vld [vmem:[#allocation2 + $0x2a8] sm:$0xff] }
 0x3a7   :  { %v2401_v49 = vpop.permute.xlu1 %2400 }
 0x3a8   :  { %v2940_v24 = vpop.permute.xlu0 %2939  ;;  %v2511_v26 = vadd.f32 %v2401_v49, %v2311_v44  ;;  %v1416_v44 = vadd.f32 %v18665_v38, %v1128_v37 }
 0x3a9   :  { %1724 = vrot.lane.b32.xlu1 %v18168_v1, %s15845_s19  ;;  %2214 = vrot.lane.b32.xlu0 %v18233_v17, %s15847_s21 }
 0x3aa   :  { %v1620_v15 = vadd.f32 %v18693_v3, %v1416_v44 }
 0x3ab   :  { %v2942_v11 = vpop.permute.xlu1 %2941 }
 0x3ac   :  { %v18762_v4 = vpop.permute.xlu0 %1310  ;;  %v3038_v58 = vsel %vm3007_vm10, %v2940_v24, %v2942_v11  ;;  %v2781_v24 = vrot.slane %v18769_v45, 4 }
 0x3ad   :  { %v3132_v39 = vadd.f32 %v3038_v58, %v2511_v26  ;;  %1036 = vrot.lane.b32.xlu1 %v18173_v42, %s15842_s1  ;;  %1526 = vrot.lane.b32.xlu0 %v18238_v61, %s15844_s16 }
 0x3ae   :  { %v3576_v18 = vpop.f32.mrb[40].mxu1  ;;  %v2782_v58 = vsel %vm2628_vm8, %v2777_v29, %v2781_v24 }
 0x3af   :  { %v3186_v5 = vadd.f32 %v18265_v30, %v3132_v39  ;;  %3785 = vst [vmem:[#allocation3 + $0x120] sm:$0xff] %v3576_v18  ;;  %v3578_v51 = vpop.f32.mrb[41].mxu1  ;;  %v1713_v40 = vpop.permute.xlu1 %1712 }
 0x3b0   :  { %3786 = vst.msk [vmem:[#allocation3 + $0x128] sm:$0xff] %vm659_vm4, %v3578_v51  ;;  %v2203_v49 = vpop.permute.xlu0 %2202 }
 0x3b1   :  { %v3233_v42 = vmax.f32 %v3186_v5, 0.0  ;;  %2012 = vrot.lane.b32.xlu1 %v18183_v55, %s15846_s20  ;;  %2414 = vrot.lane.b32.xlu0 %v18243_v6, %s15848_s23  ;;  %v1820_v55 = vadd.f32 %v1711_v10, %v1620_v15 }
 0x3b3   :  { %13879 = vmatmul.mubr.msk.f32.gmra.mrb[64].mxu1 %vm3254_vm11, %v3233_v42  ;;  %v18781_v26 = vpop.permute.xlu1 %1024  ;;  %v2108_v38 = vadd.f32 %v1999_v35, %v1820_v55  ;;  %v15761_v42 = vld [vmem:[#allocation2 + $0x200] sm:$0xff] }
 0x3b4   :  { %v18784_v11 = vpop.permute.xlu0 %1514  ;;  %3652 = vmatprep.mubr.f32.mxu1 %v24883_v54  ;;  %v1129_v44 = vadd.f32 %v15761_v42, %v18690_v22 }
 0x3b5   :  { %2967 = vrot.lane.b32.xlu1 %v18248_v31, %s15849_s24  ;;  %2969 = vrot.lane.b32.xlu0 %v2782_v58, %s15849_s24  ;;  %v2312_v3 = vadd.f32 %v2203_v49, %v2108_v38 }
 0x3b6   :  { %v1417_v38 = vadd.f32 %v18732_v12, %v1129_v44 }
 0x3b7   :  { %v2001_v39 = vpop.permute.xlu1 %2000 }
 0x3b8   :  { %v2403_v45 = vpop.permute.xlu0 %2402 }
 0x3b9   :  { %1324 = vrot.lane.b32.xlu1 %v18168_v1, %s15843_s30  ;;  %1726 = vrot.lane.b32.xlu0 %v18233_v17, %s15845_s19  ;;  %v2512_v29 = vadd.f32 %v2403_v45, %v2312_v3  ;;  %v1621_v45 = vadd.f32 %v18751_v59, %v1417_v38 }
 0x3bb   :  { %v2944_v18 = vpop.permute.xlu1 %2943 }
 0x3bc   :  { %v2946_v5 = vpop.permute.xlu0 %2945 }
 0x3bd   :  { %v3039_v51 = vsel %vm3007_vm10, %v2944_v18, %v2946_v5  ;;  %1038 = vrot.lane.b32.xlu0 %v18238_v61, %s15842_s1  ;;  %2216 = vrot.lane.b32.xlu1 %v18309_v13, %s15847_s21  ;;  %v2568_v61 = vld [vmem:[#allocation2 + $0x2b8] sm:$0xff] }
 0x3be   :  { %v3133_v31 = vadd.f32 %v3039_v51, %v2512_v29  ;;  %v2785_v55 = vrot.slane %v2568_v61, 4  ;;  %v1821_v29 = vadd.f32 %v1713_v40, %v1621_v45 }
 0x3bf   :  { %v3582_v10 = vpop.f32.mrb[42].mxu1  ;;  %v18800_v35 = vpop.permute.xlu1 %1312 }
 0x3c0   :  { %v3187_v1 = vadd.f32 %v18265_v30, %v3133_v31  ;;  %3787 = vst [vmem:[#allocation3 + $0x130] sm:$0xff] %v3582_v10  ;;  %v3584_v23 = vpop.f32.mrb[43].mxu1  ;;  %v1715_v37 = vpop.permute.xlu0 %1714  ;;  %v2786_v18 = vsel %vm2628_vm8, %v2781_v24, %v2785_v55  ;;  %v2109_v12 = vadd.f32 %v2001_v39, %v1821_v29 }
 0x3c1   :  { %3788 = vst.msk [vmem:[#allocation3 + $0x138] sm:$0xff] %vm659_vm4, %v3584_v23  ;;  %2014 = vrot.lane.b32.xlu0 %v18243_v6, %s15846_s20  ;;  %1528 = vrot.lane.b32.xlu1 %v18314_v16, %s15844_s16  ;;  %v24957_v6 = vld [vmem:[#allocation8_spill] sm:$0xff] }
 0x3c2   :  { %v3234_v49 = vmax.f32 %v3187_v1, 0.0 }
 0x3c3   :  { %v2205_v15 = vpop.permute.xlu1 %2204 }
 0x3c4   :  { %13880 = vmatmul.mubr.msk.f32.gmra.mrb[66].mxu1 %vm3254_vm11, %v3234_v49  ;;  %v18810_v58 = vpop.permute.xlu0 %1026  ;;  %v2313_v51 = vadd.f32 %v2205_v15, %v2109_v12  ;;  %v15762_v49 = vld [vmem:[#allocation2 + $0x210] sm:$0xff] }
 0x3c5   :  { %2971 = vrot.lane.b32.xlu0 %v18319_v7, %s15849_s24  ;;  %2416 = vrot.lane.b32.xlu1 %v24957_v6, %s15848_s23  ;;  %v1130_v42 = vadd.f32 %v15762_v49, %v18742_v52 }
 0x3c6   :  { %3658 = vmatprep.mubr.f32.mxu1 %v24883_v54 }
 0x3c7   :  { %v18819_v3 = vpop.permute.xlu1 %1516  ;;  %v1418_v38 = vadd.f32 %v18762_v4, %v1130_v42 }
 0x3c8   :  { %v2003_v22 = vpop.permute.xlu0 %2002 }
 0x3c9   :  { %1326 = vrot.lane.b32.xlu0 %v18233_v17, %s15843_s30  ;;  %2973 = vrot.lane.b32.xlu1 %v2786_v18, %s15849_s24  ;;  %v18836_v17 = vld [vmem:[#allocation2 + $0x2c8] sm:$0xff]  ;;  %v1622_v52 = vadd.f32 %v18784_v11, %v1418_v38 }
 0x3ca   :  { %v2789_v15 = vrot.slane %v18836_v17, 4  ;;  %v15763_v17 = vld [vmem:[#allocation2 + $0x220] sm:$0xff] }
 0x3cb   :  { %v2405_v7 = vpop.permute.xlu1 %2404 }
 0x3cc   :  { %v2948_v5 = vpop.permute.xlu0 %2947  ;;  %v2513_v59 = vadd.f32 %v2405_v7, %v2313_v51  ;;  %v2790_v29 = vsel %vm2628_vm8, %v2785_v55, %v2789_v15 }
 0x3cd   :  { %1728 = vrot.lane.b32.xlu1 %v18309_v13, %s15845_s19  ;;  %2218 = vrot.lane.b32.xlu0 %v18374_v32, %s15847_s21 }
 0x3cf   :  { %v2950_v31 = vpop.permute.xlu1 %2949 }
 0x3d0   :  { %v18829_v10 = vpop.permute.xlu0 %1314  ;;  %v3040_v40 = vsel %vm3007_vm10, %v2948_v5, %v2950_v31 }
 0x3d1   :  { %v3134_v24 = vadd.f32 %v3040_v40, %v2513_v59  ;;  %1040 = vrot.lane.b32.xlu1 %v18314_v16, %s15842_s1  ;;  %1530 = vrot.lane.b32.xlu0 %v18379_v27, %s15844_s16 }
 0x3d2   :  { %v3588_v39 = vpop.f32.mrb[44].mxu1 }
 0x3d3   :  { %v3188_v1 = vadd.f32 %v18265_v30, %v3134_v24  ;;  %3789 = vst [vmem:[#allocation3 + $0x140] sm:$0xff] %v3588_v39  ;;  %v3590_v23 = vpop.f32.mrb[45].mxu1  ;;  %v1717_v61 = vpop.permute.xlu1 %1716  ;;  %v1131_v39 = vadd.f32 %v15763_v17, %v18781_v26 }
 0x3d4   :  { %3790 = vst.msk [vmem:[#allocation3 + $0x148] sm:$0xff] %vm659_vm4, %v3590_v23  ;;  %v2207_v44 = vpop.permute.xlu0 %2206 }
 0x3d5   :  { %v3235_v16 = vmax.f32 %v3188_v1, 0.0  ;;  %2016 = vrot.lane.b32.xlu1 %v24957_v6, %s15846_s20  ;;  %2418 = vrot.lane.b32.xlu0 %v18384_v36, %s15848_s23  ;;  %v1822_v6 = vadd.f32 %v1715_v37, %v1622_v52  ;;  %v1419_v49 = vadd.f32 %v18800_v35, %v1131_v39 }
 0x3d7   :  { %13881 = vmatmul.mubr.msk.f32.gmra.mrb[68].mxu1 %vm3254_vm11, %v3235_v16  ;;  %v18848_v45 = vpop.permute.xlu1 %1028  ;;  %v2110_v4 = vadd.f32 %v2003_v22, %v1822_v6  ;;  %v1623_v42 = vadd.f32 %v18819_v3, %v1419_v49  ;;  %v24959_v3 = vld [vmem:[#allocation11_spill] sm:$0xff] }
 0x3d8   :  { %v18851_v18 = vpop.permute.xlu0 %1518  ;;  %3664 = vmatprep.mubr.f32.mxu1 %v24883_v54 }
 0x3d9   :  { %2975 = vrot.lane.b32.xlu1 %v18389_v9, %s15849_s24  ;;  %2977 = vrot.lane.b32.xlu0 %v2790_v29, %s15849_s24  ;;  %v2314_v11 = vadd.f32 %v2207_v44, %v2110_v4  ;;  %v1823_v38 = vadd.f32 %v1717_v61, %v1623_v42 }
 0x3db   :  { %v2005_v12 = vpop.permute.xlu1 %2004 }
 0x3dc   :  { %v2407_v7 = vpop.permute.xlu0 %2406  ;;  %v2111_v35 = vadd.f32 %v2005_v12, %v1823_v38  ;;  %v18903_v12 = vld [vmem:[#allocation2 + $0x2e8] sm:$0xff] }
 0x3dd   :  { %1328 = vrot.lane.b32.xlu1 %v18309_v13, %s15843_s30  ;;  %1730 = vrot.lane.b32.xlu0 %v18374_v32, %s15845_s19  ;;  %v2514_v55 = vadd.f32 %v2407_v7, %v2314_v11 }
 0x3df   :  { %v2952_v5 = vpop.permute.xlu1 %2951 }
 0x3e0   :  { %v2954_v51 = vpop.permute.xlu0 %2953 }
 0x3e1   :  { %v3041_v59 = vsel %vm3007_vm10, %v2952_v5, %v2954_v51  ;;  %1042 = vrot.lane.b32.xlu0 %v18379_v27, %s15842_s1  ;;  %2220 = vrot.lane.b32.xlu1 %v18445_v0, %s15847_s21  ;;  %v2570_v27 = vld [vmem:[#allocation2 + $0x2d8] sm:$0xff]  ;;  %v18908_v5 = vld [vmem:[%s24806_s3] ss:$0 sm:$0xff] }
 0x3e2   :  { %v3135_v9 = vadd.f32 %v3041_v59, %v2514_v55  ;;  %v2793_v23 = vrot.slane %v2570_v27, 4 }
 0x3e3   :  { %v3594_v37 = vpop.f32.mrb[46].mxu1  ;;  %v18867_v22 = vpop.permute.xlu1 %1316 }
 0x3e4   :  { %v3189_v13 = vadd.f32 %v18265_v30, %v3135_v9  ;;  %3791 = vst [vmem:[#allocation3 + $0x150] sm:$0xff] %v3594_v37  ;;  %v3596_v31 = vpop.f32.mrb[47].mxu1  ;;  %v1719_v40 = vpop.permute.xlu0 %1718  ;;  %v2794_v16 = vsel %vm2628_vm8, %v2789_v15, %v2793_v23  ;;  %v15765_v9 = vld [vmem:[#allocation2 + $0x230] sm:$0xff] }
 0x3e5   :  { %3792 = vst.msk [vmem:[#allocation3 + $0x158] sm:$0xff] %vm659_vm4, %v3596_v31  ;;  %2018 = vrot.lane.b32.xlu0 %v18384_v36, %s15846_s20  ;;  %1532 = vrot.lane.b32.xlu1 %v18450_v56, %s15844_s16  ;;  %v24958_v36 = vld [vmem:[#allocation9_spill] sm:$0xff]  ;;  %v1132_v37 = vadd.f32 %v15765_v9, %v18810_v58 }
 0x3e6   :  { %v3236_v24 = vmax.f32 %v3189_v13, 0.0  ;;  %v2797_v13 = vrot.slane %v18903_v12, 4 }
 0x3e7   :  { %v2209_v1 = vpop.permute.xlu1 %2208  ;;  %v1420_v27 = vadd.f32 %v18829_v10, %v1132_v37 }
 0x3e8   :  { %13882 = vmatmul.mubr.msk.f32.gmra.mrb[70].mxu1 %vm3254_vm11, %v3236_v24  ;;  %v18877_v30 = vpop.permute.xlu0 %1030  ;;  %v2315_v29 = vadd.f32 %v2209_v1, %v2111_v35  ;;  %v2798_v39 = vsel %vm2628_vm8, %v2793_v23, %v2797_v13 }
 0x3e9   :  { %2979 = vrot.lane.b32.xlu0 %v18455_v43, %s15849_s24  ;;  %2420 = vrot.lane.b32.xlu1 %v24958_v36, %s15848_s23  ;;  %v1624_v58 = vadd.f32 %v18851_v18, %v1420_v27 }
 0x3ea   :  { %3670 = vmatprep.mubr.f32.mxu1 %v24883_v54 }
 0x3eb   :  { %v18886_v44 = vpop.permute.xlu1 %1520  ;;  %v1824_v1 = vadd.f32 %v1719_v40, %v1624_v58  ;;  %v18978_v58 = vld [vmem:[#allocation2 + $0x308] sm:$0xff] }
 0x3ec   :  { %v2007_v26 = vpop.permute.xlu0 %2006 }
 0x3ed   :  { %1330 = vrot.lane.b32.xlu0 %v18374_v32, %s15843_s30  ;;  %2981 = vrot.lane.b32.xlu1 %v2794_v16, %s15849_s24  ;;  %v24960_v32 = vld [vmem:[#allocation12_spill] sm:$0xff]  ;;  %v2112_v10 = vadd.f32 %v2007_v26, %v1824_v1 }
 0x3ef   :  { %v2409_v43 = vpop.permute.xlu1 %2408 }
 0x3f0   :  { %v2956_v52 = vpop.permute.xlu0 %2955  ;;  %v2515_v6 = vadd.f32 %v2409_v43, %v2315_v29 }
 0x3f1   :  { %1732 = vrot.lane.b32.xlu1 %v18445_v0, %s15845_s19  ;;  %2222 = vrot.lane.b32.xlu0 %v24959_v3, %s15847_s21 }
 0x3f3   :  { %v2958_v4 = vpop.permute.xlu1 %2957 }
 0x3f4   :  { %v18896_v7 = vpop.permute.xlu0 %1318  ;;  %v3042_v61 = vsel %vm3007_vm10, %v2956_v52, %v2958_v4  ;;  %v2572_v52 = vld [vmem:[#allocation2 + $0x2f8] sm:$0xff] }
 0x3f5   :  { %v3136_v15 = vadd.f32 %v3042_v61, %v2515_v6  ;;  %1044 = vrot.lane.b32.xlu1 %v18450_v56, %s15842_s1  ;;  %1534 = vrot.lane.b32.xlu0 %v24960_v32, %s15844_s16  ;;  %v15766_v6 = vld [vmem:[#allocation2 + $0x240] sm:$0xff] }
 0x3f6   :  { %v3600_v11 = vpop.f32.mrb[48].mxu1  ;;  %v1133_v4 = vadd.f32 %v15766_v6, %v18848_v45 }
 0x3f7   :  { %v3190_v55 = vadd.f32 %v18908_v5, %v3136_v15  ;;  %3793 = vst [vmem:[#allocation3 + $0x160] sm:$0xff] %v3600_v11  ;;  %v3602_v51 = vpop.f32.mrb[49].mxu1  ;;  %v1721_v59 = vpop.permute.xlu1 %1720 }
 0x3f8   :  { %3794 = vst.msk [vmem:[#allocation3 + $0x168] sm:$0xff] %vm659_vm4, %v3602_v51  ;;  %v2211_v56 = vpop.permute.xlu0 %2210  ;;  %v1421_v12 = vadd.f32 %v18867_v22, %v1133_v4  ;;  %v811_v22 = vld [vmem:[#allocation2 + $0x2f0] sm:$0x1] }
 0x3f9   :  { %v3237_v31 = vmax.f32 %v3190_v55, 0.0  ;;  %2020 = vrot.lane.b32.xlu1 %v24958_v36, %s15846_s20  ;;  %2422 = vrot.lane.b32.xlu0 %v18522_v21, %s15848_s23  ;;  %v2316_v18 = vadd.f32 %v2211_v56, %v2112_v10  ;;  %v954_v37 = vrot.slane %v811_v22, 1  ;;  %v15767_v10 = vld [vmem:[#allocation2 + $0x250] sm:$0xff] }
 0x3fb   :  { %13883 = vmatmul.mubr.msk.f32.gmra.mrb[72].mxu1 %vm3254_vm11, %v3237_v31  ;;  %v18920_v24 = vpop.permute.xlu1 %1032  ;;  %v955_v31 = vsel %vm860_vm5, %v18503_v33, %v954_v37 }
 0x3fc   :  { %v18923_v17 = vpop.permute.xlu0 %1522  ;;  %3676 = vmatprep.mubr.f32.mxu1 %v24883_v54 }
 0x3fd   :  { %2983 = vrot.lane.b32.xlu1 %v18527_v47, %s15849_s24  ;;  %2985 = vrot.lane.b32.xlu0 %v2798_v39, %s15849_s24 }
 0x3ff   :  { %v2009_v49 = vpop.permute.xlu1 %2008 }
 0x400   :  { %v2411_v36 = vpop.permute.xlu0 %2410 }
 0x401   :  { %1332 = vrot.lane.b32.xlu1 %v18445_v0, %s15843_s30  ;;  %1734 = vrot.lane.b32.xlu0 %v24959_v3, %s15845_s19  ;;  %v2516_v23 = vadd.f32 %v2411_v36, %v2316_v18  ;;  %v1134_v36 = vadd.f32 %v15767_v10, %v18877_v30  ;;  %v2805_v18 = vrot.slane %v18978_v58, 4 }
 0x403   :  { %v2960_v42 = vpop.permute.xlu1 %2959 }
 0x404   :  { %v2962_v16 = vpop.permute.xlu0 %2961 }
 0x405   :  { %v3043_v38 = vsel %vm3007_vm10, %v2960_v42, %v2962_v16  ;;  %1046 = vrot.lane.b32.xlu0 %v24960_v32, %s15842_s1  ;;  %2224 = vrot.lane.b32.xlu1 %v18582_v20, %s15847_s21  ;;  %v2801_v32 = vrot.slane %v2572_v52, 4 }
 0x406   :  { %v3137_v47 = vadd.f32 %v3043_v38, %v2516_v23  ;;  %v1422_v23 = vadd.f32 %v18896_v7, %v1134_v36 }
 0x407   :  { %v3606_v40 = vpop.f32.mrb[50].mxu1  ;;  %v18939_v26 = vpop.permute.xlu1 %1320  ;;  %v2802_v11 = vsel %vm2628_vm8, %v2797_v13, %v2801_v32 }
 0x408   :  { %v3191_v0 = vadd.f32 %v18908_v5, %v3137_v47  ;;  %3795 = vst [vmem:[#allocation3 + $0x170] sm:$0xff] %v3606_v40  ;;  %v3608_v35 = vpop.f32.mrb[51].mxu1  ;;  %v18942_v43 = vpop.permute.xlu0 %1722  ;;  %v1626_v30 = vadd.f32 %v18923_v17, %v1422_v23  ;;  %v2806_v47 = vsel %vm2628_vm8, %v2801_v32, %v2805_v18 }
 0x409   :  { %3796 = vst.msk [vmem:[#allocation3 + $0x178] sm:$0xff] %vm659_vm4, %v3608_v35  ;;  %2022 = vrot.lane.b32.xlu0 %v18522_v21, %s15846_s20  ;;  %1536 = vrot.lane.b32.xlu1 %v18586_v28, %s15844_s16  ;;  %v1625_v21 = vadd.f32 %v18886_v44, %v1421_v12  ;;  %v24962_v12 = vrot.slane %v18610_v53, 1 }
 0x40a   :  { %v3238_v29 = vmax.f32 %v3191_v0, 0.0  ;;  %v1826_v7 = vadd.f32 %v18942_v43, %v1626_v30 }
 0x40b   :  { %v2213_v61 = vpop.permute.xlu1 %2212  ;;  %v1825_v55 = vadd.f32 %v1721_v59, %v1625_v21 }
 0x40c   :  { %13884 = vmatmul.mubr.msk.f32.gmra.mrb[74].mxu1 %vm3254_vm11, %v3238_v29  ;;  %v18951_v15 = vpop.permute.xlu0 %1034  ;;  %v24961_v29 = vld [vmem:[#allocation10_spill] sm:$0xff] }
 0x40d   :  { %2987 = vrot.lane.b32.xlu0 %v18591_v46, %s15849_s24  ;;  %2424 = vrot.lane.b32.xlu1 %v18596_v62, %s15848_s23  ;;  %v2113_v46 = vadd.f32 %v2009_v49, %v1825_v55 }
 0x40e   :  { %3682 = vmatprep.mubr.f32.mxu1 %v24883_v54 }
 0x40f   :  { %v18960_v28 = vpop.permute.xlu1 %1524  ;;  %v2317_v56 = vadd.f32 %v2213_v61, %v2113_v46 }
 0x410   :  { %v2011_v45 = vpop.permute.xlu0 %2010 }
 0x411   :  { %1334 = vrot.lane.b32.xlu0 %v24959_v3, %s15843_s30  ;;  %2989 = vrot.lane.b32.xlu1 %v2802_v11, %s15849_s24  ;;  %v2114_v35 = vadd.f32 %v2011_v45, %v1826_v7  ;;  %v2574_v45 = vld [vmem:[#allocation2 + $0x318] sm:$0xff]  ;;  %v24963_v7 = vrot.slane %v18674_v41, 4 }
 0x412   :  { %v2809_v53 = vrot.slane %v2574_v45, 4 }
 0x413   :  { %v2413_v51 = vpop.permute.xlu1 %2412 }
 0x414   :  { %v2964_v9 = vpop.permute.xlu0 %2963  ;;  %v2517_v44 = vadd.f32 %v2413_v51, %v2317_v56  ;;  %v15768_v56 = vld [vmem:[#allocation2 + $0x260] sm:$0xff] }
 0x415   :  { %1736 = vrot.lane.b32.xlu1 %v18582_v20, %s15845_s19  ;;  %2226 = vrot.lane.b32.xlu0 %v18649_v57, %s15847_s21 }
 0x417   :  { %v2966_v13 = vpop.permute.xlu1 %2965 }
 0x418   :  { %v18970_v59 = vpop.permute.xlu0 %1322  ;;  %v3044_v3 = vsel %vm3007_vm10, %v2964_v9, %v2966_v13  ;;  %v19025_v9 = vld [vmem:[#allocation2 + $0x320] sm:$0xff] }
 0x419   :  { %v3138_v27 = vadd.f32 %v3044_v3, %v2517_v44  ;;  %1048 = vrot.lane.b32.xlu1 %v955_v31, %s15842_s1  ;;  %1538 = vrot.lane.b32.xlu0 %v18654_v8, %s15844_s16  ;;  %v1145_v8 = vld [vmem:[#allocation2 + $0x2f0] sm:$0x3]  ;;  %v1135_v44 = vadd.f32 %v15768_v56, %v18920_v24  ;;  %v2810_v31 = vsel %vm2628_vm8, %v2805_v18, %v2809_v53 }
 0x41a   :  { %v3612_v20 = vpop.f32.mrb[52].mxu1  ;;  %v1242_v40 = vrot.slane %v1145_v8, 2 }
 0x41b   :  { %v3192_v39 = vadd.f32 %v18908_v5, %v3138_v27  ;;  %3797 = vst [vmem:[#allocation3 + $0x180] sm:$0xff] %v3612_v20  ;;  %v3614_v1 = vpop.f32.mrb[53].mxu1  ;;  %v18981_v49 = vpop.permute.xlu1 %1724  ;;  %v1423_v58 = vadd.f32 %v18939_v26, %v1135_v44 }
 0x41c   :  { %3798 = vst.msk [vmem:[#allocation3 + $0x188] sm:$0xff] %vm659_vm4, %v3614_v1  ;;  %v2215_v33 = vpop.permute.xlu0 %2214  ;;  %v1243_v17 = vsel %vm1148_vm6, %v24961_v29, %v1242_v40 }
 0x41d   :  { %v3239_v42 = vmax.f32 %v3192_v39, 0.0  ;;  %2024 = vrot.lane.b32.xlu1 %v18596_v62, %s15846_s20  ;;  %2426 = vrot.lane.b32.xlu0 %v18658_v2, %s15848_s23  ;;  %v1435_v62 = vld [vmem:[#allocation2 + $0x310] sm:$0x1]  ;;  %v2318_v4 = vadd.f32 %v2215_v33, %v2114_v35  ;;  %v1627_v24 = vadd.f32 %v18960_v28, %v1423_v58  ;;  %v2575_v28 = vld [vmem:[#allocation2 + $0x328] sm:$0xff] }
 0x41e   :  { %v1446_v6 = vrot.slane %v1435_v62, 1  ;;  %v2813_v23 = vrot.slane %v2575_v28, 4 }
 0x41f   :  { %13885 = vmatmul.mubr.msk.f32.gmra.mrb[76].mxu1 %vm3254_vm11, %v3239_v42  ;;  %v18992_v16 = vpop.permute.xlu1 %1036  ;;  %v1827_v36 = vadd.f32 %v18981_v49, %v1627_v24  ;;  %v2811_v42 = vrot.slane %v19025_v9, 4  ;;  %v2127_v49 = vld [vmem:[#allocation2 + $0x330] sm:$0x3] }
 0x420   :  { %v18995_v38 = vpop.permute.xlu0 %1526  ;;  %3688 = vmatprep.mubr.f32.mxu1 %v24883_v54  ;;  %v1447_v43 = vsel %vm860_vm5, %v24962_v12, %v1446_v6 }
 0x421   :  { %2991 = vrot.lane.b32.xlu1 %v18663_v34, %s15849_s24  ;;  %2993 = vrot.lane.b32.xlu0 %v2806_v47, %s15849_s24  ;;  %v2329_v47 = vld [vmem:[#allocation2 + $0x330] sm:$0x7] }
 0x422   :  { %v2338_v29 = vrot.slane %v2329_v47, 3 }
 0x423   :  { %v2013_v0 = vpop.permute.xlu1 %2012 }
 0x424   :  { %v2415_v52 = vpop.permute.xlu0 %2414  ;;  %v2115_v33 = vadd.f32 %v2013_v0, %v1827_v36  ;;  %v2812_v0 = vsel %vm2628_vm8, %v24963_v7, %v2811_v42  ;;  %v4449_v7 = vld [vmem:[#allocation3 + $0x20] sm:$0xfe] }
 0x425   :  { %1336 = vrot.lane.b32.xlu1 %v1243_v17, %s15843_s30  ;;  %1738 = vrot.lane.b32.xlu0 %v18649_v57, %s15845_s19  ;;  %v2518_v34 = vadd.f32 %v2415_v52, %v2318_v4  ;;  %v2138_v52 = vrot.slane %v2127_v49, 2  ;;  %v2576_v17 = vld [vmem:[#allocation2 + $0x330] sm:$0xf]  ;;  %v2577_v4 = vld [vmem:[#allocation2 + $0x338] sm:$0xf] }
 0x426   :  { %v2815_v12 = vrot.slane %v2576_v17, 4 }
 0x427   :  { %v2968_v61 = vpop.permute.xlu1 %2967 }
 0x428   :  { %v2970_v32 = vpop.permute.xlu0 %2969 }
 0x429   :  { %v3045_v21 = vsel %vm3007_vm10, %v2968_v61, %v2970_v32  ;;  %2228 = vrot.lane.b32.xlu1 %v18717_v25, %s15847_s21  ;;  %1540 = vrot.lane.b32.xlu0 %v1447_v43, %s15844_s16  ;;  %v1637_v25 = vld [vmem:[#allocation2 + $0x310] sm:$0x3] }
 0x42a   :  { %v3139_v11 = vadd.f32 %v3045_v21, %v2518_v34  ;;  %v1646_v27 = vrot.slane %v1637_v25, 2  ;;  %v15769_v43 = vld [vmem:[#allocation2 + $0x270] sm:$0xff]  ;;  %v19080_v25 = vld [vmem:[#allocation3 + $0x20] sm:$0xff] }
 0x42b   :  { %v3618_v55 = vpop.f32.mrb[54].mxu1  ;;  %v19015_v22 = vpop.permute.xlu1 %1324  ;;  %v1136_v21 = vadd.f32 %v15769_v43, %v18951_v15  ;;  %v4195_v36 = vrot.slane %v19080_v25, 2 }
 0x42c   :  { %v3193_v57 = vadd.f32 %v18908_v5, %v3139_v11  ;;  %3799 = vst [vmem:[#allocation3 + $0x190] sm:$0xff] %v3618_v55  ;;  %v3620_v46 = vpop.f32.mrb[55].mxu1  ;;  %v19018_v51 = vpop.permute.xlu0 %1726  ;;  %v1647_v1 = vsel %vm1148_vm6, %v18635_v50, %v1646_v27 }
 0x42d   :  { %3800 = vst.msk [vmem:[#allocation3 + $0x198] sm:$0xff] %vm659_vm4, %v3620_v46  ;;  %2026 = vrot.lane.b32.xlu1 %v18658_v2, %s15846_s20  ;;  %2428 = vrot.lane.b32.xlu0 %v18723_v19, %s15848_s23  ;;  %v2136_v2 = vrot.slane %v19025_v9, 2  ;;  %v1837_v19 = vld [vmem:[#allocation2 + $0x310] sm:$0x7] }
 0x42e   :  { %v3240_v37 = vmax.f32 %v3193_v57, 0.0  ;;  %v1934_v10 = vrot.slane %v1837_v19, 3  ;;  %v2817_v57 = vrot.slane %v2577_v4, 4  ;;  %v19076_v46 = vld [vmem:[#allocation3 + $0x10] sm:$0xff]  ;;  %v4188_v19 = vld [vmem:[#allocation3] sm:$0xfc] }
 0x42f   :  { %v2217_v13 = vpop.permute.xlu1 %2216  ;;  %v2137_v26 = vsel %vm1148_vm6, %v2134_v48, %v2136_v2  ;;  %v2139_v11 = vsel %vm1148_vm6, %v2136_v2, %v2138_v52  ;;  %v3932_v56 = vrot.slane %v19076_v46, 1  ;;  %v3934_v2 = vrot.slane %v19080_v25, 1  ;;  %v15770_v4 = vld [vmem:[#allocation2 + $0x280] sm:$0xff] }
 0x430   :  { %13886 = vmatmul.mubr.msk.f32.gmra.mrb[78].mxu1 %vm3254_vm11, %v3240_v37  ;;  %v19029_v3 = vpop.permute.xlu0 %1038  ;;  %v1935_v50 = vsel %vm1840_vm7, %v18639_v63, %v1934_v10  ;;  %v2319_v30 = vadd.f32 %v2217_v13, %v2115_v33  ;;  %v3886_v37 = vld [vmem:[#allocation3] sm:$0xfe]  ;;  %v2818_v27 = vsel %vm2628_vm8, %v2813_v23, %v2817_v57  ;;  %v4192_v28 = vrot.slane %v4188_v19, 2 }
 0x431   :  { %2995 = vrot.lane.b32.xlu1 %v18730_v14, %s15849_s24  ;;  %2997 = vrot.lane.b32.xlu0 %v2810_v31, %s15849_s24  ;;  %v2336_v14 = vrot.slane %v19025_v9, 3  ;;  %v1424_v9 = vadd.f32 %v18970_v59, %v1136_v21  ;;  %v2816_v31 = vsel %vm2628_vm8, %v2811_v42, %v2815_v12  ;;  %v3931_v58 = vrot.slane %v3886_v37, 1  ;;  %v19106_v33 = vld [vmem:[#allocation3 + $0x40] sm:$0xff] }
 0x432   :  { %3694 = vmatprep.mubr.f32.mxu1 %v24883_v54  ;;  %v4199_v21 = vrot.slane %v19106_v33, 2  ;;  %v19148_v37 = vld [vmem:[#allocation3 + $0x60] sm:$0xff] }
 0x433   :  { %v19039_v20 = vpop.permute.xlu1 %1528  ;;  %v2337_v48 = vsel %vm1840_vm7, %v2334_v60, %v2336_v14  ;;  %v2814_v60 = vsel %vm2628_vm8, %v2809_v53, %v2813_v23  ;;  %v2339_v55 = vsel %vm1840_vm7, %v2336_v14, %v2338_v29  ;;  %v1628_v44 = vadd.f32 %v18995_v38, %v1424_v9  ;;  %v19146_v9 = vld [vmem:[#allocation3 + $0x50] sm:$0xff] }
 0x434   :  { %v19041_v39 = vpop.permute.xlu0 %2014  ;;  %v4193_v38 = vrot.slane %v19076_v46, 2  ;;  %v3933_v10 = vsel %vm860_vm5, %v3931_v58, %v3932_v56  ;;  %v3935_v14 = vsel %vm860_vm5, %v3932_v56, %v3934_v2 }
 0x435   :  { %1740 = vrot.lane.b32.xlu1 %v1647_v1, %s15845_s19  ;;  %2230 = vrot.lane.b32.xlu0 %v2137_v26, %s15847_s21  ;;  %v1828_v59 = vadd.f32 %v19018_v51, %v1628_v44  ;;  %v19104_v51 = vld [vmem:[#allocation3 + $0x30] sm:$0xff] }
 0x436   :  { %v3936_v23 = vrot.slane %v19104_v51, 1  ;;  %v4197_v43 = vrot.slane %v19104_v51, 2 }
 0x437   :  { %v2417_v18 = vpop.permute.xlu1 %2416  ;;  %v2116_v1 = vadd.f32 %v19041_v39, %v1828_v59  ;;  %v4194_v39 = vsel %vm1148_vm6, %v4192_v28, %v4193_v38  ;;  %v3942_v59 = vrot.slane %v19148_v37, 1 }
 0x438   :  { %v2972_v8 = vpop.permute.xlu0 %2971  ;;  %v2519_v40 = vadd.f32 %v2417_v18, %v2319_v30  ;;  %v3938_v30 = vrot.slane %v19106_v33, 1  ;;  %v3937_v52 = vsel %vm860_vm5, %v3934_v2, %v3936_v23  ;;  %v4200_v25 = vsel %vm1148_vm6, %v4197_v43, %v4199_v21 }
 0x439   :  { %2028 = vrot.lane.b32.xlu1 %v1935_v50, %s15846_s20  ;;  %2430 = vrot.lane.b32.xlu0 %v2337_v48, %s15848_s23  ;;  %v4196_v48 = vsel %vm1148_vm6, %v4193_v38, %v4195_v36  ;;  %v3940_v2 = vrot.slane %v19146_v9, 1 }
 0x43a   :  { %v3939_v29 = vsel %vm860_vm5, %v3936_v23, %v3938_v30 }
 0x43b   :  { %v2974_v62 = vpop.permute.xlu1 %2973 }
 0x43c   :  { %v19063_v35 = vpop.permute.xlu0 %1326  ;;  %v3046_v63 = vsel %vm3007_vm10, %v2972_v8, %v2974_v62 }
 0x43d   :  { %v3140_v6 = vadd.f32 %v3046_v63, %v2519_v40  ;;  %2999 = vrot.lane.b32.xlu1 %v2812_v0, %s15849_s24  ;;  %3001 = vrot.lane.b32.xlu0 %v2814_v60, %s15849_s24 }
 0x43e   :  { %v3624_v61 = vpop.f32.mrb[56].mxu1 }
 0x43f   :  { %v3194_v41 = vadd.f32 %v18908_v5, %v3140_v6  ;;  %3801 = vst [vmem:[#allocation3 + $0x1a0] sm:$0xff] %v3624_v61  ;;  %v3626_v34 = vpop.f32.mrb[57].mxu1  ;;  %v19070_v32 = vpop.permute.xlu1 %1728  ;;  %v4457_v6 = vrot.slane %v4449_v7, 1  ;;  %v1137_v61 = vadd.f32 %v15770_v4, %v18992_v16 }
 0x440   :  { %3802 = vst.msk [vmem:[#allocation3 + $0x1a8] sm:$0xff] %vm659_vm4, %v3626_v34  ;;  %v2219_v45 = vpop.permute.xlu0 %2218 }
 0x441   :  { %v3241_v53 = vmax.f32 %v3194_v41, 0.0  ;;  %2232 = vrot.lane.b32.xlu1 %v2139_v11, %s15847_s21  ;;  %2432 = vrot.lane.b32.xlu0 %v2339_v55, %s15848_s23  ;;  %v2320_v18 = vadd.f32 %v2219_v45, %v2116_v1  ;;  %v4458_v12 = vsel %vm860_vm5, %v4457_v6, %v3936_v23  ;;  %v1425_v45 = vadd.f32 %v19015_v22, %v1137_v61  ;;  %v4637_v55 = vld [vmem:[#allocation3 + $0x20] sm:$0xfc] }
 0x442   :  { %v4828_v23 = vrot.slane %v19106_v33, 3 }
 0x443   :  { %13887 = vmatmul.mubr.msk.f32.gmra.mrb[80].mxu1 %vm3254_vm11, %v3241_v53  ;;  %v19084_v15 = vpop.permute.xlu1 %1040  ;;  %v1629_v16 = vadd.f32 %v19039_v20, %v1425_v45  ;;  %v4198_v53 = vsel %vm1148_vm6, %v4195_v36, %v4197_v43  ;;  %v4641_v20 = vrot.slane %v4637_v55, 2  ;;  %v4821_v36 = vld [vmem:[#allocation3 + $0x20] sm:$0xf8] }
 0x444   :  { %v19088_v13 = vpop.permute.xlu0 %1530  ;;  %3700 = vmatprep.mubr.f32.mxu1 %v24883_v54 }
 0x445   :  { %3003 = vrot.lane.b32.xlu1 %v2816_v31, %s15849_s24  ;;  %3005 = vrot.lane.b32.xlu0 %v2818_v27, %s15849_s24  ;;  %v1829_v22 = vadd.f32 %v19070_v32, %v1629_v16  ;;  %v4642_v27 = vsel %vm1148_vm6, %v4641_v20, %v4197_v43  ;;  %v19203_v16 = vld [vmem:[#allocation3 + $0x80] sm:$0xff] }
 0x447   :  { %v2017_v24 = vpop.permute.xlu1 %2016 }
 0x448   :  { %v2419_v26 = vpop.permute.xlu0 %2418  ;;  %v2117_v56 = vadd.f32 %v2017_v24, %v1829_v22  ;;  %v3941_v24 = vsel %vm860_vm5, %v3938_v30, %v3940_v2 }
 0x449   :  { %4016 = vrot.lane.b32.xlu1 %v3933_v10, %s15842_s1  ;;  %4018 = vrot.lane.b32.xlu0 %v3935_v14, %s15842_s1  ;;  %v2520_v8 = vadd.f32 %v2419_v26, %v2320_v18  ;;  %v3943_v26 = vsel %vm860_vm5, %v3940_v2, %v3942_v59 }
 0x44b   :  { %v2976_v42 = vpop.permute.xlu1 %2975 }
 0x44c   :  { %v2978_v50 = vpop.permute.xlu0 %2977 }
 0x44d   :  { %v3047_v49 = vsel %vm3007_vm10, %v2976_v42, %v2978_v50  ;;  %4277 = vrot.lane.b32.xlu1 %v4194_v39, %s15843_s30  ;;  %4279 = vrot.lane.b32.xlu0 %v4196_v48, %s15843_s30  ;;  %v4826_v39 = vrot.slane %v19104_v51, 3 }
 0x44e   :  { %v3141_v47 = vadd.f32 %v3047_v49, %v2520_v8  ;;  %v15771_v8 = vld [vmem:[#allocation2 + $0x290] sm:$0xff]  ;;  %v4825_v49 = vrot.slane %v4821_v36, 3 }
 0x44f   :  { %v3630_v40 = vpop.f32.mrb[58].mxu1  ;;  %v19115_v62 = vpop.permute.xlu1 %1328  ;;  %v1138_v50 = vadd.f32 %v15771_v8, %v19029_v3  ;;  %v5270_v8 = vld [vmem:[#allocation3 + $0x40] sm:$0xf8] }
 0x450   :  { %v3195_v0 = vadd.f32 %v18908_v5, %v3141_v47  ;;  %3803 = vst [vmem:[#allocation3 + $0x1b0] sm:$0xff] %v3630_v40  ;;  %v3632_v63 = vpop.f32.mrb[59].mxu1  ;;  %v19118_v60 = vpop.permute.xlu0 %1730  ;;  %v4827_v51 = vsel %vm1840_vm7, %v4825_v49, %v4826_v39  ;;  %v5274_v49 = vrot.slane %v5270_v8, 3 }
 0x451   :  { %3804 = vst.msk [vmem:[#allocation3 + $0x1b8] sm:$0xff] %vm659_vm4, %v3632_v63  ;;  %4020 = vrot.lane.b32.xlu1 %v3937_v52, %s15842_s1  ;;  %4022 = vrot.lane.b32.xlu0 %v3939_v29, %s15842_s1  ;;  %v1426_v47 = vadd.f32 %v19063_v35, %v1138_v50  ;;  %v4201_v63 = vrot.slane %v19146_v9, 2  ;;  %v4203_v52 = vrot.slane %v19148_v37, 2 }
 0x452   :  { %v3242_v17 = vmax.f32 %v3195_v0, 0.0  ;;  %v4829_v0 = vsel %vm1840_vm7, %v4826_v39, %v4828_v23 }
 0x453   :  { %v2221_v41 = vpop.permute.xlu1 %2220  ;;  %v1630_v3 = vadd.f32 %v19088_v13, %v1426_v47  ;;  %v4202_v6 = vsel %vm1148_vm6, %v4199_v21, %v4201_v63  ;;  %v4204_v4 = vsel %vm1148_vm6, %v4201_v63, %v4203_v52  ;;  %v19201_v21 = vld [vmem:[#allocation3 + $0x70] sm:$0xff]  ;;  %v5454_v47 = vld [vmem:[#allocation3 + $0x40] sm:$0xf0] }
 0x454   :  { %13888 = vmatmul.mubr.msk.f32.gmra.mrb[82].mxu1 %vm3254_vm11, %v3242_v17  ;;  %v19127_v34 = vpop.permute.xlu0 %1042  ;;  %v2321_v58 = vadd.f32 %v2221_v41, %v2117_v56 }
 0x455   :  { %4465 = vrot.lane.b32.xlu1 %v4458_v12, %s15844_s16  ;;  %4467 = vrot.lane.b32.xlu0 %v3939_v29, %s15844_s16  ;;  %v1830_v35 = vadd.f32 %v19118_v60, %v1630_v3  ;;  %v5082_v12 = vld [vmem:[#allocation3 + $0x40] sm:$0xfc] }
 0x456   :  { %3706 = vmatprep.mubr.f32.mxu1 %v24883_v54 }
 0x457   :  { %v19137_v11 = vpop.permute.xlu1 %1532 }
 0x458   :  { %v2019_v57 = vpop.permute.xlu0 %2018 }
 0x459   :  { %4281 = vrot.lane.b32.xlu1 %v4198_v53, %s15843_s30  ;;  %4283 = vrot.lane.b32.xlu0 %v4200_v25, %s15843_s30  ;;  %v2118_v13 = vadd.f32 %v2019_v57, %v1830_v35  ;;  %v5090_v57 = vrot.slane %v5082_v12, 2 }
 0x45b   :  { %v2421_v44 = vpop.permute.xlu1 %2420 }
 0x45c   :  { %v2980_v31 = vpop.permute.xlu0 %2979  ;;  %v2521_v32 = vadd.f32 %v2421_v44, %v2321_v58  ;;  %v5091_v44 = vsel %vm1148_vm6, %v5090_v57, %v4201_v63  ;;  %v15772_v58 = vld [vmem:[#allocation2 + $0x2a0] sm:$0xff]  ;;  %v5455_v63 = vld [vmem:[#allocation3 + $0x48] sm:$0xf0] }
 0x45d   :  { %4649 = vrot.lane.b32.xlu1 %v4642_v27, %s15845_s19  ;;  %4651 = vrot.lane.b32.xlu0 %v4200_v25, %s15845_s19  ;;  %v3946_v27 = vrot.slane %v19203_v16, 1 }
 0x45f   :  { %v2982_v19 = vpop.permute.xlu1 %2981 }
 0x460   :  { %v19155_v38 = vpop.permute.xlu0 %1330  ;;  %v3048_v1 = vsel %vm3007_vm10, %v2980_v31, %v2982_v19  ;;  %v3944_v31 = vrot.slane %v19201_v21, 1 }
 0x461   :  { %v3142_v10 = vadd.f32 %v3048_v1, %v2521_v32  ;;  %4024 = vrot.lane.b32.xlu1 %v3941_v24, %s15842_s1  ;;  %4026 = vrot.lane.b32.xlu0 %v3943_v26, %s15842_s1  ;;  %v1139_v32 = vadd.f32 %v15772_v58, %v19084_v15 }
 0x462   :  { %v3636_v14 = vpop.f32.mrb[60].mxu1 }
 0x463   :  { %v3196_v28 = vadd.f32 %v18908_v5, %v3142_v10  ;;  %3805 = vst [vmem:[#allocation3 + $0x1c0] sm:$0xff] %v3636_v14  ;;  %v3638_v18 = vpop.f32.mrb[61].mxu1  ;;  %v19165_v42 = vpop.permute.xlu1 %1732  ;;  %v1427_v10 = vadd.f32 %v19115_v62, %v1139_v32 }
 0x464   :  { %3806 = vst.msk [vmem:[#allocation3 + $0x1c8] sm:$0xff] %vm659_vm4, %v3638_v18  ;;  %v2223_v48 = vpop.permute.xlu0 %2222 }
 0x465   :  { %v3243_v30 = vmax.f32 %v3196_v28, 0.0  ;;  %4469 = vrot.lane.b32.xlu1 %v3941_v24, %s15844_s16  ;;  %4471 = vrot.lane.b32.xlu0 %v3943_v26, %s15844_s16  ;;  %v2322_v61 = vadd.f32 %v2223_v48, %v2118_v13  ;;  %v3945_v24 = vsel %vm860_vm5, %v3942_v59, %v3944_v31  ;;  %v3947_v26 = vsel %vm860_vm5, %v3944_v31, %v3946_v27 }
 0x466   :  { %v1631_v15 = vadd.f32 %v19137_v11, %v1427_v10  ;;  %v4830_v59 = vrot.slane %v19146_v9, 3  ;;  %v4832_v28 = vrot.slane %v19148_v37, 3  ;;  %v15850_v31 = vmov 0.0|0.0  }
 0x467   :  { %13889 = vmatmul.mubr.msk.f32.gmra.mrb[84].mxu1 %vm3254_vm11, %v3243_v30  ;;  %v19175_v40 = vpop.permute.xlu1 %1044  ;;  %14565 = vmatprep.subr.bf16.mxu1 %v15850_v31 }
 0x468   :  { %v19179_v7 = vpop.permute.xlu0 %1534  ;;  %3712 = vmatprep.mubr.f32.mxu1 %v24883_v54  ;;  %v1831_v18 = vadd.f32 %v19165_v42, %v1631_v15  ;;  %v4831_v11 = vsel %vm1840_vm7, %v4828_v23, %v4830_v59  ;;  %v4833_v48 = vsel %vm1840_vm7, %v4830_v59, %v4832_v28  ;;  %v5456_v42 = vld [vmem:[#allocation3 + $0x58] sm:$0xff]  ;;  %v5275_v35 = vsel %vm1840_vm7, %v5274_v49, %v4830_v59 }
 0x469   :  { %4910 = vrot.lane.b32.xlu1 %v4827_v51, %s15846_s20  ;;  %4912 = vrot.lane.b32.xlu0 %v4829_v0, %s15846_s20  ;;  %v5545_v0 = vrot.slane %v19146_v9, 4 }
 0x46b   :  { %v2021_v29 = vpop.permute.xlu1 %2020 }
 0x46c   :  { %v2423_v17 = vpop.permute.xlu0 %2422  ;;  %v2119_v62 = vadd.f32 %v2021_v29, %v1831_v18  ;;  %v5548_v29 = vrot.slane %v5456_v42, 4  ;;  %v15774_v42 = vld [vmem:[#allocation2 + $0x2c0] sm:$0xff] }
 0x46d   :  { %4285 = vrot.lane.b32.xlu1 %v4202_v6, %s15843_s30  ;;  %4287 = vrot.lane.b32.xlu0 %v4204_v4, %s15843_s30  ;;  %v2522_v43 = vadd.f32 %v2423_v17, %v2322_v61  ;;  %v5544_v17 = vrot.slane %v5454_v47, 4  ;;  %v5547_v61 = vrot.slane %v5455_v63, 4  ;;  %v1141_v49 = vadd.f32 %v15774_v42, %v19175_v40 }
 0x46f   :  { %v2984_v41 = vpop.permute.xlu1 %2983 }
 0x470   :  { %v2986_v60 = vpop.permute.xlu0 %2985 }
 0x471   :  { %v3049_v45 = vsel %vm3007_vm10, %v2984_v41, %v2986_v60  ;;  %4653 = vrot.lane.b32.xlu1 %v4202_v6, %s15845_s19  ;;  %4655 = vrot.lane.b32.xlu0 %v4204_v4, %s15845_s19  ;;  %v19255_v6 = vld [vmem:[#allocation3 + $0x68] sm:$0xff]  ;;  %v5550_v60 = vrot.slane %v19148_v37, 4 }
 0x472   :  { %v3143_v55 = vadd.f32 %v3049_v45, %v2522_v43  ;;  %v5546_v43 = vsel %vm2628_vm8, %v5544_v17, %v5545_v0  ;;  %v15773_v45 = vld [vmem:[#allocation2 + $0x2b0] sm:$0xff] }
 0x473   :  { %v3642_v53 = vpop.f32.mrb[62].mxu1  ;;  %v19205_v25 = vpop.permute.xlu1 %1332 }
 0x474   :  { %v3197_v22 = vadd.f32 %v18908_v5, %v3143_v55  ;;  %3807 = vst [vmem:[#allocation3 + $0x1d0] sm:$0xff] %v3642_v53  ;;  %v3644_v20 = vpop.f32.mrb[63].mxu1  ;;  %v19208_v56 = vpop.permute.xlu0 %1734  ;;  %v1140_v55 = vadd.f32 %v15773_v45, %v19127_v34  ;;  %v5549_v53 = vsel %vm2628_vm8, %v5547_v61, %v5548_v29 }
 0x475   :  { %3808 = vst.msk [vmem:[#allocation3 + $0x1d8] sm:$0xff] %vm659_vm4, %v3644_v20  ;;  %5098 = vrot.lane.b32.xlu1 %v5091_v44, %s15847_s21  ;;  %5100 = vrot.lane.b32.xlu0 %v4204_v4, %s15847_s21 }
 0x476   :  { %v3244_v2 = vmax.f32 %v3197_v22, 0.0  ;;  %v5552_v22 = vrot.slane %v19255_v6, 4  ;;  %v1428_v44 = vadd.f32 %v19155_v38, %v1140_v55  ;;  %v4205_v38 = vrot.slane %v19201_v21, 2  ;;  %v15775_v55 = vld [vmem:[#allocation2 + $0x2d0] sm:$0xff] }
 0x477   :  { %v2225_v19 = vpop.permute.xlu1 %2224 }
 0x478   :  { %13890 = vmatmul.mubr.msk.f32.gmra.mrb[86].mxu1 %vm3254_vm11, %v3244_v2  ;;  %v19218_v1 = vpop.permute.xlu0 %1046  ;;  %v2323_v30 = vadd.f32 %v2225_v19, %v2119_v62  ;;  %v5551_v2 = vsel %vm2628_vm8, %v5545_v0, %v5550_v60  ;;  %v1632_v58 = vadd.f32 %v19179_v7, %v1428_v44  ;;  %v5553_v19 = vsel %vm2628_vm8, %v5548_v29, %v5552_v22 }
 0x479   :  { %4028 = vrot.lane.b32.xlu1 %v3945_v24, %s15842_s1  ;;  %4030 = vrot.lane.b32.xlu0 %v3947_v26, %s15842_s1  ;;  %v4206_v59 = vsel %vm1148_vm6, %v4203_v52, %v4205_v38  ;;  %v19302_v52 = vld [vmem:[#allocation3 + $0xa0] sm:$0xff] }
 0x47a   :  { %3718 = vmatprep.mubr.f32.mxu1 %v24883_v54  ;;  %v3950_v63 = vrot.slane %v19302_v52, 1 }
 0x47b   :  { %v19231_v14 = vpop.permute.xlu1 %1536 }
 0x47c   :  { %v19233_v36 = vpop.permute.xlu0 %2022 }
 0x47d   :  { %4473 = vrot.lane.b32.xlu1 %v3945_v24, %s15844_s16  ;;  %4475 = vrot.lane.b32.xlu0 %v3947_v26, %s15844_s16  ;;  %v4207_v24 = vrot.slane %v19203_v16, 2  ;;  %v1832_v26 = vadd.f32 %v19208_v56, %v1632_v58  ;;  %v5458_v58 = vld [vmem:[#allocation3 + $0x78] sm:$0xff] }
 0x47f   :  { %v2425_v39 = vpop.permute.xlu1 %2424  ;;  %v2120_v7 = vadd.f32 %v19233_v36, %v1832_v26  ;;  %v4208_v18 = vsel %vm1148_vm6, %v4205_v38, %v4207_v24  ;;  %v19300_v36 = vld [vmem:[#allocation3 + $0x90] sm:$0xff] }
 0x480   :  { %v2988_v50 = vpop.permute.xlu0 %2987  ;;  %v2523_v51 = vadd.f32 %v2425_v39, %v2323_v30  ;;  %v3948_v0 = vrot.slane %v19300_v36, 1 }
 0x481   :  { %4914 = vrot.lane.b32.xlu1 %v4831_v11, %s15846_s20  ;;  %4916 = vrot.lane.b32.xlu0 %v4833_v48, %s15846_s20 }
 0x482   :  { %v3949_v17 = vsel %vm860_vm5, %v3946_v27, %v3948_v0 }
 0x483   :  { %v2990_v3 = vpop.permute.xlu1 %2989 }
 0x484   :  { %v19249_v33 = vpop.permute.xlu0 %1334  ;;  %v3050_v23 = vsel %vm3007_vm10, %v2988_v50, %v2990_v3 }
 0x485   :  { %v3144_v13 = vadd.f32 %v3050_v23, %v2523_v51  ;;  %5282 = vrot.lane.b32.xlu1 %v5275_v35, %s15848_s23  ;;  %5284 = vrot.lane.b32.xlu0 %v4833_v48, %s15848_s23  ;;  %v1429_v23 = vadd.f32 %v19205_v25, %v1141_v49 }
 0x486   :  { %v3648_v4 = vpop.f32.mrb[64].mxu1 }
 0x487   :  { %v3198_v9 = vadd.f32 %v18908_v5, %v3144_v13  ;;  %3809 = vst [vmem:[#allocation3 + $0x1e0] sm:$0xff] %v3648_v4  ;;  %v3650_v41 = vpop.f32.mrb[65].mxu1  ;;  %v19258_v12 = vpop.permute.xlu1 %1736  ;;  %v1633_v40 = vadd.f32 %v19231_v14, %v1429_v23  ;;  %v3951_v4 = vsel %vm860_vm5, %v3948_v0, %v3950_v63  ;;  %v4211_v0 = vrot.slane %v19302_v52, 2 }
 0x488   :  { %3810 = vst.msk [vmem:[#allocation3 + $0x1e8] sm:$0xff] %vm659_vm4, %v3650_v41  ;;  %v2227_v57 = vpop.permute.xlu0 %2226  ;;  %v4834_v41 = vrot.slane %v19201_v21, 3 }
 0x489   :  { %v3245_v20 = vmax.f32 %v3198_v9, 0.0  ;;  %5714 = vrot.lane.b32.xlu1 %v5546_v43, %s15849_s24  ;;  %5716 = vrot.lane.b32.xlu0 %v5549_v53, %s15849_s24  ;;  %v2324_v62 = vadd.f32 %v2227_v57, %v2120_v7  ;;  %v1833_v25 = vadd.f32 %v19258_v12, %v1633_v40  ;;  %v4836_v43 = vrot.slane %v19203_v16, 3 }
 0x48a   :  { %v1142_v57 = vadd.f32 %v15775_v55, %v19218_v1  ;;  %v5554_v7 = vrot.slane %v19201_v21, 4 }
 0x48b   :  { %13891 = vmatmul.mubr.msk.f32.gmra.mrb[88].mxu1 %vm3254_vm11, %v3245_v20  ;;  %v19271_v34 = vpop.permute.xlu1 %1048  ;;  %v4835_v20 = vsel %vm1840_vm7, %v4832_v28, %v4834_v41  ;;  %v4837_v44 = vsel %vm1840_vm7, %v4834_v41, %v4836_v43 }
 0x48c   :  { %v19277_v32 = vpop.permute.xlu0 %1538  ;;  %3724 = vmatprep.mubr.f32.mxu1 %v24883_v54 }
 0x48d   :  { %5718 = vrot.lane.b32.xlu1 %v5551_v2, %s15849_s24  ;;  %5720 = vrot.lane.b32.xlu0 %v5553_v19, %s15849_s24  ;;  %v1430_v19 = vadd.f32 %v19249_v33, %v1142_v57  ;;  %v19391_v57 = vld [vmem:[#allocation3 + $0xc0] sm:$0xff] }
 0x48f   :  { %v2025_v10 = vpop.permute.xlu1 %2024  ;;  %v1634_v26 = vadd.f32 %v19277_v32, %v1430_v19 }
 0x490   :  { %v2427_v15 = vpop.permute.xlu0 %2426  ;;  %v2121_v61 = vadd.f32 %v2025_v10, %v1833_v25 }
 0x491   :  { %4289 = vrot.lane.b32.xlu1 %v4206_v59, %s15843_s30  ;;  %4291 = vrot.lane.b32.xlu0 %v4208_v18, %s15843_s30  ;;  %v2524_v8 = vadd.f32 %v2427_v15, %v2324_v62  ;;  %v5556_v15 = vrot.slane %v5458_v58, 4 }
 0x493   :  { %v2992_v39 = vpop.permute.xlu1 %2991  ;;  %v5557_v42 = vsel %vm2628_vm8, %v5552_v22, %v5556_v15 }
 0x494   :  { %v2994_v56 = vpop.permute.xlu0 %2993 }
 0x495   :  { %v3051_v50 = vsel %vm3007_vm10, %v2992_v39, %v2994_v56  ;;  %4657 = vrot.lane.b32.xlu1 %v4206_v59, %s15845_s19  ;;  %4659 = vrot.lane.b32.xlu0 %v4208_v18, %s15845_s19 }
 0x496   :  { %v3145_v11 = vadd.f32 %v3051_v50, %v2524_v8 }
 0x497   :  { %v3654_v48 = vpop.f32.mrb[66].mxu1  ;;  %v19304_v30 = vpop.permute.xlu1 %1336 }
 0x498   :  { %v3199_v47 = vadd.f32 %v18908_v5, %v3145_v11  ;;  %3811 = vst [vmem:[#allocation3 + $0x1f0] sm:$0xff] %v3654_v48  ;;  %v3656_v51 = vpop.f32.mrb[67].mxu1  ;;  %v1739_v3 = vpop.permute.xlu0 %1738 }
 0x499   :  { %3812 = vst.msk [vmem:[#allocation3 + $0x1f8] sm:$0xff] %vm659_vm4, %v3656_v51  ;;  %5102 = vrot.lane.b32.xlu1 %v4206_v59, %s15847_s21  ;;  %5104 = vrot.lane.b32.xlu0 %v4208_v18, %s15847_s21  ;;  %v19344_v59 = vld [vmem:[#allocation3 + $0x88] sm:$0xff]  ;;  %v15776_v18 = vld [vmem:[#allocation2 + $0x2e0] sm:$0xff]  ;;  %v1834_v33 = vadd.f32 %v1739_v3, %v1634_v26  ;;  %v4209_v3 = vrot.slane %v19300_v36, 2 }
 0x49a   :  { %v3246_v35 = vmax.f32 %v3199_v47, 0.0  ;;  %v1143_v62 = vadd.f32 %v15776_v18, %v19271_v34  ;;  %v5560_v21 = vrot.slane %v19344_v59, 4  ;;  %v5555_v34 = vsel %vm2628_vm8, %v5550_v60, %v5554_v7 }
 0x49b   :  { %v2229_v29 = vpop.permute.xlu1 %2228 }
 0x49c   :  { %13892 = vmatmul.mubr.msk.f32.gmra.mrb[90].mxu1 %vm3254_vm11, %v3246_v35  ;;  %v1541_v13 = vpop.permute.xlu0 %1540  ;;  %v2325_v27 = vadd.f32 %v2229_v29, %v2121_v61  ;;  %v1431_v50 = vadd.f32 %v19304_v30, %v1143_v62  ;;  %v5561_v37 = vsel %vm2628_vm8, %v5556_v15, %v5560_v21  ;;  %v4212_v61 = vsel %vm1148_vm6, %v4209_v3, %v4211_v0 }
 0x49d   :  { %4032 = vrot.lane.b32.xlu1 %v3949_v17, %s15842_s1  ;;  %4034 = vrot.lane.b32.xlu0 %v3951_v4, %s15842_s1  ;;  %v4838_v62 = vrot.slane %v19300_v36, 3 }
 0x49e   :  { %3730 = vmatprep.mubr.f32.mxu1 %v24883_v54  ;;  %v1635_v49 = vadd.f32 %v1541_v13, %v1431_v50  ;;  %v15777_v13 = vld [vmem:[%s24806_s3] ss:$0 sm:$0xff] }
 0x49f   :  { %v2027_v14 = vpop.permute.xlu1 %2026 }
 0x4a0   :  { %v2429_v9 = vpop.permute.xlu0 %2428  ;;  %v2122_v11 = vadd.f32 %v2027_v14, %v1834_v33  ;;  %v4210_v14 = vsel %vm1148_vm6, %v4207_v24, %v4209_v3  ;;  %v19389_v24 = vld [vmem:[#allocation3 + $0xb0] sm:$0xff]  ;;  %v4840_v33 = vrot.slane %v19302_v52, 3 }
 0x4a1   :  { %4477 = vrot.lane.b32.xlu1 %v3949_v17, %s15844_s16  ;;  %4479 = vrot.lane.b32.xlu0 %v3951_v4, %s15844_s16  ;;  %v2525_v53 = vadd.f32 %v2429_v9, %v2325_v27  ;;  %v3952_v19 = vrot.slane %v19389_v24, 1 }
 0x4a3   :  { %v2996_v45 = vpop.permute.xlu1 %2995 }
 0x4a4   :  { %v2998_v12 = vpop.permute.xlu0 %2997 }
 0x4a5   :  { %v3052_v2 = vsel %vm3007_vm10, %v2996_v45, %v2998_v12  ;;  %4918 = vrot.lane.b32.xlu1 %v4835_v20, %s15846_s20  ;;  %4920 = vrot.lane.b32.xlu0 %v4837_v44, %s15846_s20 }
 0x4a6   :  { %v3146_v1 = vadd.f32 %v3052_v2, %v2525_v53 }
 0x4a7   :  { %v1741_v38 = vpop.permute.xlu1 %1740 }
 0x4a8   :  { %v3200_v10 = vadd.f32 %v18908_v5, %v3146_v1  ;;  %v2231_v28 = vpop.permute.xlu0 %2230  ;;  %v5558_v5 = vrot.slane %v19203_v16, 4  ;;  %v1835_v6 = vadd.f32 %v1741_v38, %v1635_v49  ;;  %v3954_v1 = vrot.slane %v19391_v57, 1 }
 0x4a9   :  { %5286 = vrot.lane.b32.xlu1 %v4835_v20, %s15848_s23  ;;  %5288 = vrot.lane.b32.xlu0 %v4837_v44, %s15848_s23  ;;  %v2326_v30 = vadd.f32 %v2231_v28, %v2122_v11  ;;  %v3953_v28 = vsel %vm860_vm5, %v3950_v63, %v3952_v19 }
 0x4aa   :  { %v3247_v39 = vmax.f32 %v3200_v10, 0.0  ;;  %v3660_v8 = vpop.f32.mrb[68].mxu1  ;;  %v5559_v51 = vsel %vm2628_vm8, %v5554_v7, %v5558_v5  ;;  %v3955_v7 = vsel %vm860_vm5, %v3952_v19, %v3954_v1  ;;  %v4844_v19 = vrot.slane %v19391_v57, 3 }
 0x4ab   :  { %3813 = vst [vmem:[#allocation3 + $0x200] sm:$0xff] %v3660_v8  ;;  %v3662_v32 = vpop.f32.mrb[69].mxu1  ;;  %v2029_v56 = vpop.permute.xlu1 %2028  ;;  %v4839_v8 = vsel %vm1840_vm7, %v4836_v43, %v4838_v62  ;;  %v19443_v43 = vld [vmem:[#allocation3 + $0xa8] sm:$0xff] }
 0x4ac   :  { %3814 = vst.msk [vmem:[#allocation3 + $0x208] sm:$0xff] %vm659_vm4, %v3662_v32  ;;  %13893 = vmatmul.mubr.msk.f32.gmra.mrb[92].mxu1 %vm3254_vm11, %v3247_v39  ;;  %v2431_v48 = vpop.permute.xlu0 %2430  ;;  %v2123_v35 = vadd.f32 %v2029_v56, %v1835_v6  ;;  %v4841_v32 = vsel %vm1840_vm7, %v4838_v62, %v4840_v33  ;;  %v5460_v56 = vld [vmem:[#allocation3 + $0x98] sm:$0xff]  ;;  %v5568_v6 = vrot.slane %v19443_v43, 4 }
 0x4ad   :  { %5722 = vrot.lane.b32.xlu1 %v5555_v34, %s15849_s24  ;;  %5724 = vrot.lane.b32.xlu0 %v5557_v42, %s15849_s24  ;;  %v2526_v60 = vadd.f32 %v2431_v48, %v2326_v30  ;;  %v5562_v48 = vrot.slane %v19300_v36, 4  ;;  %v5564_v34 = vrot.slane %v5460_v56, 4  ;;  %v5462_v62 = vld [vmem:[#allocation3 + $0xb8] sm:$0xff] }
 0x4ae   :  { %3736 = vmatprep.mubr.f32.mxu1 %v24883_v54 }
 0x4af   :  { %v3000_v47 = vpop.permute.xlu1 %2999  ;;  %v5563_v36 = vsel %vm2628_vm8, %v5558_v5, %v5562_v48  ;;  %v5569_v59 = vsel %vm2628_vm8, %v5564_v34, %v5568_v6  ;;  %v4213_v5 = vrot.slane %v19389_v24, 2 }
 0x4b0   :  { %v3002_v22 = vpop.permute.xlu0 %3001 }
 0x4b1   :  { %v3053_v23 = vsel %vm3007_vm10, %v3000_v47, %v3002_v22  ;;  %5726 = vrot.lane.b32.xlu1 %v5559_v51, %s15849_s24  ;;  %5728 = vrot.lane.b32.xlu0 %v5561_v37, %s15849_s24  ;;  %v5565_v51 = vsel %vm2628_vm8, %v5560_v21, %v5564_v34  ;;  %v5566_v37 = vrot.slane %v19302_v52, 4  ;;  %v4215_v21 = vrot.slane %v19391_v57, 2 }
 0x4b2   :  { %v3147_v29 = vadd.f32 %v3053_v23, %v2526_v60  ;;  %v5570_v34 = vrot.slane %v19389_v24, 4 }
 0x4b3   :  { %v2233_v40 = vpop.permute.xlu1 %2232  ;;  %v5567_v16 = vsel %vm2628_vm8, %v5562_v48, %v5566_v37 }
 0x4b4   :  { %v3201_v17 = vadd.f32 %v15777_v13, %v3147_v29  ;;  %v2327_v4 = vadd.f32 %v2233_v40, %v2123_v35  ;;  %v2433_v25 = vpop.permute.xlu0 %2432  ;;  %v4214_v35 = vsel %vm1148_vm6, %v4211_v0, %v4213_v5  ;;  %v4216_v29 = vsel %vm1148_vm6, %v4213_v5, %v4215_v21 }
 0x4b5   :  { %4293 = vrot.lane.b32.xlu1 %v4210_v14, %s15843_s30  ;;  %4295 = vrot.lane.b32.xlu0 %v4212_v61, %s15843_s30 }
 0x4b6   :  { %v3248_v9 = vmax.f32 %v3201_v17, 0.0  ;;  %v2527_v41 = vadd.f32 %v2433_v25, %v2327_v4  ;;  %v19492_v17 = vld [vmem:[#allocation3 + $0xd0] sm:$0xff]  ;;  %v19494_v4 = vld [vmem:[#allocation3 + $0xe0] sm:$0xff] }
 0x4b7   :  { %v3004_v27 = vpop.permute.xlu1 %3003 }
 0x4b8   :  { %13894 = vmatmul.mubr.msk.f32.gmra.mrb[94].mxu1 %vm3254_vm11, %v3248_v9  ;;  %v3006_v45 = vpop.permute.xlu0 %3005  ;;  %v3956_v9 = vrot.slane %v19492_v17, 1 }
 0x4b9   :  { %v3054_v55 = vsel %vm3007_vm10, %v3004_v27, %v3006_v45  ;;  %4661 = vrot.lane.b32.xlu1 %v4210_v14, %s15845_s19  ;;  %4663 = vrot.lane.b32.xlu0 %v4212_v61, %s15845_s19 }
 0x4ba   :  { %v3148_v53 = vadd.f32 %v3054_v55, %v2527_v41  ;;  %3742 = vmatprep.mubr.f32.mxu1 %v24883_v54  ;;  %v3958_v41 = vrot.slane %v19494_v4, 1  ;;  %v3957_v55 = vsel %vm860_vm5, %v3954_v1, %v3956_v9 }
 0x4bb   :  { %v3666_v12 = vpop.f32.mrb[70].mxu1  ;;  %v19394_v20 = vpop.permute.xlu1 %4016 }
 0x4bc   :  { %v3202_v44 = vadd.f32 %v15777_v13, %v3148_v53  ;;  %3815 = vst [vmem:[#allocation3 + $0x210] sm:$0xff] %v3666_v12  ;;  %v3668_v2 = vpop.f32.mrb[71].mxu1  ;;  %v19396_v58 = vpop.permute.xlu0 %4018  ;;  %v3959_v53 = vsel %vm860_vm5, %v3956_v9, %v3958_v41 }
 0x4bd   :  { %3816 = vst.msk [vmem:[#allocation3 + $0x218] sm:$0xff] %vm659_vm4, %v3668_v2  ;;  %5106 = vrot.lane.b32.xlu1 %v4210_v14, %s15847_s21  ;;  %5108 = vrot.lane.b32.xlu0 %v4212_v61, %s15847_s21  ;;  %v4842_v2 = vrot.slane %v19389_v24, 3  ;;  %v4146_v24 = vadd.f32 %v19396_v58, %v19076_v46 }
 0x4be   :  { %v3249_v38 = vmax.f32 %v3202_v44, 0.0 }
 0x4bf   :  { %v19403_v26 = vpop.permute.xlu1 %4277 }
 0x4c0   :  { %13895 = vmatmul.mubr.msk.f32.gmra.mrb[96].mxu1 %vm3254_vm11, %v3249_v38  ;;  %v19406_v10 = vpop.permute.xlu0 %4279 }
 0x4c1   :  { %4036 = vrot.lane.b32.xlu1 %v3953_v28, %s15842_s1  ;;  %4038 = vrot.lane.b32.xlu0 %v3955_v7, %s15842_s1  ;;  %v4407_v46 = vadd.f32 %v19406_v10, %v4146_v24  ;;  %v4219_v10 = vrot.slane %v19494_v4, 2 }
 0x4c3   :  { %v19416_v15 = vpop.permute.xlu1 %4020 }
 0x4c4   :  { %v19418_v18 = vpop.permute.xlu0 %4022 }
 0x4c5   :  { %4481 = vrot.lane.b32.xlu1 %v3953_v28, %s15844_s16  ;;  %4483 = vrot.lane.b32.xlu0 %v3955_v7, %s15844_s16  ;;  %v4843_v28 = vsel %vm1840_vm7, %v4840_v33, %v4842_v2  ;;  %v4845_v7 = vsel %vm1840_vm7, %v4842_v2, %v4844_v19  ;;  %v19539_v33 = vld [vmem:[#allocation3 + $0xc8] sm:$0xff] }
 0x4c7   :  { %v19424_v63 = vpop.permute.xlu1 %4465 }
 0x4c8   :  { %v19426_v39 = vpop.permute.xlu0 %4467 }
 0x4c9   :  { %4922 = vrot.lane.b32.xlu1 %v4839_v8, %s15846_s20  ;;  %4924 = vrot.lane.b32.xlu0 %v4841_v32, %s15846_s20  ;;  %v4595_v43 = vadd.f32 %v19426_v39, %v4407_v46 }
 0x4cb   :  { %v19436_v50 = vpop.permute.xlu1 %4281 }
 0x4cc   :  { %v19438_v11 = vpop.permute.xlu0 %4283 }
 0x4cd   :  { %5290 = vrot.lane.b32.xlu1 %v4839_v8, %s15848_s23  ;;  %5292 = vrot.lane.b32.xlu0 %v4841_v32, %s15848_s23  ;;  %v3843_v8 = vld [vmem:[#allocation3] sm:$0xff] }
 0x4ce   :  { %v3672_v42 = vpop.f32.mrb[72].mxu1  ;;  %v4145_v56 = vadd.f32 %v19394_v20, %v3843_v8  ;;  %v5574_v20 = vrot.slane %v19391_v57, 4 }
 0x4cf   :  { %3817 = vst [vmem:[#allocation3 + $0x220] sm:$0xff] %v3672_v42  ;;  %v3674_v49 = vpop.f32.mrb[73].mxu1  ;;  %v19445_v30 = vpop.permute.xlu1 %4649  ;;  %v5572_v42 = vrot.slane %v5462_v62, 4 }
 0x4d0   :  { %3818 = vst.msk [vmem:[#allocation3 + $0x228] sm:$0xff] %vm659_vm4, %v3674_v49  ;;  %v19448_v47 = vpop.permute.xlu0 %4651  ;;  %v4406_v49 = vadd.f32 %v19403_v26, %v4145_v56  ;;  %v5571_v26 = vsel %vm2628_vm8, %v5566_v37, %v5570_v34 }
 0x4d1   :  { %5730 = vrot.lane.b32.xlu1 %v5563_v36, %s15849_s24  ;;  %5732 = vrot.lane.b32.xlu0 %v5565_v51, %s15849_s24 }
 0x4d2   :  { %v4594_v5 = vadd.f32 %v19424_v63, %v4406_v49 }
 0x4d3   :  { %v19460_v60 = vpop.permute.xlu1 %4024 }
 0x4d4   :  { %v19462_v22 = vpop.permute.xlu0 %4026  ;;  %v4778_v58 = vadd.f32 %v19445_v30, %v4594_v5  ;;  %v4779_v30 = vadd.f32 %v19448_v47, %v4595_v43 }
 0x4d5   :  { %5734 = vrot.lane.b32.xlu1 %v5567_v16, %s15849_s24  ;;  %5736 = vrot.lane.b32.xlu0 %v5569_v59, %s15849_s24  ;;  %v5576_v59 = vrot.slane %v19539_v33, 4 }
 0x4d7   :  { %v19474_v3 = vpop.permute.xlu1 %4469  ;;  %v5577_v52 = vsel %vm2628_vm8, %v5572_v42, %v5576_v59 }
 0x4d8   :  { %v19476_v23 = vpop.permute.xlu0 %4471 }
 0x4d9   :  { %4297 = vrot.lane.b32.xlu1 %v4214_v35, %s15843_s30  ;;  %4299 = vrot.lane.b32.xlu0 %v4216_v29, %s15843_s30 }
 0x4db   :  { %v19486_v40 = vpop.permute.xlu1 %4910 }
 0x4dc   :  { %v19488_v13 = vpop.permute.xlu0 %4912  ;;  %v5039_v37 = vadd.f32 %v19486_v40, %v4778_v58 }
 0x4dd   :  { %4665 = vrot.lane.b32.xlu1 %v4214_v35, %s15845_s19  ;;  %4667 = vrot.lane.b32.xlu0 %v4216_v29, %s15845_s19 }
 0x4df   :  { %v3678_v0 = vpop.f32.mrb[74].mxu1  ;;  %v19496_v25 = vpop.permute.xlu1 %4285 }
 0x4e0   :  { %3819 = vst [vmem:[#allocation3 + $0x230] sm:$0xff] %v3678_v0  ;;  %v3680_v14 = vpop.f32.mrb[75].mxu1  ;;  %v19498_v61 = vpop.permute.xlu0 %4287  ;;  %v5575_v0 = vsel %vm2628_vm8, %v5570_v34, %v5574_v20  ;;  %v19595_v34 = vld [vmem:[#allocation3 + $0xf0] sm:$0xff] }
 0x4e1   :  { %3820 = vst.msk [vmem:[#allocation3 + $0x238] sm:$0xff] %vm659_vm4, %v3680_v14  ;;  %5110 = vrot.lane.b32.xlu1 %v4214_v35, %s15847_s21  ;;  %5112 = vrot.lane.b32.xlu0 %v4216_v29, %s15847_s21  ;;  %v5573_v29 = vsel %vm2628_vm8, %v5568_v6, %v5572_v42  ;;  %v4217_v14 = vrot.slane %v19492_v17, 2  ;;  %v19597_v42 = vld [vmem:[#allocation3 + $0x100] sm:$0xff] }
 0x4e2   :  { %v3962_v46 = vrot.slane %v19597_v42, 1 }
 0x4e3   :  { %v19505_v27 = vpop.permute.xlu1 %4653  ;;  %v4218_v39 = vsel %vm1148_vm6, %v4215_v21, %v4217_v14  ;;  %v4220_v40 = vsel %vm1148_vm6, %v4217_v14, %v4219_v10 }
 0x4e4   :  { %v19507_v45 = vpop.permute.xlu0 %4655 }
 0x4e5   :  { %4040 = vrot.lane.b32.xlu1 %v3957_v55, %s15842_s1  ;;  %4042 = vrot.lane.b32.xlu0 %v3959_v53, %s15842_s1 }
 0x4e7   :  { %v5099_v12 = vpop.permute.xlu1 %5098 }
 0x4e8   :  { %v5101_v44 = vpop.permute.xlu0 %5100  ;;  %v5227_v9 = vadd.f32 %v5099_v12, %v5039_v37 }
 0x4e9   :  { %4485 = vrot.lane.b32.xlu1 %v3957_v55, %s15844_s16  ;;  %4487 = vrot.lane.b32.xlu0 %v3959_v53, %s15844_s16  ;;  %v5040_v53 = vadd.f32 %v19488_v13, %v4779_v30  ;;  %v19590_v13 = vld [vmem:[%s24808_s5] ss:$0 sm:$0xff] }
 0x4eb   :  { %v19521_v38 = vpop.permute.xlu1 %4028  ;;  %v5228_v47 = vadd.f32 %v5101_v44, %v5040_v53 }
 0x4ec   :  { %v19523_v1 = vpop.permute.xlu0 %4030 }
 0x4ed   :  { %4926 = vrot.lane.b32.xlu1 %v4843_v28, %s15846_s20  ;;  %4928 = vrot.lane.b32.xlu0 %v4845_v7, %s15846_s20 }
 0x4ef   :  { %v19533_v32 = vpop.permute.xlu1 %4473 }
 0x4f0   :  { %v19536_v48 = vpop.permute.xlu0 %4475 }
 0x4f1   :  { %5294 = vrot.lane.b32.xlu1 %v4843_v28, %s15848_s23  ;;  %5296 = vrot.lane.b32.xlu0 %v4845_v7, %s15848_s23 }
 0x4f2   :  { %v3684_v36 = vpop.f32.mrb[76].mxu1 }
 0x4f3   :  { %3821 = vst [vmem:[#allocation3 + $0x240] sm:$0xff] %v3684_v36  ;;  %v3686_v51 = vpop.f32.mrb[77].mxu1  ;;  %v19544_v16 = vpop.permute.xlu1 %4914 }
 0x4f4   :  { %3822 = vst.msk [vmem:[#allocation3 + $0x248] sm:$0xff] %vm659_vm4, %v3686_v51  ;;  %v19552_v35 = vpop.permute.xlu0 %4916 }
 0x4f5   :  { %5738 = vrot.lane.b32.xlu1 %v5571_v26, %s15849_s24  ;;  %5740 = vrot.lane.b32.xlu0 %v5573_v29, %s15849_s24  ;;  %v3960_v29 = vrot.slane %v19595_v34, 1 }
 0x4f7   :  { %v5283_v63 = vpop.permute.xlu1 %5282  ;;  %v3961_v37 = vsel %vm860_vm5, %v3958_v41, %v3960_v29 }
 0x4f8   :  { %v5285_v6 = vpop.permute.xlu0 %5284  ;;  %v5411_v2 = vadd.f32 %v5283_v63, %v5227_v9  ;;  %v4846_v9 = vrot.slane %v19492_v17, 3 }
 0x4f9   :  { %5742 = vrot.lane.b32.xlu1 %v5575_v0, %s15849_s24  ;;  %5744 = vrot.lane.b32.xlu0 %v5577_v52, %s15849_s24  ;;  %v5412_v8 = vadd.f32 %v5285_v6, %v5228_v47  ;;  %v3963_v6 = vsel %vm860_vm5, %v3960_v29, %v3962_v46 }
 0x4fb   :  { %v5715_v55 = vpop.permute.xlu1 %5714 }
 0x4fc   :  { %v5717_v28 = vpop.permute.xlu0 %5716 }
 0x4fd   :  { %v5886_v7 = vsel %vm3007_vm10, %v5715_v55, %v5717_v28  ;;  %4301 = vrot.lane.b32.xlu1 %v4218_v39, %s15843_s30  ;;  %4303 = vrot.lane.b32.xlu0 %v4220_v40, %s15843_s30  ;;  %v4848_v55 = vrot.slane %v19494_v4, 3 }
 0x4fe   :  { %v5972_v12 = vadd.f32 %v5886_v7, %v5411_v2  ;;  %v4847_v2 = vsel %vm1840_vm7, %v4844_v19, %v4846_v9  ;;  %v15778_v7 = vld [vmem:[#allocation3 + $0x20] sm:$0xff]  ;;  %v19645_v19 = vld [vmem:[#allocation3 + $0xe8] sm:$0xff] }
 0x4ff   :  { %v5719_v62 = vpop.permute.xlu1 %5718  ;;  %v4849_v28 = vsel %vm1840_vm7, %v4846_v9, %v4848_v55  ;;  %v4147_v47 = vadd.f32 %v15778_v7, %v19416_v15  ;;  %v5582_v15 = vrot.slane %v19494_v4, 4 }
 0x500   :  { %v5721_v21 = vpop.permute.xlu0 %5720  ;;  %v6022_v44 = vadd.f32 %v19590_v13, %v5972_v12 }
 0x501   :  { %v5887_v56 = vsel %vm3007_vm10, %v5719_v62, %v5721_v21  ;;  %4669 = vrot.lane.b32.xlu1 %v4218_v39, %s15845_s19  ;;  %4671 = vrot.lane.b32.xlu0 %v4220_v40, %s15845_s19  ;;  %v5578_v62 = vrot.slane %v19492_v17, 4  ;;  %v4408_v21 = vadd.f32 %v19436_v50, %v4147_v47 }
 0x502   :  { %v5973_v49 = vadd.f32 %v5887_v56, %v5412_v8  ;;  %v6065_v58 = vmax.f32 %v6022_v44, 0.0 }
 0x503   :  { %v3690_v36 = vpop.f32.mrb[78].mxu1  ;;  %v19600_v51 = vpop.permute.xlu1 %4289  ;;  %v5579_v50 = vsel %vm2628_vm8, %v5574_v20, %v5578_v62 }
 0x504   :  { %v6023_v24 = vadd.f32 %v19590_v13, %v5973_v49  ;;  %3823 = vst [vmem:[#allocation3 + $0x250] sm:$0xff] %v3690_v36  ;;  %v3692_v5 = vpop.f32.mrb[79].mxu1  ;;  %v19603_v26 = vpop.permute.xlu0 %4291  ;;  %v5584_v36 = vrot.slane %v19645_v19, 4 }
 0x505   :  { %3824 = vst.msk [vmem:[#allocation3 + $0x258] sm:$0xff] %vm659_vm4, %v3692_v5  ;;  %5114 = vrot.lane.b32.xlu1 %v4218_v39, %s15847_s21  ;;  %5116 = vrot.lane.b32.xlu0 %v4220_v40, %s15847_s21  ;;  %v5464_v39 = vld [vmem:[#allocation3 + $0xd8] sm:$0xff]  ;;  %v4596_v5 = vadd.f32 %v19474_v3, %v4408_v21  ;;  %v19697_v21 = vld [vmem:[#allocation3 + $0x120] sm:$0xff] }
 0x506   :  { %v6066_v63 = vmax.f32 %v6023_v24, 0.0  ;;  %v5580_v8 = vrot.slane %v5464_v39, 4  ;;  %v15779_v24 = vld [vmem:[#allocation3 + $0x30] sm:$0xff] }
 0x507   :  { %v19610_v0 = vpop.permute.xlu1 %4657  ;;  %v4148_v17 = vadd.f32 %v15779_v24, %v19418_v18  ;;  %v4780_v3 = vadd.f32 %v19505_v27, %v4596_v5 }
 0x508   :  { %v14566_v52 = vpack.c.bf16 %v6066_v63, %v6065_v58  ;;  %v19612_v43 = vpop.permute.xlu0 %4659  ;;  %v5581_v58 = vsel %vm2628_vm8, %v5576_v59, %v5580_v8  ;;  %v5585_v57 = vsel %vm2628_vm8, %v5580_v8, %v5584_v36 }
 0x509   :  { %4044 = vrot.lane.b32.xlu1 %v3961_v37, %s15842_s1  ;;  %4046 = vrot.lane.b32.xlu0 %v3963_v6, %s15842_s1  ;;  %v4409_v18 = vadd.f32 %v19438_v11, %v4148_v17  ;;  %v5041_v20 = vadd.f32 %v19544_v16, %v4780_v3  ;;  %v4223_v11 = vrot.slane %v19597_v42, 2 }
 0x50a   :  { %14567 = vmatpush1.bf16.msra.mxu1 %v14566_v52  ;;  %v5583_v52 = vsel %vm2628_vm8, %v5578_v62, %v5582_v15 }
 0x50b   :  { %v5103_v14 = vpop.permute.xlu1 %5102  ;;  %14568 = vmatprep.subr.bf16.mxu1 %v15850_v31  ;;  %v4597_v33 = vadd.f32 %v19476_v23, %v4409_v18  ;;  %v3966_v18 = vrot.slane %v19697_v21, 1 }
 0x50c   :  { %v5105_v30 = vpop.permute.xlu0 %5104 }
 0x50d   :  { %4489 = vrot.lane.b32.xlu1 %v3961_v37, %s15844_s16  ;;  %4491 = vrot.lane.b32.xlu0 %v3963_v6, %s15844_s16  ;;  %v4221_v37 = vrot.slane %v19595_v34, 2  ;;  %v4781_v27 = vadd.f32 %v19507_v45, %v4597_v33  ;;  %v5229_v6 = vadd.f32 %v5103_v14, %v5041_v20 }
 0x50f   :  { %v19627_v41 = vpop.permute.xlu1 %4032  ;;  %v4222_v23 = vsel %vm1148_vm6, %v4219_v10, %v4221_v37  ;;  %v4224_v16 = vsel %vm1148_vm6, %v4221_v37, %v4223_v11  ;;  %v19695_v10 = vld [vmem:[#allocation3 + $0x110] sm:$0xff] }
 0x510   :  { %v19629_v53 = vpop.permute.xlu0 %4034 }
 0x511   :  { %4930 = vrot.lane.b32.xlu1 %v4847_v2, %s15846_s20  ;;  %4932 = vrot.lane.b32.xlu0 %v4849_v28, %s15846_s20 }
 0x513   :  { %v19639_v40 = vpop.permute.xlu1 %4477 }
 0x514   :  { %v19642_v12 = vpop.permute.xlu0 %4479 }
 0x515   :  { %5298 = vrot.lane.b32.xlu1 %v4847_v2, %s15848_s23  ;;  %5300 = vrot.lane.b32.xlu0 %v4849_v28, %s15848_s23  ;;  %v5042_v2 = vadd.f32 %v19552_v35, %v4781_v27 }
 0x516   :  { %v3696_v56 = vpop.f32.mrb[80].mxu1 }
 0x517   :  { %3825 = vst [vmem:[#allocation3 + $0x260] sm:$0xff] %v3696_v56  ;;  %v3698_v44 = vpop.f32.mrb[81].mxu1  ;;  %v19650_v49 = vpop.permute.xlu1 %4918  ;;  %v5230_v45 = vadd.f32 %v5105_v30, %v5042_v2 }
 0x518   :  { %3826 = vst.msk [vmem:[#allocation3 + $0x268] sm:$0xff] %vm659_vm4, %v3698_v44  ;;  %v19657_v29 = vpop.permute.xlu0 %4920 }
 0x519   :  { %5746 = vrot.lane.b32.xlu1 %v5579_v50, %s15849_s24  ;;  %5748 = vrot.lane.b32.xlu0 %v5581_v58, %s15849_s24  ;;  %v3964_v58 = vrot.slane %v19695_v10, 1 }
 0x51b   :  { %v5287_v63 = vpop.permute.xlu1 %5286  ;;  %v3965_v20 = vsel %vm860_vm5, %v3962_v46, %v3964_v58 }
 0x51c   :  { %v5289_v59 = vpop.permute.xlu0 %5288  ;;  %v5413_v28 = vadd.f32 %v5287_v63, %v5229_v6  ;;  %v4850_v6 = vrot.slane %v19595_v34, 3 }
 0x51d   :  { %5750 = vrot.lane.b32.xlu1 %v5583_v52, %s15849_s24  ;;  %5752 = vrot.lane.b32.xlu0 %v5585_v57, %s15849_s24  ;;  %v5414_v35 = vadd.f32 %v5289_v59, %v5230_v45  ;;  %v3967_v59 = vsel %vm860_vm5, %v3964_v58, %v3966_v18 }
 0x51f   :  { %v5723_v9 = vpop.permute.xlu1 %5722 }
 0x520   :  { %v5725_v39 = vpop.permute.xlu0 %5724 }
 0x521   :  { %v5888_v7 = vsel %vm3007_vm10, %v5723_v9, %v5725_v39  ;;  %4305 = vrot.lane.b32.xlu1 %v4222_v23, %s15843_s30  ;;  %4307 = vrot.lane.b32.xlu0 %v4224_v16, %s15843_s30  ;;  %v4852_v9 = vrot.slane %v19597_v42, 3 }
 0x522   :  { %v5974_v14 = vadd.f32 %v5888_v7, %v5413_v28  ;;  %v4851_v28 = vsel %vm1840_vm7, %v4848_v55, %v4850_v6  ;;  %v15780_v7 = vld [vmem:[#allocation3 + $0x40] sm:$0xff]  ;;  %v19745_v55 = vld [vmem:[#allocation3 + $0x108] sm:$0xff] }
 0x523   :  { %v5727_v47 = vpop.permute.xlu1 %5726  ;;  %v4853_v39 = vsel %vm1840_vm7, %v4850_v6, %v4852_v9  ;;  %v4149_v45 = vadd.f32 %v15780_v7, %v19460_v60  ;;  %v5590_v60 = vrot.slane %v19597_v42, 4 }
 0x524   :  { %v5729_v62 = vpop.permute.xlu0 %5728  ;;  %v6024_v56 = vadd.f32 %v19590_v13, %v5974_v14 }
 0x525   :  { %v5889_v8 = vsel %vm3007_vm10, %v5727_v47, %v5729_v62  ;;  %4673 = vrot.lane.b32.xlu1 %v4222_v23, %s15845_s19  ;;  %4675 = vrot.lane.b32.xlu0 %v4224_v16, %s15845_s19  ;;  %v5586_v47 = vrot.slane %v19595_v34, 4  ;;  %v4410_v62 = vadd.f32 %v19496_v25, %v4149_v45 }
 0x526   :  { %v5975_v44 = vadd.f32 %v5889_v8, %v5414_v35  ;;  %v6067_v3 = vmax.f32 %v6024_v56, 0.0 }
 0x527   :  { %v3702_v24 = vpop.f32.mrb[82].mxu1  ;;  %v19700_v17 = vpop.permute.xlu1 %4293  ;;  %v5587_v25 = vsel %vm2628_vm8, %v5582_v15, %v5586_v47 }
 0x528   :  { %v6025_v30 = vadd.f32 %v19590_v13, %v5975_v44  ;;  %3827 = vst [vmem:[#allocation3 + $0x270] sm:$0xff] %v3702_v24  ;;  %v3704_v5 = vpop.f32.mrb[83].mxu1  ;;  %v19703_v50 = vpop.permute.xlu0 %4295  ;;  %v5592_v24 = vrot.slane %v19745_v55, 4 }
 0x529   :  { %3828 = vst.msk [vmem:[#allocation3 + $0x278] sm:$0xff] %vm659_vm4, %v3704_v5  ;;  %5118 = vrot.lane.b32.xlu1 %v4222_v23, %s15847_s21  ;;  %5120 = vrot.lane.b32.xlu0 %v4224_v16, %s15847_s21  ;;  %v5466_v23 = vld [vmem:[#allocation3 + $0xf8] sm:$0xff]  ;;  %v4598_v5 = vadd.f32 %v19533_v32, %v4410_v62  ;;  %v19797_v62 = vld [vmem:[#allocation3 + $0x140] sm:$0xff] }
 0x52a   :  { %v6068_v63 = vmax.f32 %v6025_v30, 0.0  ;;  %v5588_v35 = vrot.slane %v5466_v23, 4  ;;  %v15781_v30 = vld [vmem:[#allocation3 + $0x50] sm:$0xff] }
 0x52b   :  { %v19710_v52 = vpop.permute.xlu1 %4661  ;;  %v4150_v34 = vadd.f32 %v15781_v30, %v19462_v22  ;;  %v4782_v32 = vadd.f32 %v19610_v0, %v4598_v5 }
 0x52c   :  { %v14569_v57 = vpack.c.bf16 %v6068_v63, %v6067_v3  ;;  %v19712_v33 = vpop.permute.xlu0 %4663  ;;  %v5589_v3 = vsel %vm2628_vm8, %v5584_v36, %v5588_v35  ;;  %v5593_v4 = vsel %vm2628_vm8, %v5588_v35, %v5592_v24 }
 0x52d   :  { %4048 = vrot.lane.b32.xlu1 %v3965_v20, %s15842_s1  ;;  %4050 = vrot.lane.b32.xlu0 %v3967_v59, %s15842_s1  ;;  %v4411_v22 = vadd.f32 %v19498_v61, %v4150_v34  ;;  %v5043_v15 = vadd.f32 %v19650_v49, %v4782_v32  ;;  %v4227_v61 = vrot.slane %v19697_v21, 2 }
 0x52e   :  { %14570 = vmatpush1.bf16.msra.mxu1 %v14569_v57  ;;  %v5591_v57 = vsel %vm2628_vm8, %v5586_v47, %v5590_v60 }
 0x52f   :  { %v5107_v37 = vpop.permute.xlu1 %5106  ;;  %14571 = vmatprep.subr.bf16.mxu1 %v15850_v31  ;;  %v4599_v19 = vadd.f32 %v19536_v48, %v4411_v22  ;;  %v3970_v22 = vrot.slane %v19797_v62, 1 }
 0x530   :  { %v5109_v27 = vpop.permute.xlu0 %5108 }
 0x531   :  { %4493 = vrot.lane.b32.xlu1 %v3965_v20, %s15844_s16  ;;  %4495 = vrot.lane.b32.xlu0 %v3967_v59, %s15844_s16  ;;  %v4225_v20 = vrot.slane %v19695_v10, 2  ;;  %v4783_v0 = vadd.f32 %v19612_v43, %v4599_v19  ;;  %v5231_v59 = vadd.f32 %v5107_v37, %v5043_v15 }
 0x533   :  { %v19727_v46 = vpop.permute.xlu1 %4036  ;;  %v4226_v48 = vsel %vm1148_vm6, %v4223_v11, %v4225_v20  ;;  %v4228_v49 = vsel %vm1148_vm6, %v4225_v20, %v4227_v61  ;;  %v19795_v11 = vld [vmem:[#allocation3 + $0x130] sm:$0xff] }
 0x534   :  { %v19729_v2 = vpop.permute.xlu0 %4038 }
 0x535   :  { %4934 = vrot.lane.b32.xlu1 %v4851_v28, %s15846_s20  ;;  %4936 = vrot.lane.b32.xlu0 %v4853_v39, %s15846_s20 }
 0x537   :  { %v19739_v16 = vpop.permute.xlu1 %4481 }
 0x538   :  { %v19742_v14 = vpop.permute.xlu0 %4483 }
 0x539   :  { %5302 = vrot.lane.b32.xlu1 %v4851_v28, %s15848_s23  ;;  %5304 = vrot.lane.b32.xlu0 %v4853_v39, %s15848_s23  ;;  %v5044_v28 = vadd.f32 %v19657_v29, %v4783_v0 }
 0x53a   :  { %v3708_v8 = vpop.f32.mrb[84].mxu1 }
 0x53b   :  { %3829 = vst [vmem:[#allocation3 + $0x280] sm:$0xff] %v3708_v8  ;;  %v3710_v56 = vpop.f32.mrb[85].mxu1  ;;  %v19750_v44 = vpop.permute.xlu1 %4922  ;;  %v5232_v43 = vadd.f32 %v5109_v27, %v5044_v28 }
 0x53c   :  { %3830 = vst.msk [vmem:[#allocation3 + $0x288] sm:$0xff] %vm659_vm4, %v3710_v56  ;;  %v19757_v58 = vpop.permute.xlu0 %4924 }
 0x53d   :  { %5754 = vrot.lane.b32.xlu1 %v5587_v25, %s15849_s24  ;;  %5756 = vrot.lane.b32.xlu0 %v5589_v3, %s15849_s24  ;;  %v3968_v3 = vrot.slane %v19795_v11, 1 }
 0x53f   :  { %v5291_v63 = vpop.permute.xlu1 %5290  ;;  %v3969_v15 = vsel %vm860_vm5, %v3966_v18, %v3968_v3 }
 0x540   :  { %v5293_v36 = vpop.permute.xlu0 %5292  ;;  %v5415_v39 = vadd.f32 %v5291_v63, %v5231_v59  ;;  %v4854_v59 = vrot.slane %v19695_v10, 3 }
 0x541   :  { %5758 = vrot.lane.b32.xlu1 %v5591_v57, %s15849_s24  ;;  %5760 = vrot.lane.b32.xlu0 %v5593_v4, %s15849_s24  ;;  %v5416_v29 = vadd.f32 %v5293_v36, %v5232_v43  ;;  %v3971_v36 = vsel %vm860_vm5, %v3968_v3, %v3970_v22 }
 0x543   :  { %v5731_v6 = vpop.permute.xlu1 %5730 }
 0x544   :  { %v5733_v23 = vpop.permute.xlu0 %5732 }
 0x545   :  { %v5890_v7 = vsel %vm3007_vm10, %v5731_v6, %v5733_v23  ;;  %4309 = vrot.lane.b32.xlu1 %v4226_v48, %s15843_s30  ;;  %4311 = vrot.lane.b32.xlu0 %v4228_v49, %s15843_s30  ;;  %v4856_v6 = vrot.slane %v19697_v21, 3 }
 0x546   :  { %v5976_v37 = vadd.f32 %v5890_v7, %v5415_v39  ;;  %v4855_v39 = vsel %vm1840_vm7, %v4852_v9, %v4854_v59  ;;  %v15782_v7 = vld [vmem:[#allocation3 + $0x60] sm:$0xff]  ;;  %v19845_v9 = vld [vmem:[#allocation3 + $0x128] sm:$0xff] }
 0x547   :  { %v5735_v45 = vpop.permute.xlu1 %5734  ;;  %v4857_v23 = vsel %vm1840_vm7, %v4854_v59, %v4856_v6  ;;  %v4151_v43 = vadd.f32 %v15782_v7, %v19521_v38  ;;  %v5598_v38 = vrot.slane %v19697_v21, 4 }
 0x548   :  { %v5737_v47 = vpop.permute.xlu0 %5736  ;;  %v6026_v8 = vadd.f32 %v19590_v13, %v5976_v37 }
 0x549   :  { %v5891_v35 = vsel %vm3007_vm10, %v5735_v45, %v5737_v47  ;;  %4677 = vrot.lane.b32.xlu1 %v4226_v48, %s15845_s19  ;;  %4679 = vrot.lane.b32.xlu0 %v4228_v49, %s15845_s19  ;;  %v5594_v45 = vrot.slane %v19695_v10, 4  ;;  %v4412_v47 = vadd.f32 %v19600_v51, %v4151_v43 }
 0x54a   :  { %v5977_v56 = vadd.f32 %v5891_v35, %v5416_v29  ;;  %v6069_v32 = vmax.f32 %v6026_v8, 0.0 }
 0x54b   :  { %v3714_v30 = vpop.f32.mrb[86].mxu1  ;;  %v19800_v34 = vpop.permute.xlu1 %4297  ;;  %v5595_v51 = vsel %vm2628_vm8, %v5590_v60, %v5594_v45 }
 0x54c   :  { %v6027_v27 = vadd.f32 %v19590_v13, %v5977_v56  ;;  %3831 = vst [vmem:[#allocation3 + $0x290] sm:$0xff] %v3714_v30  ;;  %v3716_v5 = vpop.f32.mrb[87].mxu1  ;;  %v19803_v25 = vpop.permute.xlu0 %4299  ;;  %v5600_v30 = vrot.slane %v19845_v9, 4 }
 0x54d   :  { %3832 = vst.msk [vmem:[#allocation3 + $0x298] sm:$0xff] %vm659_vm4, %v3716_v5  ;;  %5122 = vrot.lane.b32.xlu1 %v4226_v48, %s15847_s21  ;;  %5124 = vrot.lane.b32.xlu0 %v4228_v49, %s15847_s21  ;;  %v5468_v48 = vld [vmem:[#allocation3 + $0x118] sm:$0xff]  ;;  %v4600_v5 = vadd.f32 %v19639_v40, %v4412_v47  ;;  %v19897_v47 = vld [vmem:[#allocation3 + $0x160] sm:$0xff] }
 0x54e   :  { %v6070_v63 = vmax.f32 %v6027_v27, 0.0  ;;  %v5596_v29 = vrot.slane %v5468_v48, 4  ;;  %v15783_v27 = vld [vmem:[#allocation3 + $0x70] sm:$0xff] }
 0x54f   :  { %v19810_v57 = vpop.permute.xlu1 %4665  ;;  %v4152_v10 = vadd.f32 %v15783_v27, %v19523_v1  ;;  %v4784_v40 = vadd.f32 %v19710_v52, %v4600_v5 }
 0x550   :  { %v14572_v4 = vpack.c.bf16 %v6070_v63, %v6069_v32  ;;  %v19812_v19 = vpop.permute.xlu0 %4667  ;;  %v5597_v32 = vsel %vm2628_vm8, %v5592_v24, %v5596_v29  ;;  %v5601_v42 = vsel %vm2628_vm8, %v5596_v29, %v5600_v30 }
 0x551   :  { %4052 = vrot.lane.b32.xlu1 %v3969_v15, %s15842_s1  ;;  %4054 = vrot.lane.b32.xlu0 %v3971_v36, %s15842_s1  ;;  %v4413_v1 = vadd.f32 %v19603_v26, %v4152_v10  ;;  %v5045_v60 = vadd.f32 %v19750_v44, %v4784_v40  ;;  %v4231_v26 = vrot.slane %v19797_v62, 2 }
 0x552   :  { %14573 = vmatpush1.bf16.msra.mxu1 %v14572_v4  ;;  %v5599_v4 = vsel %vm2628_vm8, %v5594_v45, %v5598_v38 }
 0x553   :  { %v5111_v20 = vpop.permute.xlu1 %5110  ;;  %14574 = vmatprep.subr.bf16.mxu1 %v15850_v31  ;;  %v4601_v55 = vadd.f32 %v19642_v12, %v4413_v1  ;;  %v3974_v1 = vrot.slane %v19897_v47, 1 }
 0x554   :  { %v5113_v0 = vpop.permute.xlu0 %5112 }
 0x555   :  { %4497 = vrot.lane.b32.xlu1 %v3969_v15, %s15844_s16  ;;  %4499 = vrot.lane.b32.xlu0 %v3971_v36, %s15844_s16  ;;  %v4229_v15 = vrot.slane %v19795_v11, 2  ;;  %v4785_v52 = vadd.f32 %v19712_v33, %v4601_v55  ;;  %v5233_v36 = vadd.f32 %v5111_v20, %v5045_v60 }
 0x557   :  { %v19827_v18 = vpop.permute.xlu1 %4040  ;;  %v4230_v12 = vsel %vm1148_vm6, %v4227_v61, %v4229_v15  ;;  %v4232_v44 = vsel %vm1148_vm6, %v4229_v15, %v4231_v26  ;;  %v19895_v61 = vld [vmem:[#allocation3 + $0x150] sm:$0xff] }
 0x558   :  { %v19829_v28 = vpop.permute.xlu0 %4042 }
 0x559   :  { %4938 = vrot.lane.b32.xlu1 %v4855_v39, %s15846_s20  ;;  %4940 = vrot.lane.b32.xlu0 %v4857_v23, %s15846_s20 }
 0x55b   :  { %v19839_v49 = vpop.permute.xlu1 %4485 }
 0x55c   :  { %v19842_v37 = vpop.permute.xlu0 %4487 }
 0x55d   :  { %5306 = vrot.lane.b32.xlu1 %v4855_v39, %s15848_s23  ;;  %5308 = vrot.lane.b32.xlu0 %v4857_v23, %s15848_s23  ;;  %v5046_v39 = vadd.f32 %v19757_v58, %v4785_v52 }
 0x55e   :  { %v3720_v35 = vpop.f32.mrb[88].mxu1 }
 0x55f   :  { %3833 = vst [vmem:[#allocation3 + $0x2a0] sm:$0xff] %v3720_v35  ;;  %v3722_v8 = vpop.f32.mrb[89].mxu1  ;;  %v19850_v56 = vpop.permute.xlu1 %4926  ;;  %v5234_v33 = vadd.f32 %v5113_v0, %v5046_v39 }
 0x560   :  { %3834 = vst.msk [vmem:[#allocation3 + $0x2a8] sm:$0xff] %vm659_vm4, %v3722_v8  ;;  %v19857_v3 = vpop.permute.xlu0 %4928 }
 0x561   :  { %5762 = vrot.lane.b32.xlu1 %v5595_v51, %s15849_s24  ;;  %5764 = vrot.lane.b32.xlu0 %v5597_v32, %s15849_s24  ;;  %v3972_v32 = vrot.slane %v19895_v61, 1 }
 0x563   :  { %v5295_v63 = vpop.permute.xlu1 %5294  ;;  %v3973_v60 = vsel %vm860_vm5, %v3970_v22, %v3972_v32 }
 0x564   :  { %v5297_v24 = vpop.permute.xlu0 %5296  ;;  %v5417_v23 = vadd.f32 %v5295_v63, %v5233_v36  ;;  %v4858_v36 = vrot.slane %v19795_v11, 3 }
 0x565   :  { %5766 = vrot.lane.b32.xlu1 %v5599_v4, %s15849_s24  ;;  %5768 = vrot.lane.b32.xlu0 %v5601_v42, %s15849_s24  ;;  %v5418_v58 = vadd.f32 %v5297_v24, %v5234_v33  ;;  %v3975_v24 = vsel %vm860_vm5, %v3972_v32, %v3974_v1  ;;  %v15784_v33 = vld [vmem:[#allocation3 + $0x80] sm:$0xff] }
 0x567   :  { %v5739_v59 = vpop.permute.xlu1 %5738 }
 0x568   :  { %v5741_v48 = vpop.permute.xlu0 %5740 }
 0x569   :  { %v5892_v7 = vsel %vm3007_vm10, %v5739_v59, %v5741_v48  ;;  %4313 = vrot.lane.b32.xlu1 %v4230_v12, %s15843_s30  ;;  %4315 = vrot.lane.b32.xlu0 %v4232_v44, %s15843_s30  ;;  %v4860_v59 = vrot.slane %v19797_v62, 3 }
 0x56a   :  { %v5978_v20 = vadd.f32 %v5892_v7, %v5417_v23  ;;  %v4859_v23 = vsel %vm1840_vm7, %v4856_v6, %v4858_v36  ;;  %v5602_v6 = vrot.slane %v19795_v11, 4 }
 0x56b   :  { %v5743_v43 = vpop.permute.xlu1 %5742  ;;  %v4861_v48 = vsel %vm1840_vm7, %v4858_v36, %v4860_v59 }
 0x56c   :  { %v5745_v45 = vpop.permute.xlu0 %5744  ;;  %v6028_v35 = vadd.f32 %v19590_v13, %v5978_v20  ;;  %v4153_v20 = vadd.f32 %v15784_v33, %v19627_v41  ;;  %v5606_v41 = vrot.slane %v19797_v62, 4 }
 0x56d   :  { %v5893_v29 = vsel %vm3007_vm10, %v5743_v43, %v5745_v45  ;;  %4681 = vrot.lane.b32.xlu1 %v4230_v12, %s15845_s19  ;;  %4683 = vrot.lane.b32.xlu0 %v4232_v44, %s15845_s19 }
 0x56e   :  { %v5979_v8 = vadd.f32 %v5893_v29, %v5418_v58  ;;  %v6071_v40 = vmax.f32 %v6028_v35, 0.0  ;;  %v19947_v29 = vld [vmem:[#allocation3 + $0x148] sm:$0xff]  ;;  %v4414_v35 = vadd.f32 %v19700_v17, %v4153_v20 }
 0x56f   :  { %v3726_v27 = vpop.f32.mrb[90].mxu1  ;;  %v19900_v10 = vpop.permute.xlu1 %4301 }
 0x570   :  { %v6029_v0 = vadd.f32 %v19590_v13, %v5979_v8  ;;  %3835 = vst [vmem:[#allocation3 + $0x2b0] sm:$0xff] %v3726_v27  ;;  %v3728_v5 = vpop.f32.mrb[91].mxu1  ;;  %v19903_v51 = vpop.permute.xlu0 %4303  ;;  %v5608_v27 = vrot.slane %v19947_v29, 4 }
 0x571   :  { %3836 = vst.msk [vmem:[#allocation3 + $0x2b8] sm:$0xff] %vm659_vm4, %v3728_v5  ;;  %5126 = vrot.lane.b32.xlu1 %v4230_v12, %s15847_s21  ;;  %5128 = vrot.lane.b32.xlu0 %v4232_v44, %s15847_s21  ;;  %v5470_v12 = vld [vmem:[#allocation3 + $0x138] sm:$0xff]  ;;  %v4602_v5 = vadd.f32 %v19739_v16, %v4414_v35  ;;  %v5607_v16 = vsel %vm2628_vm8, %v5602_v6, %v5606_v41  ;;  %v20001_v35 = vld [vmem:[#allocation3 + $0x180] sm:$0xff] }
 0x572   :  { %v6072_v63 = vmax.f32 %v6029_v0, 0.0  ;;  %v5604_v45 = vrot.slane %v5470_v12, 4  ;;  %v15785_v0 = vld [vmem:[#allocation3 + $0x90] sm:$0xff] }
 0x573   :  { %v19910_v4 = vpop.permute.xlu1 %4669  ;;  %v4154_v11 = vadd.f32 %v15785_v0, %v19629_v53  ;;  %v4786_v53 = vadd.f32 %v19810_v57, %v4602_v5 }
 0x574   :  { %v14575_v42 = vpack.c.bf16 %v6072_v63, %v6071_v40  ;;  %v19912_v55 = vpop.permute.xlu0 %4671  ;;  %v5603_v40 = vsel %vm2628_vm8, %v5598_v38, %v5602_v6  ;;  %v5605_v17 = vsel %vm2628_vm8, %v5600_v30, %v5604_v45  ;;  %v5609_v21 = vsel %vm2628_vm8, %v5604_v45, %v5608_v27  ;;  %v19999_v45 = vld [vmem:[#allocation3 + $0x170] sm:$0xff] }
 0x575   :  { %4056 = vrot.lane.b32.xlu1 %v3973_v60, %s15842_s1  ;;  %4058 = vrot.lane.b32.xlu0 %v3975_v24, %s15842_s1  ;;  %v4415_v63 = vadd.f32 %v19703_v50, %v4154_v11  ;;  %v5047_v38 = vadd.f32 %v19850_v56, %v4786_v53  ;;  %v4235_v50 = vrot.slane %v19897_v47, 2  ;;  %v3976_v53 = vrot.slane %v19999_v45, 1 }
 0x576   :  { %14576 = vmatpush1.bf16.msra.mxu1 %v14575_v42 }
 0x577   :  { %v5115_v15 = vpop.permute.xlu1 %5114  ;;  %14577 = vmatprep.subr.bf16.mxu1 %v15850_v31  ;;  %v4603_v9 = vadd.f32 %v19742_v14, %v4415_v63 }
 0x578   :  { %v19923_v52 = vpop.permute.xlu0 %5116 }
 0x579   :  { %4501 = vrot.lane.b32.xlu1 %v3973_v60, %s15844_s16  ;;  %4503 = vrot.lane.b32.xlu0 %v3975_v24, %s15844_s16  ;;  %v4233_v60 = vrot.slane %v19895_v61, 2  ;;  %v4787_v57 = vadd.f32 %v19812_v19, %v4603_v9  ;;  %v5235_v24 = vadd.f32 %v5115_v15, %v5047_v38 }
 0x57b   :  { %v19929_v22 = vpop.permute.xlu1 %4044  ;;  %v4236_v33 = vsel %vm1148_vm6, %v4233_v60, %v4235_v50 }
 0x57c   :  { %v19931_v39 = vpop.permute.xlu0 %4046 }
 0x57d   :  { %4942 = vrot.lane.b32.xlu1 %v4859_v23, %s15846_s20  ;;  %4944 = vrot.lane.b32.xlu0 %v4861_v48, %s15846_s20 }
 0x57f   :  { %v3732_v44 = vpop.f32.mrb[92].mxu1  ;;  %v19941_v7 = vpop.permute.xlu1 %4489 }
 0x580   :  { %3837 = vst [vmem:[#allocation3 + $0x2c0] sm:$0xff] %v3732_v44  ;;  %v3734_v43 = vpop.f32.mrb[93].mxu1  ;;  %v19944_v58 = vpop.permute.xlu0 %4491  ;;  %v4234_v44 = vsel %vm1148_vm6, %v4231_v26, %v4233_v60  ;;  %v3977_v60 = vsel %vm860_vm5, %v3974_v1, %v3976_v53 }
 0x581   :  { %3838 = vst.msk [vmem:[#allocation3 + $0x2c8] sm:$0xff] %vm659_vm4, %v3734_v43  ;;  %5310 = vrot.lane.b32.xlu1 %v4859_v23, %s15848_s23  ;;  %5312 = vrot.lane.b32.xlu0 %v4861_v48, %s15848_s23  ;;  %v5048_v48 = vadd.f32 %v19857_v3, %v4787_v57 }
 0x583   :  { %v19953_v8 = vpop.permute.xlu1 %4930  ;;  %v5236_v3 = vadd.f32 %v19923_v52, %v5048_v48  ;;  %v4864_v48 = vrot.slane %v19897_v47, 3 }
 0x584   :  { %v19959_v32 = vpop.permute.xlu0 %4932 }
 0x585   :  { %5770 = vrot.lane.b32.xlu1 %v5603_v40, %s15849_s24  ;;  %5772 = vrot.lane.b32.xlu0 %v5605_v17, %s15849_s24 }
 0x587   :  { %v5299_v42 = vpop.permute.xlu1 %5298 }
 0x588   :  { %v5301_v30 = vpop.permute.xlu0 %5300  ;;  %v5419_v12 = vadd.f32 %v5299_v42, %v5235_v24  ;;  %v3978_v42 = vrot.slane %v20001_v35, 1 }
 0x589   :  { %5774 = vrot.lane.b32.xlu1 %v5607_v16, %s15849_s24  ;;  %5776 = vrot.lane.b32.xlu0 %v5609_v21, %s15849_s24  ;;  %v5420_v43 = vadd.f32 %v5301_v30, %v5236_v3 }
 0x58a   :  { %v3979_v57 = vsel %vm860_vm5, %v3976_v53, %v3978_v42 }
 0x58b   :  { %v3738_v36 = vpop.f32.mrb[94].mxu1  ;;  %v5747_v23 = vpop.permute.xlu1 %5746 }
 0x58c   :  { %3839 = vst [vmem:[#allocation3 + $0x2d0] sm:$0xff] %v3738_v36  ;;  %v3740_v14 = vpop.f32.mrb[95].mxu1  ;;  %v5749_v56 = vpop.permute.xlu0 %5748 }
 0x58d   :  { %3840 = vst.msk [vmem:[#allocation3 + $0x2d8] sm:$0xff] %vm659_vm4, %v3740_v14  ;;  %v5894_v19 = vsel %vm3007_vm10, %v5747_v23, %v5749_v56  ;;  %4317 = vrot.lane.b32.xlu1 %v4234_v44, %s15843_s30  ;;  %4319 = vrot.lane.b32.xlu0 %v4236_v33, %s15843_s30  ;;  %v4862_v23 = vrot.slane %v19895_v61, 3 }
 0x58e   :  { %v5980_v15 = vadd.f32 %v5894_v19, %v5419_v12  ;;  %v15786_v19 = vld [vmem:[#allocation3 + $0xa0] sm:$0xff] }
 0x58f   :  { %v5751_v20 = vpop.permute.xlu1 %5750  ;;  %v4863_v14 = vsel %vm1840_vm7, %v4860_v59, %v4862_v23  ;;  %v4865_v56 = vsel %vm1840_vm7, %v4862_v23, %v4864_v48  ;;  %v4155_v3 = vadd.f32 %v15786_v19, %v19727_v46  ;;  %v20049_v59 = vld [vmem:[#allocation3 + $0x168] sm:$0xff]  ;;  %v15787_v46 = vld [vmem:[#allocation3 + $0xb0] sm:$0xff] }
 0x590   :  { %v5753_v6 = vpop.permute.xlu0 %5752  ;;  %v6030_v0 = vadd.f32 %v19590_v13, %v5980_v15 }
 0x591   :  { %v5895_v26 = vsel %vm3007_vm10, %v5751_v20, %v5753_v6  ;;  %4685 = vrot.lane.b32.xlu1 %v4234_v44, %s15845_s19  ;;  %4687 = vrot.lane.b32.xlu0 %v4236_v33, %s15845_s19  ;;  %v5610_v20 = vrot.slane %v19895_v61, 4  ;;  %v4416_v6 = vadd.f32 %v19800_v34, %v4155_v3 }
 0x592   :  { %v5981_v11 = vadd.f32 %v5895_v26, %v5420_v43  ;;  %v6073_v16 = vmax.f32 %v6030_v0, 0.0  ;;  %v5614_v0 = vrot.slane %v19897_v47, 4 }
 0x593   :  { %v3744_v5 = vpop.f32.mrb[96].mxu1  ;;  %v20004_v40 = vpop.permute.xlu1 %4305  ;;  %v4604_v61 = vadd.f32 %v19839_v49, %v4416_v6 }
 0x594   :  { %v6031_v52 = vadd.f32 %v19590_v13, %v5981_v11  ;;  %3841 = vst [vmem:[#allocation3 + $0x2e0] sm:$0xff] %v3744_v5  ;;  %v3746_v17 = vpop.f32.mrb[97].mxu1  ;;  %v20007_v63 = vpop.permute.xlu0 %4307  ;;  %v5616_v11 = vrot.slane %v20049_v59, 4  ;;  %v4156_v5 = vadd.f32 %v15787_v46, %v19729_v2  ;;  %v5615_v49 = vsel %vm2628_vm8, %v5610_v20, %v5614_v0 }
 0x595   :  { %3842 = vst.msk [vmem:[#allocation3 + $0x2e8] sm:$0xff] %vm659_vm4, %v3746_v17  ;;  %5130 = vrot.lane.b32.xlu1 %v4234_v44, %s15847_s21  ;;  %5132 = vrot.lane.b32.xlu0 %v4236_v33, %s15847_s21  ;;  %v5472_v44 = vld [vmem:[#allocation3 + $0x158] sm:$0xff]  ;;  %v5611_v17 = vsel %vm2628_vm8, %v5606_v41, %v5610_v20  ;;  %v4788_v2 = vadd.f32 %v19910_v4, %v4604_v61  ;;  %v20100_v20 = vld [vmem:[#allocation3 + $0x1a0] sm:$0xff]  ;;  %vm13782_vm4 = vcmask 1043458  }
 0x596   :  { %v6074_v21 = vmax.f32 %v6031_v52, 0.0  ;;  %v5612_v43 = vrot.slane %v5472_v44, 4  ;;  %v4417_v53 = vadd.f32 %v19803_v25, %v4156_v5  ;;  %v4239_v25 = vrot.slane %v20001_v35, 2 }
 0x597   :  { %v20014_v9 = vpop.permute.xlu1 %4673  ;;  %v5049_v41 = vadd.f32 %v19953_v8, %v4788_v2 }
 0x598   :  { %v14578_v38 = vpack.c.bf16 %v6074_v21, %v6073_v16  ;;  %v20016_v30 = vpop.permute.xlu0 %4675  ;;  %v5613_v34 = vsel %vm2628_vm8, %v5608_v27, %v5612_v43  ;;  %v5617_v62 = vsel %vm2628_vm8, %v5612_v43, %v5616_v11  ;;  %v4605_v29 = vadd.f32 %v19842_v37, %v4417_v53 }
 0x599   :  { %4060 = vrot.lane.b32.xlu1 %v3977_v60, %s15842_s1  ;;  %4062 = vrot.lane.b32.xlu0 %v3979_v57, %s15842_s1  ;;  %v4237_v21 = vrot.slane %v19999_v45, 2 }
 0x59a   :  { %14579 = vmatpush1.bf16.msra.mxu1 %v14578_v38  ;;  %v4789_v4 = vadd.f32 %v19912_v55, %v4605_v29 }
 0x59b   :  { %v5119_v24 = vpop.permute.xlu1 %5118  ;;  %14580 = vmatprep.subr.bf16.mxu1 %v15850_v31  ;;  %v4238_v37 = vsel %vm1148_vm6, %v4235_v50, %v4237_v21  ;;  %v4240_v8 = vsel %vm1148_vm6, %v4237_v21, %v4239_v25  ;;  %v20098_v50 = vld [vmem:[#allocation3 + $0x190] sm:$0xff]  ;;  %v4868_v21 = vrot.slane %v20001_v35, 3 }
 0x59c   :  { %v5121_v36 = vpop.permute.xlu0 %5120  ;;  %v5237_v38 = vadd.f32 %v5119_v24, %v5049_v41  ;;  %v3980_v61 = vrot.slane %v20098_v50, 1 }
 0x59d   :  { %4505 = vrot.lane.b32.xlu1 %v3977_v60, %s15844_s16  ;;  %4507 = vrot.lane.b32.xlu0 %v3979_v57, %s15844_s16  ;;  %v5050_v57 = vadd.f32 %v19959_v32, %v4789_v4 }
 0x59f   :  { %v20031_v1 = vpop.permute.xlu1 %4048  ;;  %v5238_v55 = vadd.f32 %v5121_v36, %v5050_v57  ;;  %v5474_v57 = vld [vmem:[#allocation3 + $0x178] sm:$0xff] }
 0x5a0   :  { %v20033_v12 = vpop.permute.xlu0 %4050 }
 0x5a1   :  { %4946 = vrot.lane.b32.xlu1 %v4863_v14, %s15846_s20  ;;  %4948 = vrot.lane.b32.xlu0 %v4865_v56, %s15846_s20 }
 0x5a3   :  { %v20043_v33 = vpop.permute.xlu1 %4493 }
 0x5a4   :  { %v20046_v15 = vpop.permute.xlu0 %4495 }
 0x5a5   :  { %5314 = vrot.lane.b32.xlu1 %v4863_v14, %s15848_s23  ;;  %5316 = vrot.lane.b32.xlu0 %v4865_v56, %s15848_s23 }
 0x5a7   :  { %v20054_v26 = vpop.permute.xlu1 %4934 }
 0x5a8   :  { %v20060_v52 = vpop.permute.xlu0 %4936 }
 0x5a9   :  { %5778 = vrot.lane.b32.xlu1 %v5611_v17, %s15849_s24  ;;  %5780 = vrot.lane.b32.xlu0 %v5613_v34, %s15849_s24  ;;  %v3982_v17 = vrot.slane %v20100_v20, 1 }
 0x5ab   :  { %v5303_v16 = vpop.permute.xlu1 %5302 }
 0x5ac   :  { %v5305_v27 = vpop.permute.xlu0 %5304  ;;  %v5421_v23 = vadd.f32 %v5303_v16, %v5237_v38 }
 0x5ad   :  { %5782 = vrot.lane.b32.xlu1 %v5615_v49, %s15849_s24  ;;  %5784 = vrot.lane.b32.xlu0 %v5617_v62, %s15849_s24  ;;  %v5422_v32 = vadd.f32 %v5305_v27, %v5238_v55  ;;  %v3983_v62 = vsel %vm860_vm5, %v3980_v61, %v3982_v17  ;;  %v4866_v27 = vrot.slane %v19999_v45, 3  ;;  %v5620_v55 = vrot.slane %v5474_v57, 4 }
 0x5af   :  { %v5755_v60 = vpop.permute.xlu1 %5754  ;;  %v4867_v38 = vsel %vm1840_vm7, %v4864_v48, %v4866_v27  ;;  %v20147_v48 = vld [vmem:[#allocation3 + $0x188] sm:$0xff] }
 0x5b0   :  { %v5757_v14 = vpop.permute.xlu0 %5756 }
 0x5b1   :  { %v5896_v56 = vsel %vm3007_vm10, %v5755_v60, %v5757_v14  ;;  %4321 = vrot.lane.b32.xlu1 %v4238_v37, %s15843_s30  ;;  %4323 = vrot.lane.b32.xlu0 %v4240_v8, %s15843_s30  ;;  %v4869_v60 = vsel %vm1840_vm7, %v4866_v27, %v4868_v21  ;;  %v15788_v14 = vld [vmem:[#allocation3 + $0xc0] sm:$0xff] }
 0x5b2   :  { %v5982_v24 = vadd.f32 %v5896_v56, %v5421_v23  ;;  %v5618_v56 = vrot.slane %v19999_v45, 4 }
 0x5b3   :  { %v5759_v44 = vpop.permute.xlu1 %5758 }
 0x5b4   :  { %v5761_v19 = vpop.permute.xlu0 %5760  ;;  %v6032_v43 = vadd.f32 %v19590_v13, %v5982_v24 }
 0x5b5   :  { %v5897_v3 = vsel %vm3007_vm10, %v5759_v44, %v5761_v19  ;;  %4689 = vrot.lane.b32.xlu1 %v4238_v37, %s15845_s19  ;;  %4691 = vrot.lane.b32.xlu0 %v4240_v8, %s15845_s19  ;;  %v5624_v19 = vrot.slane %v20147_v48, 4 }
 0x5b6   :  { %v5983_v6 = vadd.f32 %v5897_v3, %v5422_v32  ;;  %v6075_v34 = vmax.f32 %v6032_v43, 0.0  ;;  %v5622_v32 = vrot.slane %v20001_v35, 4 }
 0x5b7   :  { %v20103_v46 = vpop.permute.xlu1 %4309  ;;  %v5625_v47 = vsel %vm2628_vm8, %v5620_v55, %v5624_v19 }
 0x5b8   :  { %v6033_v36 = vadd.f32 %v19590_v13, %v5983_v6  ;;  %v20106_v5 = vpop.permute.xlu0 %4311  ;;  %v3981_v13 = vsel %vm860_vm5, %v3978_v42, %v3980_v61  ;;  %v5619_v6 = vsel %vm2628_vm8, %v5614_v0, %v5618_v56 }
 0x5b9   :  { %5134 = vrot.lane.b32.xlu1 %v4238_v37, %s15847_s21  ;;  %5136 = vrot.lane.b32.xlu0 %v4240_v8, %s15847_s21  ;;  %v4157_v37 = vadd.f32 %v15788_v14, %v19827_v18  ;;  %v15789_v18 = vld [vmem:[#allocation3 + $0xd0] sm:$0xff] }
 0x5ba   :  { %v6076_v53 = vmax.f32 %v6033_v36, 0.0  ;;  %v4158_v3 = vadd.f32 %v15789_v18, %v19829_v28 }
 0x5bb   :  { %v20112_v2 = vpop.permute.xlu1 %4677  ;;  %v4418_v24 = vadd.f32 %v19900_v10, %v4157_v37  ;;  %v5621_v10 = vsel %vm2628_vm8, %v5616_v11, %v5620_v55  ;;  %v20198_v37 = vld [vmem:[#allocation3 + $0x1c0] sm:$0xff] }
 0x5bc   :  { %v14581_v16 = vpack.c.bf16 %v6076_v53, %v6075_v34  ;;  %v20114_v49 = vpop.permute.xlu0 %4679  ;;  %v4419_v36 = vadd.f32 %v19903_v51, %v4158_v3  ;;  %v4241_v34 = vrot.slane %v20098_v50, 2  ;;  %v4243_v51 = vrot.slane %v20100_v20, 2 }
 0x5bd   :  { %4064 = vrot.lane.b32.xlu1 %v3981_v13, %s15842_s1  ;;  %4066 = vrot.lane.b32.xlu0 %v3983_v62, %s15842_s1  ;;  %v4606_v45 = vadd.f32 %v19941_v7, %v4418_v24  ;;  %v5623_v7 = vsel %vm2628_vm8, %v5618_v56, %v5622_v32  ;;  %v20203_v56 = vld [vmem:[%s24808_s5] ss:$0 sm:$0xff] }
 0x5be   :  { %14582 = vmatpush1.bf16.msra.mxu1 %v14581_v16  ;;  %v4607_v59 = vadd.f32 %v19944_v58, %v4419_v36  ;;  %v4242_v58 = vsel %vm1148_vm6, %v4239_v25, %v4241_v34  ;;  %v20196_v25 = vld [vmem:[#allocation3 + $0x1b0] sm:$0xff] }
 0x5bf   :  { %v5123_v29 = vpop.permute.xlu1 %5122  ;;  %14583 = vmatprep.subr.bf16.mxu1 %v15850_v31  ;;  %v4790_v28 = vadd.f32 %v20014_v9, %v4606_v45  ;;  %v3984_v45 = vrot.slane %v20196_v25, 1 }
 0x5c0   :  { %v5125_v41 = vpop.permute.xlu0 %5124  ;;  %v4791_v9 = vadd.f32 %v20016_v30, %v4607_v59 }
 0x5c1   :  { %4509 = vrot.lane.b32.xlu1 %v3981_v13, %s15844_s16  ;;  %4511 = vrot.lane.b32.xlu0 %v3983_v62, %s15844_s16  ;;  %v5051_v0 = vadd.f32 %v20054_v26, %v4790_v28  ;;  %v4244_v26 = vsel %vm1148_vm6, %v4241_v34, %v4243_v51  ;;  %v4870_v34 = vrot.slane %v20098_v50, 3 }
 0x5c2   :  { %v5052_v13 = vadd.f32 %v20060_v52, %v4791_v9  ;;  %v4872_v9 = vrot.slane %v20100_v20, 3 }
 0x5c3   :  { %v20129_v42 = vpop.permute.xlu1 %4052  ;;  %v5239_v53 = vadd.f32 %v5123_v29, %v5051_v0 }
 0x5c4   :  { %v20131_v4 = vpop.permute.xlu0 %4054  ;;  %v5240_v30 = vadd.f32 %v5125_v41, %v5052_v13  ;;  %v4873_v13 = vsel %vm1840_vm7, %v4870_v34, %v4872_v9 }
 0x5c5   :  { %4950 = vrot.lane.b32.xlu1 %v4867_v38, %s15846_s20  ;;  %4952 = vrot.lane.b32.xlu0 %v4869_v60, %s15846_s20 }
 0x5c7   :  { %v20141_v23 = vpop.permute.xlu1 %4497 }
 0x5c8   :  { %v20144_v8 = vpop.permute.xlu0 %4499 }
 0x5c9   :  { %5318 = vrot.lane.b32.xlu1 %v4867_v38, %s15848_s23  ;;  %5320 = vrot.lane.b32.xlu0 %v4869_v60, %s15848_s23 }
 0x5cb   :  { %v20152_v44 = vpop.permute.xlu1 %4938 }
 0x5cc   :  { %v20158_v43 = vpop.permute.xlu0 %4940 }
 0x5cd   :  { %5786 = vrot.lane.b32.xlu1 %v5619_v6, %s15849_s24  ;;  %5788 = vrot.lane.b32.xlu0 %v5621_v10, %s15849_s24  ;;  %v3986_v6 = vrot.slane %v20198_v37, 1 }
 0x5cf   :  { %v5307_v61 = vpop.permute.xlu1 %5306  ;;  %v3987_v59 = vsel %vm860_vm5, %v3984_v45, %v3986_v6 }
 0x5d0   :  { %v5309_v11 = vpop.permute.xlu0 %5308  ;;  %v5423_v62 = vadd.f32 %v5307_v61, %v5239_v53 }
 0x5d1   :  { %5790 = vrot.lane.b32.xlu1 %v5623_v7, %s15849_s24  ;;  %5792 = vrot.lane.b32.xlu0 %v5625_v47, %s15849_s24  ;;  %v5424_v52 = vadd.f32 %v5309_v11, %v5240_v30  ;;  %v3985_v47 = vsel %vm860_vm5, %v3982_v17, %v3984_v45  ;;  %v5626_v30 = vrot.slane %v20098_v50, 4 }
 0x5d3   :  { %v5763_v16 = vpop.permute.xlu1 %5762 }
 0x5d4   :  { %v5765_v27 = vpop.permute.xlu0 %5764 }
 0x5d5   :  { %v5898_v38 = vsel %vm3007_vm10, %v5763_v16, %v5765_v27  ;;  %4325 = vrot.lane.b32.xlu1 %v4242_v58, %s15843_s30  ;;  %4327 = vrot.lane.b32.xlu0 %v4244_v26, %s15843_s30  ;;  %v4871_v16 = vsel %vm1840_vm7, %v4868_v21, %v4870_v34  ;;  %v20250_v21 = vld [vmem:[#allocation3 + $0x1a8] sm:$0xff] }
 0x5d6   :  { %v5984_v29 = vadd.f32 %v5898_v38, %v5423_v62  ;;  %v5476_v62 = vld [vmem:[#allocation3 + $0x198] sm:$0xff] }
 0x5d7   :  { %v5767_v60 = vpop.permute.xlu1 %5766 }
 0x5d8   :  { %v5769_v57 = vpop.permute.xlu0 %5768  ;;  %v6034_v41 = vadd.f32 %v20203_v56, %v5984_v29  ;;  %v5628_v29 = vrot.slane %v5476_v62, 4 }
 0x5d9   :  { %v5899_v14 = vsel %vm3007_vm10, %v5767_v60, %v5769_v57  ;;  %4693 = vrot.lane.b32.xlu1 %v4242_v58, %s15845_s19  ;;  %4695 = vrot.lane.b32.xlu0 %v4244_v26, %s15845_s19  ;;  %v5630_v57 = vrot.slane %v20100_v20, 4 }
 0x5da   :  { %v5985_v55 = vadd.f32 %v5899_v14, %v5424_v52  ;;  %v6077_v10 = vmax.f32 %v6034_v41, 0.0  ;;  %v5632_v14 = vrot.slane %v20250_v21, 4 }
 0x5db   :  { %v20206_v24 = vpop.permute.xlu1 %4313 }
 0x5dc   :  { %v6035_v18 = vadd.f32 %v20203_v56, %v5985_v55  ;;  %v20209_v3 = vpop.permute.xlu0 %4315  ;;  %v5633_v35 = vsel %vm2628_vm8, %v5628_v29, %v5632_v14 }
 0x5dd   :  { %5138 = vrot.lane.b32.xlu1 %v4242_v58, %s15847_s21  ;;  %5140 = vrot.lane.b32.xlu0 %v4244_v26, %s15847_s21  ;;  %v15791_v58 = vld [vmem:[#allocation3 + $0xe0] sm:$0xff] }
 0x5de   :  { %v6078_v36 = vmax.f32 %v6035_v18, 0.0  ;;  %v4159_v26 = vadd.f32 %v15791_v58, %v19929_v22  ;;  %v15792_v22 = vld [vmem:[#allocation3 + $0xf0] sm:$0xff]  ;;  %v5627_v18 = vsel %vm2628_vm8, %v5622_v32, %v5626_v30 }
 0x5df   :  { %v20215_v28 = vpop.permute.xlu1 %4681  ;;  %v4160_v41 = vadd.f32 %v15792_v22, %v19931_v39 }
 0x5e0   :  { %v14584_v61 = vpack.c.bf16 %v6078_v36, %v6077_v10  ;;  %v20217_v7 = vpop.permute.xlu0 %4683  ;;  %v4420_v60 = vadd.f32 %v20004_v40, %v4159_v26  ;;  %v5629_v40 = vsel %vm2628_vm8, %v5624_v19, %v5628_v29  ;;  %v4245_v36 = vrot.slane %v20196_v25, 2 }
 0x5e1   :  { %4068 = vrot.lane.b32.xlu1 %v3985_v47, %s15842_s1  ;;  %4070 = vrot.lane.b32.xlu0 %v3987_v59, %s15842_s1  ;;  %v4421_v45 = vadd.f32 %v20007_v63, %v4160_v41  ;;  %v4247_v63 = vrot.slane %v20198_v37, 2 }
 0x5e2   :  { %14585 = vmatpush1.bf16.msra.mxu1 %v14584_v61  ;;  %v4608_v50 = vadd.f32 %v20043_v33, %v4420_v60  ;;  %v5631_v33 = vsel %vm2628_vm8, %v5626_v30, %v5630_v57  ;;  %v20301_v30 = vld [vmem:[#allocation3 + $0x1e0] sm:$0xff] }
 0x5e3   :  { %v5127_v0 = vpop.permute.xlu1 %5126  ;;  %14586 = vmatprep.subr.bf16.mxu1 %v15850_v31  ;;  %v4609_v48 = vadd.f32 %v20046_v15, %v4421_v45  ;;  %v4246_v15 = vsel %vm1148_vm6, %v4243_v51, %v4245_v36  ;;  %v20299_v51 = vld [vmem:[#allocation3 + $0x1d0] sm:$0xff] }
 0x5e4   :  { %v5129_v11 = vpop.permute.xlu0 %5128  ;;  %v4792_v39 = vadd.f32 %v20112_v2, %v4608_v50  ;;  %v3988_v50 = vrot.slane %v20299_v51, 1 }
 0x5e5   :  { %4513 = vrot.lane.b32.xlu1 %v3985_v47, %s15844_s16  ;;  %4515 = vrot.lane.b32.xlu0 %v3987_v59, %s15844_s16  ;;  %v4793_v2 = vadd.f32 %v20114_v49, %v4609_v48 }
 0x5e6   :  { %v5053_v32 = vadd.f32 %v20152_v44, %v4792_v39  ;;  %v4248_v44 = vsel %vm1148_vm6, %v4245_v36, %v4247_v63  ;;  %v4874_v36 = vrot.slane %v20196_v25, 3 }
 0x5e7   :  { %v20232_v17 = vpop.permute.xlu1 %4056  ;;  %v5054_v59 = vadd.f32 %v20158_v43, %v4793_v2  ;;  %v4876_v2 = vrot.slane %v20198_v37, 3 }
 0x5e8   :  { %v20234_v53 = vpop.permute.xlu0 %4058  ;;  %v5241_v61 = vadd.f32 %v5127_v0, %v5053_v32 }
 0x5e9   :  { %4954 = vrot.lane.b32.xlu1 %v4871_v16, %s15846_s20  ;;  %4956 = vrot.lane.b32.xlu0 %v4873_v13, %s15846_s20  ;;  %v5242_v49 = vadd.f32 %v5129_v11, %v5054_v59  ;;  %v4877_v59 = vsel %vm1840_vm7, %v4874_v36, %v4876_v2 }
 0x5eb   :  { %v20244_v27 = vpop.permute.xlu1 %4501 }
 0x5ec   :  { %v20247_v38 = vpop.permute.xlu0 %4503 }
 0x5ed   :  { %5322 = vrot.lane.b32.xlu1 %v4871_v16, %s15848_s23  ;;  %5324 = vrot.lane.b32.xlu0 %v4873_v13, %s15848_s23 }
 0x5ef   :  { %v20255_v52 = vpop.permute.xlu1 %4942 }
 0x5f0   :  { %v20261_v55 = vpop.permute.xlu0 %4944 }
 0x5f1   :  { %5794 = vrot.lane.b32.xlu1 %v5627_v18, %s15849_s24  ;;  %5796 = vrot.lane.b32.xlu0 %v5629_v40, %s15849_s24  ;;  %v3990_v18 = vrot.slane %v20301_v30, 1 }
 0x5f3   :  { %v5311_v10 = vpop.permute.xlu1 %5310  ;;  %v3991_v48 = vsel %vm860_vm5, %v3988_v50, %v3990_v18 }
 0x5f4   :  { %v5313_v19 = vpop.permute.xlu0 %5312  ;;  %v5425_v34 = vadd.f32 %v5311_v10, %v5241_v61 }
 0x5f5   :  { %5798 = vrot.lane.b32.xlu1 %v5631_v33, %s15849_s24  ;;  %5800 = vrot.lane.b32.xlu0 %v5633_v35, %s15849_s24  ;;  %v5426_v43 = vadd.f32 %v5313_v19, %v5242_v49  ;;  %v3989_v35 = vsel %vm860_vm5, %v3986_v6, %v3988_v50  ;;  %v5634_v49 = vrot.slane %v20196_v25, 4 }
 0x5f7   :  { %v5771_v47 = vpop.permute.xlu1 %5770 }
 0x5f8   :  { %v5773_v16 = vpop.permute.xlu0 %5772 }
 0x5f9   :  { %v5900_v13 = vsel %vm3007_vm10, %v5771_v47, %v5773_v16  ;;  %4329 = vrot.lane.b32.xlu1 %v4246_v15, %s15843_s30  ;;  %4331 = vrot.lane.b32.xlu0 %v4248_v44, %s15843_s30  ;;  %v4875_v47 = vsel %vm1840_vm7, %v4872_v9, %v4874_v36  ;;  %v20348_v9 = vld [vmem:[#allocation3 + $0x1c8] sm:$0xff] }
 0x5fa   :  { %v5986_v0 = vadd.f32 %v5900_v13, %v5425_v34  ;;  %v5478_v34 = vld [vmem:[#allocation3 + $0x1b8] sm:$0xff] }
 0x5fb   :  { %v5775_v62 = vpop.permute.xlu1 %5774 }
 0x5fc   :  { %v5777_v58 = vpop.permute.xlu0 %5776  ;;  %v6036_v29 = vadd.f32 %v20203_v56, %v5986_v0  ;;  %v5636_v0 = vrot.slane %v5478_v34, 4 }
 0x5fd   :  { %v5901_v26 = vsel %vm3007_vm10, %v5775_v62, %v5777_v58  ;;  %4697 = vrot.lane.b32.xlu1 %v4246_v15, %s15845_s19  ;;  %4699 = vrot.lane.b32.xlu0 %v4248_v44, %s15845_s19  ;;  %v5638_v58 = vrot.slane %v20198_v37, 4 }
 0x5fe   :  { %v5987_v60 = vadd.f32 %v5901_v26, %v5426_v43  ;;  %v6079_v40 = vmax.f32 %v6036_v29, 0.0  ;;  %v5640_v26 = vrot.slane %v20348_v9, 4 }
 0x5ff   :  { %v20304_v22 = vpop.permute.xlu1 %4317 }
 0x600   :  { %v6037_v11 = vadd.f32 %v20203_v56, %v5987_v60  ;;  %v20307_v41 = vpop.permute.xlu0 %4319  ;;  %v5641_v20 = vsel %vm2628_vm8, %v5636_v0, %v5640_v26 }
 0x601   :  { %5142 = vrot.lane.b32.xlu1 %v4246_v15, %s15847_s21  ;;  %5144 = vrot.lane.b32.xlu0 %v4248_v44, %s15847_s21  ;;  %v15793_v15 = vld [vmem:[#allocation3 + $0x100] sm:$0xff] }
 0x602   :  { %v6080_v45 = vmax.f32 %v6037_v11, 0.0  ;;  %v4161_v44 = vadd.f32 %v15793_v15, %v20031_v1  ;;  %v15794_v1 = vld [vmem:[#allocation3 + $0x110] sm:$0xff]  ;;  %v5635_v11 = vsel %vm2628_vm8, %v5630_v57, %v5634_v49 }
 0x603   :  { %v20313_v39 = vpop.permute.xlu1 %4685  ;;  %v4162_v29 = vadd.f32 %v15794_v1, %v20033_v12 }
 0x604   :  { %v14587_v10 = vpack.c.bf16 %v6080_v45, %v6079_v40  ;;  %v20315_v33 = vpop.permute.xlu0 %4687  ;;  %v4422_v62 = vadd.f32 %v20103_v46, %v4161_v44  ;;  %v5637_v46 = vsel %vm2628_vm8, %v5632_v14, %v5636_v0  ;;  %v4249_v45 = vrot.slane %v20299_v51, 2 }
 0x605   :  { %4072 = vrot.lane.b32.xlu1 %v3989_v35, %s15842_s1  ;;  %4074 = vrot.lane.b32.xlu0 %v3991_v48, %s15842_s1  ;;  %v4423_v50 = vadd.f32 %v20106_v5, %v4162_v29  ;;  %v4251_v5 = vrot.slane %v20301_v30, 2 }
 0x606   :  { %14588 = vmatpush1.bf16.msra.mxu1 %v14587_v10  ;;  %v4610_v25 = vadd.f32 %v20141_v23, %v4422_v62  ;;  %v5639_v23 = vsel %vm2628_vm8, %v5634_v49, %v5638_v58  ;;  %v20399_v49 = vld [vmem:[#allocation3 + $0x200] sm:$0xff] }
 0x607   :  { %v5131_v32 = vpop.permute.xlu1 %5130  ;;  %14589 = vmatprep.subr.bf16.mxu1 %v15850_v31  ;;  %v4611_v21 = vadd.f32 %v20144_v8, %v4423_v50  ;;  %v4250_v8 = vsel %vm1148_vm6, %v4247_v63, %v4249_v45  ;;  %v20397_v63 = vld [vmem:[#allocation3 + $0x1f0] sm:$0xff] }
 0x608   :  { %v5133_v19 = vpop.permute.xlu0 %5132  ;;  %v4794_v12 = vadd.f32 %v20215_v28, %v4610_v25  ;;  %v3992_v25 = vrot.slane %v20397_v63, 1 }
 0x609   :  { %4517 = vrot.lane.b32.xlu1 %v3989_v35, %s15844_s16  ;;  %4519 = vrot.lane.b32.xlu0 %v3991_v48, %s15844_s16  ;;  %v4795_v28 = vadd.f32 %v20217_v7, %v4611_v21 }
 0x60a   :  { %v5055_v57 = vadd.f32 %v20255_v52, %v4794_v12  ;;  %v4252_v52 = vsel %vm1148_vm6, %v4249_v45, %v4251_v5  ;;  %v4878_v45 = vrot.slane %v20299_v51, 3 }
 0x60b   :  { %v20330_v6 = vpop.permute.xlu1 %4060  ;;  %v5056_v48 = vadd.f32 %v20261_v55, %v4795_v28  ;;  %v4880_v28 = vrot.slane %v20301_v30, 3 }
 0x60c   :  { %v20332_v61 = vpop.permute.xlu0 %4062  ;;  %v5243_v10 = vadd.f32 %v5131_v32, %v5055_v57 }
 0x60d   :  { %4958 = vrot.lane.b32.xlu1 %v4875_v47, %s15846_s20  ;;  %4960 = vrot.lane.b32.xlu0 %v4877_v59, %s15846_s20  ;;  %v5244_v7 = vadd.f32 %v5133_v19, %v5056_v48  ;;  %v4881_v48 = vsel %vm1840_vm7, %v4878_v45, %v4880_v28 }
 0x60f   :  { %v20342_v16 = vpop.permute.xlu1 %4505 }
 0x610   :  { %v20345_v13 = vpop.permute.xlu0 %4507 }
 0x611   :  { %5326 = vrot.lane.b32.xlu1 %v4875_v47, %s15848_s23  ;;  %5328 = vrot.lane.b32.xlu0 %v4877_v59, %s15848_s23 }
 0x613   :  { %v20353_v43 = vpop.permute.xlu1 %4946 }
 0x614   :  { %v20359_v60 = vpop.permute.xlu0 %4948 }
 0x615   :  { %5802 = vrot.lane.b32.xlu1 %v5635_v11, %s15849_s24  ;;  %5804 = vrot.lane.b32.xlu0 %v5637_v46, %s15849_s24  ;;  %v3994_v11 = vrot.slane %v20399_v49, 1 }
 0x617   :  { %v5315_v40 = vpop.permute.xlu1 %5314  ;;  %v3995_v21 = vsel %vm860_vm5, %v3992_v25, %v3994_v11 }
 0x618   :  { %v5317_v14 = vpop.permute.xlu0 %5316  ;;  %v5427_v36 = vadd.f32 %v5315_v40, %v5243_v10 }
 0x619   :  { %5806 = vrot.lane.b32.xlu1 %v5639_v23, %s15849_s24  ;;  %5808 = vrot.lane.b32.xlu0 %v5641_v20, %s15849_s24  ;;  %v5428_v55 = vadd.f32 %v5317_v14, %v5244_v7  ;;  %v3993_v20 = vsel %vm860_vm5, %v3990_v18, %v3992_v25  ;;  %v5642_v7 = vrot.slane %v20299_v51, 4 }
 0x61b   :  { %v5779_v35 = vpop.permute.xlu1 %5778 }
 0x61c   :  { %v5781_v47 = vpop.permute.xlu0 %5780 }
 0x61d   :  { %v5902_v59 = vsel %vm3007_vm10, %v5779_v35, %v5781_v47  ;;  %4333 = vrot.lane.b32.xlu1 %v4250_v8, %s15843_s30  ;;  %4335 = vrot.lane.b32.xlu0 %v4252_v52, %s15843_s30  ;;  %v4879_v35 = vsel %vm1840_vm7, %v4876_v2, %v4878_v45  ;;  %v20446_v2 = vld [vmem:[#allocation3 + $0x1e8] sm:$0xff] }
 0x61e   :  { %v5988_v32 = vadd.f32 %v5902_v59, %v5427_v36  ;;  %v5480_v36 = vld [vmem:[#allocation3 + $0x1d8] sm:$0xff] }
 0x61f   :  { %v5783_v34 = vpop.permute.xlu1 %5782 }
 0x620   :  { %v5785_v15 = vpop.permute.xlu0 %5784  ;;  %v6038_v0 = vadd.f32 %v20203_v56, %v5988_v32  ;;  %v5644_v32 = vrot.slane %v5480_v36, 4 }
 0x621   :  { %v5903_v44 = vsel %vm3007_vm10, %v5783_v34, %v5785_v15  ;;  %4701 = vrot.lane.b32.xlu1 %v4250_v8, %s15845_s19  ;;  %4703 = vrot.lane.b32.xlu0 %v4252_v52, %s15845_s19  ;;  %v5646_v15 = vrot.slane %v20301_v30, 4 }
 0x622   :  { %v5989_v62 = vadd.f32 %v5903_v44, %v5428_v55  ;;  %v6081_v46 = vmax.f32 %v6038_v0, 0.0  ;;  %v5648_v44 = vrot.slane %v20446_v2, 4 }
 0x623   :  { %v20402_v1 = vpop.permute.xlu1 %4321 }
 0x624   :  { %v6039_v19 = vadd.f32 %v20203_v56, %v5989_v62  ;;  %v20405_v29 = vpop.permute.xlu0 %4323  ;;  %v5649_v37 = vsel %vm2628_vm8, %v5644_v32, %v5648_v44 }
 0x625   :  { %5146 = vrot.lane.b32.xlu1 %v4250_v8, %s15847_s21  ;;  %5148 = vrot.lane.b32.xlu0 %v4252_v52, %s15847_s21  ;;  %v15795_v8 = vld [vmem:[#allocation3 + $0x120] sm:$0xff] }
 0x626   :  { %v6082_v50 = vmax.f32 %v6039_v19, 0.0  ;;  %v4163_v52 = vadd.f32 %v15795_v8, %v20129_v42  ;;  %v15796_v42 = vld [vmem:[#allocation3 + $0x130] sm:$0xff]  ;;  %v5643_v19 = vsel %vm2628_vm8, %v5638_v58, %v5642_v7 }
 0x627   :  { %v20411_v12 = vpop.permute.xlu1 %4689  ;;  %v4164_v0 = vadd.f32 %v15796_v42, %v20131_v4 }
 0x628   :  { %v14590_v40 = vpack.c.bf16 %v6082_v50, %v6081_v46  ;;  %v20413_v23 = vpop.permute.xlu0 %4691  ;;  %v4424_v34 = vadd.f32 %v20206_v24, %v4163_v52  ;;  %v5645_v24 = vsel %vm2628_vm8, %v5640_v26, %v5644_v32  ;;  %v4253_v50 = vrot.slane %v20397_v63, 2 }
 0x629   :  { %4076 = vrot.lane.b32.xlu1 %v3993_v20, %s15842_s1  ;;  %4078 = vrot.lane.b32.xlu0 %v3995_v21, %s15842_s1  ;;  %v4425_v25 = vadd.f32 %v20209_v3, %v4164_v0  ;;  %v4255_v3 = vrot.slane %v20399_v49, 2 }
 0x62a   :  { %14591 = vmatpush1.bf16.msra.mxu1 %v14590_v40  ;;  %v4612_v51 = vadd.f32 %v20244_v27, %v4424_v34  ;;  %v5647_v27 = vsel %vm2628_vm8, %v5642_v7, %v5646_v15  ;;  %v20497_v7 = vld [vmem:[#allocation3 + $0x220] sm:$0xff] }
 0x62b   :  { %v5135_v57 = vpop.permute.xlu1 %5134  ;;  %14592 = vmatprep.subr.bf16.mxu1 %v15850_v31  ;;  %v4613_v9 = vadd.f32 %v20247_v38, %v4425_v25  ;;  %v4254_v38 = vsel %vm1148_vm6, %v4251_v5, %v4253_v50  ;;  %v20495_v5 = vld [vmem:[#allocation3 + $0x210] sm:$0xff] }
 0x62c   :  { %v5137_v14 = vpop.permute.xlu0 %5136  ;;  %v4796_v4 = vadd.f32 %v20313_v39, %v4612_v51  ;;  %v3996_v51 = vrot.slane %v20495_v5, 1 }
 0x62d   :  { %4521 = vrot.lane.b32.xlu1 %v3993_v20, %s15844_s16  ;;  %4523 = vrot.lane.b32.xlu0 %v3995_v21, %s15844_s16  ;;  %v4797_v39 = vadd.f32 %v20315_v33, %v4613_v9 }
 0x62e   :  { %v5057_v58 = vadd.f32 %v20353_v43, %v4796_v4  ;;  %v4256_v43 = vsel %vm1148_vm6, %v4253_v50, %v4255_v3  ;;  %v20517_v9 = vsel %vm860_vm5, %v3994_v11, %v3996_v51 }
 0x62f   :  { %v20428_v18 = vpop.permute.xlu1 %4064  ;;  %v5058_v21 = vadd.f32 %v20359_v60, %v4797_v39 }
 0x630   :  { %v20430_v10 = vpop.permute.xlu0 %4066  ;;  %v5245_v40 = vadd.f32 %v5135_v57, %v5057_v58 }
 0x631   :  { %4962 = vrot.lane.b32.xlu1 %v4879_v35, %s15846_s20  ;;  %4964 = vrot.lane.b32.xlu0 %v4881_v48, %s15846_s20  ;;  %v5246_v33 = vadd.f32 %v5137_v14, %v5058_v21 }
 0x633   :  { %v20440_v47 = vpop.permute.xlu1 %4509 }
 0x634   :  { %v20443_v59 = vpop.permute.xlu0 %4511 }
 0x635   :  { %5330 = vrot.lane.b32.xlu1 %v4879_v35, %s15848_s23  ;;  %5332 = vrot.lane.b32.xlu0 %v4881_v48, %s15848_s23 }
 0x637   :  { %v20451_v55 = vpop.permute.xlu1 %4950 }
 0x638   :  { %v20457_v62 = vpop.permute.xlu0 %4952 }
 0x639   :  { %5810 = vrot.lane.b32.xlu1 %v5643_v19, %s15849_s24  ;;  %5812 = vrot.lane.b32.xlu0 %v5645_v24, %s15849_s24  ;;  %v3998_v19 = vrot.slane %v20497_v7, 1 }
 0x63b   :  { %v5319_v46 = vpop.permute.xlu1 %5318  ;;  %v20522_v58 = vsel %vm860_vm5, %v3996_v51, %v3998_v19 }
 0x63c   :  { %v5321_v26 = vpop.permute.xlu0 %5320  ;;  %v5429_v45 = vadd.f32 %v5319_v46, %v5245_v40  ;;  %v4882_v46 = vrot.slane %v20397_v63, 3 }
 0x63d   :  { %5814 = vrot.lane.b32.xlu1 %v5647_v27, %s15849_s24  ;;  %5816 = vrot.lane.b32.xlu0 %v5649_v37, %s15849_s24  ;;  %v5430_v60 = vadd.f32 %v5321_v26, %v5246_v33  ;;  %v4884_v26 = vrot.slane %v20399_v49, 3 }
 0x63e   :  { %v4883_v11 = vsel %vm1840_vm7, %v4880_v28, %v4882_v46 }
 0x63f   :  { %v5787_v20 = vpop.permute.xlu1 %5786  ;;  %v4885_v40 = vsel %vm1840_vm7, %v4882_v46, %v4884_v26 }
 0x640   :  { %v5789_v35 = vpop.permute.xlu0 %5788 }
 0x641   :  { %v5904_v48 = vsel %vm3007_vm10, %v5787_v20, %v5789_v35  ;;  %4337 = vrot.lane.b32.xlu1 %v4254_v38, %s15843_s30  ;;  %4339 = vrot.lane.b32.xlu0 %v4256_v43, %s15843_s30  ;;  %v5482_v20 = vld [vmem:[#allocation3 + $0x1f8] sm:$0xff]  ;;  %v5650_v35 = vrot.slane %v20397_v63, 4 }
 0x642   :  { %v5990_v57 = vadd.f32 %v5904_v48, %v5429_v45  ;;  %v5654_v48 = vrot.slane %v20399_v49, 4 }
 0x643   :  { %v5791_v36 = vpop.permute.xlu1 %5790  ;;  %v5651_v63 = vsel %vm2628_vm8, %v5646_v15, %v5650_v35  ;;  %v15798_v15 = vld [vmem:[#allocation3 + $0x150] sm:$0xff] }
 0x644   :  { %v5793_v8 = vpop.permute.xlu0 %5792  ;;  %v6040_v32 = vadd.f32 %v20203_v56, %v5990_v57  ;;  %v15797_v57 = vld [vmem:[#allocation3 + $0x140] sm:$0xff]  ;;  %v4166_v2 = vadd.f32 %v15798_v15, %v20234_v53 }
 0x645   :  { %v5905_v52 = vsel %vm3007_vm10, %v5791_v36, %v5793_v8  ;;  %4705 = vrot.lane.b32.xlu1 %v4254_v38, %s15845_s19  ;;  %4707 = vrot.lane.b32.xlu0 %v4256_v43, %s15845_s19  ;;  %v4165_v36 = vadd.f32 %v15797_v57, %v20232_v17  ;;  %v5655_v17 = vsel %vm2628_vm8, %v5650_v35, %v5654_v48 }
 0x646   :  { %v5991_v34 = vadd.f32 %v5905_v52, %v5430_v60  ;;  %v6083_v24 = vmax.f32 %v6040_v32, 0.0  ;;  %v4427_v51 = vadd.f32 %v20307_v41, %v4166_v2 }
 0x647   :  { %v20500_v42 = vpop.permute.xlu1 %4325  ;;  %v4426_v52 = vadd.f32 %v20304_v22, %v4165_v36  ;;  %v4259_v22 = vrot.slane %v20497_v7, 2 }
 0x648   :  { %v6041_v14 = vadd.f32 %v20203_v56, %v5991_v34  ;;  %v20503_v0 = vpop.permute.xlu0 %4327  ;;  %v4615_v46 = vadd.f32 %v20345_v13, %v4427_v51 }
 0x649   :  { %5150 = vrot.lane.b32.xlu1 %v4254_v38, %s15847_s21  ;;  %5152 = vrot.lane.b32.xlu0 %v4256_v43, %s15847_s21  ;;  %v5652_v38 = vrot.slane %v5482_v20, 4  ;;  %v20543_v43 = vld [vmem:[#allocation3 + $0x208] sm:$0xff] }
 0x64a   :  { %v6084_v25 = vmax.f32 %v6041_v14, 0.0  ;;  %v5656_v33 = vrot.slane %v20543_v43, 4  ;;  %v4257_v14 = vrot.slane %v20495_v5, 2  ;;  %v4799_v41 = vadd.f32 %v20413_v23, %v4615_v46 }
 0x64b   :  { %v20509_v4 = vpop.permute.xlu1 %4693  ;;  %v5653_v8 = vsel %vm2628_vm8, %v5648_v44, %v5652_v38  ;;  %v4614_v44 = vadd.f32 %v20342_v16, %v4426_v52  ;;  %v4886_v23 = vrot.slane %v20495_v5, 3 }
 0x64c   :  { %v14593_v27 = vpack.c.bf16 %v6084_v25, %v6083_v24  ;;  %v20512_v37 = vpop.permute.xlu0 %4695  ;;  %v5657_v30 = vsel %vm2628_vm8, %v5652_v38, %v5656_v33 }
 0x64d   :  { %4525 = vrot.lane.b32.xlu1 %v20517_v9, %s15844_s16  ;;  %4527 = vrot.lane.b32.xlu0 %v20522_v58, %s15844_s16  ;;  %v4798_v24 = vadd.f32 %v20411_v12, %v4614_v44  ;;  %v4887_v15 = vsel %vm1840_vm7, %v4884_v26, %v4886_v23  ;;  %v20632_v26 = vld [vmem:[#allocation3 + $0x228] sm:$0xff] }
 0x64e   :  { %14594 = vmatpush1.bf16.msra.mxu1 %v14593_v27  ;;  %v20586_v27 = vsel %vm1148_vm6, %v4255_v3, %v4257_v14 }
 0x64f   :  { %v5139_v50 = vpop.permute.xlu1 %5138  ;;  %14595 = vmatprep.subr.bf16.mxu1 %v15850_v31  ;;  %v5059_v53 = vadd.f32 %v20451_v55, %v4798_v24  ;;  %v5060_v55 = vadd.f32 %v20457_v62, %v4799_v41 }
 0x650   :  { %v5141_v39 = vpop.permute.xlu0 %5140 }
 0x651   :  { %4966 = vrot.lane.b32.xlu1 %v4883_v11, %s15846_s20  ;;  %4968 = vrot.lane.b32.xlu0 %v4885_v40, %s15846_s20  ;;  %v5247_v13 = vadd.f32 %v5139_v50, %v5059_v53  ;;  %v5248_v35 = vadd.f32 %v5141_v39, %v5060_v55  ;;  %v4888_v50 = vrot.slane %v20497_v7, 3 }
 0x653   :  { %v20538_v21 = vpop.permute.xlu1 %4068 }
 0x654   :  { %v20540_v45 = vpop.permute.xlu0 %4070 }
 0x655   :  { %5334 = vrot.lane.b32.xlu1 %v4883_v11, %s15848_s23  ;;  %5336 = vrot.lane.b32.xlu0 %v4885_v40, %s15848_s23  ;;  %v20591_v11 = vsel %vm1148_vm6, %v4257_v14, %v4259_v22 }
 0x657   :  { %v20547_v28 = vpop.permute.xlu1 %4513 }
 0x658   :  { %v20552_v60 = vpop.permute.xlu0 %4515 }
 0x659   :  { %5818 = vrot.lane.b32.xlu1 %v5651_v63, %s15849_s24  ;;  %5820 = vrot.lane.b32.xlu0 %v5653_v8, %s15849_s24 }
 0x65b   :  { %v20563_v32 = vpop.permute.xlu1 %4954 }
 0x65c   :  { %v20573_v34 = vpop.permute.xlu0 %4956 }
 0x65d   :  { %5822 = vrot.lane.b32.xlu1 %v5655_v17, %s15849_s24  ;;  %5824 = vrot.lane.b32.xlu0 %v5657_v30, %s15849_s24 }
 0x65f   :  { %v5323_v25 = vpop.permute.xlu1 %5322 }
 0x660   :  { %v5325_v16 = vpop.permute.xlu0 %5324  ;;  %v5431_v40 = vadd.f32 %v5323_v25, %v5247_v13  ;;  %v5658_v25 = vrot.slane %v20495_v5, 4  ;;  %v5662_v13 = vrot.slane %v20497_v7, 4 }
 0x661   :  { %4709 = vrot.lane.b32.xlu1 %v20586_v27, %s15845_s19  ;;  %4711 = vrot.lane.b32.xlu0 %v20591_v11, %s15845_s19  ;;  %v5432_v36 = vadd.f32 %v5325_v16, %v5248_v35  ;;  %v15799_v35 = vld [vmem:[#allocation3 + $0x160] sm:$0xff] }
 0x662   :  { %v5659_v41 = vsel %vm2628_vm8, %v5654_v48, %v5658_v25  ;;  %v5663_v49 = vsel %vm2628_vm8, %v5658_v25, %v5662_v13  ;;  %v20655_v48 = vld [vmem:[#allocation3 + $0x230] sm:$0xff] }
 0x663   :  { %v5795_v12 = vpop.permute.xlu1 %5794 }
 0x664   :  { %v5797_v3 = vpop.permute.xlu0 %5796 }
 0x665   :  { %v5906_v20 = vsel %vm3007_vm10, %v5795_v12, %v5797_v3  ;;  %5154 = vrot.lane.b32.xlu1 %v20586_v27, %s15847_s21  ;;  %5156 = vrot.lane.b32.xlu0 %v20591_v11, %s15847_s21  ;;  %v5664_v12 = vrot.slane %v20632_v26, 4 }
 0x666   :  { %v5992_v38 = vadd.f32 %v5906_v20, %v5431_v40  ;;  %v4261_v20 = vrot.slane %v20655_v48, 2 }
 0x667   :  { %v5799_v57 = vpop.permute.xlu1 %5798 }
 0x668   :  { %v5801_v63 = vpop.permute.xlu0 %5800  ;;  %v6042_v8 = vadd.f32 %v20203_v56, %v5992_v38  ;;  %v4167_v38 = vadd.f32 %v15799_v35, %v20330_v6  ;;  %v4000_v6 = vrot.slane %v20655_v48, 1 }
 0x669   :  { %v5907_v62 = vsel %vm3007_vm10, %v5799_v57, %v5801_v63  ;;  %4080 = vrot.lane.b32.xlu1 %v20517_v9, %s15842_s1  ;;  %4082 = vrot.lane.b32.xlu0 %v20522_v58, %s15842_s1  ;;  %v4889_v9 = vsel %vm1840_vm7, %v4886_v23, %v4888_v50  ;;  %v5484_v58 = vld [vmem:[#allocation3 + $0x218] sm:$0xff] }
 0x66a   :  { %v5993_v52 = vadd.f32 %v5907_v62, %v5432_v36  ;;  %v6085_v2 = vmax.f32 %v6042_v8, 0.0  ;;  %v5660_v46 = vrot.slane %v5484_v58, 4  ;;  %v4428_v63 = vadd.f32 %v20402_v1, %v4167_v38  ;;  %v15800_v8 = vld [vmem:[#allocation3 + $0x170] sm:$0xff] }
 0x66b   :  { %v20612_v39 = vpop.permute.xlu1 %4329  ;;  %v20678_v62 = vsel %vm1148_vm6, %v4259_v22, %v4261_v20 }
 0x66c   :  { %v6043_v17 = vadd.f32 %v20203_v56, %v5993_v52  ;;  %v20615_v30 = vpop.permute.xlu0 %4331  ;;  %v5661_v5 = vsel %vm2628_vm8, %v5656_v33, %v5660_v46  ;;  %v5665_v43 = vsel %vm2628_vm8, %v5660_v46, %v5664_v12  ;;  %v20659_v33 = vld [vmem:[#allocation3 + $0x240] sm:$0xff]  ;;  %v4168_v52 = vadd.f32 %v15800_v8, %v20332_v61 }
 0x66d   :  { %4970 = vrot.lane.b32.xlu1 %v4887_v15, %s15846_s20  ;;  %4972 = vrot.lane.b32.xlu0 %v4889_v9, %s15846_s20  ;;  %v4263_v36 = vrot.slane %v20659_v33, 2  ;;  %v4890_v46 = vrot.slane %v20655_v48, 3 }
 0x66e   :  { %v6086_v44 = vmax.f32 %v6043_v17, 0.0  ;;  %v4616_v17 = vadd.f32 %v20440_v47, %v4428_v63  ;;  %v4429_v22 = vadd.f32 %v20405_v29, %v4168_v52 }
 0x66f   :  { %v20625_v14 = vpop.permute.xlu1 %4697  ;;  %v20688_v1 = vsel %vm1148_vm6, %v4261_v20, %v4263_v36  ;;  %v20718_v35 = vsel %vm1840_vm7, %v4888_v50, %v4890_v46 }
 0x670   :  { %v14596_v51 = vpack.c.bf16 %v6086_v44, %v6085_v2  ;;  %v20627_v24 = vpop.permute.xlu0 %4699  ;;  %v4800_v61 = vadd.f32 %v20509_v4, %v4616_v17  ;;  %v4001_v2 = vsel %vm860_vm5, %v3998_v19, %v4000_v6  ;;  %v4892_v19 = vrot.slane %v20659_v33, 3 }
 0x671   :  { %5338 = vrot.lane.b32.xlu1 %v4887_v15, %s15848_s23  ;;  %5340 = vrot.lane.b32.xlu0 %v4889_v9, %s15848_s23  ;;  %v4617_v15 = vadd.f32 %v20443_v59, %v4429_v22 }
 0x672   :  { %14597 = vmatpush1.bf16.msra.mxu1 %v14596_v51  ;;  %v5061_v9 = vadd.f32 %v20563_v32, %v4800_v61  ;;  %v20723_v38 = vsel %vm1840_vm7, %v4890_v46, %v4892_v19 }
 0x673   :  { %v5143_v53 = vpop.permute.xlu1 %5142  ;;  %14598 = vmatprep.subr.bf16.mxu1 %v15850_v31  ;;  %v4801_v29 = vadd.f32 %v20512_v37, %v4617_v15  ;;  %v5670_v15 = vrot.slane %v20659_v33, 4 }
 0x674   :  { %v5145_v16 = vpop.permute.xlu0 %5144  ;;  %v5249_v4 = vadd.f32 %v5143_v53, %v5061_v9  ;;  %v5666_v53 = vrot.slane %v20655_v48, 4 }
 0x675   :  { %5826 = vrot.lane.b32.xlu1 %v5659_v41, %s15849_s24  ;;  %5828 = vrot.lane.b32.xlu0 %v5661_v5, %s15849_s24  ;;  %v5062_v59 = vadd.f32 %v20573_v34, %v4801_v29  ;;  %v5486_v5 = vld [vmem:[#allocation3 + $0x238] sm:$0xff] }
 0x676   :  { %v5668_v63 = vrot.slane %v5486_v5, 4  ;;  %v5667_v17 = vsel %vm2628_vm8, %v5662_v13, %v5666_v53  ;;  %v5671_v26 = vsel %vm2628_vm8, %v5666_v53, %v5670_v15 }
 0x677   :  { %v20645_v55 = vpop.permute.xlu1 %4072 }
 0x678   :  { %v20647_v40 = vpop.permute.xlu0 %4074 }
 0x679   :  { %5830 = vrot.lane.b32.xlu1 %v5663_v49, %s15849_s24  ;;  %5832 = vrot.lane.b32.xlu0 %v5665_v43, %s15849_s24  ;;  %v5250_v49 = vadd.f32 %v5145_v16, %v5062_v59  ;;  %v20730_v16 = vld [vmem:[#allocation3 + $0x248] sm:$0xff]  ;;  %v20765_v59 = vld [vmem:[#allocation3 + $0x250] sm:$0xff] }
 0x67a   :  { %v5672_v9 = vrot.slane %v20730_v16, 4 }
 0x67b   :  { %v20661_v3 = vpop.permute.xlu1 %4517 }
 0x67c   :  { %v20665_v57 = vpop.permute.xlu0 %4519 }
 0x67d   :  { %4341 = vrot.lane.b32.xlu1 %v20586_v27, %s15843_s30  ;;  %4343 = vrot.lane.b32.xlu0 %v20591_v11, %s15843_s30  ;;  %v4002_v11 = vrot.slane %v20659_v33, 1 }
 0x67f   :  { %v20673_v23 = vpop.permute.xlu1 %4958  ;;  %v4003_v44 = vsel %vm860_vm5, %v4000_v6, %v4002_v11 }
 0x680   :  { %v20683_v27 = vpop.permute.xlu0 %4960 }
 0x681   :  { %5158 = vrot.lane.b32.xlu1 %v20678_v62, %s15847_s21  ;;  %5160 = vrot.lane.b32.xlu0 %v20688_v1, %s15847_s21 }
 0x683   :  { %v5327_v47 = vpop.permute.xlu1 %5326 }
 0x684   :  { %v5329_v58 = vpop.permute.xlu0 %5328  ;;  %v5433_v32 = vadd.f32 %v5327_v47, %v5249_v4  ;;  %v5669_v47 = vsel %vm2628_vm8, %v5664_v12, %v5668_v63  ;;  %v5673_v12 = vsel %vm2628_vm8, %v5668_v63, %v5672_v9  ;;  %v15802_v63 = vld [vmem:[#allocation3 + $0x190] sm:$0xff] }
 0x685   :  { %4084 = vrot.lane.b32.xlu1 %v4001_v2, %s15842_s1  ;;  %4086 = vrot.lane.b32.xlu0 %v4003_v44, %s15842_s1  ;;  %v5434_v20 = vadd.f32 %v5329_v58, %v5250_v49 }
 0x687   :  { %v5803_v51 = vpop.permute.xlu1 %5802 }
 0x688   :  { %v5805_v25 = vpop.permute.xlu0 %5804 }
 0x689   :  { %v5908_v41 = vsel %vm3007_vm10, %v5803_v51, %v5805_v25  ;;  %4529 = vrot.lane.b32.xlu1 %v4001_v2, %s15844_s16  ;;  %4531 = vrot.lane.b32.xlu0 %v4003_v44, %s15844_s16 }
 0x68a   :  { %v5994_v43 = vadd.f32 %v5908_v41, %v5433_v32  ;;  %v20767_v32 = vld [vmem:[#allocation3 + $0x260] sm:$0xff]  ;;  %v4004_v41 = vrot.slane %v20765_v59, 1 }
 0x68b   :  { %v5807_v37 = vpop.permute.xlu1 %5806  ;;  %v4006_v5 = vrot.slane %v20767_v32, 1 }
 0x68c   :  { %v5809_v34 = vpop.permute.xlu0 %5808  ;;  %v6044_v8 = vadd.f32 %v20203_v56, %v5994_v43  ;;  %v15801_v43 = vld [vmem:[#allocation3 + $0x180] sm:$0xff] }
 0x68d   :  { %v5909_v6 = vsel %vm3007_vm10, %v5807_v37, %v5809_v34  ;;  %5342 = vrot.lane.b32.xlu1 %v20718_v35, %s15848_s23  ;;  %5344 = vrot.lane.b32.xlu0 %v20723_v38, %s15848_s23  ;;  %v4169_v37 = vadd.f32 %v15801_v43, %v20428_v18  ;;  %v4007_v34 = vsel %vm860_vm5, %v4004_v41, %v4006_v5  ;;  %v20827_v43 = vld [vmem:[#allocation3 + $0x280] sm:$0xff] }
 0x68e   :  { %v5995_v50 = vadd.f32 %v5909_v6, %v5434_v20  ;;  %v6087_v58 = vmax.f32 %v6044_v8, 0.0  ;;  %v4005_v20 = vsel %vm860_vm5, %v4002_v11, %v4004_v41  ;;  %v4170_v18 = vadd.f32 %v15802_v63, %v20430_v10 }
 0x68f   :  { %v20733_v52 = vpop.permute.xlu1 %4333  ;;  %v4265_v10 = vrot.slane %v20765_v59, 2 }
 0x690   :  { %v6045_v22 = vadd.f32 %v20203_v56, %v5995_v50  ;;  %v20739_v61 = vpop.permute.xlu0 %4335  ;;  %v4431_v11 = vadd.f32 %v20503_v0, %v4170_v18 }
 0x691   :  { %5834 = vrot.lane.b32.xlu1 %v5667_v17, %s15849_s24  ;;  %5836 = vrot.lane.b32.xlu0 %v5669_v47, %s15849_s24 }
 0x692   :  { %v6088_v2 = vmax.f32 %v6045_v22, 0.0 }
 0x693   :  { %v20748_v44 = vpop.permute.xlu1 %4701 }
 0x694   :  { %v14599_v13 = vpack.c.bf16 %v6088_v2, %v6087_v58  ;;  %v20750_v29 = vpop.permute.xlu0 %4703 }
 0x695   :  { %5838 = vrot.lane.b32.xlu1 %v5671_v26, %s15849_s24  ;;  %5840 = vrot.lane.b32.xlu0 %v5673_v12, %s15849_s24 }
 0x696   :  { %14600 = vmatpush1.bf16.msra.mxu1 %v14599_v13 }
 0x697   :  { %v5147_v4 = vpop.permute.xlu1 %5146  ;;  %14601 = vmatprep.subr.bf16.mxu1 %v15850_v31 }
 0x698   :  { %v5149_v51 = vpop.permute.xlu0 %5148 }
 0x699   :  { %4345 = vrot.lane.b32.xlu1 %v20678_v62, %s15843_s30  ;;  %4347 = vrot.lane.b32.xlu0 %v20688_v1, %s15843_s30 }
 0x69b   :  { %v20769_v25 = vpop.permute.xlu1 %4076 }
 0x69c   :  { %v20771_v46 = vpop.permute.xlu0 %4078 }
 0x69d   :  { %4713 = vrot.lane.b32.xlu1 %v20678_v62, %s15845_s19  ;;  %4715 = vrot.lane.b32.xlu0 %v20688_v1, %s15845_s19  ;;  %v4430_v62 = vadd.f32 %v20500_v42, %v4169_v37  ;;  %v4619_v42 = vadd.f32 %v20552_v60, %v4431_v11 }
 0x69f   :  { %v20779_v49 = vpop.permute.xlu1 %4521  ;;  %v4618_v6 = vadd.f32 %v20547_v28, %v4430_v62  ;;  %v4267_v28 = vrot.slane %v20767_v32, 2  ;;  %v4803_v0 = vadd.f32 %v20627_v24, %v4619_v42 }
 0x6a0   :  { %v20782_v53 = vpop.permute.xlu0 %4523 }
 0x6a1   :  { %4088 = vrot.lane.b32.xlu1 %v4005_v20, %s15842_s1  ;;  %4090 = vrot.lane.b32.xlu0 %v4007_v34, %s15842_s1  ;;  %v4802_v50 = vadd.f32 %v20625_v14, %v4618_v6  ;;  %v5064_v2 = vadd.f32 %v20683_v27, %v4803_v0  ;;  %v4268_v26 = vsel %vm1148_vm6, %v4265_v10, %v4267_v28  ;;  %v4010_v6 = vrot.slane %v20827_v43, 1 }
 0x6a3   :  { %v20793_v1 = vpop.permute.xlu1 %4962  ;;  %v5063_v22 = vadd.f32 %v20673_v23, %v4802_v50  ;;  %v4266_v23 = vsel %vm1148_vm6, %v4263_v36, %v4265_v10  ;;  %v5252_v24 = vadd.f32 %v5149_v51, %v5064_v2  ;;  %v20825_v36 = vld [vmem:[#allocation3 + $0x270] sm:$0xff]  ;;  %v20835_v51 = vld [vmem:[%s24808_s5] ss:$0 sm:$0xff] }
 0x6a4   :  { %v20797_v8 = vpop.permute.xlu0 %4964  ;;  %v4008_v18 = vrot.slane %v20825_v36, 1  ;;  %v15804_v2 = vld [vmem:[#allocation3 + $0x1a0] sm:$0xff] }
 0x6a5   :  { %4533 = vrot.lane.b32.xlu1 %v4005_v20, %s15844_s16  ;;  %4535 = vrot.lane.b32.xlu0 %v4007_v34, %s15844_s16  ;;  %v5251_v58 = vadd.f32 %v5147_v4, %v5063_v22 }
 0x6a6   :  { %v4009_v22 = vsel %vm860_vm5, %v4006_v5, %v4008_v18 }
 0x6a7   :  { %v5331_v17 = vpop.permute.xlu1 %5330 }
 0x6a8   :  { %v5333_v47 = vpop.permute.xlu0 %5332  ;;  %v5435_v60 = vadd.f32 %v5331_v17, %v5251_v58  ;;  %v4894_v58 = vrot.slane %v20765_v59, 3 }
 0x6a9   :  { %4974 = vrot.lane.b32.xlu1 %v20718_v35, %s15846_s20  ;;  %4976 = vrot.lane.b32.xlu0 %v20723_v38, %s15846_s20  ;;  %v5436_v27 = vadd.f32 %v5333_v47, %v5252_v24  ;;  %v4011_v47 = vsel %vm860_vm5, %v4008_v18, %v4010_v6 }
 0x6ab   :  { %v5811_v14 = vpop.permute.xlu1 %5810 }
 0x6ac   :  { %v5813_v13 = vpop.permute.xlu0 %5812 }
 0x6ad   :  { %v5910_v35 = vsel %vm3007_vm10, %v5811_v14, %v5813_v13  ;;  %4349 = vrot.lane.b32.xlu1 %v4266_v23, %s15843_s30  ;;  %4351 = vrot.lane.b32.xlu0 %v4268_v26, %s15843_s30  ;;  %v4896_v14 = vrot.slane %v20767_v32, 3 }
 0x6ae   :  { %v5996_v38 = vadd.f32 %v5910_v35, %v5435_v60  ;;  %v4171_v60 = vadd.f32 %v15804_v2, %v20538_v21  ;;  %v5488_v35 = vld [vmem:[#allocation3 + $0x258] sm:$0xff]  ;;  %v15805_v21 = vld [vmem:[#allocation3 + $0x1b0] sm:$0xff]  ;;  %v4271_v2 = vrot.slane %v20827_v43, 2 }
 0x6af   :  { %v5815_v12 = vpop.permute.xlu1 %5814 }
 0x6b0   :  { %v5817_v4 = vpop.permute.xlu0 %5816  ;;  %v6046_v37 = vadd.f32 %v20203_v56, %v5996_v38  ;;  %v4432_v24 = vadd.f32 %v20612_v39, %v4171_v60 }
 0x6b1   :  { %v5911_v41 = vsel %vm3007_vm10, %v5815_v12, %v5817_v4  ;;  %4717 = vrot.lane.b32.xlu1 %v4266_v23, %s15845_s19  ;;  %4719 = vrot.lane.b32.xlu0 %v4268_v26, %s15845_s19  ;;  %v4172_v12 = vadd.f32 %v15805_v21, %v20540_v45  ;;  %v5678_v45 = vrot.slane %v20767_v32, 4 }
 0x6b2   :  { %v5997_v20 = vadd.f32 %v5911_v41, %v5436_v27  ;;  %v6089_v56 = vmax.f32 %v6046_v37, 0.0  ;;  %v4620_v27 = vadd.f32 %v20661_v3, %v4432_v24  ;;  %v5676_v41 = vrot.slane %v5488_v35, 4  ;;  %v20882_v37 = vld [vmem:[#allocation3 + $0x268] sm:$0xff] }
 0x6b3   :  { %v20830_v34 = vpop.permute.xlu1 %4337  ;;  %v4433_v39 = vadd.f32 %v20615_v30, %v4172_v12  ;;  %v5680_v3 = vrot.slane %v20882_v37, 4 }
 0x6b4   :  { %v6047_v62 = vadd.f32 %v20835_v51, %v5997_v20  ;;  %v20838_v63 = vpop.permute.xlu0 %4339  ;;  %v4804_v20 = vadd.f32 %v20748_v44, %v4620_v27  ;;  %v5677_v30 = vsel %vm2628_vm8, %v5672_v9, %v5676_v41 }
 0x6b5   :  { %5162 = vrot.lane.b32.xlu1 %v4266_v23, %s15847_s21  ;;  %5164 = vrot.lane.b32.xlu0 %v4268_v26, %s15847_s21  ;;  %v4895_v23 = vsel %vm1840_vm7, %v4892_v19, %v4894_v58  ;;  %v4897_v26 = vsel %vm1840_vm7, %v4894_v58, %v4896_v14  ;;  %v5674_v19 = vrot.slane %v20765_v59, 4  ;;  %v4621_v18 = vadd.f32 %v20665_v57, %v4433_v39  ;;  %v20932_v39 = vld [vmem:[#allocation3 + $0x2a0] sm:$0x1f] }
 0x6b6   :  { %v6090_v11 = vmax.f32 %v6047_v62, 0.0  ;;  %v4269_v58 = vrot.slane %v20825_v36, 2 }
 0x6b7   :  { %v20844_v50 = vpop.permute.xlu1 %4705  ;;  %v4805_v44 = vadd.f32 %v20750_v29, %v4621_v18  ;;  %v5679_v57 = vsel %vm2628_vm8, %v5674_v19, %v5678_v45 }
 0x6b8   :  { %v14602_v17 = vpack.c.bf16 %v6090_v11, %v6089_v56  ;;  %v20846_v42 = vpop.permute.xlu0 %4707  ;;  %v5065_v56 = vadd.f32 %v20793_v1, %v4804_v20  ;;  %v4272_v24 = vsel %vm1148_vm6, %v4269_v58, %v4271_v2 }
 0x6b9   :  { %4092 = vrot.lane.b32.xlu1 %v4009_v22, %s15842_s1  ;;  %4094 = vrot.lane.b32.xlu0 %v4011_v47, %s15842_s1  ;;  %v5066_v16 = vadd.f32 %v20797_v8, %v4805_v44  ;;  %v4270_v8 = vsel %vm1148_vm6, %v4267_v28, %v4269_v58  ;;  %v20930_v28 = vld [vmem:[#allocation3 + $0x290] sm:$0xff]  ;;  %v20938_v44 = vld [vmem:[#allocation3 + $0x2a0] sm:$0xff] }
 0x6ba   :  { %14603 = vmatpush1.bf16.msra.mxu1 %v14602_v17  ;;  %v5675_v17 = vsel %vm2628_vm8, %v5670_v15, %v5674_v19  ;;  %v5681_v15 = vsel %vm2628_vm8, %v5676_v41, %v5680_v3 }
 0x6bb   :  { %v5151_v10 = vpop.permute.xlu1 %5150  ;;  %14604 = vmatprep.subr.bf16.mxu1 %v15850_v31 }
 0x6bc   :  { %v5153_v0 = vpop.permute.xlu0 %5152 }
 0x6bd   :  { %4537 = vrot.lane.b32.xlu1 %v4009_v22, %s15844_s16  ;;  %4539 = vrot.lane.b32.xlu0 %v4011_v47, %s15844_s16  ;;  %v5253_v22 = vadd.f32 %v5151_v10, %v5065_v56  ;;  %v5254_v10 = vadd.f32 %v5153_v0, %v5066_v16 }
 0x6bf   :  { %v20861_v5 = vpop.permute.xlu1 %4525 }
 0x6c0   :  { %v20864_v13 = vpop.permute.xlu0 %4527 }
 0x6c1   :  { %4978 = vrot.lane.b32.xlu1 %v4895_v23, %s15846_s20  ;;  %4980 = vrot.lane.b32.xlu0 %v4897_v26, %s15846_s20 }
 0x6c3   :  { %v20875_v38 = vpop.permute.xlu1 %4966 }
 0x6c4   :  { %v20879_v4 = vpop.permute.xlu0 %4968 }
 0x6c5   :  { %5346 = vrot.lane.b32.xlu1 %v4895_v23, %s15848_s23  ;;  %5348 = vrot.lane.b32.xlu0 %v4897_v26, %s15848_s23 }
 0x6c7   :  { %v5335_v62 = vpop.permute.xlu1 %5334 }
 0x6c8   :  { %v5337_v11 = vpop.permute.xlu0 %5336  ;;  %v5437_v1 = vadd.f32 %v5335_v62, %v5253_v22 }
 0x6c9   :  { %5842 = vrot.lane.b32.xlu1 %v5675_v17, %s15849_s24  ;;  %5844 = vrot.lane.b32.xlu0 %v5677_v30, %s15849_s24  ;;  %v5438_v26 = vadd.f32 %v5337_v11, %v5254_v10  ;;  %v4012_v17 = vrot.slane %v20930_v28, 1  ;;  %v4014_v30 = vrot.slane %v20932_v39, 1  ;;  %v15807_v10 = vld [vmem:[#allocation3 + $0x1d0] sm:$0xff]  ;;  %v21135_v39 = vld [vmem:[#allocation3 + $0x2c0] sm:$0x7f] }
 0x6cb   :  { %v5819_v47 = vpop.permute.xlu1 %5818  ;;  %v4013_v16 = vsel %vm860_vm5, %v4010_v6, %v4012_v17 }
 0x6cc   :  { %v5821_v9 = vpop.permute.xlu0 %5820 }
 0x6cd   :  { %v5912_v29 = vsel %vm3007_vm10, %v5819_v47, %v5821_v9  ;;  %5846 = vrot.lane.b32.xlu1 %v5679_v57, %s15849_s24  ;;  %5848 = vrot.lane.b32.xlu0 %v5681_v15, %s15849_s24  ;;  %v15806_v47 = vld [vmem:[#allocation3 + $0x1c0] sm:$0xff]  ;;  %v4459_v9 = vrot.slane %v20938_v44, 1 }
 0x6ce   :  { %v5998_v60 = vadd.f32 %v5912_v29, %v5437_v1  ;;  %v4173_v57 = vadd.f32 %v15806_v47, %v20645_v55  ;;  %v4015_v1 = vsel %vm860_vm5, %v4012_v17, %v4014_v30  ;;  %v4898_v55 = vrot.slane %v20825_v36, 3  ;;  %v20987_v47 = vld [vmem:[#allocation3 + $0x288] sm:$0xff] }
 0x6cf   :  { %v5823_v23 = vpop.permute.xlu1 %5822 }
 0x6d0   :  { %v5825_v35 = vpop.permute.xlu0 %5824  ;;  %v6048_v0 = vadd.f32 %v20835_v51, %v5998_v60  ;;  %v4434_v58 = vadd.f32 %v20733_v52, %v4173_v57  ;;  %v4174_v60 = vadd.f32 %v15807_v10, %v20647_v40  ;;  %v5688_v10 = vrot.slane %v20987_v47, 4 }
 0x6d1   :  { %v5913_v21 = vsel %vm3007_vm10, %v5823_v23, %v5825_v35  ;;  %4353 = vrot.lane.b32.xlu1 %v4270_v8, %s15843_s30  ;;  %4355 = vrot.lane.b32.xlu0 %v4272_v24, %s15843_s30  ;;  %v4900_v35 = vrot.slane %v20827_v43, 3 }
 0x6d2   :  { %v5999_v12 = vadd.f32 %v5913_v21, %v5438_v26  ;;  %v6091_v20 = vmax.f32 %v6048_v0, 0.0  ;;  %v4622_v6 = vadd.f32 %v20779_v49, %v4434_v58  ;;  %v4460_v26 = vsel %vm860_vm5, %v4012_v17, %v4459_v9 }
 0x6d3   :  { %v20923_v27 = vpop.permute.xlu1 %4709  ;;  %v4435_v52 = vadd.f32 %v20739_v61, %v4174_v60  ;;  %v4899_v0 = vsel %vm1840_vm7, %v4896_v14, %v4898_v55  ;;  %v5490_v61 = vld [vmem:[#allocation3 + $0x278] sm:$0xff] }
 0x6d4   :  { %v6049_v19 = vadd.f32 %v20835_v51, %v5999_v12  ;;  %v20926_v41 = vpop.permute.xlu0 %4711  ;;  %v4901_v12 = vsel %vm1840_vm7, %v4898_v55, %v4900_v35  ;;  %v5684_v14 = vrot.slane %v5490_v61, 4 }
 0x6d5   :  { %4721 = vrot.lane.b32.xlu1 %v4270_v8, %s15845_s19  ;;  %4723 = vrot.lane.b32.xlu0 %v4272_v24, %s15845_s19  ;;  %v4623_v40 = vadd.f32 %v20782_v53, %v4435_v52 }
 0x6d6   :  { %v6092_v62 = vmax.f32 %v6049_v19, 0.0  ;;  %v5685_v55 = vsel %vm2628_vm8, %v5680_v3, %v5684_v14 }
 0x6d7   :  { %v5155_v18 = vpop.permute.xlu1 %5154 }
 0x6d8   :  { %v14605_v56 = vpack.c.bf16 %v6092_v62, %v6091_v20  ;;  %v5157_v11 = vpop.permute.xlu0 %5156 }
 0x6d9   :  { %5166 = vrot.lane.b32.xlu1 %v4270_v8, %s15847_s21  ;;  %5168 = vrot.lane.b32.xlu0 %v4272_v24, %s15847_s21  ;;  %v4806_v8 = vadd.f32 %v20844_v50, %v4622_v6  ;;  %v4807_v50 = vadd.f32 %v20846_v42, %v4623_v40 }
 0x6da   :  { %14606 = vmatpush1.bf16.msra.mxu1 %v14605_v56  ;;  %v5682_v56 = vrot.slane %v20825_v36, 4 }
 0x6db   :  { %v20940_v22 = vpop.permute.xlu1 %4080  ;;  %14607 = vmatprep.subr.bf16.mxu1 %v15850_v31  ;;  %v5067_v49 = vadd.f32 %v20875_v38, %v4806_v8  ;;  %v5068_v38 = vadd.f32 %v20879_v4, %v4807_v50  ;;  %v5689_v8 = vsel %vm2628_vm8, %v5684_v14, %v5688_v10  ;;  %v21038_v14 = vld [vmem:[#allocation3 + $0x2b0] sm:$0xff] }
 0x6dc   :  { %v20944_v15 = vpop.permute.xlu0 %4082  ;;  %v5683_v58 = vsel %vm2628_vm8, %v5678_v45, %v5682_v56 }
 0x6dd   :  { %4096 = vrot.lane.b32.xlu1 %v4013_v16, %s15842_s1  ;;  %4098 = vrot.lane.b32.xlu0 %v4015_v1, %s15842_s1  ;;  %v5255_v19 = vadd.f32 %v5155_v18, %v5067_v49  ;;  %v5256_v57 = vadd.f32 %v5157_v11, %v5068_v38  ;;  %v5686_v18 = vrot.slane %v20827_v43, 4  ;;  %v21000_v11 = vld [vmem:[#allocation3 + $0x2a0] sm:$0x3f] }
 0x6de   :  { %v4275_v40 = vrot.slane %v21000_v11, 2 }
 0x6df   :  { %v20956_v29 = vpop.permute.xlu1 %4970  ;;  %v5687_v37 = vsel %vm2628_vm8, %v5682_v56, %v5686_v18 }
 0x6e0   :  { %v20961_v23 = vpop.permute.xlu0 %4972 }
 0x6e1   :  { %4541 = vrot.lane.b32.xlu1 %v4013_v16, %s15844_s16  ;;  %4543 = vrot.lane.b32.xlu0 %v4460_v26, %s15844_s16 }
 0x6e3   :  { %v5339_v24 = vpop.permute.xlu1 %5338 }
 0x6e4   :  { %v5341_v21 = vpop.permute.xlu0 %5340  ;;  %v5439_v20 = vadd.f32 %v5339_v24, %v5255_v19  ;;  %v4273_v24 = vrot.slane %v20930_v28, 2 }
 0x6e5   :  { %4982 = vrot.lane.b32.xlu1 %v4899_v0, %s15846_s20  ;;  %4984 = vrot.lane.b32.xlu0 %v4901_v12, %s15846_s20  ;;  %v5440_v1 = vadd.f32 %v5341_v21, %v5256_v57 }
 0x6e6   :  { %v4274_v50 = vsel %vm1148_vm6, %v4271_v2, %v4273_v24  ;;  %v4276_v19 = vsel %vm1148_vm6, %v4273_v24, %v4275_v40 }
 0x6e7   :  { %v5827_v53 = vpop.permute.xlu1 %5826 }
 0x6e8   :  { %v5829_v62 = vpop.permute.xlu0 %5828 }
 0x6e9   :  { %v5914_v17 = vsel %vm3007_vm10, %v5827_v53, %v5829_v62  ;;  %5350 = vrot.lane.b32.xlu1 %v4899_v0, %s15848_s23  ;;  %5352 = vrot.lane.b32.xlu0 %v4901_v12, %s15848_s23  ;;  %v4643_v53 = vrot.slane %v20938_v44, 2 }
 0x6ea   :  { %v6000_v16 = vadd.f32 %v5914_v17, %v5439_v20  ;;  %v15808_v20 = vld [vmem:[#allocation3 + $0x1e0] sm:$0xff] }
 0x6eb   :  { %v5831_v42 = vpop.permute.xlu1 %5830  ;;  %v4175_v62 = vadd.f32 %v15808_v20, %v20769_v25  ;;  %v4644_v2 = vsel %vm1148_vm6, %v4273_v24, %v4643_v53  ;;  %v21040_v17 = vld [vmem:[#allocation3 + $0x2c0] sm:$0x1f]  ;;  %v5690_v20 = vrot.slane %v20930_v28, 4 }
 0x6ec   :  { %v5833_v4 = vpop.permute.xlu0 %5832  ;;  %v6050_v6 = vadd.f32 %v20835_v51, %v6000_v16 }
 0x6ed   :  { %v5915_v60 = vsel %vm3007_vm10, %v5831_v42, %v5833_v4  ;;  %5850 = vrot.lane.b32.xlu1 %v5683_v58, %s15849_s24  ;;  %5852 = vrot.lane.b32.xlu0 %v5685_v55, %s15849_s24  ;;  %v4436_v57 = vadd.f32 %v20830_v34, %v4175_v62  ;;  %v15809_v42 = vld [vmem:[#allocation3 + $0x1f0] sm:$0xff]  ;;  %v4461_v58 = vrot.slane %v21038_v14, 1  ;;  %v4463_v55 = vrot.slane %v21040_v17, 1 }
 0x6ee   :  { %v6001_v26 = vadd.f32 %v5915_v60, %v5440_v1  ;;  %v6093_v49 = vmax.f32 %v6050_v6, 0.0  ;;  %v4176_v25 = vadd.f32 %v15809_v42, %v20771_v46  ;;  %v4904_v46 = vrot.slane %v20938_v44, 3  ;;  %v21082_v42 = vld [vmem:[#allocation3 + $0x2a8] sm:$0xff] }
 0x6ef   :  { %v21003_v52 = vpop.permute.xlu1 %4341  ;;  %v4624_v1 = vadd.f32 %v20861_v5, %v4436_v57 }
 0x6f0   :  { %v6051_v45 = vadd.f32 %v20835_v51, %v6001_v26  ;;  %v21009_v3 = vpop.permute.xlu0 %4343  ;;  %v4437_v60 = vadd.f32 %v20838_v63, %v4176_v25  ;;  %v4902_v26 = vrot.slane %v20930_v28, 3  ;;  %v4464_v63 = vsel %vm860_vm5, %v4461_v58, %v4463_v55 }
 0x6f1   :  { %5854 = vrot.lane.b32.xlu1 %v5687_v37, %s15849_s24  ;;  %5856 = vrot.lane.b32.xlu0 %v5689_v8, %s15849_s24  ;;  %v4808_v34 = vadd.f32 %v20923_v27, %v4624_v1  ;;  %v4462_v8 = vsel %vm860_vm5, %v4459_v9, %v4461_v58 }
 0x6f2   :  { %v6094_v21 = vmax.f32 %v6051_v45, 0.0  ;;  %v4625_v5 = vadd.f32 %v20864_v13, %v4437_v60  ;;  %v4903_v9 = vsel %vm1840_vm7, %v4900_v35, %v4902_v26 }
 0x6f3   :  { %v5159_v0 = vpop.permute.xlu1 %5158  ;;  %v5069_v37 = vadd.f32 %v20956_v29, %v4808_v34 }
 0x6f4   :  { %v14608_v12 = vpack.c.bf16 %v6094_v21, %v6093_v49  ;;  %v5161_v61 = vpop.permute.xlu0 %5160  ;;  %v4809_v27 = vadd.f32 %v20926_v41, %v4625_v5  ;;  %v5492_v41 = vld [vmem:[#allocation3 + $0x298] sm:$0xff]  ;;  %v5696_v5 = vrot.slane %v21082_v42, 4 }
 0x6f5   :  { %4357 = vrot.lane.b32.xlu1 %v4274_v50, %s15843_s30  ;;  %4359 = vrot.lane.b32.xlu0 %v4276_v19, %s15843_s30  ;;  %v5257_v24 = vadd.f32 %v5159_v0, %v5069_v37  ;;  %v5692_v57 = vrot.slane %v5492_v41, 4 }
 0x6f6   :  { %14609 = vmatpush1.bf16.msra.mxu1 %v14608_v12  ;;  %v5070_v13 = vadd.f32 %v20961_v23, %v4809_v27  ;;  %v4905_v12 = vsel %vm1840_vm7, %v4902_v26, %v4904_v46  ;;  %v5694_v26 = vrot.slane %v20938_v44, 4  ;;  %v4645_v27 = vrot.slane %v21038_v14, 2 }
 0x6f7   :  { %v21027_v38 = vpop.permute.xlu1 %4084  ;;  %14610 = vmatprep.subr.bf16.mxu1 %v15850_v31 }
 0x6f8   :  { %v21031_v56 = vpop.permute.xlu0 %4086  ;;  %v5258_v0 = vadd.f32 %v5161_v61, %v5070_v13  ;;  %v5691_v61 = vsel %vm2628_vm8, %v5686_v18, %v5690_v20  ;;  %v5695_v47 = vsel %vm2628_vm8, %v5690_v20, %v5694_v26  ;;  %v4179_v13 = vadd.f32 %v21027_v38, %v20497_v7 }
 0x6f9   :  { %4725 = vrot.lane.b32.xlu1 %v4274_v50, %s15845_s19  ;;  %4727 = vrot.lane.b32.xlu0 %v4644_v2, %s15845_s19 }
 0x6fb   :  { %v21043_v16 = vpop.permute.xlu1 %4529 }
 0x6fc   :  { %v21047_v4 = vpop.permute.xlu0 %4531 }
 0x6fd   :  { %5170 = vrot.lane.b32.xlu1 %v4274_v50, %s15847_s21  ;;  %5172 = vrot.lane.b32.xlu0 %v4644_v2, %s15847_s21 }
 0x6ff   :  { %v5343_v6 = vpop.permute.xlu1 %5342 }
 0x700   :  { %v5345_v45 = vpop.permute.xlu0 %5344  ;;  %v5441_v29 = vadd.f32 %v5343_v6, %v5257_v24  ;;  %v5693_v6 = vsel %vm2628_vm8, %v5688_v10, %v5692_v57  ;;  %v5697_v10 = vsel %vm2628_vm8, %v5692_v57, %v5696_v5  ;;  %v21109_v24 = vld [vmem:[#allocation3 + $0x2c0] sm:$0x3f] }
 0x701   :  { %4545 = vrot.lane.b32.xlu1 %v4462_v8, %s15844_s16  ;;  %4547 = vrot.lane.b32.xlu0 %v4464_v63, %s15844_s16  ;;  %v5442_v62 = vadd.f32 %v5345_v45, %v5258_v0 }
 0x703   :  { %v5835_v49 = vpop.permute.xlu1 %5834 }
 0x704   :  { %v5837_v21 = vpop.permute.xlu0 %5836 }
 0x705   :  { %v5916_v50 = vsel %vm3007_vm10, %v5835_v49, %v5837_v21  ;;  %4986 = vrot.lane.b32.xlu1 %v4903_v9, %s15846_s20  ;;  %4988 = vrot.lane.b32.xlu0 %v4905_v12, %s15846_s20  ;;  %v4646_v21 = vsel %vm1148_vm6, %v4643_v53, %v4645_v27 }
 0x706   :  { %v6002_v19 = vadd.f32 %v5916_v50, %v5441_v29  ;;  %v21123_v50 = vld [vmem:[#allocation3 + $0x2c0] sm:$0xff] }
 0x707   :  { %v5839_v23 = vpop.permute.xlu1 %5838 }
 0x708   :  { %v5841_v2 = vpop.permute.xlu0 %5840  ;;  %v6052_v25 = vadd.f32 %v20835_v51, %v6002_v19 }
 0x709   :  { %v5917_v35 = vsel %vm3007_vm10, %v5839_v23, %v5841_v2  ;;  %5354 = vrot.lane.b32.xlu1 %v4903_v9, %s15848_s23  ;;  %5356 = vrot.lane.b32.xlu0 %v4905_v12, %s15848_s23  ;;  %v4647_v9 = vrot.slane %v21109_v24, 2  ;;  %v4180_v12 = vadd.f32 %v21031_v56, %v20655_v48  ;;  %v5092_v48 = vrot.slane %v21123_v50, 2 }
 0x70a   :  { %v6003_v1 = vadd.f32 %v5917_v35, %v5442_v62  ;;  %v6095_v37 = vmax.f32 %v6052_v25, 0.0  ;;  %v4906_v62 = vrot.slane %v21038_v14, 3  ;;  %v4908_v2 = vrot.slane %v21135_v39, 3 }
 0x70b   :  { %v4346_v58 = vpop.permute.xlu1 %4345  ;;  %v4648_v53 = vsel %vm1148_vm6, %v4645_v27, %v4647_v9  ;;  %v5093_v20 = vsel %vm1148_vm6, %v4645_v27, %v5092_v48 }
 0x70c   :  { %v6053_v60 = vadd.f32 %v20835_v51, %v6003_v1  ;;  %v4348_v34 = vpop.permute.xlu0 %4347  ;;  %v4440_v41 = vadd.f32 %v4346_v58, %v4179_v13 }
 0x70d   :  { %5858 = vrot.lane.b32.xlu1 %v5691_v61, %s15849_s24  ;;  %5860 = vrot.lane.b32.xlu0 %v5693_v6, %s15849_s24  ;;  %v4441_v7 = vadd.f32 %v4348_v34, %v4180_v12  ;;  %v4907_v61 = vsel %vm1840_vm7, %v4904_v46, %v4906_v62  ;;  %v5276_v34 = vrot.slane %v21123_v50, 3  ;;  %v5698_v46 = vrot.slane %v21038_v14, 4 }
 0x70e   :  { %v6096_v45 = vmax.f32 %v6053_v60, 0.0  ;;  %v4909_v60 = vsel %vm1840_vm7, %v4906_v62, %v4908_v2 }
 0x70f   :  { %v21096_v8 = vpop.permute.xlu1 %4713  ;;  %v5699_v27 = vsel %vm2628_vm8, %v5694_v26, %v5698_v46  ;;  %v6112_v26 = vld [vmem:[#allocation4 + $0x20] sm:$0xff] }
 0x710   :  { %v14611_v18 = vpack.c.bf16 %v6096_v45, %v6095_v37  ;;  %v21098_v63 = vpop.permute.xlu0 %4715  ;;  %v21171_v45 = vld [vmem:[#allocation3 + $0x2c8] sm:$0xff] }
 0x711   :  { %5862 = vrot.lane.b32.xlu1 %v5695_v47, %s15849_s24  ;;  %5864 = vrot.lane.b32.xlu0 %v5697_v10, %s15849_s24  ;;  %v6109_v47 = vld [vmem:[#allocation4 + $0x8] sm:$0xff]  ;;  %v5704_v13 = vrot.slane %v21171_v45, 4 }
 0x712   :  { %14612 = vmatpush1.bf16.msra.mxu1 %v14611_v18  ;;  %6284 = vmatprep.mubr.f32.mxu1 %v6109_v47 }
 0x713   :  { %v4089_v49 = vpop.permute.xlu1 %4088 }
 0x714   :  { %v4091_v29 = vpop.permute.xlu0 %4090  ;;  %v4181_v57 = vadd.f32 %v4089_v49, %v20659_v33  ;;  %v5494_v33 = vld [vmem:[#allocation3 + $0x2b8] sm:$0xff]  ;;  %v5702_v49 = vrot.slane %v21123_v50, 4 }
 0x715   :  { %4100 = vrot.lane.b32.xlu1 %v4014_v30, %s15842_s1  ;;  %4729 = vrot.lane.b32.xlu0 %v4646_v21, %s15845_s19  ;;  %v4182_v35 = vadd.f32 %v4091_v29, %v20765_v59  ;;  %v5700_v37 = vrot.slane %v5494_v33, 4  ;;  %v6108_v29 = vld [vmem:[#allocation4] sm:$0xff] }
 0x716   :  { %6285 = vmatmul.mubr.f32.vlgmr.msra.gmra.mrb[98].mxu1 %v6108_v29  ;;  %v5703_v42 = vsel %vm2628_vm8, %v5698_v46, %v5702_v49  ;;  %v15811_v46 = vld [vmem:[#allocation3 + $0x210] sm:$0xff] }
 0x717   :  { %v4534_v38 = vpop.permute.xlu1 %4533  ;;  %v5701_v14 = vsel %vm2628_vm8, %v5696_v5, %v5700_v37  ;;  %v5705_v5 = vsel %vm2628_vm8, %v5700_v37, %v5704_v13  ;;  %6289 = vmatprep.mubr.f32.mxu1 %v6112_v26 }
 0x718   :  { %v21125_v0 = vadd.f32 %v4534_v38, %v4440_v41  ;;  %v4536_v19 = vpop.permute.xlu0 %4535  ;;  %v21202_v38 = vld [vmem:[#allocation3 + $0x2e0] sm:$0x3f] }
 0x719   :  { %v21131_v56 = vadd.f32 %v4536_v19, %v4441_v7  ;;  %4731 = vrot.lane.b32.xlu1 %v4648_v53, %s15845_s19  ;;  %5174 = vrot.lane.b32.xlu0 %v4646_v21, %s15847_s21  ;;  %v21187_v21 = vld [vmem:[#allocation3 + $0x2d0] sm:$0xff]  ;;  %v6111_v7 = vld [vmem:[#allocation4 + $0x18] sm:$0xff] }
 0x71a   :  { %v5094_v41 = vrot.slane %v21187_v21, 2  ;;  %6290 = vmatmul.mubr.f32.gmra.mrb[100].mxu1 %v6111_v7  ;;  %v6115_v53 = vld [vmem:[#allocation4 + $0x38] sm:$0xff]  ;;  %v5706_v29 = vrot.slane %v21187_v21, 4 }
 0x71b   :  { %v21137_v30 = vpop.permute.xlu1 %4974  ;;  %6294 = vmatprep.mubr.f32.mxu1 %v6115_v53 }
 0x71c   :  { %v21139_v23 = vpop.permute.xlu0 %4976 }
 0x71d   :  { %5176 = vrot.lane.b32.xlu1 %v5093_v20, %s15847_s21  ;;  %4361 = vrot.lane.b32.xlu0 %v4275_v40, %s15843_s30  ;;  %v5277_v40 = vsel %vm1840_vm7, %v4906_v62, %v5276_v34  ;;  %v15810_v20 = vld [vmem:[#allocation3 + $0x200] sm:$0xff] }
 0x71e   :  { %v4177_v62 = vadd.f32 %v15810_v20, %v20940_v22  ;;  %v21217_v22 = vld [vmem:[#allocation3 + $0x2e0] sm:$0x7f]  ;;  %v6124_v20 = vld [vmem:[#allocation4 + $0x80] sm:$0xff] }
 0x71f   :  { %v4350_v25 = vpop.permute.xlu1 %4349 }
 0x720   :  { %v4442_v1 = vadd.f32 %v4350_v25, %v4181_v57  ;;  %v4352_v58 = vpop.permute.xlu0 %4351  ;;  %v5095_v25 = vsel %vm1148_vm6, %v5092_v48, %v5094_v41  ;;  %v5278_v48 = vrot.slane %v21187_v21, 3  ;;  %v21248_v21 = vld [vmem:[#allocation3 + $0x2e8] sm:$0xff] }
 0x721   :  { %v4443_v6 = vadd.f32 %v4352_v58, %v4182_v35  ;;  %4990 = vrot.lane.b32.xlu1 %v4907_v61, %s15846_s20  ;;  %4992 = vrot.lane.b32.xlu0 %v4909_v60, %s15846_s20  ;;  %v5096_v58 = vrot.slane %v21202_v38, 2 }
 0x722   :  { %v5279_v24 = vsel %vm1840_vm7, %v5276_v34, %v5278_v48  ;;  %v5707_v34 = vsel %vm2628_vm8, %v5702_v49, %v5706_v29 }
 0x723   :  { %v21161_v59 = vpop.permute.xlu1 %4717  ;;  %v5097_v17 = vsel %vm1148_vm6, %v5094_v41, %v5096_v58 }
 0x724   :  { %v21163_v11 = vpop.permute.xlu0 %4719 }
 0x725   :  { %5358 = vrot.lane.b32.xlu1 %v4907_v61, %s15848_s23  ;;  %5360 = vrot.lane.b32.xlu0 %v5277_v40, %s15848_s23  ;;  %v6114_v61 = vld [vmem:[#allocation4 + $0x30] sm:$0xff] }
 0x726   :  { %6295 = vmatmul.mubr.f32.gmra.mrb[102].mxu1 %v6114_v61  ;;  %v6118_v40 = vld [vmem:[#allocation4 + $0x50] sm:$0xff] }
 0x727   :  { %v21173_v18 = vpop.permute.xlu1 %5162  ;;  %6299 = vmatprep.mubr.f32.mxu1 %v6118_v40 }
 0x728   :  { %v21175_v10 = vpop.permute.xlu0 %5164 }
 0x729   :  { %5866 = vrot.lane.b32.xlu1 %v5699_v27, %s15849_s24  ;;  %5868 = vrot.lane.b32.xlu0 %v5701_v14, %s15849_s24  ;;  %v6117_v27 = vld [vmem:[#allocation4 + $0x48] sm:$0xff] }
 0x72a   :  { %6300 = vmatmul.mubr.f32.gmra.mrb[104].mxu1 %v6117_v27 }
 0x72b   :  { %v21189_v44 = vpop.permute.xlu1 %4092 }
 0x72c   :  { %v21191_v12 = vpop.permute.xlu0 %4094 }
 0x72d   :  { %5870 = vrot.lane.b32.xlu1 %v5703_v42, %s15849_s24  ;;  %5872 = vrot.lane.b32.xlu0 %v5705_v5, %s15849_s24  ;;  %v6121_v42 = vld [vmem:[#allocation4 + $0x68] sm:$0xff]  ;;  %v4184_v27 = vadd.f32 %v21191_v12, %v20825_v36 }
 0x72e   :  { %6304 = vmatprep.mubr.f32.mxu1 %v6121_v42  ;;  %v6129_v42 = vld [vmem:[#allocation4 + $0xa8] sm:$0xff] }
 0x72f   :  { %v4538_v19 = vpop.permute.xlu1 %4537  ;;  %v6133_v12 = vld [vmem:[#allocation4 + $0xc8] sm:$0xff] }
 0x730   :  { %v21205_v57 = vadd.f32 %v4538_v19, %v4442_v1  ;;  %v4540_v35 = vpop.permute.xlu0 %4539  ;;  %v4438_v1 = vadd.f32 %v21003_v52, %v4177_v62  ;;  %v5496_v52 = vld [vmem:[#allocation3 + $0x2d8] sm:$0xff] }
 0x731   :  { %v21211_v60 = vadd.f32 %v4540_v35, %v4443_v6  ;;  %4549 = vrot.lane.b32.xlu1 %v4463_v55, %s15844_s16  ;;  %5178 = vrot.lane.b32.xlu0 %v5095_v25, %s15847_s21  ;;  %v4178_v6 = vadd.f32 %v15811_v46, %v20944_v15  ;;  %v5280_v55 = vrot.slane %v21217_v22, 3  ;;  %v5708_v26 = vrot.slane %v5496_v52, 4  ;;  %v6138_v22 = vld [vmem:[#allocation4 + $0xf0] sm:$0xff] }
 0x732   :  { %v4626_v37 = vadd.f32 %v21043_v16, %v4438_v1 }
 0x733   :  { %v21220_v33 = vpop.permute.xlu1 %4978  ;;  %v4439_v15 = vadd.f32 %v21009_v3, %v4178_v6  ;;  %v5281_v3 = vsel %vm1840_vm7, %v5278_v48, %v5280_v55  ;;  %v5709_v53 = vsel %vm2628_vm8, %v5704_v13, %v5708_v26  ;;  %v6127_v13 = vld [vmem:[#allocation4 + $0x98] sm:$0xff]  ;;  %v6126_v6 = vld [vmem:[#allocation4 + $0x90] sm:$0xff] }
 0x734   :  { %v21225_v47 = vpop.permute.xlu0 %4980  ;;  %v4810_v16 = vadd.f32 %v21096_v8, %v4626_v37  ;;  %v6120_v8 = vld [vmem:[#allocation4 + $0x60] sm:$0xff] }
 0x735   :  { %5180 = vrot.lane.b32.xlu1 %v5097_v17, %s15847_s21  ;;  %4733 = vrot.lane.b32.xlu0 %v4647_v9, %s15845_s19  ;;  %v4627_v5 = vadd.f32 %v21047_v4, %v4439_v15  ;;  %v5497_v9 = vld [vmem:[#allocation3 + $0x2e0] sm:$0xff] }
 0x736   :  { %v5071_v41 = vadd.f32 %v21137_v30, %v4810_v16  ;;  %6305 = vmatmul.mubr.f32.gmra.mrb[106].mxu1 %v6120_v8  ;;  %v5710_v61 = vrot.slane %v5497_v9, 4  ;;  %v6130_v16 = vld [vmem:[#allocation4 + $0xb0] sm:$0xff]  ;;  %v6139_v9 = vld [vmem:[#allocation4 + $0xf8] sm:$0xff] }
 0x737   :  { %v5347_v14 = vpop.permute.xlu1 %5346  ;;  %v4811_v4 = vadd.f32 %v21098_v63, %v4627_v5  ;;  %v5712_v63 = vrot.slane %v21248_v21, 4  ;;  %6309 = vmatprep.mubr.f32.mxu1 %v6124_v20 }
 0x738   :  { %v5349_v7 = vpop.permute.xlu0 %5348  ;;  %v5259_v30 = vadd.f32 %v21173_v18, %v5071_v41  ;;  %v6123_v18 = vld [vmem:[#allocation4 + $0x78] sm:$0xff]  ;;  %v5711_v40 = vsel %vm2628_vm8, %v5706_v29, %v5710_v61 }
 0x739   :  { %5362 = vrot.lane.b32.xlu1 %v5279_v24, %s15848_s23  ;;  %5364 = vrot.lane.b32.xlu0 %v5281_v3, %s15848_s23  ;;  %v5072_v62 = vadd.f32 %v21139_v23, %v4811_v4  ;;  %v5713_v46 = vsel %vm2628_vm8, %v5708_v26, %v5712_v63  ;;  %v6110_v24 = vld [vmem:[#allocation4 + $0x10] sm:$0xff]  ;;  %v6132_v3 = vld [vmem:[#allocation4 + $0xc0] sm:$0xff] }
 0x73a   :  { %v5443_v35 = vadd.f32 %v5347_v14, %v5259_v30  ;;  %6310 = vmatmul.mubr.f32.gmra.mrb[108].mxu1 %v6123_v18  ;;  %14371 = vmatprep.mubr.msk.f32.mxu0 %vm6162_vm12, %v6110_v24  ;;  %v6142_v4 = vld [vmem:[#allocation4 + $0x110] sm:$0xff]  ;;  %v6148_v18 = vld [vmem:[#allocation4 + $0x140] sm:$0xff] }
 0x73b   :  { %v5843_v19 = vpop.permute.xlu1 %5842  ;;  %v5260_v50 = vadd.f32 %v21175_v10, %v5072_v62  ;;  %6314 = vmatprep.mubr.f32.mxu1 %v6127_v13  ;;  %v4183_v10 = vadd.f32 %v21189_v44, %v20767_v32  ;;  %v6145_v62 = vld [vmem:[#allocation4 + $0x128] sm:$0xff] }
 0x73c   :  { %v5845_v25 = vpop.permute.xlu0 %5844 }
 0x73d   :  { %v5918_v1 = vsel %vm3007_vm10, %v5843_v19, %v5845_v25  ;;  %5874 = vrot.lane.b32.xlu1 %v5707_v34, %s15849_s24  ;;  %5876 = vrot.lane.b32.xlu0 %v5709_v53, %s15849_s24  ;;  %v5444_v23 = vadd.f32 %v5349_v7, %v5260_v50  ;;  %v6141_v34 = vld [vmem:[#allocation4 + $0x108] sm:$0xff]  ;;  %v6144_v25 = vld [vmem:[#allocation4 + $0x120] sm:$0xff] }
 0x73e   :  { %v6004_v45 = vadd.f32 %v5918_v1, %v5443_v35  ;;  %6315 = vmatmul.mubr.f32.gmra.mrb[110].mxu1 %v6126_v6 }
 0x73f   :  { %v5847_v49 = vpop.permute.xlu1 %5846  ;;  %6319 = vmatprep.mubr.f32.mxu1 %v6130_v16 }
 0x740   :  { %v5849_v48 = vpop.permute.xlu0 %5848  ;;  %v6054_v17 = vadd.f32 %v20835_v51, %v6004_v45  ;;  %v6147_v45 = vld [vmem:[#allocation4 + $0x138] sm:$0xff] }
 0x741   :  { %v5919_v37 = vsel %vm3007_vm10, %v5847_v49, %v5849_v48  ;;  %5878 = vrot.lane.b32.xlu1 %v5711_v40, %s15849_s24  ;;  %5880 = vrot.lane.b32.xlu0 %v5713_v46, %s15849_s24  ;;  %v4813_v49 = vadd.f32 %v21163_v11, %v21131_v56  ;;  %v6151_v48 = vld [vmem:[#allocation4 + $0x158] sm:$0xff]  ;;  %v6153_v56 = vld [vmem:[#allocation4 + $0x168] sm:$0xff] }
 0x742   :  { %v6005_v52 = vadd.f32 %v5919_v37, %v5444_v23  ;;  %v6097_v32 = vmax.f32 %v6054_v17, 0.0  ;;  %6320 = vmatmul.mubr.f32.gmra.mrb[112].mxu1 %v6129_v42  ;;  %v6154_v17 = vld [vmem:[#allocation4 + $0x170] sm:$0xff] }
 0x743   :  { %v4354_v15 = vpop.permute.xlu1 %4353  ;;  %6324 = vmatprep.mubr.f32.mxu1 %v6133_v12  ;;  %v5074_v40 = vadd.f32 %v21225_v47, %v4813_v49 }
 0x744   :  { %v6055_v14 = vadd.f32 %v20835_v51, %v6005_v52  ;;  %v4444_v29 = vadd.f32 %v4354_v15, %v4183_v10  ;;  %v4356_v26 = vpop.permute.xlu0 %4355 }
 0x745   :  { %v4445_v5 = vadd.f32 %v4356_v26, %v4184_v27  ;;  %4994 = vrot.lane.b32.xlu1 %v4908_v2, %s15846_s20  ;;  %5182 = vrot.lane.b32.xlu0 %v5096_v58, %s15847_s21  ;;  %v6136_v2 = vld [vmem:[#allocation4 + $0xe0] sm:$0xff]  ;;  %v6135_v58 = vld [vmem:[#allocation4 + $0xd8] sm:$0xff] }
 0x746   :  { %v6098_v44 = vmax.f32 %v6055_v14, 0.0  ;;  %6325 = vmatmul.mubr.f32.gmra.mrb[114].mxu1 %v6132_v3  ;;  %v6157_v14 = vld [vmem:[#allocation4 + $0x188] sm:$0xff] }
 0x747   :  { %v21281_v36 = vpop.permute.xlu1 %4721  ;;  %6329 = vmatprep.mubr.f32.mxu1 %v6136_v2 }
 0x748   :  { %v21283_v41 = vpop.permute.xlu0 %4723  ;;  %v14613_v7 = vpack.c.bf16 %v6098_v44, %v6097_v32  ;;  %v6156_v44 = vld [vmem:[#allocation4 + $0x180] sm:$0xff] }
 0x749   :  { %5366 = vrot.lane.b32.xlu1 %v5280_v55, %s15848_s23  ;;  %5882 = vrot.lane.b32.xlu0 %v5710_v61, %s15849_s24  ;;  %v4812_v61 = vadd.f32 %v21161_v59, %v21125_v0  ;;  %v6150_v0 = vld [vmem:[#allocation4 + $0x150] sm:$0xff] }
 0x74a   :  { %14614 = vmatprep.subr.bf16.mxu0 %v14613_v7  ;;  %6330 = vmatmul.mubr.f32.gmra.mrb[116].mxu1 %v6135_v58 }
 0x74b   :  { %14616 = vmatpush3.bf16.msra.mxu0 %v14613_v7  ;;  %v5167_v39 = vpop.permute.xlu1 %5166  ;;  %6334 = vmatprep.mubr.f32.mxu1 %v6139_v9  ;;  %v5073_v1 = vadd.f32 %v21220_v33, %v4812_v61  ;;  %v6160_v7 = vld [vmem:[#allocation4 + $0x1a0] sm:$0xff] }
 0x74c   :  { %v5169_v38 = vpop.permute.xlu0 %5168 }
 0x74d   :  { %5884 = vrot.lane.b32.xlu1 %v5712_v63, %s15849_s24  ;;  %v5261_v13 = vadd.f32 %v5167_v39, %v5073_v1  ;;  %v5262_v37 = vadd.f32 %v5169_v38, %v5074_v40 }
 0x74e   :  { %6335 = vmatmul.mubr.f32.gmra.mrb[118].mxu1 %v6138_v22  ;;  %v4814_v22 = vadd.f32 %v21281_v36, %v21205_v57 }
 0x74f   :  { %v4097_v8 = vpop.permute.xlu1 %4096  ;;  %6339 = vmatprep.mubr.f32.mxu1 %v6142_v4 }
 0x750   :  { %v4099_v21 = vpop.permute.xlu0 %4098  ;;  %v4185_v15 = vadd.f32 %v4097_v8, %v20827_v43 }
 0x752   :  { %6340 = vmatmul.mubr.f32.gmra.mrb[120].mxu1 %v6141_v34  ;;  %v4815_v34 = vadd.f32 %v21283_v41, %v21211_v60 }
 0x753   :  { %v4542_v55 = vpop.permute.xlu1 %4541  ;;  %6344 = vmatprep.mubr.f32.mxu1 %v6145_v62 }
 0x754   :  { %v21291_v30 = vadd.f32 %v4542_v55, %v4444_v29  ;;  %v4544_v19 = vpop.permute.xlu0 %4543  ;;  %v4186_v29 = vadd.f32 %v4099_v21, %v20930_v28  ;;  %v6159_v28 = vld [vmem:[#allocation4 + $0x198] sm:$0xff] }
 0x755   :  { %v21293_v53 = vadd.f32 %v4544_v19, %v4445_v5 }
 0x756   :  { %6345 = vmatmul.mubr.f32.gmra.mrb[122].mxu1 %v6144_v25 }
 0x757   :  { %v21295_v20 = vpop.permute.xlu1 %4982  ;;  %6349 = vmatprep.mubr.f32.mxu1 %v6148_v18 }
 0x758   :  { %v21297_v35 = vpop.permute.xlu0 %4984  ;;  %v5075_v4 = vadd.f32 %v21295_v20, %v4814_v22  ;;  %v21330_v20 = vld [vmem:[%s24808_s5] ss:$0 sm:$0xff] }
 0x759   :  { %v5076_v61 = vadd.f32 %v21297_v35, %v4815_v34 }
 0x75a   :  { %6350 = vmatmul.mubr.f32.gmra.mrb[124].mxu1 %v6147_v45 }
 0x75b   :  { %v5351_v63 = vpop.permute.xlu1 %5350  ;;  %6354 = vmatprep.mubr.f32.mxu1 %v6151_v48 }
 0x75c   :  { %v5353_v50 = vpop.permute.xlu0 %5352  ;;  %v5445_v46 = vadd.f32 %v5351_v63, %v5261_v13 }
 0x75d   :  { %v5446_v52 = vadd.f32 %v5353_v50, %v5262_v37 }
 0x75e   :  { %6355 = vmatmul.mubr.f32.gmra.mrb[126].mxu1 %v6150_v0 }
 0x75f   :  { %v5851_v23 = vpop.permute.xlu1 %5850  ;;  %6359 = vmatprep.mubr.f32.mxu1 %v6154_v17 }
 0x760   :  { %v5853_v6 = vpop.permute.xlu0 %5852 }
 0x761   :  { %v5920_v59 = vsel %vm3007_vm10, %v5851_v23, %v5853_v6 }
 0x762   :  { %v6006_v33 = vadd.f32 %v5920_v59, %v5445_v46  ;;  %6360 = vmatmul.mubr.f32.gmra.mrb[128].mxu1 %v6153_v56 }
 0x763   :  { %v5855_v10 = vpop.permute.xlu1 %5854  ;;  %6364 = vmatprep.mubr.f32.mxu1 %v6157_v14 }
 0x764   :  { %v5857_v27 = vpop.permute.xlu0 %5856  ;;  %v6056_v47 = vadd.f32 %v20835_v51, %v6006_v33 }
 0x765   :  { %v5921_v11 = vsel %vm3007_vm10, %v5855_v10, %v5857_v27 }
 0x766   :  { %v6007_v16 = vadd.f32 %v5921_v11, %v5446_v52  ;;  %v6099_v24 = vmax.f32 %v6056_v47, 0.0  ;;  %6365 = vmatmul.mubr.f32.gmra.mrb[130].mxu1 %v6156_v44 }
 0x767   :  { %v4358_v26 = vpop.permute.xlu1 %4357  ;;  %6369 = vmatprep.mubr.f32.mxu1 %v6160_v7 }
 0x768   :  { %v6057_v42 = vadd.f32 %v20835_v51, %v6007_v16  ;;  %v21311_v5 = vadd.f32 %v4358_v26, %v4185_v15  ;;  %v4360_v32 = vpop.permute.xlu0 %4359 }
 0x769   :  { %v21313_v12 = vadd.f32 %v4360_v32, %v4186_v29 }
 0x76a   :  { %v6100_v43 = vmax.f32 %v6057_v42, 0.0  ;;  %6370 = vmatmul.mubr.f32.gmra.mrb[132].mxu1 %v6159_v28 }
 0x76b   :  { %v4726_v3 = vpop.permute.xlu1 %4725 }
 0x76c   :  { %v4728_v39 = vpop.permute.xlu0 %4727  ;;  %v14617_v2 = vpack.c.bf16 %v6100_v43, %v6099_v24  ;;  %v4816_v52 = vadd.f32 %v4726_v3, %v21291_v30 }
 0x76d   :  { %v4817_v15 = vadd.f32 %v4728_v39, %v21293_v53 }
 0x76e   :  { %14618 = vmatprep.subr.bf16.mxu0 %v14617_v2 }
 0x76f   :  { %14620 = vmatpush3.bf16.msra.mxu0 %v14617_v2  ;;  %v5171_v38 = vpop.permute.xlu1 %5170 }
 0x770   :  { %v5173_v51 = vpop.permute.xlu0 %5172  ;;  %v5263_v62 = vadd.f32 %v5171_v38, %v5075_v4 }
 0x771   :  { %v5264_v50 = vadd.f32 %v5173_v51, %v5076_v61 }
 0x773   :  { %v21315_v58 = vpop.permute.xlu1 %4545 }
 0x774   :  { %v21317_v8 = vpop.permute.xlu0 %4547 }
 0x775   :  { %v4635_v34 = vadd.f32 %v21317_v8, %v21313_v12 }
 0x777   :  { %v4987_v9 = vpop.permute.xlu1 %4986 }
 0x778   :  { %v4989_v21 = vpop.permute.xlu0 %4988  ;;  %v5077_v56 = vadd.f32 %v4987_v9, %v4816_v52 }
 0x779   :  { %v5078_v14 = vadd.f32 %v4989_v21, %v4817_v15  ;;  %v4634_v21 = vadd.f32 %v21315_v58, %v21311_v5 }
 0x77b   :  { %v5355_v55 = vpop.permute.xlu1 %5354 }
 0x77c   :  { %v5357_v19 = vpop.permute.xlu0 %5356  ;;  %v5447_v63 = vadd.f32 %v5355_v55, %v5263_v62 }
 0x77d   :  { %v5448_v13 = vadd.f32 %v5357_v19, %v5264_v50 }
 0x77f   :  { %v5859_v25 = vpop.permute.xlu1 %5858 }
 0x780   :  { %v5861_v18 = vpop.permute.xlu0 %5860 }
 0x781   :  { %v5922_v1 = vsel %vm3007_vm10, %v5859_v25, %v5861_v18  ;;  %v3885_v18 = vld [vmem:[#allocation3 + $0x2a0] sm:$0xf] }
 0x782   :  { %v6008_v45 = vadd.f32 %v5922_v1, %v5447_v63 }
 0x783   :  { %v5863_v49 = vpop.permute.xlu1 %5862 }
 0x784   :  { %v5865_v57 = vpop.permute.xlu0 %5864  ;;  %v6058_v60 = vadd.f32 %v21330_v20, %v6008_v45 }
 0x785   :  { %v5923_v36 = vsel %vm3007_vm10, %v5863_v49, %v5865_v57 }
 0x786   :  { %v6009_v41 = vadd.f32 %v5923_v36, %v5448_v13  ;;  %v6101_v40 = vmax.f32 %v6058_v60, 0.0 }
 0x787   :  { %v4101_v35 = vpop.permute.xlu1 %4100 }
 0x788   :  { %v6059_v23 = vadd.f32 %v21330_v20, %v6009_v41  ;;  %v4730_v48 = vpop.permute.xlu0 %4729  ;;  %v4187_v50 = vadd.f32 %v4101_v35, %v3885_v18 }
 0x789   :  { %v4818_v4 = vadd.f32 %v4730_v48, %v4634_v21 }
 0x78a   :  { %v6102_v46 = vmax.f32 %v6059_v23, 0.0 }
 0x78b   :  { %v4732_v6 = vpop.permute.xlu1 %4731 }
 0x78c   :  { %v5175_v0 = vpop.permute.xlu0 %5174  ;;  %v14621_v59 = vpack.c.bf16 %v6102_v46, %v6101_v40  ;;  %v4819_v61 = vadd.f32 %v4732_v6, %v4635_v34 }
 0x78d   :  { %v5265_v47 = vadd.f32 %v5175_v0, %v5077_v56 }
 0x78e   :  { %14622 = vmatprep.subr.bf16.mxu0 %v14621_v59 }
 0x78f   :  { %14624 = vmatpush3.bf16.msra.mxu0 %v14621_v59  ;;  %v5177_v37 = vpop.permute.xlu1 %5176 }
 0x790   :  { %v4362_v33 = vpop.permute.xlu0 %4361  ;;  %v5266_v32 = vadd.f32 %v5177_v37, %v5078_v14 }
 0x791   :  { %v4448_v58 = vadd.f32 %v4362_v33, %v4187_v50 }
 0x793   :  { %v4991_v10 = vpop.permute.xlu1 %4990 }
 0x794   :  { %v4993_v17 = vpop.permute.xlu0 %4992  ;;  %v5079_v62 = vadd.f32 %v4991_v10, %v4818_v4 }
 0x795   :  { %v5080_v45 = vadd.f32 %v4993_v17, %v4819_v61 }
 0x797   :  { %v5359_v27 = vpop.permute.xlu1 %5358 }
 0x798   :  { %v5361_v11 = vpop.permute.xlu0 %5360  ;;  %v5449_v29 = vadd.f32 %v5359_v27, %v5265_v47 }
 0x799   :  { %v5450_v24 = vadd.f32 %v5361_v11, %v5266_v32  ;;  %v6122_v32 = vld [vmem:[#allocation4 + $0x70] sm:$0xff] }
 0x79b   :  { %v5867_v16 = vpop.permute.xlu1 %5866 }
 0x79c   :  { %v5869_v26 = vpop.permute.xlu0 %5868 }
 0x79d   :  { %v5924_v42 = vsel %vm3007_vm10, %v5867_v16, %v5869_v26  ;;  %v6116_v26 = vld [vmem:[#allocation4 + $0x40] sm:$0xff] }
 0x79e   :  { %v6010_v44 = vadd.f32 %v5924_v42, %v5449_v29  ;;  %v6113_v29 = vld [vmem:[#allocation4 + $0x28] sm:$0xff]  ;;  %v6119_v42 = vld [vmem:[#allocation4 + $0x58] sm:$0xff] }
 0x79f   :  { %v5871_v7 = vpop.permute.xlu1 %5870 }
 0x7a0   :  { %v5873_v43 = vpop.permute.xlu0 %5872  ;;  %v6060_v30 = vadd.f32 %v21330_v20, %v6010_v44  ;;  %v6125_v44 = vld [vmem:[#allocation4 + $0x88] sm:$0xff] }
 0x7a1   :  { %v5925_v2 = vsel %vm3007_vm10, %v5871_v7, %v5873_v43  ;;  %v6128_v7 = vld [vmem:[#allocation4 + $0xa0] sm:$0xff]  ;;  %v6137_v43 = vld [vmem:[#allocation4 + $0xe8] sm:$0xff] }
 0x7a2   :  { %v6011_v3 = vadd.f32 %v5925_v2, %v5450_v24  ;;  %v6103_v38 = vmax.f32 %v6060_v30, 0.0  ;;  %v6134_v24 = vld [vmem:[#allocation4 + $0xd0] sm:$0xff]  ;;  %v6140_v2 = vld [vmem:[#allocation4 + $0x100] sm:$0xff]  ;;  %v6143_v30 = vld [vmem:[#allocation4 + $0x118] sm:$0xff] }
 0x7a3   :  { %v4550_v28 = vpop.permute.xlu1 %4549 }
 0x7a4   :  { %v6061_v53 = vadd.f32 %v21330_v20, %v6011_v3  ;;  %v5179_v39 = vpop.permute.xlu0 %5178  ;;  %v4636_v41 = vadd.f32 %v4550_v28, %v4448_v58  ;;  %v6146_v3 = vld [vmem:[#allocation4 + $0x130] sm:$0xff]  ;;  %v6149_v28 = vld [vmem:[#allocation4 + $0x148] sm:$0xff] }
 0x7a5   :  { %v5267_v63 = vadd.f32 %v5179_v39, %v5079_v62  ;;  %v6155_v39 = vld [vmem:[#allocation4 + $0x178] sm:$0xff] }
 0x7a6   :  { %v6104_v51 = vmax.f32 %v6061_v53, 0.0  ;;  %v6152_v53 = vld [vmem:[#allocation4 + $0x160] sm:$0xff] }
 0x7a7   :  { %v5181_v9 = vpop.permute.xlu1 %5180 }
 0x7a8   :  { %v4734_v22 = vpop.permute.xlu0 %4733  ;;  %v14625_v55 = vpack.c.bf16 %v6104_v51, %v6103_v38  ;;  %v5268_v57 = vadd.f32 %v5181_v9, %v5080_v45  ;;  %v6158_v38 = vld [vmem:[#allocation4 + $0x190] sm:$0xff]  ;;  %v6161_v51 = vld [vmem:[#allocation4 + $0x1a8] sm:$0xff] }
 0x7a9   :  { %v4820_v8 = vadd.f32 %v4734_v22, %v4636_v41 }
 0x7aa   :  { %14626 = vmatprep.subr.bf16.mxu0 %v14625_v55 }
 0x7ab   :  { %14628 = vmatpush3.bf16.msra.mxu0 %v14625_v55  ;;  %v5363_v19 = vpop.permute.xlu1 %5362 }
 0x7ac   :  { %v5365_v25 = vpop.permute.xlu0 %5364  ;;  %v5451_v49 = vadd.f32 %v5363_v19, %v5267_v63 }
 0x7ad   :  { %v5452_v23 = vadd.f32 %v5365_v25, %v5268_v57 }
 0x7af   :  { %v5875_v1 = vpop.permute.xlu1 %5874 }
 0x7b0   :  { %v5877_v13 = vpop.permute.xlu0 %5876 }
 0x7b1   :  { %v5926_v5 = vsel %vm3007_vm10, %v5875_v1, %v5877_v13 }
 0x7b2   :  { %v6012_v36 = vadd.f32 %v5926_v5, %v5451_v49 }
 0x7b3   :  { %v5879_v60 = vpop.permute.xlu1 %5878 }
 0x7b4   :  { %v5881_v48 = vpop.permute.xlu0 %5880  ;;  %v6062_v40 = vadd.f32 %v21330_v20, %v6012_v36 }
 0x7b5   :  { %v5927_v12 = vsel %vm3007_vm10, %v5879_v60, %v5881_v48 }
 0x7b6   :  { %v6013_v46 = vadd.f32 %v5927_v12, %v5452_v23  ;;  %v6105_v37 = vmax.f32 %v6062_v40, 0.0 }
 0x7b7   :  { %v4995_v6 = vpop.permute.xlu1 %4994 }
 0x7b8   :  { %v6063_v35 = vadd.f32 %v21330_v20, %v6013_v46  ;;  %v5081_v0 = vadd.f32 %v4995_v6, %v4820_v8  ;;  %v5183_v59 = vpop.permute.xlu0 %5182 }
 0x7ba   :  { %v6106_v10 = vmax.f32 %v6063_v35, 0.0  ;;  %v5269_v33 = vadd.f32 %v5183_v59, %v5081_v0 }
 0x7bb   :  { %v5367_v17 = vpop.permute.xlu1 %5366 }
 0x7bc   :  { %v14629_v52 = vpack.c.bf16 %v6106_v10, %v6105_v37  ;;  %v5453_v27 = vadd.f32 %v5367_v17, %v5269_v33  ;;  %v5883_v56 = vpop.permute.xlu0 %5882  ;;  %v6585_v10 = vld [vmem:[%s24809_s6 + $0x8] sm:$0xff]  ;;  %v6590_v33 = vld [vmem:[%s24809_s6 + $0x30] sm:$0x7f] }
 0x7bd   :  { %v14633_v17 = vpack.c.bf16 %v6590_v33, %v6585_v10  ;;  %v6586_v33 = vld [vmem:[%s24809_s6 + $0x10] sm:$0xff] }
 0x7be   :  { %14630 = vmatprep.subr.bf16.mxu0 %v14629_v52 }
 0x7bf   :  { %14632 = vmatpush3.bf16.msra.mxu0 %v14629_v52  ;;  %v5885_v11 = vpop.permute.xlu1 %5884  ;;  %v6584_v52 = vld [vmem:[%s24809_s6] sm:$0xff] }
 0x7c0   :  { %v5928_v15 = vsel %vm3007_vm10, %v5883_v56, %v5885_v11 }
 0x7c1   :  { %v6014_v47 = vadd.f32 %v5928_v15, %v5453_v27  ;;  %v6589_v27 = vld [vmem:[%s24809_s6 + $0x28] sm:$0x7f] }
 0x7c2   :  { %v14636_v56 = vpack.c.bf16 %v6589_v27, %v6584_v52  ;;  %v6591_v52 = vld [vmem:[%s24809_s6 + $0x38] sm:$0x7f]  ;;  %v21459_v27 = vld [vmem:[%s24809_s6 + $0x20] sm:$0xff]  ;;  %v11771_v15 = vld [vmem:[%s24811_s8 + $0x368] sm:$0xff] }
 0x7c3   :  { %v6064_v16 = vadd.f32 %v21330_v20, %v6014_v47  ;;  %v6131_v20 = vld [vmem:[#allocation4 + $0xb8] sm:$0xff]  ;;  %v6587_v47 = vld [vmem:[%s24809_s6 + $0x18] sm:$0xff] }
 0x7c5   :  { %v6107_v14 = vmax.f32 %v6064_v16, 0.0  ;;  %v6592_v16 = vld [vmem:[%s24809_s6 + $0x40] sm:$0x7f] }
 0x7c7   :  { %14369 = vmatprep.subr.msk.mxu0 %vm2628_vm8, %v6107_v14 }
 0x7c8   :  { %14370 = vmatpush3.msk.msra.mxu0 %vm2628_vm8, %v6107_v14 }
 0x7c9   :  { %14372 = vmatmul.mubr.msk.f32.vlgmr.msra.gmra.mrb[100].mxu0 %vm6162_vm12, %v6113_v29  ;;  %14635 = vmatprep.subr.msk.bf16.mxu0 %vm16281_vm9, %v14633_v17  ;;  %v14639_v29 = vpack.c.bf16 %v6592_v16, %v6587_v47 }
 0x7ca   :  { %14374 = vmatprep.mubr.msk.f32.mxu0 %vm6162_vm12, %v6116_v26  ;;  %14638 = vmatpush1.bf16.msk.msra.mxu0 %vm16281_vm9, %v14636_v56  ;;  %v21464_v56 = vld [vmem:[%s24809_s6 + $0x48] sm:$0x7f] }
 0x7cb   :  { %14641 = vmatprep.subr.msk.bf16.mxu0 %vm16281_vm9, %v14639_v29 }
 0x7cd   :  { %14375 = vmatmul.mubr.msk.f32.gmra.mrb[102].mxu0 %vm6162_vm12, %v6119_v42 }
 0x7ce   :  { %14377 = vmatprep.mubr.msk.f32.mxu0 %vm6162_vm12, %v6122_v32 }
 0x7d1   :  { %14378 = vmatmul.mubr.msk.f32.gmra.mrb[104].mxu0 %vm6162_vm12, %v6125_v44 }
 0x7d2   :  { %14380 = vmatprep.mubr.msk.f32.mxu0 %vm6162_vm12, %v6128_v7 }
 0x7d5   :  { %14381 = vmatmul.mubr.msk.f32.gmra.mrb[106].mxu0 %vm6162_vm12, %v6131_v20 }
 0x7d6   :  { %14383 = vmatprep.mubr.msk.f32.mxu0 %vm6162_vm12, %v6134_v24 }
 0x7d9   :  { %14384 = vmatmul.mubr.msk.f32.gmra.mrb[108].mxu0 %vm6162_vm12, %v6137_v43 }
 0x7da   :  { %14386 = vmatprep.mubr.msk.f32.mxu0 %vm6162_vm12, %v6140_v2 }
 0x7dd   :  { %14387 = vmatmul.mubr.msk.f32.gmra.mrb[110].mxu0 %vm6162_vm12, %v6143_v30 }
 0x7de   :  { %14389 = vmatprep.mubr.msk.f32.mxu0 %vm6162_vm12, %v6146_v3 }
 0x7e1   :  { %14390 = vmatmul.mubr.msk.f32.gmra.mrb[112].mxu0 %vm6162_vm12, %v6149_v28 }
 0x7e2   :  { %14392 = vmatprep.mubr.msk.f32.mxu0 %vm6162_vm12, %v6152_v53 }
 0x7e5   :  { %14393 = vmatmul.mubr.msk.f32.gmra.mrb[114].mxu0 %vm6162_vm12, %v6155_v39 }
 0x7e6   :  { %14395 = vmatprep.mubr.msk.f32.mxu0 %vm6162_vm12, %v6158_v38 }
 0x7e9   :  { %14396 = vmatmul.mubr.msk.f32.gmra.mrb[116].mxu0 %vm6162_vm12, %v6161_v51  ;;  %v6286_v9 = vpop.f32.mrb[98].mxu1 }
 0x7ea   :  { %6676 = vmatprep.mubr.f32.mxu0 %v24883_v54  ;;  %v6288_v21 = vpop.f32.mrb[99].mxu1 }
 0x7ed   :  { %v6291_v22 = vpop.f32.mrb[100].mxu1 }
 0x7ee   :  { %v6293_v55 = vpop.f32.mrb[101].mxu1 }
 0x7f9   :  { %v6296_v4 = vpop.f32.mrb[102].mxu1 }
 0x7fa   :  { %v6298_v19 = vpop.f32.mrb[103].mxu1 }
 0x7fd   :  { %v6301_v34 = vpop.f32.mrb[104].mxu1 }
 0x7fe   :  { %v6303_v62 = vpop.f32.mrb[105].mxu1 }
 0x809   :  { %v6306_v25 = vpop.f32.mrb[106].mxu1 }
 0x80a   :  { %v6308_v61 = vpop.f32.mrb[107].mxu1 }
 0x80d   :  { %v6311_v63 = vpop.f32.mrb[108].mxu1 }
 0x80e   :  { %v6313_v18 = vpop.f32.mrb[109].mxu1 }
 0x811   :  { %v6316_v1 = vpop.f32.mrb[110].mxu1 }
 0x812   :  { %v6318_v50 = vpop.f32.mrb[111].mxu1 }
 0x815   :  { %v6321_v45 = vpop.f32.mrb[112].mxu1 }
 0x816   :  { %v6323_v49 = vpop.f32.mrb[113].mxu1 }
 0x819   :  { %v6326_v13 = vpop.f32.mrb[114].mxu1 }
 0x81a   :  { %v6328_v5 = vpop.f32.mrb[115].mxu1 }
 0x81d   :  { %v6331_v58 = vpop.f32.mrb[116].mxu1 }
 0x81e   :  { %v6333_v57 = vpop.f32.mrb[117].mxu1 }
 0x821   :  { %v21370_v36 = vpop.f32.mrb[118].mxu1 }
 0x822   :  { %v6338_v60 = vpop.f32.mrb[119].mxu1 }
 0x825   :  { %v6341_v41 = vpop.f32.mrb[120].mxu1 }
 0x826   :  { %v6343_v23 = vpop.f32.mrb[121].mxu1 }
 0x829   :  { %v21372_v48 = vpop.f32.mrb[122].mxu1 }
 0x82a   :  { %v6348_v12 = vpop.f32.mrb[123].mxu1 }
 0x82d   :  { %v6351_v8 = vpop.f32.mrb[124].mxu1 }
 0x82e   :  { %v6353_v40 = vpop.f32.mrb[125].mxu1 }
 0x831   :  { %v21374_v46 = vpop.f32.mrb[126].mxu1 }
 0x832   :  { %v6358_v6 = vpop.f32.mrb[127].mxu1 }
 0x835   :  { %v21376_v35 = vpop.f32.mrb[128].mxu1 }
 0x836   :  { %v6363_v0 = vpop.f32.mrb[129].mxu1 }
 0x839   :  { %v21378_v59 = vpop.f32.mrb[130].mxu1 }
 0x83a   :  { %v6368_v37 = vpop.f32.mrb[131].mxu1 }
 0x83d   :  { %v21392_v11 = vpop.f32.mrb[132].mxu1 }
 0x83e   :  { %v6373_v14 = vpop.f32.mrb[133].mxu1 }
 0x89c   :  { %v14373_v26 = vpop.f32.mrb[100].mxu0 }
 0x89d   :  { %v21406_v42 = vadd.f32 %v14373_v26, %v6291_v22  ;;  %v6441_v32 = vpop.f32.mrb[101].mxu0 }
 0x89e   :  { %v21408_v44 = vadd.f32 %v6441_v32, %v6286_v9 }
 0x8a0   :  { %v14376_v7 = vpop.f32.mrb[102].mxu0 }
 0x8a1   :  { %v21410_v20 = vadd.f32 %v14376_v7, %v6301_v34  ;;  %v6451_v24 = vpop.f32.mrb[103].mxu0  ;;  %v14642_v7 = vpack.c.bf16 %v6591_v52, %v6586_v33 }
 0x8a2   :  { %v21412_v43 = vadd.f32 %v6451_v24, %v6296_v4  ;;  %v14646_v24 = vpack.c.bf16 %v21464_v56, %v21459_v27 }
 0x8a4   :  { %v14379_v2 = vpop.f32.mrb[104].mxu0 }
 0x8a5   :  { %v6467_v30 = vadd.f32 %v14379_v2, %v6311_v63  ;;  %v6461_v3 = vpop.f32.mrb[105].mxu0  ;;  %v6865_v2 = vld [vmem:[%s24809_s6 + $0x78] sm:$0x3f] }
 0x8a6   :  { %v6462_v28 = vadd.f32 %v6461_v3, %v6306_v25 }
 0x8a7   :  { %v6536_v53 = vrot.slane %v6467_v30, 4 }
 0x8a8   :  { %v6535_v39 = vrot.slane %v6462_v28, 4  ;;  %v14382_v38 = vpop.f32.mrb[106].mxu0 }
 0x8a9   :  { %v6477_v51 = vadd.f32 %v14382_v38, %v6321_v45  ;;  %v6471_v21 = vpop.f32.mrb[107].mxu0  ;;  %v6858_v38 = vld [vmem:[%s24809_s6 + $0x40] sm:$0x80] }
 0x8aa   :  { %v21415_v22 = vsel %vm2628_vm8, %v6535_v39, %v6536_v53  ;;  %v6472_v9 = vadd.f32 %v6471_v21, %v6316_v1 }
 0x8ab   :  { %v6549_v55 = vmax.f32 %v21408_v44, %v21415_v22  ;;  %v6540_v19 = vrot.slane %v6477_v51, 4 }
 0x8ac   :  { %v6538_v34 = vrot.slane %v6472_v9, 4  ;;  %v14385_v4 = vpop.f32.mrb[108].mxu0 }
 0x8ad   :  { %v6487_v62 = vadd.f32 %v14385_v4, %v6331_v58  ;;  %v6481_v61 = vpop.f32.mrb[109].mxu0 }
 0x8ae   :  { %v6539_v63 = vsel %vm2628_vm8, %v6536_v53, %v6538_v34  ;;  %v21421_v25 = vsel %vm2628_vm8, %v6538_v34, %v6540_v19  ;;  %v6482_v18 = vadd.f32 %v6481_v61, %v6326_v13  ;;  %v6863_v34 = vld [vmem:[%s24809_s6 + $0x68] sm:$0xff] }
 0x8af   :  { %v6550_v50 = vmax.f32 %v21406_v42, %v6539_v63  ;;  %v6551_v45 = vmax.f32 %v21412_v43, %v21421_v25  ;;  %v6860_v42 = vld [vmem:[%s24809_s6 + $0x50] sm:$0xff]  ;;  %v7146_v43 = vld [vmem:[%s24809_s6 + $0x80] sm:$0xc0] }
 0x8b0   :  { %v6542_v1 = vrot.slane %v6482_v18, 4  ;;  %v14388_v49 = vpop.f32.mrb[110].mxu0  ;;  %v6887_v9 = vrot.slane %v6860_v42, 7  ;;  %v6901_v18 = vrot.slane %v6865_v2, 7  ;;  %v7156_v25 = vld [vmem:[%s24809_s6 + $0xd0] sm:$0x1f] }
 0x8b1   :  { %v21426_v5 = vadd.f32 %v14388_v49, %v6341_v41  ;;  %v6491_v57 = vpop.f32.mrb[111].mxu0  ;;  %v6856_v41 = vld [vmem:[%s24809_s6 + $0x30] sm:$0x80]  ;;  %v6895_v49 = vrot.slane %v6858_v38, 7  ;;  %v7155_v42 = vld [vmem:[%s24809_s6 + $0xc8] sm:$0x1f] }
 0x8b2   :  { %v21429_v60 = vsel %vm2628_vm8, %v6540_v19, %v6542_v1  ;;  %v21431_v58 = vmax.f32 %v6462_v28, %v6542_v1  ;;  %v6492_v23 = vadd.f32 %v6491_v57, %v21370_v36  ;;  %v6861_v36 = vld [vmem:[%s24809_s6 + $0x58] sm:$0xff]  ;;  %v6889_v47 = vrot.slane %v6856_v41, 7  ;;  %v6859_v41 = vld [vmem:[%s24809_s6 + $0x48] sm:$0x80] }
 0x8b3   :  { %v6552_v13 = vmax.f32 %v21410_v20, %v21429_v60  ;;  %v6890_v29 = vrot.slane %v6861_v36, 7  ;;  %v6857_v57 = vld [vmem:[%s24809_s6 + $0x38] sm:$0x80]  ;;  %v7151_v20 = vld [vmem:[%s24809_s6 + $0xa8] sm:$0xff]  ;;  %v7194_v2 = vrot.slane %v7156_v25, 6 }
 0x8b4   :  { %v14391_v12 = vpop.f32.mrb[112].mxu0  ;;  %v7446_v25 = vld [vmem:[%s24809_s6 + $0x118] sm:$0xf] }
 0x8b5   :  { %v6507_v40 = vadd.f32 %v14391_v12, %v6351_v8  ;;  %v6501_v6 = vpop.f32.mrb[113].mxu0  ;;  %v6866_v8 = vld [vmem:[%s24809_s6 + $0x80] sm:$0x3f]  ;;  %v6891_v61 = vsel %vm274_vm0, %v6889_v47, %v6890_v29  ;;  %v6867_v12 = vld [vmem:[%s24809_s6 + $0x88] sm:$0x3f] }
 0x8b6   :  { %v21437_v0 = vadd.f32 %v6501_v6, %v21372_v48  ;;  %v6903_v26 = vrot.slane %v6866_v8, 7 }
 0x8b7   :  { %v6559_v16 = vrot.slane %v6507_v40, 4 }
 0x8b8   :  { %v14394_v37 = vpop.f32.mrb[114].mxu0  ;;  %v6904_v63 = vsel %vm274_vm0, %v6890_v29, %v6903_v26  ;;  %v7150_v26 = vld [vmem:[%s24809_s6 + $0xa0] sm:$0xff] }
 0x8b9   :  { %v6511_v10 = vpop.f32.mrb[115].mxu0  ;;  %v6517_v48 = vadd.f32 %v14394_v37, %v21376_v35  ;;  %v6855_v35 = vld [vmem:[%s24809_s6 + $0x28] sm:$0x80]  ;;  %v6896_v37 = vrot.slane %v6863_v34, 7  ;;  %v14649_v36 = vpack.c.bf16 %v6904_v63, %v6891_v61  ;;  %v7152_v61 = vld [vmem:[%s24809_s6 + $0xb0] sm:$0xff] }
 0x8ba   :  { %v6512_v17 = vadd.f32 %v6511_v10, %v21374_v46  ;;  %v6886_v53 = vrot.slane %v6855_v35, 7  ;;  %v6864_v10 = vld [vmem:[%s24809_s6 + $0x70] sm:$0xff]  ;;  %v6898_v35 = vrot.slane %v6859_v41, 7  ;;  %v7154_v41 = vld [vmem:[%s24809_s6 + $0xc0] sm:$0xff] }
 0x8bb   :  { %v6562_v46 = vrot.slane %v6517_v48, 4  ;;  %v6905_v48 = vrot.slane %v6867_v12, 7  ;;  %v6897_v56 = vsel %vm274_vm0, %v6895_v49, %v6896_v37 }
 0x8bc   :  { %v6560_v14 = vrot.slane %v6512_v17, 4  ;;  %v14397_v32 = vpop.f32.mrb[116].mxu0  ;;  %v6869_v17 = vld [vmem:[%s24809_s6 + $0x98] sm:$0x3f] }
 0x8bd   :  { %v6521_v30 = vpop.f32.mrb[117].mxu0  ;;  %v6527_v3 = vadd.f32 %v14397_v32, %v21392_v11  ;;  %v6868_v11 = vld [vmem:[%s24809_s6 + $0x90] sm:$0x3f]  ;;  %v7148_v32 = vld [vmem:[%s24809_s6 + $0x90] sm:$0xc0] }
 0x8be   :  { %v6561_v28 = vsel %vm2628_vm8, %v6559_v16, %v6560_v14  ;;  %v6563_v39 = vsel %vm2628_vm8, %v6560_v14, %v6562_v46  ;;  %v6522_v51 = vadd.f32 %v6521_v30, %v21378_v59  ;;  %v6907_v44 = vrot.slane %v6868_v11, 7  ;;  %v7145_v14 = vld [vmem:[%s24809_s6 + $0x78] sm:$0xc0] }
 0x8bf   :  { %v6573_v21 = vmax.f32 %v6487_v62, %v6561_v28  ;;  %v6574_v19 = vmax.f32 %v6492_v23, %v6563_v39  ;;  %v6566_v4 = vrot.slane %v6527_v3, 4  ;;  %v6862_v23 = vld [vmem:[%s24809_s6 + $0x60] sm:$0xff]  ;;  %v6909_v16 = vrot.slane %v6869_v17, 7  ;;  %v7153_v30 = vld [vmem:[%s24809_s6 + $0xb8] sm:$0xff] }
 0x8c0   :  { %v6564_v1 = vrot.slane %v6522_v51, 4  ;;  %v6893_v8 = vrot.slane %v6862_v23, 7  ;;  %v6908_v47 = vsel %vm274_vm0, %v6896_v37, %v6907_v44  ;;  %v7158_v3 = vld [vmem:[%s24809_s6 + $0xe0] sm:$0x1f]  ;;  %v7177_v38 = vrot.slane %v7145_v14, 6 }
 0x8c1   :  { %v21495_v59 = vmax.f32 %v6549_v55, %v6573_v21  ;;  %v21497_v62 = vmax.f32 %v6550_v50, %v6574_v19  ;;  %v6577_v6 = vmax.f32 %v6507_v40, %v6566_v4  ;;  %v14655_v29 = vpack.c.bf16 %v6908_v47, %v6897_v56 }
 0x8c2   :  { %v6565_v22 = vsel %vm2628_vm8, %v6562_v46, %v6564_v1  ;;  %v6567_v55 = vsel %vm2628_vm8, %v6564_v1, %v6566_v4  ;;  %v6899_v46 = vrot.slane %v6864_v10, 7  ;;  %v7178_v51 = vrot.slane %v7150_v26, 6  ;;  %v7147_v4 = vld [vmem:[%s24809_s6 + $0x88] sm:$0xc0]  ;;  %v7157_v1 = vld [vmem:[%s24809_s6 + $0xd8] sm:$0x1f] }
 0x8c3   :  { %13918 = vmatmul.mubr.msk.f32.vlgmr.msra.gmra.mrb[118].mxu0 %vm3254_vm11, %v21495_v59  ;;  %v6575_v50 = vmax.f32 %v21426_v5, %v6565_v22  ;;  %v6576_v40 = vmax.f32 %v21437_v0, %v6567_v55  ;;  %v21521_v33 = vmax.f32 %v21431_v58, %v6577_v6  ;;  %v6892_v5 = vrot.slane %v6857_v57, 7  ;;  %v7159_v10 = vld [vmem:[%s24809_s6 + $0xe8] sm:$0x1f] }
 0x8c4   :  { %14644 = vmatpush1.bf16.msk.msra.mxu0 %vm16281_vm9, %v14642_v7  ;;  %6747 = vmatprep.mubr.f32.mxu0 %v24883_v54  ;;  %v6888_v0 = vsel %vm274_vm0, %v6886_v53, %v6887_v9  ;;  %v6902_v58 = vsel %vm274_vm0, %v6887_v9, %v6901_v18  ;;  %v7180_v7 = vrot.slane %v7146_v43, 6  ;;  %v6900_v53 = vsel %vm274_vm0, %v6898_v35, %v6899_v46 }
 0x8c5   :  { %14645 = vmatprep.subr.bf16.mxu0 %v15850_v31  ;;  %v21535_v52 = vmax.f32 %v6551_v45, %v6575_v50  ;;  %v21540_v27 = vmax.f32 %v6552_v13, %v6576_v40  ;;  %v14652_v45 = vpack.c.bf16 %v6902_v58, %v6888_v0  ;;  %v6894_v60 = vsel %vm274_vm0, %v6892_v5, %v6893_v8  ;;  %v7149_v50 = vld [vmem:[%s24809_s6 + $0x98] sm:$0xc0]  ;;  %v7437_v40 = vld [vmem:[%s24809_s6 + $0xd0] sm:$0xe0] }
 0x8c6   :  { %v6906_v13 = vsel %vm274_vm0, %v6893_v8, %v6905_v48  ;;  %v6910_v39 = vsel %vm274_vm0, %v6899_v46, %v6909_v16  ;;  %v7192_v21 = vrot.slane %v7155_v42, 6  ;;  %v7186_v9 = vrot.slane %v7148_v32, 6  ;;  %v7447_v8 = vld [vmem:[%s24809_s6 + $0x120] sm:$0xf]  ;;  %v7436_v16 = vld [vmem:[%s24809_s6 + $0xc8] sm:$0xe0] }
 0x8c7   :  { %13921 = vmatmul.mubr.msk.f32.vlgmr.msra.gmra.mrb[120].mxu0 %vm3254_vm11, %v21495_v59  ;;  %v14658_v28 = vpack.c.bf16 %v6906_v13, %v6894_v60  ;;  %v6870_v19 = vrot.slane %v21495_v59, 2  ;;  %v7187_v34 = vrot.slane %v7153_v30, 6  ;;  %v7198_v11 = vrot.slane %v7158_v3, 6  ;;  %v7444_v60 = vld [vmem:[%s24809_s6 + $0x108] sm:$0xff]  ;;  %v7449_v13 = vld [vmem:[%s24809_s6 + $0x130] sm:$0xf] }
 0x8c8   :  { %14648 = vmatpush3.bf16.msk.msra.mxu0 %vm16281_vm9, %v14646_v24  ;;  %14402 = vmatprep.mubr.msk.f32.mxu0 %vm15851_vm13, %v24883_v54  ;;  %v7181_v24 = vrot.slane %v7151_v20, 6  ;;  %v14662_v49 = vpack.c.bf16 %v6910_v39, %v6900_v53  ;;  %v7179_v57 = vsel %vm7176_vm14, %v7177_v38, %v7178_v51  ;;  %v7193_v23 = vsel %vm7176_vm14, %v7178_v51, %v7192_v21  ;;  %v7441_v20 = vld [vmem:[%s24809_s6 + $0xf0] sm:$0xff]  ;;  %v7438_v32 = vld [vmem:[%s24809_s6 + $0xd8] sm:$0xe0] }
 0x8c9   :  { %14651 = vmatprep.subr.msk.bf16.mxu0 %vm16281_vm9, %v14649_v36  ;;  %v7183_v12 = vrot.slane %v7147_v4, 6  ;;  %v7184_v6 = vrot.slane %v7152_v61, 6  ;;  %v7188_v44 = vsel %vm7176_vm14, %v7186_v9, %v7187_v34  ;;  %v7199_v22 = vsel %vm7176_vm14, %v7187_v34, %v7198_v11  ;;  %v7442_v36 = vld [vmem:[%s24809_s6 + $0xf8] sm:$0xff]  ;;  %v7440_v34 = vld [vmem:[%s24809_s6 + $0xe8] sm:$0xe0]  ;;  %v7445_v11 = vld [vmem:[%s24809_s6 + $0x110] sm:$0xff] }
 0x8ca   :  { %v7182_v63 = vsel %vm7176_vm14, %v7180_v7, %v7181_v24  ;;  %v7195_v18 = vsel %vm7176_vm14, %v7181_v24, %v7194_v2  ;;  %v7196_v55 = vrot.slane %v7157_v1, 6  ;;  %v14668_v5 = vpack.c.bf16 %v7193_v23, %v7179_v57  ;;  %v7443_v7 = vld [vmem:[%s24809_s6 + $0x100] sm:$0xff]  ;;  %v7448_v24 = vld [vmem:[%s24809_s6 + $0x128] sm:$0xf]  ;;  %v7450_v61 = vld [vmem:[%s24809_s6 + $0x138] sm:$0xf] }
 0x8cb   :  { %14403 = vmatmul.mubr.msk.f32.vlgmr.msra.gmra.mrb[122].mxu0 %vm3254_vm11, %v21495_v59  ;;  %v14665_v37 = vpack.c.bf16 %v7195_v18, %v7182_v63  ;;  %v14671_v48 = vpack.c.bf16 %v7199_v22, %v7188_v44  ;;  %v7189_v17 = vrot.slane %v7149_v50, 6  ;;  %v7190_v0 = vrot.slane %v7154_v41, 6  ;;  %v7728_v22 = vld [vmem:[%s24809_s6 + $0x120] sm:$0xf0]  ;;  %v7738_v50 = vld [vmem:[%s24809_s6 + $0x170] sm:$0x7] }
 0x8cc   :  { %14654 = vmatpush1.bf16.msk.msra.mxu0 %vm16281_vm9, %v14652_v45  ;;  %6992 = vmatprep.mubr.f32.mxu0 %v24883_v54  ;;  %v7200_v58 = vrot.slane %v7159_v10, 6  ;;  %v7185_v56 = vsel %vm7176_vm14, %v7183_v12, %v7184_v6  ;;  %v7197_v47 = vsel %vm7176_vm14, %v7184_v6, %v7196_v55  ;;  %v7471_v35 = vrot.slane %v7437_v40, 5  ;;  %v7439_v45 = vld [vmem:[%s24809_s6 + $0xe0] sm:$0xe0]  ;;  %v7733_v55 = vld [vmem:[%s24809_s6 + $0x148] sm:$0xff] }
 0x8cd   :  { %14657 = vmatprep.subr.msk.bf16.mxu0 %vm16281_vm9, %v14655_v29  ;;  %v7472_v46 = vrot.slane %v7442_v36, 5  ;;  %v7485_v43 = vrot.slane %v7447_v8, 5  ;;  %v14674_v14 = vpack.c.bf16 %v7197_v47, %v7185_v56  ;;  %v7191_v29 = vsel %vm7176_vm14, %v7189_v17, %v7190_v0  ;;  %v7727_v10 = vld [vmem:[%s24809_s6 + $0x118] sm:$0xf0]  ;;  %v7732_v40 = vld [vmem:[%s24809_s6 + $0x140] sm:$0xff] }
 0x8ce   :  { %v7201_v26 = vsel %vm7176_vm14, %v7190_v0, %v7200_v58  ;;  %v7468_v42 = vrot.slane %v7436_v16, 5  ;;  %v7160_v2 = vrot.slane %v21495_v59, 4  ;;  %v7469_v3 = vrot.slane %v7441_v20, 5  ;;  %v7737_v36 = vld [vmem:[%s24809_s6 + $0x168] sm:$0x7] }
 0x8cf   :  { %13926 = vmatmul.mubr.msk.f32.vlgmr.msra.gmra.mrb[118].mxu0 %vm3254_vm11, %v6870_v19  ;;  %v7473_v30 = vsel %vm7467_vm15, %v7471_v35, %v7472_v46  ;;  %v7486_v53 = vsel %vm7467_vm15, %v7472_v46, %v7485_v43  ;;  %v7477_v39 = vrot.slane %v7439_v45, 5  ;;  %v7478_v38 = vrot.slane %v7444_v60, 5  ;;  %v7730_v8 = vld [vmem:[%s24809_s6 + $0x130] sm:$0xf0]  ;;  %v7740_v17 = vld [vmem:[%s24809_s6 + $0x180] sm:$0x7] }
 0x8d0   :  { %14660 = vmatpush1.bf16.msk.msra.mxu0 %vm16281_vm9, %v14658_v28  ;;  %7063 = vmatprep.mubr.f32.mxu0 %v24883_v54  ;;  %v7483_v28 = vrot.slane %v7446_v25, 5  ;;  %v7489_v51 = vrot.slane %v7449_v13, 5  ;;  %v7474_v21 = vrot.slane %v7438_v32, 5  ;;  %v7475_v9 = vrot.slane %v7443_v7, 5 }
 0x8d1   :  { %14661 = vmatprep.subr.bf16.mxu0 %v15850_v31  ;;  %v14678_v4 = vpack.c.bf16 %v7201_v26, %v7191_v29  ;;  %v14681_v63 = vpack.c.bf16 %v7486_v53, %v7473_v30  ;;  %v7470_v18 = vsel %vm7467_vm15, %v7468_v42, %v7469_v3  ;;  %v7480_v23 = vrot.slane %v7440_v34, 5  ;;  %v7734_v29 = vld [vmem:[%s24809_s6 + $0x150] sm:$0xff]  ;;  %v7739_v26 = vld [vmem:[%s24809_s6 + $0x178] sm:$0x7] }
 0x8d2   :  { %v7484_v1 = vsel %vm7467_vm15, %v7469_v3, %v7483_v28  ;;  %v7490_v57 = vsel %vm7467_vm15, %v7478_v38, %v7489_v51  ;;  %v7481_v12 = vrot.slane %v7445_v11, 5  ;;  %v7476_v6 = vsel %vm7467_vm15, %v7474_v21, %v7475_v9  ;;  %v7736_v51 = vld [vmem:[%s24809_s6 + $0x160] sm:$0xff]  ;;  %v7741_v21 = vld [vmem:[%s24809_s6 + $0x188] sm:$0x7] }
 0x8d3   :  { %13929 = vmatmul.mubr.msk.f32.vlgmr.msra.gmra.mrb[120].mxu0 %vm3254_vm11, %v6870_v19  ;;  %v7491_v44 = vrot.slane %v7450_v61, 5  ;;  %v14684_v41 = vpack.c.bf16 %v7484_v1, %v7470_v18  ;;  %v7760_v58 = vrot.slane %v7728_v22, 4  ;;  %v7761_v56 = vrot.slane %v7733_v55, 4  ;;  %v8028_v11 = vld [vmem:[%s24809_s6 + $0x1c0] sm:$0x3]  ;;  %v8022_v61 = vld [vmem:[%s24809_s6 + $0x190] sm:$0xff] }
 0x8d4   :  { %14664 = vmatpush3.bf16.msk.msra.mxu0 %vm16281_vm9, %v14662_v49  ;;  %14409 = vmatprep.mubr.msk.f32.mxu0 %vm15851_vm13, %v24883_v54  ;;  %v7479_v49 = vsel %vm7467_vm15, %v7477_v39, %v7478_v38  ;;  %v7774_v47 = vrot.slane %v7738_v50, 4  ;;  %v7482_v35 = vsel %vm7467_vm15, %v7480_v23, %v7481_v12  ;;  %v7757_v16 = vrot.slane %v7727_v10, 4  ;;  %v7731_v38 = vld [vmem:[%s24809_s6 + $0x138] sm:$0xf0]  ;;  %v8025_v10 = vld [vmem:[%s24809_s6 + $0x1a8] sm:$0xff] }
 0x8d5   :  { %14667 = vmatprep.subr.msk.bf16.mxu0 %vm16281_vm9, %v14665_v37  ;;  %v7492_v46 = vsel %vm7467_vm15, %v7481_v12, %v7491_v44  ;;  %v7758_v43 = vrot.slane %v7732_v40, 4  ;;  %v7772_v20 = vrot.slane %v7737_v36, 4  ;;  %v7766_v25 = vrot.slane %v7730_v8, 4  ;;  %v8030_v40 = vld [vmem:[%s24809_s6 + $0x1d0] sm:$0x3]  ;;  %v8024_v8 = vld [vmem:[%s24809_s6 + $0x1a0] sm:$0xff] }
 0x8d6   :  { %v7778_v60 = vrot.slane %v7740_v17, 4  ;;  %v7451_v13 = vrot.slane %v21495_v59, 6  ;;  %v7762_v42 = vsel %vm2628_vm8, %v7760_v58, %v7761_v56  ;;  %v7775_v32 = vsel %vm2628_vm8, %v7761_v56, %v7774_v47  ;;  %v8029_v58 = vld [vmem:[%s24809_s6 + $0x1c8] sm:$0x3] }
 0x8d7   :  { %14410 = vmatmul.mubr.msk.f32.vlgmr.msra.gmra.mrb[122].mxu0 %vm3254_vm11, %v6870_v19  ;;  %v7487_v19 = vrot.slane %v7448_v24, 5  ;;  %v14694_v59 = vpack.c.bf16 %v7492_v46, %v7482_v35  ;;  %v7759_v7 = vsel %vm2628_vm8, %v7757_v16, %v7758_v43  ;;  %v7773_v24 = vsel %vm2628_vm8, %v7758_v43, %v7772_v20 }
 0x8d8   :  { %14670 = vmatpush1.bf16.msk.msra.mxu0 %vm16281_vm9, %v14668_v5  ;;  %7283 = vmatprep.mubr.f32.mxu0 %v24883_v54  ;;  %v14687_v5 = vpack.c.bf16 %v7490_v57, %v7479_v49  ;;  %v7764_v30 = vrot.slane %v7734_v29, 4  ;;  %v7776_v3 = vrot.slane %v7739_v26, 4  ;;  %v14697_v28 = vpack.c.bf16 %v7775_v32, %v7762_v42  ;;  %v8027_v57 = vld [vmem:[%s24809_s6 + $0x1b8] sm:$0x3]  ;;  %v8308_v42 = vld [vmem:[%s24809_s6 + $0x1c0] sm:$0xfc] }
 0x8d9   :  { %14673 = vmatprep.subr.msk.bf16.mxu0 %vm16281_vm9, %v14671_v48  ;;  %v7488_v37 = vsel %vm7467_vm15, %v7475_v9, %v7487_v19  ;;  %v7735_v48 = vld [vmem:[%s24809_s6 + $0x158] sm:$0xff]  ;;  %v8018_v9 = vld [vmem:[%s24809_s6 + $0x170] sm:$0xf8]  ;;  %v14700_v34 = vpack.c.bf16 %v7773_v24, %v7759_v7  ;;  %v7769_v49 = vrot.slane %v7731_v38, 4  ;;  %v7770_v23 = vrot.slane %v7736_v51, 4  ;;  %v8313_v32 = vld [vmem:[%s24809_s6 + $0x1e8] sm:$0xff] }
 0x8da   :  { %v14690_v0 = vpack.c.bf16 %v7488_v37, %v7476_v6  ;;  %v7767_v45 = vrot.slane %v7735_v48, 4  ;;  %v8023_v19 = vld [vmem:[%s24809_s6 + $0x198] sm:$0xff]  ;;  %v7777_v1 = vsel %vm2628_vm8, %v7764_v30, %v7776_v3  ;;  %v7780_v12 = vrot.slane %v7741_v21, 4 }
 0x8db   :  { %13934 = vmatmul.mubr.msk.f32.vlgmr.msra.gmra.mrb[118].mxu0 %vm3254_vm11, %v7160_v2  ;;  %v8051_v6 = vrot.slane %v8018_v9, 3  ;;  %v8052_v37 = vrot.slane %v8023_v19, 3  ;;  %v8065_v44 = vrot.slane %v8028_v11, 3  ;;  %v8049_v55 = vrot.slane %v8022_v61, 3  ;;  %v8031_v29 = vld [vmem:[%s24809_s6 + $0x1d8] sm:$0x3] }
 0x8dc   :  { %14676 = vmatpush1.bf16.msk.msra.mxu0 %vm16281_vm9, %v14674_v14  ;;  %7354 = vmatprep.mubr.f32.mxu0 %v24883_v54  ;;  %v7729_v14 = vld [vmem:[%s24809_s6 + $0x128] sm:$0xf0]  ;;  %v7768_v53 = vsel %vm2628_vm8, %v7766_v25, %v7767_v45  ;;  %v7779_v39 = vsel %vm2628_vm8, %v7767_v45, %v7778_v60  ;;  %v8063_v50 = vrot.slane %v8027_v57, 3  ;;  %v7771_v48 = vsel %vm2628_vm8, %v7769_v49, %v7770_v23  ;;  %v8307_v19 = vld [vmem:[%s24809_s6 + $0x1b8] sm:$0xfc] }
 0x8dd   :  { %14677 = vmatprep.subr.bf16.mxu0 %v15850_v31  ;;  %v7781_v17 = vsel %vm2628_vm8, %v7770_v23, %v7780_v12  ;;  %v8066_v56 = vsel %vm1840_vm7, %v8052_v37, %v8065_v44  ;;  %v8058_v35 = vrot.slane %v8025_v10, 3  ;;  %v8069_v46 = vrot.slane %v8030_v40, 3  ;;  %v8317_v11 = vld [vmem:[%s24809_s6 + $0x208] sm:$0x1]  ;;  %v8315_v61 = vld [vmem:[%s24809_s6 + $0x1f8] sm:$0xff]  ;;  %v8314_v10 = vld [vmem:[%s24809_s6 + $0x1f0] sm:$0xff] }
 0x8de   :  { %v8064_v43 = vsel %vm1840_vm7, %v8049_v55, %v8063_v50  ;;  %v8055_v25 = vrot.slane %v8024_v8, 3  ;;  %v14710_v45 = vpack.c.bf16 %v7781_v17, %v7771_v48  ;;  %v8067_v60 = vrot.slane %v8029_v58, 3  ;;  %v8320_v49 = vld [vmem:[%s24809_s6 + $0x220] sm:$0x1]  ;;  %v8319_v40 = vld [vmem:[%s24809_s6 + $0x218] sm:$0x1] }
 0x8df   :  { %13937 = vmatmul.mubr.msk.f32.vlgmr.msra.gmra.mrb[120].mxu0 %vm3254_vm11, %v7160_v2  ;;  %v8341_v38 = vrot.slane %v8308_v42, 2  ;;  %v8342_v51 = vrot.slane %v8313_v32, 2  ;;  %v8338_v12 = vrot.slane %v8307_v19, 2  ;;  %v8353_v44 = vrot.slane %v8317_v11, 2  ;;  %v8599_v19 = vld [vmem:[%s24809_s6 + $0x218] sm:$0xfe] }
 0x8e0   :  { %14680 = vmatpush3.bf16.msk.msra.mxu0 %vm16281_vm9, %v14678_v4  ;;  %14416 = vmatprep.mubr.msk.f32.mxu0 %vm15851_vm13, %v24883_v54  ;;  %v8017_v4 = vld [vmem:[%s24809_s6 + $0x168] sm:$0xf8]  ;;  %v8359_v50 = vrot.slane %v8320_v49, 2  ;;  %v8357_v58 = vrot.slane %v8319_v40, 2  ;;  %v8867_v40 = vld [vmem:[%s24809_s6 + $0x258] sm:$0xff] }
 0x8e1   :  { %14683 = vmatprep.subr.msk.bf16.mxu0 %vm16281_vm9, %v14681_v63  ;;  %v14703_v63 = vpack.c.bf16 %v7779_v39, %v7768_v53  ;;  %v8048_v22 = vrot.slane %v8017_v4, 3  ;;  %v8071_v53 = vrot.slane %v8031_v29, 3  ;;  %v8068_v39 = vsel %vm1840_vm7, %v8055_v25, %v8067_v60  ;;  %v8310_v4 = vld [vmem:[%s24809_s6 + $0x1d0] sm:$0xfc]  ;;  %v8601_v49 = vld [vmem:[%s24809_s6 + $0x228] sm:$0xfe] }
 0x8e2   :  { %v8343_v57 = vsel %vm1148_vm6, %v8341_v38, %v8342_v51 }
 0x8e3   :  { %14417 = vmatmul.mubr.msk.f32.vlgmr.msra.gmra.mrb[122].mxu0 %vm3254_vm11, %v7160_v2  ;;  %v7763_v2 = vrot.slane %v7729_v14, 4  ;;  %v8050_v16 = vsel %vm1840_vm7, %v8048_v22, %v8049_v55  ;;  %v8026_v14 = vld [vmem:[%s24809_s6 + $0x1b0] sm:$0xff]  ;;  %v8347_v22 = vrot.slane %v8310_v4, 2  ;;  %v8348_v55 = vrot.slane %v8315_v61, 2 }
 0x8e4   :  { %14686 = vmatpush1.bf16.msk.msra.mxu0 %vm16281_vm9, %v14684_v41  ;;  %7574 = vmatprep.mubr.f32.mxu0 %v24883_v54  ;;  %v8020_v41 = vld [vmem:[%s24809_s6 + $0x180] sm:$0xf8]  ;;  %v14716_v7 = vpack.c.bf16 %v8064_v43, %v8050_v16  ;;  %v8321_v16 = vld [vmem:[%s24809_s6 + $0x228] sm:$0x1]  ;;  %v8598_v43 = vld [vmem:[%s24809_s6 + $0x210] sm:$0xfe] }
 0x8e5   :  { %14689 = vmatprep.subr.msk.bf16.mxu0 %vm16281_vm9, %v14687_v5  ;;  %v7765_v18 = vsel %vm2628_vm8, %v7763_v2, %v7764_v30  ;;  %v8019_v5 = vld [vmem:[%s24809_s6 + $0x178] sm:$0xf8]  ;;  %v8057_v47 = vrot.slane %v8020_v41, 3  ;;  %v8070_v2 = vsel %vm1840_vm7, %v8058_v35, %v8069_v46  ;;  %v8309_v41 = vld [vmem:[%s24809_s6 + $0x1c8] sm:$0xfc]  ;;  %v8360_v46 = vsel %vm1148_vm6, %v8348_v55, %v8359_v50 }
 0x8e6   :  { %v14706_v36 = vpack.c.bf16 %v7777_v1, %v7765_v18  ;;  %v8054_v20 = vrot.slane %v8019_v5, 3  ;;  %v8344_v17 = vrot.slane %v8309_v41, 2  ;;  %v8621_v42 = vrot.slane %v8598_v43, 1  ;;  %v8868_v41 = vld [vmem:[%s24809_s6 + $0x260] sm:$0xff] }
 0x8e7   :  { %13942 = vmatmul.mubr.msk.f32.vlgmr.msra.gmra.mrb[118].mxu0 %vm3254_vm11, %v7451_v13  ;;  %v8059_v24 = vsel %vm1840_vm7, %v8057_v47, %v8058_v35  ;;  %v8316_v47 = vld [vmem:[%s24809_s6 + $0x200] sm:$0xff]  ;;  %v8349_v35 = vsel %vm1148_vm6, %v8347_v22, %v8348_v55  ;;  %v8607_v55 = vrot.slane %v21497_v62, 6 }
 0x8e8   :  { %14692 = vmatpush1.bf16.msk.msra.mxu0 %vm16281_vm9, %v14690_v0  ;;  %7645 = vmatprep.mubr.f32.mxu0 %v24883_v54  ;;  %v8053_v0 = vsel %vm1840_vm7, %v8051_v6, %v8052_v37  ;;  %v8056_v30 = vsel %vm1840_vm7, %v8054_v20, %v8055_v25  ;;  %v14719_v9 = vpack.c.bf16 %v8070_v2, %v8059_v24  ;;  %v8032_v37 = vrot.slane %v21497_v62, 2  ;;  %v8603_v20 = vld [vmem:[%s24809_s6 + $0x238] sm:$0xff]  ;;  %v8600_v24 = vld [vmem:[%s24809_s6 + $0x220] sm:$0xfe]  ;;  %v8605_v2 = vld [vmem:[%s24809_s6 + $0x248] sm:$0xff] }
 0x8e9   :  { %14693 = vmatprep.subr.bf16.mxu0 %v15850_v31  ;;  %v14713_v26 = vpack.c.bf16 %v8066_v56, %v8053_v0  ;;  %v8345_v0 = vrot.slane %v8314_v10, 2  ;;  %v8311_v56 = vld [vmem:[%s24809_s6 + $0x1d8] sm:$0xfc]  ;;  %v8351_v60 = vrot.slane %v8316_v47, 2  ;;  %v8622_v32 = vrot.slane %v8603_v20, 1 }
 0x8ea   :  { %v8873_v10 = vld [vmem:[%s24809_s6 + $0x288] sm:$0x7f]  ;;  %v11673_v47 = vld [vmem:[%s24811_s8 + $0x58] sm:$0xff] }
 0x8eb   :  { %13945 = vmatmul.mubr.msk.f32.vlgmr.msra.gmra.mrb[120].mxu0 %vm3254_vm11, %v7451_v13  ;;  %v8358_v29 = vsel %vm1148_vm6, %v8345_v0, %v8357_v58 }
 0x8ec   :  { %14696 = vmatpush3.bf16.msk.msra.mxu0 %vm16281_vm9, %v14694_v59  ;;  %14423 = vmatprep.mubr.msk.f32.mxu0 %vm15851_vm13, %v24883_v54  ;;  %v8318_v59 = vld [vmem:[%s24809_s6 + $0x210] sm:$0x1] }
 0x8ed   :  { %14699 = vmatprep.subr.msk.bf16.mxu0 %vm16281_vm9, %v14697_v28  ;;  %v8061_v28 = vrot.slane %v8026_v14, 3  ;;  %v8355_v21 = vrot.slane %v8318_v59, 2  ;;  %v8346_v14 = vsel %vm1148_vm6, %v8344_v17, %v8345_v0  ;;  %v8597_v59 = vld [vmem:[%s24809_s6 + $0x208] sm:$0xfe]  ;;  %v8870_v17 = vld [vmem:[%s24809_s6 + $0x270] sm:$0xff] }
 0x8ee   :  { %v8875_v0 = vld [vmem:[%s24809_s6 + $0x298] sm:$0x7f] }
 0x8ef   :  { %14424 = vmatmul.mubr.msk.f32.vlgmr.msra.gmra.mrb[122].mxu0 %vm3254_vm11, %v7451_v13  ;;  %v8021_v13 = vld [vmem:[%s24809_s6 + $0x188] sm:$0xf8]  ;;  %v8072_v1 = vsel %vm1840_vm7, %v8061_v28, %v8071_v53  ;;  %v8356_v23 = vsel %vm1148_vm6, %v8342_v51, %v8355_v21  ;;  %v8623_v51 = vsel %vm860_vm5, %v8621_v42, %v8622_v32  ;;  %v8627_v21 = vrot.slane %v8600_v24, 1  ;;  %v9123_v42 = vld [vmem:[%s24809_s6 + $0x2d8] sm:$0x3f] }
 0x8f0   :  { %14702 = vmatpush1.bf16.msk.msra.mxu0 %vm16281_vm9, %v14700_v34  ;;  %7864 = vmatprep.mubr.f32.mxu0 %v24883_v54  ;;  %v8060_v3 = vrot.slane %v8021_v13, 3  ;;  %v8312_v34 = vld [vmem:[%s24809_s6 + $0x1e0] sm:$0xff]  ;;  %v14729_v5 = vpack.c.bf16 %v8356_v23, %v8343_v57  ;;  %v14735_v13 = vpack.c.bf16 %v8360_v46, %v8349_v35  ;;  %v14745_v4 = vpack.c.bf16 %v8622_v32, %v8623_v51  ;;  %v8606_v57 = vld [vmem:[%s24809_s6 + $0x250] sm:$0xff] }
 0x8f1   :  { %14705 = vmatprep.subr.msk.bf16.mxu0 %vm16281_vm9, %v14703_v63  ;;  %v14722_v63 = vpack.c.bf16 %v8068_v39, %v8056_v30  ;;  %v8339_v6 = vrot.slane %v8312_v34, 2  ;;  %v14738_v30 = vpack.c.bf16 %v8358_v29, %v8346_v14  ;;  %v8618_v39 = vrot.slane %v8597_v59, 1  ;;  %v8604_v34 = vld [vmem:[%s24809_s6 + $0x240] sm:$0xff]  ;;  %v11688_v14 = vld [vmem:[%s24811_s8 + $0xd0] sm:$0xff]  ;;  %v8869_v29 = vld [vmem:[%s24809_s6 + $0x268] sm:$0xff] }
 0x8f2   :  { %v8062_v18 = vsel %vm1840_vm7, %v8060_v3, %v8061_v28  ;;  %v8322_v28 = vrot.slane %v21497_v62, 4  ;;  %v11678_v35 = vld [vmem:[%s24811_s8 + $0x80] sm:$0xff]  ;;  %v14761_v46 = vpack.c.bf16 %v8873_v10, %v8868_v41  ;;  %v9117_v59 = vld [vmem:[%s24809_s6 + $0x2a8] sm:$0xff] }
 0x8f3   :  { %13950 = vmatmul.mubr.msk.f32.vlgmr.msra.gmra.mrb[118].mxu0 %vm3254_vm11, %v21497_v62  ;;  %v8340_v8 = vsel %vm1148_vm6, %v8338_v12, %v8339_v6  ;;  %v8354_v48 = vsel %vm1148_vm6, %v8339_v6, %v8353_v44  ;;  %v8631_v44 = vrot.slane %v8606_v57, 1  ;;  %v14925_v20 = vpack.c.bf16 %v11678_v35, %v11673_v47  ;;  %v9112_v32 = vld [vmem:[%s24809_s6 + $0x280] sm:$0x80] }
 0x8f4   :  { %14708 = vmatpush1.bf16.msk.msra.mxu0 %vm16281_vm9, %v14706_v36  ;;  %7935 = vmatprep.mubr.f32.mxu0 %v24883_v54  ;;  %v14726_v36 = vpack.c.bf16 %v8072_v1, %v8062_v18  ;;  %v14732_v25 = vpack.c.bf16 %v8354_v48, %v8340_v8  ;;  %v8625_v18 = vrot.slane %v8604_v34, 1  ;;  %v11662_v8 = vld [vmem:[%s24811_s8] sm:$0xff]  ;;  %v11693_v34 = vld [vmem:[%s24811_s8 + $0xf8] sm:$0xff] }
 0x8f5   :  { %14709 = vmatprep.subr.bf16.mxu0 %v15850_v31 }
 0x8f7   :  { %13953 = vmatmul.mubr.msk.f32.vlgmr.msra.gmra.mrb[120].mxu0 %vm3254_vm11, %v21497_v62 }
 0x8f8   :  { %14712 = vmatpush3.bf16.msk.msra.mxu0 %vm16281_vm9, %v14710_v45  ;;  %14430 = vmatprep.mubr.msk.f32.mxu0 %vm15851_vm13, %v24883_v54  ;;  %v8350_v45 = vrot.slane %v8311_v56, 2  ;;  %v11667_v56 = vld [vmem:[%s24811_s8 + $0x28] sm:$0xff] }
 0x8f9   :  { %14715 = vmatprep.subr.msk.bf16.mxu0 %vm16281_vm9, %v14713_v26  ;;  %v8361_v26 = vrot.slane %v8321_v16, 2  ;;  %v9113_v16 = vld [vmem:[%s24809_s6 + $0x288] sm:$0x80]  ;;  %v14923_v43 = vpack.c.bf16 %v11667_v56, %v11662_v8  ;;  %v11708_v8 = vld [vmem:[%s24811_s8 + $0x170] sm:$0xff] }
 0x8fa   :  { %v8352_v3 = vsel %vm1148_vm6, %v8350_v45, %v8351_v60  ;;  %v11677_v45 = vld [vmem:[%s24811_s8 + $0x78] sm:$0xff]  ;;  %v9126_v56 = vld [vmem:[%s24809_s6 + $0x2f0] sm:$0x3f] }
 0x8fb   :  { %14431 = vmatmul.mubr.msk.f32.vlgmr.msra.gmra.mrb[122].mxu0 %vm3254_vm11, %v21497_v62  ;;  %v8362_v53 = vsel %vm1148_vm6, %v8351_v60, %v8361_v26  ;;  %v8872_v62 = vld [vmem:[%s24809_s6 + $0x280] sm:$0x7f]  ;;  %v9118_v60 = vld [vmem:[%s24809_s6 + $0x2b0] sm:$0xff] }
 0x8fc   :  { %14718 = vmatpush1.bf16.msk.msra.mxu0 %vm16281_vm9, %v14716_v7  ;;  %8154 = vmatprep.mubr.f32.mxu0 %v24883_v54  ;;  %v8602_v7 = vld [vmem:[%s24809_s6 + $0x230] sm:$0xff]  ;;  %v14742_v11 = vpack.c.bf16 %v8362_v53, %v8352_v3  ;;  %v14764_v24 = vpack.c.bf16 %v8872_v62, %v8867_v40  ;;  %v11687_v3 = vld [vmem:[%s24811_s8 + $0xc8] sm:$0xff]  ;;  %v9115_v53 = vld [vmem:[%s24809_s6 + $0x298] sm:$0x80] }
 0x8fd   :  { %14721 = vmatprep.subr.msk.bf16.mxu0 %vm16281_vm9, %v14719_v9  ;;  %v8619_v38 = vrot.slane %v8602_v7, 1  ;;  %v8628_v9 = vrot.slane %v8605_v2, 1  ;;  %v8874_v26 = vld [vmem:[%s24809_s6 + $0x290] sm:$0x7f] }
 0x8fe   :  { %v9122_v2 = vld [vmem:[%s24809_s6 + $0x2d0] sm:$0x3f]  ;;  %v14770_v57 = vpack.c.bf16 %v8874_v26, %v8869_v29  ;;  %v9402_v29 = vld [vmem:[%s24809_s6 + $0x2d0] sm:$0xc0] }
 0x8ff   :  { %13958 = vmatmul.mubr.msk.f32.vlgmr.msra.gmra.mrb[118].mxu0 %vm3254_vm11, %v8032_v37  ;;  %v8620_v61 = vsel %vm860_vm5, %v8618_v39, %v8619_v38  ;;  %v8629_v1 = vsel %vm860_vm5, %v8627_v21, %v8628_v9  ;;  %v9120_v39 = vld [vmem:[%s24809_s6 + $0x2c0] sm:$0xff]  ;;  %v9146_v21 = vrot.slane %v9113_v16, 7 }
 0x900   :  { %14724 = vmatpush1.bf16.msk.msra.mxu0 %vm16281_vm9, %v14722_v63  ;;  %8225 = vmatprep.mubr.f32.mxu0 %v24883_v54  ;;  %v8624_v63 = vrot.slane %v8599_v19, 1  ;;  %v14748_v23 = vpack.c.bf16 %v8619_v38, %v8620_v61  ;;  %v14751_v12 = vpack.c.bf16 %v8628_v9, %v8629_v1  ;;  %v9125_v38 = vld [vmem:[%s24809_s6 + $0x2e8] sm:$0x3f]  ;;  %v9147_v9 = vrot.slane %v9118_v60, 7  ;;  %v22102_v1 = vld [vmem:[%s24809_s6 + $0x2b8] sm:$0xff] }
 0x901   :  { %14725 = vmatprep.subr.bf16.mxu0 %v15850_v31  ;;  %v9160_v19 = vrot.slane %v9123_v42, 7  ;;  %v9144_v61 = vrot.slane %v9117_v59, 7  ;;  %v9407_v59 = vld [vmem:[%s24809_s6 + $0x2f8] sm:$0xff] }
 0x902   :  { %v8626_v6 = vsel %vm860_vm5, %v8624_v63, %v8625_v18  ;;  %v9158_v63 = vrot.slane %v9122_v2, 7  ;;  %v9148_v10 = vsel %vm274_vm0, %v9146_v21, %v9147_v9 }
 0x903   :  { %13961 = vmatmul.mubr.msk.f32.vlgmr.msra.gmra.mrb[120].mxu0 %vm3254_vm11, %v8032_v37  ;;  %v14754_v22 = vpack.c.bf16 %v8625_v18, %v8626_v6  ;;  %v9114_v18 = vld [vmem:[%s24809_s6 + $0x290] sm:$0x80]  ;;  %v9164_v6 = vrot.slane %v9125_v38, 7  ;;  %v9161_v40 = vsel %vm274_vm0, %v9147_v9, %v9160_v19  ;;  %v9166_v38 = vrot.slane %v9126_v56, 7  ;;  %v11717_v19 = vld [vmem:[%s24811_s8 + $0x1b8] sm:$0xff] }
 0x904   :  { %14728 = vmatpush3.bf16.msk.msra.mxu0 %vm16281_vm9, %v14726_v36  ;;  %14437 = vmatprep.mubr.msk.f32.mxu0 %vm15851_vm13, %v24883_v54  ;;  %v11663_v36 = vld [vmem:[%s24811_s8 + $0x8] sm:$0xff]  ;;  %v9149_v62 = vrot.slane %v9114_v18, 7  ;;  %v14777_v60 = vpack.c.bf16 %v9161_v40, %v9148_v10  ;;  %v11712_v9 = vld [vmem:[%s24811_s8 + $0x190] sm:$0xff]  ;;  %v11722_v10 = vld [vmem:[%s24811_s8 + $0x1e0] sm:$0xff] }
 0x905   :  { %14731 = vmatprep.subr.msk.bf16.mxu0 %vm16281_vm9, %v14729_v5  ;;  %v11668_v5 = vld [vmem:[%s24811_s8 + $0x30] sm:$0xff]  ;;  %v11727_v40 = vld [vmem:[%s24811_s8 + $0x208] sm:$0xff]  ;;  %v11733_v56 = vld [vmem:[%s24811_s8 + $0x238] sm:$0xff] }
 0x906   :  { %v14921_v58 = vpack.c.bf16 %v11668_v5, %v11663_v36  ;;  %v9150_v36 = vrot.slane %v22102_v1, 7  ;;  %v11703_v5 = vld [vmem:[%s24811_s8 + $0x148] sm:$0xff]  ;;  %v9410_v1 = vld [vmem:[%s24809_s6 + $0x310] sm:$0xff] }
 0x907   :  { %14438 = vmatmul.mubr.msk.f32.vlgmr.msra.gmra.mrb[122].mxu0 %vm3254_vm11, %v8032_v37  ;;  %v8630_v37 = vrot.slane %v8601_v49, 1  ;;  %v14937_v26 = vpack.c.bf16 %v11708_v8, %v11703_v5 }
 0x908   :  { %14734 = vmatpush1.bf16.msk.msra.mxu0 %vm16281_vm9, %v14732_v25  ;;  %8444 = vmatprep.mubr.f32.mxu0 %v24883_v54  ;;  %v11672_v25 = vld [vmem:[%s24811_s8 + $0x50] sm:$0xff] }
 0x909   :  { %14737 = vmatprep.subr.msk.bf16.mxu0 %vm16281_vm9, %v14735_v13  ;;  %v8632_v50 = vsel %vm860_vm5, %v8630_v37, %v8631_v44  ;;  %14922 = vmatprep.subr.bf16.mxu1 %v14921_v58  ;;  %v11683_v13 = vld [vmem:[%s24811_s8 + $0xa8] sm:$0xff]  ;;  %v14927_v7 = vpack.c.bf16 %v11677_v45, %v11672_v25  ;;  %v11692_v37 = vld [vmem:[%s24811_s8 + $0xf0] sm:$0xff]  ;;  %v11702_v25 = vld [vmem:[%s24811_s8 + $0x140] sm:$0xff] }
 0x90a   :  { %v14758_v48 = vpack.c.bf16 %v8631_v44, %v8632_v50  ;;  %14924 = vmatpush1.bf16.msra.mxu1 %v14923_v43  ;;  %v14929_v51 = vpack.c.bf16 %v11688_v14, %v11683_v13  ;;  %v11697_v44 = vld [vmem:[%s24811_s8 + $0x118] sm:$0xff]  ;;  %v9124_v50 = vld [vmem:[%s24809_s6 + $0x2e0] sm:$0x3f]  ;;  %v22145_v58 = vld [vmem:[%s24809_s6 + $0x2c8] sm:$0xff] }
 0x90b   :  { %13966 = vmatmul.mubr.msk.f32.vlgmr.msra.gmra.mrb[118].mxu0 %vm3254_vm11, %v8322_v28  ;;  %14926 = vmatprep.subr.bf16.mxu1 %v14925_v20  ;;  %v14935_v47 = vpack.c.bf16 %v11697_v44, %v11692_v37  ;;  %v9162_v43 = vrot.slane %v9124_v50, 7  ;;  %v9403_v20 = vld [vmem:[%s24809_s6 + $0x2d8] sm:$0xc0]  ;;  %v11707_v45 = vld [vmem:[%s24811_s8 + $0x168] sm:$0xff]  ;;  %v9408_v13 = vld [vmem:[%s24809_s6 + $0x300] sm:$0xff]  ;;  %v14943_v44 = vpack.c.bf16 %v11717_v19, %v11712_v9 }
 0x90c   :  { %14740 = vmatpush1.bf16.msk.msra.mxu0 %vm16281_vm9, %v14738_v30  ;;  %8515 = vmatprep.mubr.f32.mxu0 %v24883_v54  ;;  %v11682_v30 = vld [vmem:[%s24811_s8 + $0xa0] sm:$0xff]  ;;  %v9413_v14 = vld [vmem:[%s24809_s6 + $0x328] sm:$0x1f]  ;;  %v9437_v21 = vrot.slane %v9408_v13, 6  ;;  %v11732_v13 = vld [vmem:[%s24811_s8 + $0x230] sm:$0xff] }
 0x90d   :  { %14741 = vmatprep.subr.bf16.mxu0 %v15850_v31  ;;  %v14931_v49 = vpack.c.bf16 %v11687_v3, %v11682_v30  ;;  %v9156_v3 = vrot.slane %v22145_v58, 7  ;;  %v9409_v37 = vld [vmem:[%s24809_s6 + $0x308] sm:$0xff] }
 0x90e   :  { %14928 = vmatpush1.bf16.msra.mxu1 %v14927_v7  ;;  %v11713_v7 = vld [vmem:[%s24811_s8 + $0x198] sm:$0xff] }
 0x90f   :  { %13969 = vmatmul.mubr.msk.f32.vlgmr.msra.gmra.mrb[120].mxu0 %vm3254_vm11, %v8322_v28  ;;  %14930 = vmatprep.subr.bf16.mxu1 %v14929_v51  ;;  %v9436_v51 = vrot.slane %v9403_v20, 6  ;;  %v9411_v20 = vld [vmem:[%s24809_s6 + $0x318] sm:$0xff] }
 0x910   :  { %14744 = vmatpush3.bf16.msk.msra.mxu0 %vm16281_vm9, %v14742_v11  ;;  %14444 = vmatprep.mubr.msk.f32.mxu0 %vm15851_vm13, %v24883_v54  ;;  %v11698_v11 = vld [vmem:[%s24811_s8 + $0x120] sm:$0xff] }
 0x911   :  { %14747 = vmatprep.subr.msk.bf16.mxu0 %vm16281_vm9, %v14745_v4  ;;  %v9143_v4 = vrot.slane %v9112_v32, 7  ;;  %v14933_v41 = vpack.c.bf16 %v11698_v11, %v11693_v34  ;;  %v22175_v32 = vsel %vm274_vm0, %v9149_v62, %v9150_v36  ;;  %v9450_v34 = vrot.slane %v9413_v14, 6  ;;  %v11737_v14 = vld [vmem:[%s24811_s8 + $0x258] sm:$0xff] }
 0x912   :  { %14932 = vmatpush1.bf16.msra.mxu1 %v14931_v49  ;;  %v9433_v11 = vrot.slane %v9402_v29, 6  ;;  %v11723_v49 = vld [vmem:[%s24811_s8 + $0x1e8] sm:$0xff]  ;;  %v9438_v50 = vsel %vm7176_vm14, %v9436_v51, %v9437_v21  ;;  %v22246_v62 = vrot.slane %v21535_v52, 2  ;;  %v9692_v51 = vld [vmem:[%s24809_s6 + $0x320] sm:$0xe0]  ;;  %v14951_v9 = vpack.c.bf16 %v11737_v14, %v11732_v13 }
 0x913   :  { %14445 = vmatmul.mubr.msk.f32.vlgmr.msra.gmra.mrb[122].mxu0 %vm3254_vm11, %v8322_v28  ;;  %v14767_v28 = vpack.c.bf16 %v8875_v0, %v8870_v17  ;;  %v9159_v17 = vsel %vm274_vm0, %v9144_v61, %v9158_v63  ;;  %v22140_v0 = vld [vmem:[%s24809_s6 + $0x2a0] sm:$0x80]  ;;  %14934 = vmatprep.subr.bf16.mxu1 %v14933_v41  ;;  %v9414_v41 = vld [vmem:[%s24809_s6 + $0x330] sm:$0x1f] }
 0x914   :  { %14750 = vmatpush1.bf16.msk.msra.mxu0 %vm16281_vm9, %v14748_v23  ;;  %8714 = vmatprep.mubr.f32.mxu0 %v24883_v54  ;;  %v9152_v23 = vrot.slane %v9115_v53, 7  ;;  %v9155_v30 = vrot.slane %v22140_v0, 7  ;;  %v14939_v53 = vpack.c.bf16 %v11707_v45, %v11702_v25  ;;  %v9443_v0 = vrot.slane %v9410_v1, 6  ;;  %v9702_v1 = vld [vmem:[%s24809_s6 + $0x370] sm:$0xf] }
 0x915   :  { %14753 = vmatprep.subr.msk.bf16.mxu0 %vm16281_vm9, %v14751_v12  ;;  %v9153_v12 = vrot.slane %v9120_v39, 7  ;;  %v9163_v39 = vsel %vm274_vm0, %v9150_v36, %v9162_v43  ;;  %v9451_v36 = vsel %vm7176_vm14, %v9437_v21, %v9450_v34  ;;  %v9406_v43 = vld [vmem:[%s24809_s6 + $0x2f0] sm:$0xc0]  ;;  %v14947_v25 = vpack.c.bf16 %v11727_v40, %v11722_v10  ;;  %v9697_v21 = vld [vmem:[%s24809_s6 + $0x348] sm:$0xff] }
 0x916   :  { %14936 = vmatpush1.bf16.msra.mxu1 %v14935_v47  ;;  %v11738_v47 = vld [vmem:[%s24811_s8 + $0x260] sm:$0xff]  ;;  %v14793_v29 = vpack.c.bf16 %v9451_v36, %v9438_v50  ;;  %v9723_v50 = vrot.slane %v9692_v51, 5 }
 0x917   :  { %13974 = vmatmul.mubr.msk.f32.vlgmr.msra.gmra.mrb[118].mxu0 %vm3254_vm11, %v8607_v55  ;;  %v9165_v16 = vsel %vm274_vm0, %v9153_v12, %v9164_v6  ;;  %14938 = vmatprep.subr.bf16.mxu1 %v14937_v26  ;;  %v9404_v6 = vld [vmem:[%s24809_s6 + $0x2e0] sm:$0xc0] }
 0x918   :  { %14756 = vmatpush1.bf16.msk.msra.mxu0 %vm16281_vm9, %v14754_v22  ;;  %8785 = vmatprep.mubr.f32.mxu0 %v24883_v54  ;;  %v8871_v22 = vld [vmem:[%s24809_s6 + $0x278] sm:$0xff]  ;;  %v9988_v51 = vld [vmem:[%s24809_s6 + $0x3a0] sm:$0xff] }
 0x919   :  { %14757 = vmatprep.subr.bf16.mxu0 %v15850_v31 }
 0x91a   :  { %14940 = vmatpush1.bf16.msra.mxu1 %v14939_v53  ;;  %v11748_v53 = vld [vmem:[%s24811_s8 + $0x2b0] sm:$0xff] }
 0x91b   :  { %13977 = vmatmul.mubr.msk.f32.vlgmr.msra.gmra.mrb[120].mxu0 %vm3254_vm11, %v8607_v55 }
 0x91c   :  { %14760 = vmatpush3.bf16.msk.msra.mxu0 %vm16281_vm9, %v14758_v48  ;;  %14451 = vmatprep.mubr.msk.f32.mxu0 %vm15851_vm13, %v24883_v54  ;;  %v9145_v48 = vsel %vm274_vm0, %v9143_v4, %v9144_v61  ;;  %v9434_v4 = vrot.slane %v9407_v59, 6  ;;  %v9405_v61 = vld [vmem:[%s24809_s6 + $0x2e8] sm:$0xc0]  ;;  %v9703_v59 = vld [vmem:[%s24809_s6 + $0x378] sm:$0xf] }
 0x91d   :  { %14763 = vmatprep.subr.msk.bf16.mxu0 %vm16281_vm9, %v14761_v46  ;;  %v9154_v46 = vsel %vm274_vm0, %v9152_v23, %v9153_v12  ;;  %v14780_v42 = vpack.c.bf16 %v9159_v17, %v9145_v48  ;;  %v14786_v23 = vpack.c.bf16 %v9163_v39, %v22175_v32  ;;  %v9415_v12 = vld [vmem:[%s24809_s6 + $0x338] sm:$0x1f]  ;;  %v9442_v17 = vrot.slane %v9405_v61, 6  ;;  %v9698_v32 = vld [vmem:[%s24809_s6 + $0x350] sm:$0xff]  ;;  %v11742_v61 = vld [vmem:[%s24811_s8 + $0x280] sm:$0xff] }
 0x91e   :  { %v14783_v2 = vpack.c.bf16 %v9165_v16, %v9154_v46  ;;  %v22252_v5 = vsel %vm7176_vm14, %v9433_v11, %v9434_v4  ;;  %v9454_v58 = vrot.slane %v9415_v12, 6  ;;  %v9440_v46 = vrot.slane %v9409_v37, 6  ;;  %v9705_v37 = vld [vmem:[%s24809_s6 + $0x388] sm:$0xf] }
 0x91f   :  { %14452 = vmatmul.mubr.msk.f32.vlgmr.msra.gmra.mrb[122].mxu0 %vm3254_vm11, %v8607_v55  ;;  %v8876_v55 = vld [vmem:[%s24809_s6 + $0x2a0] sm:$0x7f]  ;;  %v9452_v16 = vrot.slane %v9414_v41, 6  ;;  %v9727_v11 = vrot.slane %v9698_v32, 5  ;;  %v9724_v41 = vrot.slane %v9697_v21, 5 }
 0x920   :  { %14766 = vmatpush1.bf16.msk.msra.mxu0 %vm16281_vm9, %v14764_v24  ;;  %8959 = vmatprep.mubr.f32.mxu0 %v24883_v54  ;;  %v14774_v35 = vpack.c.bf16 %v8876_v55, %v8871_v22  ;;  %v11718_v24 = vld [vmem:[%s24811_s8 + $0x1c0] sm:$0xff]  ;;  %v9157_v22 = vsel %vm274_vm0, %v9155_v30, %v9156_v3  ;;  %v9167_v55 = vsel %vm274_vm0, %v9156_v3, %v9166_v38  ;;  %v9445_v30 = vrot.slane %v9406_v43, 6  ;;  %v11768_v43 = vld [vmem:[%s24811_s8 + $0x350] sm:$0xff]  ;;  %v9993_v21 = vld [vmem:[%s24809_s6 + $0x3c8] sm:$0x7] }
 0x921   :  { %14769 = vmatprep.subr.msk.bf16.mxu0 %vm16281_vm9, %v14767_v28  ;;  %v9412_v28 = vld [vmem:[%s24809_s6 + $0x320] sm:$0x1f]  ;;  %v14941_v63 = vpack.c.bf16 %v11718_v24, %v11713_v7  ;;  %v14790_v45 = vpack.c.bf16 %v9167_v55, %v9157_v22  ;;  %v14949_v7 = vpack.c.bf16 %v11738_v47, %v11733_v56  ;;  %v9444_v24 = vsel %vm7176_vm14, %v9442_v17, %v9443_v0  ;;  %v9694_v56 = vld [vmem:[%s24809_s6 + $0x330] sm:$0xe0]  ;;  %v9699_v47 = vld [vmem:[%s24809_s6 + $0x358] sm:$0xff] }
 0x922   :  { %v9448_v18 = vrot.slane %v9412_v28, 6  ;;  %v9446_v3 = vrot.slane %v9411_v20, 6  ;;  %v11743_v28 = vld [vmem:[%s24811_s8 + $0x288] sm:$0xff]  ;;  %v9453_v38 = vsel %vm7176_vm14, %v9440_v46, %v9452_v16  ;;  %v11758_v22 = vld [vmem:[%s24811_s8 + $0x300] sm:$0xff]  ;;  %v22347_v55 = vrot.slane %v21535_v52, 4 }
 0x923   :  { %13982 = vmatmul.mubr.msk.f32.vlgmr.msra.gmra.mrb[118].mxu0 %vm3254_vm11, %v21535_v52  ;;  %14942 = vmatprep.subr.bf16.mxu1 %v14941_v63  ;;  %v11747_v63 = vld [vmem:[%s24811_s8 + $0x2a8] sm:$0xff]  ;;  %v9729_v14 = vrot.slane %v9694_v56, 5 }
 0x924   :  { %14772 = vmatpush1.bf16.msk.msra.mxu0 %vm16281_vm9, %v14770_v57  ;;  %9030 = vmatprep.mubr.f32.mxu0 %v24883_v54  ;;  %v11728_v57 = vld [vmem:[%s24811_s8 + $0x210] sm:$0xff]  ;;  %v22255_v48 = vsel %vm7176_vm14, %v9434_v4, %v9448_v18  ;;  %v9740_v4 = vrot.slane %v9703_v59, 5  ;;  %v14955_v10 = vpack.c.bf16 %v11747_v63, %v11742_v61  ;;  %v11763_v16 = vld [vmem:[%s24811_s8 + $0x328] sm:$0xff]  ;;  %v11777_v63 = vld [vmem:[%s24811_s8 + $0x398] sm:$0xff] }
 0x925   :  { %14773 = vmatprep.subr.bf16.mxu0 %v15850_v31  ;;  %v14945_v8 = vpack.c.bf16 %v11728_v57, %v11723_v49  ;;  %14944 = vmatpush1.bf16.msra.mxu1 %v14943_v44  ;;  %v14796_v26 = vpack.c.bf16 %v22255_v48, %v22252_v5  ;;  %v9695_v49 = vld [vmem:[%s24809_s6 + $0x338] sm:$0xe0]  ;;  %v9700_v57 = vld [vmem:[%s24809_s6 + $0x360] sm:$0xff]  ;;  %v11772_v61 = vld [vmem:[%s24811_s8 + $0x370] sm:$0xff] }
 0x926   :  { %v11753_v44 = vld [vmem:[%s24811_s8 + $0x2d8] sm:$0xff]  ;;  %v9741_v5 = vsel %vm7467_vm15, %v9727_v11, %v9740_v4  ;;  %v9732_v17 = vrot.slane %v9695_v49, 5 }
 0x927   :  { %13985 = vmatmul.mubr.msk.f32.vlgmr.msra.gmra.mrb[120].mxu0 %vm3254_vm11, %v21535_v52  ;;  %14946 = vmatprep.subr.bf16.mxu1 %v14945_v8  ;;  %v9738_v8 = vrot.slane %v9702_v1, 5  ;;  %v11757_v48 = vld [vmem:[%s24811_s8 + $0x2f8] sm:$0xff] }
 0x928   :  { %14776 = vmatpush3.bf16.msk.msra.mxu0 %vm16281_vm9, %v14774_v35  ;;  %14458 = vmatprep.mubr.msk.f32.mxu0 %vm15851_vm13, %v24883_v54  ;;  %v9439_v35 = vrot.slane %v9404_v6, 6  ;;  %v9447_v6 = vsel %vm7176_vm14, %v9445_v30, %v9446_v3  ;;  %v9706_v30 = vld [vmem:[%s24809_s6 + $0x390] sm:$0xf] }
 0x929   :  { %14779 = vmatprep.subr.msk.bf16.mxu0 %vm16281_vm9, %v14777_v60  ;;  %v9416_v60 = vld [vmem:[%s24809_s6 + $0x340] sm:$0x1f]  ;;  %14948 = vmatpush1.bf16.msra.mxu1 %v14947_v25  ;;  %v9739_v13 = vsel %vm7467_vm15, %v9724_v41, %v9738_v8  ;;  %v9746_v4 = vrot.slane %v9706_v30, 5  ;;  %v14967_v8 = vpack.c.bf16 %v11777_v63, %v11772_v61  ;;  %v10283_v61 = vld [vmem:[%s24809_s6 + $0x418] sm:$0x3] }
 0x92a   :  { %v9441_v39 = vsel %vm7176_vm14, %v9439_v35, %v9440_v46  ;;  %v9456_v19 = vrot.slane %v9416_v60, 6  ;;  %14950 = vmatprep.subr.bf16.mxu1 %v14949_v7  ;;  %v14957_v35 = vpack.c.bf16 %v11758_v22, %v11753_v44  ;;  %v9704_v46 = vld [vmem:[%s24809_s6 + $0x380] sm:$0xf]  ;;  %v9725_v60 = vsel %vm7467_vm15, %v9723_v50, %v9724_v41  ;;  %v9985_v22 = vld [vmem:[%s24809_s6 + $0x388] sm:$0xf0]  ;;  %v11788_v41 = vld [vmem:[%s24811_s8 + $0x3f0] sm:$0xff] }
 0x92b   :  { %14459 = vmatmul.mubr.msk.f32.vlgmr.msra.gmra.mrb[122].mxu0 %vm3254_vm11, %v21535_v52  ;;  %v14802_v12 = vpack.c.bf16 %v9453_v38, %v9441_v39  ;;  %v9742_v7 = vrot.slane %v9704_v46, 5  ;;  %v11778_v39 = vld [vmem:[%s24811_s8 + $0x3a0] sm:$0xff]  ;;  %v14812_v38 = vpack.c.bf16 %v9739_v13, %v9725_v60  ;;  %v10029_v44 = vrot.slane %v9993_v21, 4  ;;  %v11783_v50 = vld [vmem:[%s24811_s8 + $0x3c8] sm:$0xff]  ;;  %v11793_v60 = vld [vmem:[%s24811_s8 + $0x418] sm:$0xff] }
 0x92c   :  { %14782 = vmatpush1.bf16.msk.msra.mxu0 %vm16281_vm9, %v14780_v42  ;;  %9249 = vmatprep.mubr.f32.mxu0 %v24883_v54  ;;  %v9693_v42 = vld [vmem:[%s24809_s6 + $0x328] sm:$0xe0]  ;;  %v9457_v40 = vsel %vm7176_vm14, %v9446_v3, %v9456_v19  ;;  %v14961_v3 = vpack.c.bf16 %v11768_v43, %v11763_v16  ;;  %v14969_v46 = vpack.c.bf16 %v11788_v41, %v11783_v50  ;;  %v11798_v13 = vld [vmem:[%s24811_s8 + $0x440] sm:$0xff]  ;;  %v10282_v41 = vld [vmem:[%s24809_s6 + $0x410] sm:$0x3] }
 0x92d   :  { %14785 = vmatprep.subr.msk.bf16.mxu0 %vm16281_vm9, %v14783_v2  ;;  %v9455_v2 = vsel %vm7176_vm14, %v9443_v0, %v9454_v58  ;;  %v9726_v34 = vrot.slane %v9693_v42, 5  ;;  %14952 = vmatpush1.bf16.msra.mxu1 %v14951_v9  ;;  %v9733_v0 = vrot.slane %v9700_v57, 5  ;;  %v9744_v58 = vrot.slane %v9705_v37, 5  ;;  %v11767_v42 = vld [vmem:[%s24811_s8 + $0x348] sm:$0xff]  ;;  %v9982_v57 = vld [vmem:[%s24809_s6 + $0x370] sm:$0xf0] }
 0x92e   :  { %v14799_v18 = vpack.c.bf16 %v9455_v2, %v9444_v24  ;;  %v14806_v20 = vpack.c.bf16 %v9457_v40, %v9447_v6  ;;  %v9696_v24 = vld [vmem:[%s24809_s6 + $0x340] sm:$0xe0]  ;;  %v9701_v2 = vld [vmem:[%s24809_s6 + $0x368] sm:$0xff]  ;;  %v10016_v37 = vrot.slane %v9988_v51, 4  ;;  %v9990_v40 = vld [vmem:[%s24809_s6 + $0x3b0] sm:$0xff] }
 0x92f   :  { %13990 = vmatmul.mubr.msk.f32.vlgmr.msra.gmra.mrb[118].mxu0 %vm3254_vm11, %v22246_v62  ;;  %v9728_v36 = vsel %vm7467_vm15, %v9726_v34, %v9727_v11  ;;  %v9734_v32 = vsel %vm7467_vm15, %v9732_v17, %v9733_v0  ;;  %v9745_v59 = vsel %vm7467_vm15, %v9733_v0, %v9744_v58  ;;  %v9735_v34 = vrot.slane %v9696_v24, 5  ;;  %v9989_v17 = vld [vmem:[%s24809_s6 + $0x3a8] sm:$0xff]  ;;  %v11782_v0 = vld [vmem:[%s24811_s8 + $0x3c0] sm:$0xff]  ;;  %v11792_v24 = vld [vmem:[%s24811_s8 + $0x410] sm:$0xff] }
 0x930   :  { %14788 = vmatpush1.bf16.msk.msra.mxu0 %vm16281_vm9, %v14786_v23  ;;  %9320 = vmatprep.mubr.f32.mxu0 %v24883_v54  ;;  %v14953_v23 = vpack.c.bf16 %v11748_v53, %v11743_v28  ;;  %v14809_v25 = vpack.c.bf16 %v9741_v5, %v9728_v36  ;;  %v9983_v28 = vld [vmem:[%s24809_s6 + $0x378] sm:$0xf0]  ;;  %v14815_v19 = vpack.c.bf16 %v9745_v59, %v9734_v32  ;;  %v9736_v11 = vrot.slane %v9701_v2, 5  ;;  %v9995_v36 = vld [vmem:[%s24809_s6 + $0x3d8] sm:$0x7]  ;;  %v11787_v58 = vld [vmem:[%s24811_s8 + $0x3e8] sm:$0xff] }
 0x931   :  { %14789 = vmatprep.subr.bf16.mxu0 %v15850_v31  ;;  %v11773_v53 = vld [vmem:[%s24811_s8 + $0x378] sm:$0xff]  ;;  %v10015_v49 = vrot.slane %v9983_v28, 4  ;;  %v9984_v5 = vld [vmem:[%s24809_s6 + $0x380] sm:$0xf0]  ;;  %v10030_v43 = vsel %vm2628_vm8, %v10016_v37, %v10029_v44  ;;  %v10277_v50 = vld [vmem:[%s24809_s6 + $0x3e8] sm:$0xff] }
 0x932   :  { %14954 = vmatprep.subr.bf16.mxu1 %v14953_v23  ;;  %v9987_v23 = vld [vmem:[%s24809_s6 + $0x398] sm:$0xff]  ;;  %v14965_v6 = vpack.c.bf16 %v11778_v39, %v11773_v53  ;;  %v9737_v56 = vsel %vm7467_vm15, %v9735_v34, %v9736_v11  ;;  %v9996_v53 = vld [vmem:[%s24809_s6 + $0x3e0] sm:$0x7]  ;;  %v10273_v39 = vld [vmem:[%s24809_s6 + $0x3c8] sm:$0xf8] }
 0x933   :  { %13993 = vmatmul.mubr.msk.f32.vlgmr.msra.gmra.mrb[120].mxu0 %vm3254_vm11, %v22246_v62  ;;  %14956 = vmatpush1.bf16.msra.mxu1 %v14955_v10  ;;  %v22455_v10 = vrot.slane %v21535_v52, 6  ;;  %v10017_v16 = vsel %vm2628_vm8, %v10015_v49, %v10016_v37  ;;  %v11797_v2 = vld [vmem:[%s24811_s8 + $0x438] sm:$0xff]  ;;  %v11808_v34 = vld [vmem:[%s24811_s8 + $0x490] sm:$0xff]  ;;  %v10035_v49 = vrot.slane %v9996_v53, 4 }
 0x934   :  { %14792 = vmatpush3.bf16.msk.msra.mxu0 %vm16281_vm9, %v14790_v45  ;;  %14465 = vmatprep.mubr.msk.f32.mxu0 %vm15851_vm13, %v24883_v54  ;;  %v14825_v30 = vpack.c.bf16 %v10030_v43, %v10017_v16  ;;  %v9991_v28 = vld [vmem:[%s24809_s6 + $0x3b8] sm:$0xff]  ;;  %v14975_v63 = vpack.c.bf16 %v11797_v2, %v11792_v24  ;;  %v10568_v2 = vld [vmem:[%s24809_s6 + $0x440] sm:$0xff] }
 0x935   :  { %14795 = vmatprep.subr.msk.bf16.mxu0 %vm16281_vm9, %v14793_v29  ;;  %v9730_v29 = vrot.slane %v9699_v47, 5  ;;  %14958 = vmatprep.subr.bf16.mxu1 %v14957_v35  ;;  %v9747_v47 = vsel %vm7467_vm15, %v9736_v11, %v9746_v4  ;;  %v10021_v35 = vrot.slane %v9985_v22, 4  ;;  %v10272_v22 = vld [vmem:[%s24809_s6 + $0x3c0] sm:$0xf8]  ;;  %v10563_v24 = vld [vmem:[%s24809_s6 + $0x418] sm:$0xfc] }
 0x937   :  { %14466 = vmatmul.mubr.msk.f32.vlgmr.msra.gmra.mrb[122].mxu0 %vm3254_vm11, %v22246_v62  ;;  %v11752_v62 = vld [vmem:[%s24811_s8 + $0x2d0] sm:$0xff]  ;;  %v9743_v1 = vsel %vm7467_vm15, %v9730_v29, %v9742_v7 }
 0x938   :  { %14798 = vmatpush1.bf16.msk.msra.mxu0 %vm16281_vm9, %v14796_v26  ;;  %9539 = vmatprep.mubr.f32.mxu0 %v24883_v54  ;;  %v14959_v45 = vpack.c.bf16 %v11757_v48, %v11752_v62  ;;  %v11762_v26 = vld [vmem:[%s24811_s8 + $0x320] sm:$0xff]  ;;  %v10013_v62 = vrot.slane %v9987_v23, 4  ;;  %v9986_v7 = vld [vmem:[%s24809_s6 + $0x390] sm:$0xf0] }
 0x939   :  { %14801 = vmatprep.subr.msk.bf16.mxu0 %vm16281_vm9, %v14799_v18  ;;  %v14963_v9 = vpack.c.bf16 %v11767_v42, %v11762_v26  ;;  %v9731_v18 = vsel %vm7467_vm15, %v9729_v14, %v9730_v29  ;;  %v10018_v14 = vrot.slane %v9984_v5, 4  ;;  %v10019_v29 = vrot.slane %v9989_v17, 4  ;;  %v11802_v23 = vld [vmem:[%s24811_s8 + $0x460] sm:$0xff]  ;;  %v10275_v5 = vld [vmem:[%s24809_s6 + $0x3d8] sm:$0xf8] }
 0x93a   :  { %14960 = vmatpush1.bf16.msra.mxu1 %v14959_v45  ;;  %v14818_v52 = vpack.c.bf16 %v9743_v1, %v9731_v18  ;;  %v9994_v45 = vld [vmem:[%s24809_s6 + $0x3d0] sm:$0x7]  ;;  %v14971_v26 = vpack.c.bf16 %v11787_v58, %v11782_v0  ;;  %v14822_v42 = vpack.c.bf16 %v9747_v47, %v9737_v56  ;;  %v10024_v18 = vrot.slane %v9986_v7, 4  ;;  %v10274_v0 = vld [vmem:[%s24809_s6 + $0x3d0] sm:$0xf8]  ;;  %v10279_v58 = vld [vmem:[%s24809_s6 + $0x3f8] sm:$0xff] }
 0x93b   :  { %13998 = vmatmul.mubr.msk.f32.vlgmr.msra.gmra.mrb[118].mxu0 %vm3254_vm11, %v22347_v55  ;;  %14962 = vmatprep.subr.bf16.mxu1 %v14961_v3  ;;  %v10031_v3 = vrot.slane %v9994_v45, 4  ;;  %v10020_v4 = vsel %vm2628_vm8, %v10018_v14, %v10019_v29  ;;  %v10025_v1 = vrot.slane %v9991_v28, 4  ;;  %v10318_v17 = vrot.slane %v10282_v41, 3  ;;  %v10573_v28 = vld [vmem:[%s24809_s6 + $0x468] sm:$0x1] }
 0x93c   :  { %14804 = vmatpush1.bf16.msk.msra.mxu0 %vm16281_vm9, %v14802_v12  ;;  %9610 = vmatprep.mubr.f32.mxu0 %v24883_v54  ;;  %v9992_v12 = vld [vmem:[%s24809_s6 + $0x3c0] sm:$0x7]  ;;  %v10312_v43 = vrot.slane %v10275_v5, 3  ;;  %v10309_v45 = vrot.slane %v10274_v0, 3 }
 0x93d   :  { %14805 = vmatprep.subr.bf16.mxu0 %v15850_v31  ;;  %v10027_v48 = vrot.slane %v9992_v12, 4  ;;  %v11807_v12 = vld [vmem:[%s24811_s8 + $0x488] sm:$0xff]  ;;  %v10032_v37 = vsel %vm2628_vm8, %v10019_v29, %v10031_v3  ;;  %v10026_v56 = vsel %vm2628_vm8, %v10024_v18, %v10025_v1  ;;  %v10036_v47 = vsel %vm2628_vm8, %v10025_v1, %v10035_v49  ;;  %v10572_v18 = vld [vmem:[%s24809_s6 + $0x460] sm:$0x1]  ;;  %v10570_v49 = vld [vmem:[%s24809_s6 + $0x450] sm:$0xff] }
 0x93e   :  { %14964 = vmatpush1.bf16.msra.mxu1 %v14963_v9  ;;  %v10278_v9 = vld [vmem:[%s24809_s6 + $0x3f0] sm:$0xff]  ;;  %v10565_v1 = vld [vmem:[%s24809_s6 + $0x428] sm:$0xfc]  ;;  %v10608_v41 = vrot.slane %v10572_v18, 2  ;;  %v10603_v5 = vrot.slane %v10570_v49, 2 }
 0x93f   :  { %14001 = vmatmul.mubr.msk.f32.vlgmr.msra.gmra.mrb[120].mxu0 %vm3254_vm11, %v22347_v55  ;;  %14966 = vmatprep.subr.bf16.mxu1 %v14965_v6  ;;  %v10028_v59 = vsel %vm2628_vm8, %v10013_v62, %v10027_v48  ;;  %v10307_v44 = vrot.slane %v10278_v9, 3  ;;  %v10304_v48 = vrot.slane %v10277_v50, 3 }
 0x940   :  { %14808 = vmatpush3.bf16.msk.msra.mxu0 %vm16281_vm9, %v14806_v20  ;;  %14472 = vmatprep.mubr.msk.f32.mxu0 %vm15851_vm13, %v24883_v54  ;;  %v10022_v20 = vrot.slane %v9990_v40, 4 }
 0x941   :  { %14811 = vmatprep.subr.msk.bf16.mxu0 %vm16281_vm9, %v14809_v25  ;;  %v10033_v25 = vrot.slane %v9995_v36, 4  ;;  %v10320_v36 = vrot.slane %v10283_v61, 3  ;;  %v10319_v29 = vsel %vm1840_vm7, %v10304_v48, %v10318_v17  ;;  %v10562_v61 = vld [vmem:[%s24809_s6 + $0x410] sm:$0xfc] }
 0x942   :  { %14968 = vmatpush1.bf16.msra.mxu1 %v14967_v8  ;;  %v10023_v51 = vsel %vm2628_vm8, %v10021_v35, %v10022_v20  ;;  %v10280_v8 = vld [vmem:[%s24809_s6 + $0x400] sm:$0xff] }
 0x943   :  { %14473 = vmatmul.mubr.msk.f32.vlgmr.msra.gmra.mrb[122].mxu0 %vm3254_vm11, %v22347_v55  ;;  %v10012_v55 = vrot.slane %v9982_v57, 4  ;;  %14970 = vmatprep.subr.bf16.mxu1 %v14969_v46  ;;  %v10034_v21 = vsel %vm2628_vm8, %v10022_v20, %v10033_v25  ;;  %v10306_v57 = vrot.slane %v10273_v39, 3  ;;  %v10284_v46 = vld [vmem:[%s24809_s6 + $0x420] sm:$0x3]  ;;  %v10321_v16 = vsel %vm1840_vm7, %v10307_v44, %v10320_v36 }
 0x944   :  { %14814 = vmatpush1.bf16.msk.msra.mxu0 %vm16281_vm9, %v14812_v38  ;;  %9829 = vmatprep.mubr.f32.mxu0 %v24883_v54  ;;  %v14973_v38 = vpack.c.bf16 %v11798_v13, %v11793_v60  ;;  %v14831_v6 = vpack.c.bf16 %v10034_v21, %v10023_v51  ;;  %v10313_v20 = vrot.slane %v10280_v8, 3  ;;  %v10310_v60 = vrot.slane %v10279_v58, 3 }
 0x945   :  { %14817 = vmatprep.subr.msk.bf16.mxu0 %vm16281_vm9, %v14815_v19  ;;  %v10014_v32 = vsel %vm2628_vm8, %v10012_v55, %v10013_v62  ;;  %v11803_v19 = vld [vmem:[%s24811_s8 + $0x468] sm:$0xff]  ;;  %v14979_v55 = vpack.c.bf16 %v11807_v12, %v11802_v23  ;;  %v10303_v62 = vrot.slane %v10272_v22, 3  ;;  %v10308_v35 = vsel %vm1840_vm7, %v10306_v57, %v10307_v44  ;;  %v10575_v57 = vld [vmem:[%s24809_s6 + $0x478] sm:$0x1] }
 0x946   :  { %v14828_v11 = vpack.c.bf16 %v10028_v59, %v10014_v32  ;;  %14972 = vmatpush1.bf16.msra.mxu1 %v14971_v26  ;;  %v14977_v40 = vpack.c.bf16 %v11808_v34, %v11803_v19  ;;  %v14838_v13 = vpack.c.bf16 %v10036_v47, %v10026_v56  ;;  %v10322_v26 = vrot.slane %v10284_v46, 3  ;;  %v10281_v32 = vld [vmem:[%s24809_s6 + $0x408] sm:$0xff]  ;;  %v10286_v59 = vld [vmem:[%s24809_s6 + $0x430] sm:$0x3] }
 0x947   :  { %14006 = vmatmul.mubr.msk.f32.vlgmr.msra.gmra.mrb[118].mxu0 %vm3254_vm11, %v22455_v10  ;;  %14974 = vmatprep.subr.bf16.mxu1 %v14973_v38  ;;  %v10305_v14 = vsel %vm1840_vm7, %v10303_v62, %v10304_v48  ;;  %v14841_v7 = vpack.c.bf16 %v10321_v16, %v10308_v35  ;;  %v10316_v38 = vrot.slane %v10281_v32, 3  ;;  %v10326_v51 = vrot.slane %v10286_v59, 3  ;;  %v10566_v16 = vld [vmem:[%s24809_s6 + $0x430] sm:$0xfc] }
 0x948   :  { %14820 = vmatpush1.bf16.msk.msra.mxu0 %vm16281_vm9, %v14818_v52  ;;  %9900 = vmatprep.mubr.f32.mxu0 %v24883_v54  ;;  %v10285_v52 = vld [vmem:[%s24809_s6 + $0x428] sm:$0x3]  ;;  %v14844_v53 = vpack.c.bf16 %v10319_v29, %v10305_v14  ;;  %v10311_v21 = vsel %vm1840_vm7, %v10309_v45, %v10310_v60  ;;  %v10323_v9 = vsel %vm1840_vm7, %v10310_v60, %v10322_v26  ;;  %v10596_v19 = vrot.slane %v10563_v24, 2  ;;  %v10858_v45 = vld [vmem:[%s24809_s6 + $0x490] sm:$0xff]  ;;  %v10852_v24 = vld [vmem:[%s24809_s6 + $0x460] sm:$0xfe] }
 0x949   :  { %14821 = vmatprep.subr.bf16.mxu0 %v15850_v31  ;;  %v10324_v25 = vrot.slane %v10285_v52, 3  ;;  %v10597_v34 = vrot.slane %v10568_v2, 2  ;;  %v10287_v23 = vrot.slane %v21540_v27, 2  ;;  %v14850_v12 = vpack.c.bf16 %v10323_v9, %v10311_v21  ;;  %v10564_v52 = vld [vmem:[%s24809_s6 + $0x420] sm:$0xfc]  ;;  %v10857_v2 = vld [vmem:[%s24809_s6 + $0x488] sm:$0xff] }
 0x94a   :  { %14976 = vmatpush1.bf16.msra.mxu1 %v14975_v63  ;;  %v10567_v63 = vld [vmem:[%s24809_s6 + $0x438] sm:$0xff]  ;;  %v10593_v22 = vrot.slane %v10562_v61, 2  ;;  %v10602_v36 = vrot.slane %v10565_v1, 2  ;;  %v10614_v8 = vrot.slane %v10575_v57, 2  ;;  %v10599_v0 = vrot.slane %v10564_v52, 2  ;;  %v11122_v52 = vld [vmem:[%s24809_s6 + $0x4b0] sm:$0xff] }
 0x94b   :  { %14009 = vmatmul.mubr.msk.f32.vlgmr.msra.gmra.mrb[120].mxu0 %vm3254_vm11, %v22455_v10  ;;  %14978 = vmatprep.subr.bf16.mxu1 %v14977_v40  ;;  %v10325_v3 = vsel %vm1840_vm7, %v10313_v20, %v10324_v25  ;;  %v10598_v44 = vsel %vm1148_vm6, %v10596_v19, %v10597_v34  ;;  %v10594_v50 = vrot.slane %v10567_v63, 2  ;;  %v10853_v25 = vld [vmem:[%s24809_s6 + $0x468] sm:$0xfe]  ;;  %v10605_v26 = vrot.slane %v10566_v16, 2 }
 0x94c   :  { %14824 = vmatpush3.bf16.msk.msra.mxu0 %vm16281_vm9, %v14822_v42  ;;  %14479 = vmatprep.mubr.msk.f32.mxu0 %vm15851_vm13, %v24883_v54  ;;  %v10276_v42 = vld [vmem:[%s24809_s6 + $0x3e0] sm:$0xf8]  ;;  %v10604_v47 = vsel %vm1148_vm6, %v10602_v36, %v10603_v5  ;;  %v10615_v35 = vsel %vm1148_vm6, %v10603_v5, %v10614_v8  ;;  %v10876_v59 = vrot.slane %v10853_v25, 1  ;;  %v10874_v21 = vrot.slane %v10857_v2, 1  ;;  %v11123_v5 = vld [vmem:[%s24809_s6 + $0x4b8] sm:$0xff] }
 0x94d   :  { %14827 = vmatprep.subr.msk.bf16.mxu0 %vm16281_vm9, %v14825_v30  ;;  %v10314_v30 = vsel %vm1840_vm7, %v10312_v43, %v10313_v20  ;;  %v10315_v39 = vrot.slane %v10276_v42, 3  ;;  %v10595_v17 = vsel %vm1148_vm6, %v10593_v22, %v10594_v50  ;;  %v10609_v56 = vsel %vm1148_vm6, %v10594_v50, %v10608_v41  ;;  %v10571_v43 = vld [vmem:[%s24809_s6 + $0x458] sm:$0xff]  ;;  %v10576_v20 = vld [vmem:[%s24809_s6 + $0x480] sm:$0x1] }
 0x94e   :  { %14980 = vmatpush1.bf16.msra.mxu1 %v14979_v55  ;;  %v10569_v55 = vld [vmem:[%s24809_s6 + $0x448] sm:$0xff]  ;;  %v14860_v60 = vpack.c.bf16 %v10609_v56, %v10595_v17  ;;  %v10606_v42 = vrot.slane %v10571_v43, 2  ;;  %v10616_v32 = vrot.slane %v10576_v20, 2  ;;  %v11128_v8 = vld [vmem:[%s24809_s6 + $0x4e0] sm:$0x7f] }
 0x94f   :  { %14480 = vmatmul.mubr.msk.f32.vlgmr.msra.gmra.mrb[122].mxu0 %vm3254_vm11, %v22455_v10  ;;  %v14834_v10 = vpack.c.bf16 %v10032_v37, %v10020_v4  ;;  %v10610_v4 = vrot.slane %v10573_v28, 2  ;;  %v10327_v37 = vsel %vm1840_vm7, %v10316_v38, %v10326_v51  ;;  %v10600_v58 = vrot.slane %v10569_v55, 2  ;;  %v11125_v17 = vld [vmem:[%s24809_s6 + $0x4c8] sm:$0xff]  ;;  %v11367_v25 = vld [vmem:[%s24809_s6 + $0x4d8] sm:$0x80] }
 0x950   :  { %14830 = vmatpush1.bf16.msk.msra.mxu0 %vm16281_vm9, %v14828_v11  ;;  %10119 = vmatprep.mubr.f32.mxu0 %v24883_v54  ;;  %v14847_v11 = vpack.c.bf16 %v10325_v3, %v10314_v30  ;;  %v10855_v30 = vld [vmem:[%s24809_s6 + $0x478] sm:$0xfe]  ;;  %v10860_v3 = vld [vmem:[%s24809_s6 + $0x4a0] sm:$0xff]  ;;  %v10577_v28 = vrot.slane %v21540_v27, 4  ;;  %v10873_v51 = vrot.slane %v10852_v24, 1  ;;  %v14889_v55 = vpack.c.bf16 %v11128_v8, %v11123_v5 }
 0x951   :  { %14833 = vmatprep.subr.msk.bf16.mxu0 %vm16281_vm9, %v14831_v6  ;;  %v10317_v6 = vsel %vm1840_vm7, %v10315_v39, %v10316_v38  ;;  %v10611_v40 = vsel %vm1148_vm6, %v10597_v34, %v10610_v4  ;;  %v10601_v14 = vsel %vm1148_vm6, %v10599_v0, %v10600_v58  ;;  %v10607_v39 = vsel %vm1148_vm6, %v10605_v26, %v10606_v42  ;;  %v10859_v4 = vld [vmem:[%s24809_s6 + $0x498] sm:$0xff]  ;;  %v11130_v0 = vld [vmem:[%s24809_s6 + $0x4f0] sm:$0x7f]  ;;  %v11746_v8 = vld [vmem:[%s24811_s8 + $0x2a0] sm:$0xff] }
 0x952   :  { %v14854_v62 = vpack.c.bf16 %v10327_v37, %v10317_v6  ;;  %v14857_v48 = vpack.c.bf16 %v10611_v40, %v10598_v44  ;;  %v10617_v38 = vsel %vm1148_vm6, %v10606_v42, %v10616_v32  ;;  %v10882_v19 = vrot.slane %v10855_v30, 1  ;;  %v11126_v42 = vld [vmem:[%s24809_s6 + $0x4d0] sm:$0xff]  ;;  %v11131_v32 = vld [vmem:[%s24809_s6 + $0x4f8] sm:$0x7f] }
 0x953   :  { %14014 = vmatmul.mubr.msk.f32.vlgmr.msra.gmra.mrb[118].mxu0 %vm3254_vm11, %v21540_v27  ;;  %v10883_v34 = vrot.slane %v10860_v3, 1  ;;  %v14870_v61 = vpack.c.bf16 %v10617_v38, %v10607_v39  ;;  %v10875_v18 = vsel %vm860_vm5, %v10873_v51, %v10874_v21  ;;  %v10880_v49 = vrot.slane %v10859_v4, 1  ;;  %v11369_v39 = vld [vmem:[%s24809_s6 + $0x4e8] sm:$0x80]  ;;  %v11374_v38 = vld [vmem:[%s24809_s6 + $0x510] sm:$0xff] }
 0x954   :  { %14836 = vmatpush1.bf16.msk.msra.mxu0 %vm16281_vm9, %v14834_v10  ;;  %10190 = vmatprep.mubr.f32.mxu0 %v24883_v54  ;;  %v10574_v10 = vld [vmem:[%s24809_s6 + $0x470] sm:$0x1]  ;;  %v14876_v6 = vpack.c.bf16 %v10874_v21, %v10875_v18  ;;  %v10862_v40 = vrot.slane %v21540_v27, 6  ;;  %v14895_v43 = vpack.c.bf16 %v11130_v0, %v11125_v17  ;;  %v11379_v51 = vld [vmem:[%s24809_s6 + $0x538] sm:$0x3f]  ;;  %v14902_v21 = vpack.c.bf16 %v11131_v32, %v11126_v42 }
 0x955   :  { %14837 = vmatprep.subr.bf16.mxu0 %v15850_v31  ;;  %v10612_v46 = vrot.slane %v10574_v10, 2  ;;  %v10884_v57 = vsel %vm860_vm5, %v10882_v19, %v10883_v34  ;;  %v11127_v10 = vld [vmem:[%s24809_s6 + $0x4d8] sm:$0x7f]  ;;  %v11417_v18 = vrot.slane %v11379_v51, 7 }
 0x956   :  { %v14879_v37 = vpack.c.bf16 %v10883_v34, %v10884_v57  ;;  %v14892_v56 = vpack.c.bf16 %v11127_v10, %v11122_v52  ;;  %v11404_v34 = vrot.slane %v11369_v39, 7  ;;  %v11381_v57 = vld [vmem:[%s24809_s6 + $0x548] sm:$0x3f]  ;;  %v11806_v39 = vld [vmem:[%s24811_s8 + $0x480] sm:$0xff] }
 0x957   :  { %14017 = vmatmul.mubr.msk.f32.vlgmr.msra.gmra.mrb[120].mxu0 %vm3254_vm11, %v21540_v27  ;;  %v10613_v29 = vsel %vm1148_vm6, %v10600_v58, %v10612_v46  ;;  %v11378_v58 = vld [vmem:[%s24809_s6 + $0x530] sm:$0x3f]  ;;  %v11671_v10 = vld [vmem:[%s24811_s8 + $0x48] sm:$0xff]  ;;  %vm13784_vm6 = vcmask 685060  }
 0x958   :  { %14840 = vmatpush3.bf16.msk.msra.mxu0 %vm16281_vm9, %v14838_v13  ;;  %14486 = vmatprep.mubr.msk.f32.mxu0 %vm15851_vm13, %v24883_v54  ;;  %v14863_v13 = vpack.c.bf16 %v10615_v35, %v10604_v47  ;;  %v11124_v47 = vld [vmem:[%s24809_s6 + $0x4c0] sm:$0xff]  ;;  %v11129_v35 = vld [vmem:[%s24809_s6 + $0x4e8] sm:$0x7f]  ;;  %v11415_v20 = vrot.slane %v11378_v58, 7  ;;  %v11676_v58 = vld [vmem:[%s24811_s8 + $0x70] sm:$0xff] }
 0x959   :  { %14843 = vmatprep.subr.msk.bf16.mxu0 %vm16281_vm9, %v14841_v7  ;;  %v10877_v7 = vrot.slane %v10858_v45, 1  ;;  %v11372_v45 = vld [vmem:[%s24809_s6 + $0x500] sm:$0xff]  ;;  %v14898_v26 = vpack.c.bf16 %v11129_v35, %v11124_v47 }
 0x95a   :  { %v11399_v24 = vrot.slane %v11372_v45, 7  ;;  %v11766_v47 = vld [vmem:[%s24811_s8 + $0x340] sm:$0xff] }
 0x95b   :  { %14487 = vmatmul.mubr.msk.f32.vlgmr.msra.gmra.mrb[122].mxu0 %vm3254_vm11, %v21540_v27  ;;  %v10878_v9 = vsel %vm860_vm5, %v10876_v59, %v10877_v7 }
 0x95c   :  { %14846 = vmatpush1.bf16.msk.msra.mxu0 %vm16281_vm9, %v14844_v53  ;;  %10409 = vmatprep.mubr.f32.mxu0 %v24883_v54  ;;  %v14866_v53 = vpack.c.bf16 %v10613_v29, %v10601_v14  ;;  %v14873_v63 = vpack.c.bf16 %v10877_v7, %v10878_v9  ;;  %v11375_v14 = vld [vmem:[%s24809_s6 + $0x518] sm:$0xff]  ;;  %v11380_v29 = vld [vmem:[%s24809_s6 + $0x540] sm:$0x3f]  ;;  %v11398_v7 = vrot.slane %v11367_v25, 7 }
 0x95d   :  { %14849 = vmatprep.subr.msk.bf16.mxu0 %vm16281_vm9, %v14847_v11  ;;  %v10854_v11 = vld [vmem:[%s24809_s6 + $0x470] sm:$0xfe]  ;;  %v11781_v25 = vld [vmem:[%s24811_s8 + $0x3b8] sm:$0xff] }
 0x95e   :  { %v10879_v1 = vrot.slane %v10854_v11, 1  ;;  %v11400_v19 = vsel %vm274_vm0, %v11398_v7, %v11399_v24  ;;  %v11405_v11 = vrot.slane %v11374_v38, 7  ;;  %v11711_v7 = vld [vmem:[%s24811_s8 + $0x188] sm:$0xff] }
 0x95f   :  { %14022 = vmatmul.mubr.msk.f32.vlgmr.msra.gmra.mrb[118].mxu0 %vm3254_vm11, %v10287_v23  ;;  %v11811_v38 = vld [vmem:[%s24811_s8 + $0x4a8] sm:$0xff] }
 0x960   :  { %14852 = vmatpush1.bf16.msk.msra.mxu0 %vm16281_vm9, %v14850_v12  ;;  %10480 = vmatprep.mubr.f32.mxu0 %v24883_v54  ;;  %v10861_v12 = vld [vmem:[%s24809_s6 + $0x4a8] sm:$0xff]  ;;  %v10881_v44 = vsel %vm860_vm5, %v10879_v1, %v10880_v49  ;;  %v11371_v1 = vld [vmem:[%s24809_s6 + $0x4f8] sm:$0x80] }
 0x961   :  { %14853 = vmatprep.subr.bf16.mxu0 %v15850_v31  ;;  %v10886_v50 = vrot.slane %v10861_v12, 1  ;;  %v14882_v41 = vpack.c.bf16 %v10880_v49, %v10881_v44  ;;  %v11376_v49 = vld [vmem:[%s24809_s6 + $0x520] sm:$0xff]  ;;  %v11410_v44 = vrot.slane %v11371_v1, 7  ;;  %v11812_v1 = vld [vmem:[%s24811_s8 + $0x4b0] sm:$0xff] }
 0x963   :  { %14025 = vmatmul.mubr.msk.f32.vlgmr.msra.gmra.mrb[120].mxu0 %vm3254_vm11, %v10287_v23 }
 0x964   :  { %14856 = vmatpush3.bf16.msk.msra.mxu0 %vm16281_vm9, %v14854_v62  ;;  %14493 = vmatprep.mubr.msk.f32.mxu0 %vm15851_vm13, %v24883_v54  ;;  %v11368_v62 = vld [vmem:[%s24809_s6 + $0x4e0] sm:$0x80] }
 0x965   :  { %14859 = vmatprep.subr.msk.bf16.mxu0 %vm16281_vm9, %v14857_v48  ;;  %v11373_v48 = vld [vmem:[%s24809_s6 + $0x508] sm:$0xff]  ;;  %v11401_v46 = vrot.slane %v11368_v62, 7  ;;  %v11756_v62 = vld [vmem:[%s24811_s8 + $0x2f0] sm:$0xff] }
 0x966   :  { %v11402_v16 = vrot.slane %v11373_v48, 7  ;;  %v11761_v48 = vld [vmem:[%s24811_s8 + $0x318] sm:$0xff] }
 0x967   :  { %14494 = vmatmul.mubr.msk.f32.vlgmr.msra.gmra.mrb[122].mxu0 %vm3254_vm11, %v10287_v23  ;;  %v10856_v23 = vld [vmem:[%s24809_s6 + $0x480] sm:$0xfe]  ;;  %v15201_v0 = vpack.c.bf16 %v11761_v48, %v11756_v62 }
 0x968   :  { %14862 = vmatpush1.bf16.msk.msra.mxu0 %vm16281_vm9, %v14860_v60  ;;  %10699 = vmatprep.mubr.f32.mxu0 %v24883_v54  ;;  %v10885_v22 = vrot.slane %v10856_v23, 1  ;;  %v11377_v60 = vld [vmem:[%s24809_s6 + $0x528] sm:$0x3f]  ;;  %v11403_v59 = vsel %vm274_vm0, %v11401_v46, %v11402_v16  ;;  %v11416_v30 = vsel %vm274_vm0, %v11402_v16, %v11415_v20  ;;  %v15205_v46 = vpack.c.bf16 %v11771_v15, %v11766_v47  ;;  %v11686_v16 = vld [vmem:[%s24811_s8 + $0xc0] sm:$0xff]  ;;  %v11776_v20 = vld [vmem:[%s24811_s8 + $0x390] sm:$0xff] }
 0x969   :  { %14865 = vmatprep.subr.msk.bf16.mxu0 %vm16281_vm9, %v14863_v13  ;;  %v11370_v13 = vld [vmem:[%s24809_s6 + $0x4f0] sm:$0x80]  ;;  %v11413_v2 = vrot.slane %v11377_v60, 7  ;;  %v14905_v9 = vpack.c.bf16 %v11416_v30, %v11403_v59  ;;  %v15209_v60 = vpack.c.bf16 %v11781_v25, %v11776_v20  ;;  %v11706_v59 = vld [vmem:[%s24811_s8 + $0x160] sm:$0xff] }
 0x96a   :  { %v10887_v36 = vsel %vm860_vm5, %v10885_v22, %v10886_v50  ;;  %v11407_v3 = vrot.slane %v11370_v13, 7  ;;  %v11411_v22 = vrot.slane %v11376_v49, 7  ;;  %v11696_v13 = vld [vmem:[%s24811_s8 + $0x110] sm:$0xff]  ;;  %v15215_v30 = vpack.c.bf16 %v11711_v7, %v11706_v59  ;;  %v11817_v49 = vld [vmem:[%s24811_s8 + $0x4d8] sm:$0xff]  ;;  %v11843_v7 = vld [vmem:[%s24811_s8 + $0x5a8] sm:$0xff] }
 0x96b   :  { %14030 = vmatmul.mubr.msk.f32.vlgmr.msra.gmra.mrb[118].mxu0 %vm3254_vm11, %v10577_v28  ;;  %v14886_v27 = vpack.c.bf16 %v10886_v50, %v10887_v36  ;;  %v11414_v4 = vsel %vm274_vm0, %v11399_v24, %v11413_v2  ;;  %v11421_v50 = vrot.slane %v11381_v57, 7  ;;  %v11796_v24 = vld [vmem:[%s24811_s8 + $0x430] sm:$0xff]  ;;  %v11801_v2 = vld [vmem:[%s24811_s8 + $0x458] sm:$0xff]  ;;  %vm13783_vm5 = vmor %vm13782_vm4, %vm7176_vm14 }
 0x96c   :  { %14868 = vmatpush1.bf16.msk.msra.mxu0 %vm16281_vm9, %v14866_v53  ;;  %10770 = vmatprep.mubr.f32.mxu0 %v24883_v54  ;;  %v11419_v53 = vrot.slane %v11380_v29, 7  ;;  %v14908_v23 = vpack.c.bf16 %v11414_v4, %v11400_v19  ;;  %v11412_v36 = vsel %vm274_vm0, %v11410_v44, %v11411_v22  ;;  %v11786_v29 = vld [vmem:[%s24811_s8 + $0x3e0] sm:$0xff]  ;;  %v11731_v19 = vld [vmem:[%s24811_s8 + $0x228] sm:$0xff]  ;;  %vm13785_vm7 = vmor %vm13784_vm6, %vm13783_vm5 }
 0x96d   :  { %14869 = vmatprep.subr.bf16.mxu0 %v15850_v31  ;;  %v11422_v5 = vsel %vm274_vm0, %v11411_v22, %v11421_v50  ;;  %v11818_v4 = vld [vmem:[%s24811_s8 + $0x4e0] sm:$0xff]  ;;  %v11823_v44 = vld [vmem:[%s24811_s8 + $0x508] sm:$0xff]  ;;  %v11828_v22 = vld [vmem:[%s24811_s8 + $0x530] sm:$0xff] }
 0x96e   :  { %v14985_v50 = vpack.c.bf16 %v11828_v22, %v11823_v44  ;;  %v11878_v44 = vld [vmem:[%s24811_s8 + $0x6c0] sm:$0xff] }
 0x96f   :  { %14033 = vmatmul.mubr.msk.f32.vlgmr.msra.gmra.mrb[120].mxu0 %vm3254_vm11, %v10577_v28 }
 0x970   :  { %14872 = vmatpush3.bf16.msk.msra.mxu0 %vm16281_vm9, %v14870_v61  ;;  %14500 = vmatprep.mubr.msk.f32.mxu0 %vm15851_vm13, %v24883_v54 }
 0x971   :  { %14875 = vmatprep.subr.msk.bf16.mxu0 %vm16281_vm9, %v14873_v63 }
 0x973   :  { %14501 = vmatmul.mubr.msk.f32.vlgmr.msra.gmra.mrb[122].mxu0 %vm3254_vm11, %v10577_v28  ;;  %v11408_v28 = vrot.slane %v11375_v14, 7  ;;  %v11701_v14 = vld [vmem:[%s24811_s8 + $0x138] sm:$0xff] }
 0x974   :  { %14878 = vmatpush1.bf16.msk.msra.mxu0 %vm16281_vm9, %v14876_v6  ;;  %10969 = vmatprep.mubr.f32.mxu0 %v24883_v54  ;;  %v11406_v6 = vsel %vm274_vm0, %v11404_v34, %v11405_v11  ;;  %v15211_v42 = vpack.c.bf16 %v11701_v14, %v11696_v13 }
 0x975   :  { %14881 = vmatprep.subr.msk.bf16.mxu0 %vm16281_vm9, %v14879_v37  ;;  %v11409_v61 = vsel %vm274_vm0, %v11407_v3, %v11408_v28  ;;  %v11420_v63 = vsel %vm274_vm0, %v11408_v28, %v11419_v53  ;;  %v11418_v37 = vsel %vm274_vm0, %v11405_v11, %v11417_v18  ;;  %v15217_v3 = vpack.c.bf16 %v11801_v2, %v11796_v24  ;;  %v11716_v28 = vld [vmem:[%s24811_s8 + $0x1b0] sm:$0xff]  ;;  %v11721_v53 = vld [vmem:[%s24811_s8 + $0x1d8] sm:$0xff]  ;;  %vm23080_vm0 = vmpackc.low %vm2628_vm8, %vm15841_vm1 }
 0x976   :  { %v14911_v12 = vpack.c.bf16 %v11420_v63, %v11409_v61  ;;  %v15219_v51 = vpack.c.bf16 %v11721_v53, %v11716_v28  ;;  %v11813_v11 = vld [vmem:[%s24811_s8 + $0x4b8] sm:$0xff]  ;;  %v11816_v61 = vld [vmem:[%s24811_s8 + $0x4d0] sm:$0xff]  ;;  %vm13467_vm1 = vcmask 113664  }
 0x977   :  { %14038 = vmatmul.mubr.msk.f32.vlgmr.msra.gmra.mrb[118].mxu0 %vm3254_vm11, %v10862_v40  ;;  %v14981_v63 = vpack.c.bf16 %v11818_v4, %v11813_v11  ;;  %v11821_v18 = vld [vmem:[%s24811_s8 + $0x4f8] sm:$0xff]  ;;  %v11848_v24 = vld [vmem:[%s24811_s8 + $0x5d0] sm:$0xff] }
 0x978   :  { %14884 = vmatpush1.bf16.msk.msra.mxu0 %vm16281_vm9, %v14882_v41  ;;  %11040 = vmatprep.mubr.f32.mxu0 %v24883_v54  ;;  %v14914_v41 = vpack.c.bf16 %v11418_v37, %v11406_v6  ;;  %v15225_v57 = vpack.c.bf16 %v11821_v18, %v11816_v61  ;;  %v11741_v6 = vld [vmem:[%s24811_s8 + $0x278] sm:$0xff] }
 0x979   :  { %14885 = vmatprep.subr.bf16.mxu0 %v15850_v31  ;;  %14982 = vmatprep.subr.bf16.mxu1 %v14981_v63  ;;  %v11852_v63 = vld [vmem:[%s24811_s8 + $0x5f0] sm:$0xff]  ;;  %v11857_v18 = vld [vmem:[%s24811_s8 + $0x618] sm:$0xff] }
 0x97a   :  { %v13351_v53 = vld [vmem:[%s24815_s12 + $0x18] sm:$0xff] }
 0x97b   :  { %14041 = vmatmul.mubr.msk.f32.vlgmr.msra.gmra.mrb[120].mxu0 %vm3254_vm11, %v10862_v40 }
 0x97c   :  { %14888 = vmatpush3.bf16.msk.msra.mxu0 %vm16281_vm9, %v14886_v27  ;;  %14507 = vmatprep.mubr.msk.f32.mxu0 %vm15851_vm13, %v24883_v54  ;;  %v11751_v27 = vld [vmem:[%s24811_s8 + $0x2c8] sm:$0xff] }
 0x97d   :  { %14891 = vmatprep.subr.msk.bf16.mxu0 %vm16281_vm9, %v14889_v55  ;;  %v15197_v52 = vpack.c.bf16 %v11751_v27, %v11746_v8  ;;  %v11666_v55 = vld [vmem:[%s24811_s8 + $0x20] sm:$0xff] }
 0x97e   :  { %v15199_v17 = vpack.c.bf16 %v11671_v10, %v11666_v55  ;;  %v11822_v10 = vld [vmem:[%s24811_s8 + $0x500] sm:$0xff] }
 0x97f   :  { %14508 = vmatmul.mubr.msk.f32.vlgmr.msra.gmra.mrb[122].mxu0 %vm3254_vm11, %v10862_v40  ;;  %v11382_v40 = vrot.slane %v21521_v33, 2 }
 0x980   :  { %14894 = vmatpush1.bf16.msk.msra.mxu0 %vm16281_vm9, %v14892_v56  ;;  %11214 = vmatprep.mubr.f32.mxu0 %v24883_v54  ;;  %v11681_v56 = vld [vmem:[%s24811_s8 + $0x98] sm:$0xff] }
 0x981   :  { %14897 = vmatprep.subr.msk.bf16.mxu0 %vm16281_vm9, %v14895_v43  ;;  %v15203_v35 = vpack.c.bf16 %v11681_v56, %v11676_v58  ;;  %v11691_v43 = vld [vmem:[%s24811_s8 + $0xe8] sm:$0xff] }
 0x982   :  { %v15207_v45 = vpack.c.bf16 %v11691_v43, %v11686_v16  ;;  %v11991_v58 = vld [vmem:[%s24811_s8 + $0xa48] sm:$0xff] }
 0x983   :  { %14046 = vmatmul.mubr.msk.f32.vlgmr.msra.gmra.mrb[118].mxu0 %vm3254_vm11, %v21521_v33 }
 0x984   :  { %14900 = vmatpush1.bf16.msk.msra.mxu0 %vm16281_vm9, %v14898_v26  ;;  %11285 = vmatprep.mubr.f32.mxu0 %v24883_v54  ;;  %v11791_v26 = vld [vmem:[%s24811_s8 + $0x408] sm:$0xff] }
 0x985   :  { %14901 = vmatprep.subr.bf16.mxu0 %v15850_v31  ;;  %v15213_v32 = vpack.c.bf16 %v11791_v26, %v11786_v29  ;;  %v11837_v26 = vld [vmem:[%s24811_s8 + $0x578] sm:$0xff] }
 0x987   :  { %14049 = vmatmul.mubr.msk.f32.vlgmr.msra.gmra.mrb[120].mxu0 %vm3254_vm11, %v21521_v33 }
 0x988   :  { %14904 = vmatpush3.bf16.msk.msra.mxu0 %vm16281_vm9, %v14902_v21  ;;  %14514 = vmatprep.mubr.msk.f32.mxu0 %vm15851_vm13, %v24883_v54  ;;  %v15221_v21 = vpack.c.bf16 %v11811_v38, %v11806_v39 }
 0x989   :  { %14907 = vmatprep.subr.msk.bf16.mxu0 %vm16281_vm9, %v14905_v9  ;;  %v11726_v9 = vld [vmem:[%s24811_s8 + $0x200] sm:$0xff] }
 0x98a   :  { %v15223_v34 = vpack.c.bf16 %v11731_v19, %v11726_v9  ;;  %v11847_v9 = vld [vmem:[%s24811_s8 + $0x5c8] sm:$0xff]  ;;  %v11853_v19 = vld [vmem:[%s24811_s8 + $0x5f8] sm:$0xff] }
 0x98b   :  { %14515 = vmatmul.mubr.msk.f32.vlgmr.msra.gmra.mrb[122].mxu0 %vm3254_vm11, %v21521_v33  ;;  %v14918_v33 = vpack.c.bf16 %v11422_v5, %v11412_v36  ;;  %v23013_v5 = vld [vmem:[%s24810_s7] sm:$0x1f] }
 0x98c   :  { %14910 = vmatpush1.bf16.msk.msra.mxu0 %vm16281_vm9, %v14908_v23  ;;  %11504 = vmatprep.mubr.f32.mxu0 %v24883_v54  ;;  %v14983_v23 = vpack.c.bf16 %v11817_v49, %v11812_v1  ;;  %v11863_v1 = vld [vmem:[%s24811_s8 + $0x648] sm:$0xff]  ;;  %v11868_v49 = vld [vmem:[%s24811_s8 + $0x670] sm:$0xff] }
 0x98d   :  { %14913 = vmatprep.subr.msk.bf16.mxu0 %vm16281_vm9, %v14911_v12  ;;  %v11736_v12 = vld [vmem:[%s24811_s8 + $0x250] sm:$0xff] }
 0x98e   :  { %v15227_v37 = vpack.c.bf16 %v11741_v6, %v11736_v12  ;;  %14984 = vmatpush1.bf16.msra.mxu1 %v14983_v23  ;;  %v15001_v23 = vpack.c.bf16 %v11868_v49, %v11863_v1  ;;  %v11862_v12 = vld [vmem:[%s24811_s8 + $0x640] sm:$0xff]  ;;  %v11867_v6 = vld [vmem:[%s24811_s8 + $0x668] sm:$0xff] }
 0x98f   :  { %14054 = vmatmul.mubr.msk.f32.vlgmr.msra.gmra.mrb[118].mxu0 %vm3254_vm11, %v11382_v40  ;;  %14986 = vmatprep.subr.bf16.mxu1 %v14985_v50  ;;  %v15003_v22 = vpack.c.bf16 %v11867_v6, %v11862_v12  ;;  %v11953_v12 = vld [vmem:[%s24811_s8 + $0x918] sm:$0xff]  ;;  %v11958_v6 = vld [vmem:[%s24811_s8 + $0x940] sm:$0xff] }
 0x990   :  { %14916 = vmatpush1.bf16.msk.msra.mxu0 %vm16281_vm9, %v14914_v41  ;;  %11575 = vmatprep.mubr.f32.mxu0 %v24883_v54  ;;  %v6825_v41 = vlaneseq }
 0x991   :  { %14917 = vmatprep.subr.bf16.mxu0 %v15850_v31 }
 0x993   :  { %14057 = vmatmul.mubr.msk.f32.vlgmr.msra.gmra.mrb[120].mxu0 %vm3254_vm11, %v11382_v40 }
 0x994   :  { %14920 = vmatpush3.bf16.msk.msra.mxu0 %vm16281_vm9, %v14918_v33  ;;  %14521 = vmatprep.mubr.msk.f32.mxu0 %vm15851_vm13, %v24883_v54 }
 0x995   :  { %15198 = vmatprep.subr.bf16.mxu0 %v15197_v52 }
 0x997   :  { %14522 = vmatmul.mubr.msk.f32.vlgmr.msra.gmra.mrb[122].mxu0 %vm3254_vm11, %v11382_v40  ;;  %v23005_v40 = vshrl.u32 %v6825_v41, 7  ;;  %v11872_v41 = vld [vmem:[%s24811_s8 + $0x690] sm:$0xff] }
 0x998   :  { %15200 = vmatpush3.bf16.msra.mxu0 %v15199_v17  ;;  %v11827_v17 = vld [vmem:[%s24811_s8 + $0x528] sm:$0xff] }
 0x999   :  { %15202 = vmatprep.subr.bf16.mxu0 %v15201_v0  ;;  %v23008_v36 = vsub.s32 0, %v23005_v40  ;;  %v23016_v8 = vsub.s32 1, %v23005_v40  ;;  %v6839_v52 = vsub.s32 3, %v23005_v40  ;;  %v11986_v0 = vld [vmem:[%s24811_s8 + $0xa20] sm:$0xff]  ;;  %v6843_v56 = vsub.s32 4, %v23005_v40 }
 0x99a   :  { %v14987_v20 = vpack.c.bf16 %v11827_v17, %v11822_v10  ;;  %v15262_v25 = vpack.c.bf16 %v11991_v58, %v11986_v0  ;;  %v11887_v17 = vld [vmem:[%s24811_s8 + $0x708] sm:$0xff]  ;;  %v11893_v0 = vld [vmem:[%s24811_s8 + $0x738] sm:$0xff]  ;;  %v11898_v58 = vld [vmem:[%s24811_s8 + $0x760] sm:$0xff] }
 0x99b   :  { %v6828_v27 = vrot.slane %v23013_v5, %v23008_v36  ;;  %v6832_v33 = vrot.slane %v23013_v5, %v23016_v8  ;;  %v6840_v15 = vrot.slane %v23013_v5, %v6839_v52  ;;  %v6844_v14 = vrot.slane %v23013_v5, %v6843_v56 }
 0x99c   :  { %15204 = vmatpush3.bf16.msra.mxu0 %v15203_v35  ;;  %v11833_v35 = vld [vmem:[%s24811_s8 + $0x558] sm:$0xff] }
 0x99d   :  { %15206 = vmatprep.subr.bf16.mxu0 %v15205_v46  ;;  %v11838_v46 = vld [vmem:[%s24811_s8 + $0x580] sm:$0xff] }
 0x99e   :  { %v14989_v29 = vpack.c.bf16 %v11838_v46, %v11833_v35  ;;  %v11892_v35 = vld [vmem:[%s24811_s8 + $0x730] sm:$0xff]  ;;  %v11897_v46 = vld [vmem:[%s24811_s8 + $0x758] sm:$0xff] }
 0x9a0   :  { %15208 = vmatpush3.bf16.msra.mxu0 %v15207_v45  ;;  %v11832_v45 = vld [vmem:[%s24811_s8 + $0x550] sm:$0xff] }
 0x9a1   :  { %15210 = vmatprep.subr.bf16.mxu0 %v15209_v60 }
 0x9a4   :  { %15212 = vmatpush3.bf16.msra.mxu0 %v15211_v42  ;;  %v11996_v42 = vld [vmem:[%s24811_s8 + $0xa70] sm:$0xff] }
 0x9a5   :  { %15214 = vmatprep.subr.bf16.mxu0 %v15213_v32  ;;  %v12001_v32 = vld [vmem:[%s24811_s8 + $0xa98] sm:$0xf] }
 0x9a6   :  { %v15265_v28 = vpack.c.bf16 %v12001_v32, %v11996_v42  ;;  %v11918_v42 = vld [vmem:[%s24811_s8 + $0x800] sm:$0xff] }
 0x9a8   :  { %15216 = vmatpush3.bf16.msra.mxu0 %v15215_v30 }
 0x9a9   :  { %15218 = vmatprep.subr.bf16.mxu0 %v15217_v3  ;;  %v14991_v3 = vpack.c.bf16 %v11837_v26, %v11832_v45  ;;  %v15015_v45 = vpack.c.bf16 %v11897_v46, %v11892_v35  ;;  %v11913_v26 = vld [vmem:[%s24811_s8 + $0x7d8] sm:$0xff]  ;;  %v11972_v35 = vld [vmem:[%s24811_s8 + $0x9b0] sm:$0xff] }
 0x9aa   :  { %v11977_v46 = vld [vmem:[%s24811_s8 + $0x9d8] sm:$0xff] }
 0x9ac   :  { %15220 = vmatpush3.bf16.msra.mxu0 %v15219_v51  ;;  %v14993_v51 = vpack.c.bf16 %v11848_v24, %v11843_v7  ;;  %v11912_v7 = vld [vmem:[%s24811_s8 + $0x7d0] sm:$0xff]  ;;  %v11917_v24 = vld [vmem:[%s24811_s8 + $0x7f8] sm:$0xff] }
 0x9ad   :  { %15222 = vmatprep.subr.bf16.mxu0 %v15221_v21  ;;  %v11842_v21 = vld [vmem:[%s24811_s8 + $0x5a0] sm:$0xff] }
 0x9ae   :  { %v14995_v4 = vpack.c.bf16 %v11847_v9, %v11842_v21  ;;  %v11933_v21 = vld [vmem:[%s24811_s8 + $0x878] sm:$0xff]  ;;  %v11938_v9 = vld [vmem:[%s24811_s8 + $0x8a0] sm:$0xff] }
 0x9b0   :  { %15224 = vmatpush3.bf16.msra.mxu0 %v15223_v34  ;;  %v11858_v34 = vld [vmem:[%s24811_s8 + $0x620] sm:$0xff] }
 0x9b1   :  { %15226 = vmatprep.subr.bf16.mxu0 %v15225_v57  ;;  %v14997_v61 = vpack.c.bf16 %v11858_v34, %v11853_v19  ;;  %v14999_v57 = vpack.c.bf16 %v11857_v18, %v11852_v63  ;;  %v15029_v34 = vpack.c.bf16 %v11938_v9, %v11933_v21  ;;  %v11943_v63 = vld [vmem:[%s24811_s8 + $0x8c8] sm:$0xff]  ;;  %v11948_v18 = vld [vmem:[%s24811_s8 + $0x8f0] sm:$0xff] }
 0x9b2   :  { %v15033_v49 = vpack.c.bf16 %v11948_v18, %v11943_v63  ;;  %v11675_v21 = vld [vmem:[%s24811_s8 + $0x68] sm:$0xff]  ;;  %v11680_v9 = vld [vmem:[%s24811_s8 + $0x90] sm:$0xff]  ;;  %v11685_v63 = vld [vmem:[%s24811_s8 + $0xb8] sm:$0xff] }
 0x9b3   :  { %v11690_v18 = vld [vmem:[%s24811_s8 + $0xe0] sm:$0xff] }
 0x9b4   :  { %15228 = vmatpush3.bf16.msra.mxu0 %v15227_v37  ;;  %v11873_v37 = vld [vmem:[%s24811_s8 + $0x698] sm:$0xff] }
 0x9b5   :  { %15261 = vmatprep.subr.bf16.mxu0 %v15850_v31  ;;  %v15005_v50 = vpack.c.bf16 %v11878_v44, %v11873_v37  ;;  %v15037_v44 = vpack.c.bf16 %v11958_v6, %v11953_v12  ;;  %v11695_v12 = vld [vmem:[%s24811_s8 + $0x108] sm:$0xff]  ;;  %v11700_v6 = vld [vmem:[%s24811_s8 + $0x130] sm:$0xff] }
 0xa62   :  { %v11506_v55 = vpop.f32.mrb[118].mxu0 }
 0xa63   :  { %v15585_v62 = vadd.f32 %v11506_v55, %v6828_v27  ;;  %v11508_v48 = vpop.f32.mrb[119].mxu0  ;;  %v11877_v27 = vld [vmem:[%s24811_s8 + $0x6b8] sm:$0xff]  ;;  %v11888_v55 = vld [vmem:[%s24811_s8 + $0x710] sm:$0xff] }
 0xa64   :  { %v15586_v47 = vadd.f32 %v11508_v48, %v6832_v33  ;;  %v11883_v33 = vld [vmem:[%s24811_s8 + $0x6e8] sm:$0xff]  ;;  %v15007_v10 = vpack.c.bf16 %v11877_v27, %v11872_v41  ;;  %v11882_v48 = vld [vmem:[%s24811_s8 + $0x6e0] sm:$0xff]  ;;  %v11968_v27 = vld [vmem:[%s24811_s8 + $0x990] sm:$0xff] }
 0xa65   :  { %v23052_v60 = vmax.f32 %v15585_v62, 0.0  ;;  %v15009_v62 = vpack.c.bf16 %v11888_v55, %v11883_v33  ;;  %v11963_v41 = vld [vmem:[%s24811_s8 + $0x968] sm:$0xff]  ;;  %v23239_v55 = vsub.s32 2, %v23005_v40 }
 0xa66   :  { %v23045_v16 = vmax.f32 %v15586_v47, 0.0  ;;  %v23047_v43 = vpop.f32.mrb[120].mxu0  ;;  %v15011_v47 = vpack.c.bf16 %v11887_v17, %v11882_v48  ;;  %v11967_v48 = vld [vmem:[%s24811_s8 + $0x988] sm:$0xff]  ;;  %v11973_v17 = vld [vmem:[%s24811_s8 + $0x9b8] sm:$0xff] }
 0xa67   :  { %v11579_v13 = vpop.f32.mrb[121].mxu0 }
 0xa68   :  { %v15588_v59 = vadd.f32 %v11579_v13, %v6840_v15  ;;  %12112 = vmatprep.mubr.f32.mxu1 %v23045_v16  ;;  %12538 = vmatprep.mubr.f32.mxu0 %v23045_v16  ;;  %v15013_v15 = vpack.c.bf16 %v11898_v58, %v11893_v0  ;;  %v11978_v0 = vld [vmem:[%s24811_s8 + $0x9e0] sm:$0xff] }
 0xa69   :  { %12113 = vmatmul.mubr.f32.vlgmr.msra.gmra.mrb[134].mxu1 %v23052_v60  ;;  %12539 = vmatmul.mubr.f32.vlgmr.msra.gmra.mrb[124].mxu0 %v23052_v60 }
 0xa6a   :  { %v23076_v2 = vmax.f32 %v15588_v59, 0.0  ;;  %14988 = vmatpush1.bf16.msra.mxu1 %v14987_v20  ;;  %15263 = vmatpush3.bf16.msra.mxu0 %v15262_v25  ;;  %v11648_v30 = vpop.f32.mrb[122].mxu0  ;;  %v11903_v20 = vld [vmem:[%s24811_s8 + $0x788] sm:$0xff]  ;;  %v11908_v25 = vld [vmem:[%s24811_s8 + $0x7b0] sm:$0xff]  ;;  %v15021_v59 = vpack.c.bf16 %v11918_v42, %v11913_v26  ;;  %v11993_v26 = vld [vmem:[%s24811_s8 + $0xa58] sm:$0xff] }
 0xa6b   :  { %v15589_v39 = vadd.f32 %v11648_v30, %v6844_v14  ;;  %v14523_v38 = vpop.f32.mrb[123].mxu0  ;;  %14990 = vmatprep.subr.bf16.mxu1 %v14989_v29  ;;  %15264 = vmatprep.subr.bf16.mxu0 %v15850_v31  ;;  %v15017_v13 = vpack.c.bf16 %v11908_v25, %v11903_v20  ;;  %v11902_v14 = vld [vmem:[%s24811_s8 + $0x780] sm:$0xff]  ;;  %v11907_v29 = vld [vmem:[%s24811_s8 + $0x7a8] sm:$0xff]  ;;  %v11988_v25 = vld [vmem:[%s24811_s8 + $0xa30] sm:$0xff] }
 0xa6c   :  { %12183 = vmatprep.mubr.f32.mxu1 %v23076_v2  ;;  %14532 = vmatprep.mubr.msk.f32.mxu0 %vm15851_vm13, %v24883_v54  ;;  %v15019_v32 = vpack.c.bf16 %v11907_v29, %v11902_v14  ;;  %v11923_v30 = vld [vmem:[%s24811_s8 + $0x828] sm:$0xff]  ;;  %v11922_v38 = vld [vmem:[%s24811_s8 + $0x820] sm:$0xff] }
 0xa6d   :  { %v23100_v11 = vmax.f32 %v15589_v39, 0.0  ;;  %v11983_v20 = vld [vmem:[%s24811_s8 + $0xa08] sm:$0xff]  ;;  %v11982_v14 = vld [vmem:[%s24811_s8 + $0xa00] sm:$0xff] }
 0xa6e   :  { %14992 = vmatpush1.bf16.msra.mxu1 %v14991_v3  ;;  %15267 = vmatpush3.bf16.msk.msra.mxu0 %vm23080_vm0, %v15265_v28  ;;  %v11928_v3 = vld [vmem:[%s24811_s8 + $0x850] sm:$0xff]  ;;  %v15023_v28 = vpack.c.bf16 %v11917_v24, %v11912_v7  ;;  %v11987_v29 = vld [vmem:[%s24811_s8 + $0xa28] sm:$0xff]  ;;  %v11998_v42 = vld [vmem:[%s24811_s8 + $0xa80] sm:$0xf] }
 0xa6f   :  { %14994 = vmatprep.subr.bf16.mxu1 %v14993_v51  ;;  %v15025_v39 = vpack.c.bf16 %v11928_v3, %v11923_v30  ;;  %v11927_v51 = vld [vmem:[%s24811_s8 + $0x848] sm:$0xff]  ;;  %v11992_v7 = vld [vmem:[%s24811_s8 + $0xa50] sm:$0xff]  ;;  %v11997_v24 = vld [vmem:[%s24811_s8 + $0xa78] sm:$0xf] }
 0xa70   :  { %v15027_v19 = vpack.c.bf16 %v11927_v51, %v11922_v38  ;;  %v11665_v30 = vld [vmem:[%s24811_s8 + $0x18] sm:$0xff]  ;;  %v11670_v3 = vld [vmem:[%s24811_s8 + $0x40] sm:$0xff]  ;;  %v11664_v38 = vld [vmem:[%s24811_s8 + $0x10] sm:$0xff] }
 0xa71   :  { %14533 = vmatmul.mubr.msk.f32.vlgmr.msra.gmra.mrb[126].mxu0 %vm12029_vm2, %v23100_v11  ;;  %v11669_v51 = vld [vmem:[%s24811_s8 + $0x38] sm:$0xff] }
 0xa72   :  { %14996 = vmatpush1.bf16.msra.mxu1 %v14995_v4  ;;  %v11932_v4 = vld [vmem:[%s24811_s8 + $0x870] sm:$0xff] }
 0xa73   :  { %14998 = vmatprep.subr.bf16.mxu1 %v14997_v61  ;;  %v11937_v61 = vld [vmem:[%s24811_s8 + $0x898] sm:$0xff] }
 0xa74   :  { %v15031_v1 = vpack.c.bf16 %v11937_v61, %v11932_v4  ;;  %v11674_v4 = vld [vmem:[%s24811_s8 + $0x60] sm:$0xff]  ;;  %v11679_v61 = vld [vmem:[%s24811_s8 + $0x88] sm:$0xff] }
 0xa76   :  { %15000 = vmatpush1.bf16.msra.mxu1 %v14999_v57  ;;  %v11942_v57 = vld [vmem:[%s24811_s8 + $0x8c0] sm:$0xff] }
 0xa77   :  { %15002 = vmatprep.subr.bf16.mxu1 %v15001_v23  ;;  %v11947_v23 = vld [vmem:[%s24811_s8 + $0x8e8] sm:$0xff] }
 0xa78   :  { %v15035_v37 = vpack.c.bf16 %v11947_v23, %v11942_v57  ;;  %v11684_v57 = vld [vmem:[%s24811_s8 + $0xb0] sm:$0xff]  ;;  %v11689_v23 = vld [vmem:[%s24811_s8 + $0xd8] sm:$0xff] }
 0xa7a   :  { %15004 = vmatpush1.bf16.msra.mxu1 %v15003_v22  ;;  %v11952_v22 = vld [vmem:[%s24811_s8 + $0x910] sm:$0xff] }
 0xa7b   :  { %15006 = vmatprep.subr.bf16.mxu1 %v15005_v50  ;;  %v11957_v50 = vld [vmem:[%s24811_s8 + $0x938] sm:$0xff] }
 0xa7c   :  { %v15039_v33 = vpack.c.bf16 %v11957_v50, %v11952_v22  ;;  %v11699_v22 = vld [vmem:[%s24811_s8 + $0x128] sm:$0xff]  ;;  %v11705_v50 = vld [vmem:[%s24811_s8 + $0x158] sm:$0xff] }
 0xa7e   :  { %15008 = vmatpush1.bf16.msra.mxu1 %v15007_v10  ;;  %v15041_v10 = vpack.c.bf16 %v11968_v27, %v11963_v41  ;;  %v11710_v41 = vld [vmem:[%s24811_s8 + $0x180] sm:$0xff] }
 0xa7f   :  { %15010 = vmatprep.subr.bf16.mxu1 %v15009_v62  ;;  %v11962_v62 = vld [vmem:[%s24811_s8 + $0x960] sm:$0xff] }
 0xa80   :  { %v15043_v58 = vpack.c.bf16 %v11967_v48, %v11962_v62  ;;  %v11709_v62 = vld [vmem:[%s24811_s8 + $0x178] sm:$0xff]  ;;  %v11715_v48 = vld [vmem:[%s24811_s8 + $0x1a8] sm:$0xff] }
 0xa82   :  { %15012 = vmatpush1.bf16.msra.mxu1 %v15011_v47  ;;  %v6836_v47 = vrot.slane %v23013_v5, %v23239_v55  ;;  %v15047_v5 = vpack.c.bf16 %v11977_v46, %v11972_v35  ;;  %v11725_v35 = vld [vmem:[%s24811_s8 + $0x1f8] sm:$0xff]  ;;  %v11730_v46 = vld [vmem:[%s24811_s8 + $0x220] sm:$0xff] }
 0xa83   :  { %15014 = vmatprep.subr.bf16.mxu1 %v15013_v15  ;;  %v15045_v15 = vpack.c.bf16 %v11978_v0, %v11973_v17  ;;  %v11720_v17 = vld [vmem:[%s24811_s8 + $0x1d0] sm:$0xff] }
 0xa86   :  { %15016 = vmatpush1.bf16.msra.mxu1 %v15015_v45  ;;  %v15587_v45 = vadd.f32 %v23047_v43, %v6836_v47  ;;  %v15051_v43 = vpack.c.bf16 %v11987_v29, %v11982_v14  ;;  %v11714_v47 = vld [vmem:[%s24811_s8 + $0x1a0] sm:$0xff]  ;;  %v11740_v14 = vld [vmem:[%s24811_s8 + $0x270] sm:$0xff] }
 0xa87   :  { %15018 = vmatprep.subr.bf16.mxu1 %v15017_v13  ;;  %v15049_v13 = vpack.c.bf16 %v11988_v25, %v11983_v20  ;;  %v15083_v25 = vpack.c.bf16 %v11730_v46, %v11725_v35  ;;  %v12708_v35 = vld [vmem:[%s24813_s10 + $0x98] sm:$0xff]  ;;  %v12711_v46 = vld [vmem:[%s24813_s10 + $0xb0] sm:$0xff] }
 0xa8a   :  { %15020 = vmatpush1.bf16.msra.mxu1 %v15019_v32  ;;  %v23280_v32 = vmax.f32 %v15587_v45, 0.0  ;;  %v11729_v45 = vld [vmem:[%s24811_s8 + $0x218] sm:$0xff] }
 0xa8b   :  { %15022 = vmatprep.subr.bf16.mxu1 %v15021_v59  ;;  %v15053_v59 = vpack.c.bf16 %v11998_v42, %v11993_v26  ;;  %v11734_v42 = vld [vmem:[%s24811_s8 + $0x240] sm:$0xff] }
 0xa8e   :  { %15024 = vmatpush1.bf16.msra.mxu1 %v15023_v28  ;;  %v15056_v28 = vpack.c.bf16 %v11997_v24, %v11992_v7  ;;  %v11750_v7 = vld [vmem:[%s24811_s8 + $0x2c0] sm:$0xff] }
 0xa8f   :  { %15026 = vmatprep.subr.bf16.mxu1 %v15025_v39  ;;  %v15059_v39 = vpack.c.bf16 %v11670_v3, %v11665_v30  ;;  %v12690_v30 = vld [vmem:[%s24813_s10 + $0x8] sm:$0xff]  ;;  %v12693_v3 = vld [vmem:[%s24813_s10 + $0x20] sm:$0xff] }
 0xa92   :  { %15028 = vmatpush1.bf16.msra.mxu1 %v15027_v19  ;;  %v15061_v19 = vpack.c.bf16 %v11669_v51, %v11664_v38  ;;  %v11744_v38 = vld [vmem:[%s24811_s8 + $0x290] sm:$0xff]  ;;  %v11749_v51 = vld [vmem:[%s24811_s8 + $0x2b8] sm:$0xff] }
 0xa93   :  { %15030 = vmatprep.subr.bf16.mxu1 %v15029_v34  ;;  %v15063_v34 = vpack.c.bf16 %v11680_v9, %v11675_v21  ;;  %v15268_v21 = vpack.c.bf16 %v12693_v3, %v12690_v30  ;;  %v12692_v9 = vld [vmem:[%s24813_s10 + $0x18] sm:$0xff]  ;;  %v12713_v30 = vld [vmem:[%s24813_s10 + $0xc0] sm:$0xff] }
 0xa95   :  { %15269 = vmatprep.subr.bf16.mxu0 %v15268_v21 }
 0xa96   :  { %15032 = vmatpush1.bf16.msra.mxu1 %v15031_v1  ;;  %v15065_v1 = vpack.c.bf16 %v11679_v61, %v11674_v4  ;;  %v15093_v61 = vpack.c.bf16 %v11749_v51, %v11744_v38  ;;  %v12720_v38 = vld [vmem:[%s24813_s10 + $0xf8] sm:$0xff]  ;;  %v12723_v51 = vld [vmem:[%s24813_s10 + $0x110] sm:$0xff] }
 0xa97   :  { %15034 = vmatprep.subr.bf16.mxu1 %v15033_v49  ;;  %v15067_v49 = vpack.c.bf16 %v11690_v18, %v11685_v63  ;;  %v12696_v63 = vld [vmem:[%s24813_s10 + $0x38] sm:$0xff]  ;;  %v12699_v18 = vld [vmem:[%s24813_s10 + $0x50] sm:$0xff] }
 0xa9a   :  { %15036 = vmatpush1.bf16.msra.mxu1 %v15035_v37  ;;  %v15071_v37 = vpack.c.bf16 %v11700_v6, %v11695_v12  ;;  %v15272_v12 = vpack.c.bf16 %v12699_v18, %v12696_v63  ;;  %v12698_v6 = vld [vmem:[%s24813_s10 + $0x48] sm:$0xff]  ;;  %v11800_v63 = vld [vmem:[%s24811_s8 + $0x450] sm:$0xff] }
 0xa9b   :  { %15038 = vmatprep.subr.bf16.mxu1 %v15037_v44  ;;  %v11694_v44 = vld [vmem:[%s24811_s8 + $0x100] sm:$0xff]  ;;  %v12726_v18 = vld [vmem:[%s24813_s10 + $0x128] sm:$0xff] }
 0xa9c   :  { %v15073_v27 = vpack.c.bf16 %v11699_v22, %v11694_v44 }
 0xa9e   :  { %15040 = vmatpush1.bf16.msra.mxu1 %v15039_v33  ;;  %v15075_v33 = vpack.c.bf16 %v11710_v41, %v11705_v50  ;;  %v12702_v50 = vld [vmem:[%s24813_s10 + $0x68] sm:$0xff]  ;;  %v12705_v41 = vld [vmem:[%s24813_s10 + $0x80] sm:$0xff] }
 0xa9f   :  { %15042 = vmatprep.subr.bf16.mxu1 %v15041_v10  ;;  %v11704_v10 = vld [vmem:[%s24811_s8 + $0x150] sm:$0xff] }
 0xaa0   :  { %v15077_v0 = vpack.c.bf16 %v11709_v62, %v11704_v10  ;;  %v11764_v10 = vld [vmem:[%s24811_s8 + $0x330] sm:$0xff]  ;;  %v11769_v62 = vld [vmem:[%s24811_s8 + $0x358] sm:$0xff] }
 0xaa2   :  { %15044 = vmatpush1.bf16.msra.mxu1 %v15043_v58  ;;  %v15079_v58 = vpack.c.bf16 %v11720_v17, %v11715_v48  ;;  %v15276_v48 = vpack.c.bf16 %v12705_v41, %v12702_v50  ;;  %v12704_v17 = vld [vmem:[%s24813_s10 + $0x78] sm:$0xff]  ;;  %v11810_v50 = vld [vmem:[%s24811_s8 + $0x4a0] sm:$0xff] }
 0xaa3   :  { %15046 = vmatprep.subr.bf16.mxu1 %v15045_v15  ;;  %v11719_v15 = vld [vmem:[%s24811_s8 + $0x1c8] sm:$0xff]  ;;  %v12732_v41 = vld [vmem:[%s24813_s10 + $0x158] sm:$0xff] }
 0xaa4   :  { %v15081_v20 = vpack.c.bf16 %v11719_v15, %v11714_v47  ;;  %v15101_v15 = vpack.c.bf16 %v11769_v62, %v11764_v10  ;;  %v11804_v10 = vld [vmem:[%s24811_s8 + $0x470] sm:$0xff]  ;;  %v11809_v62 = vld [vmem:[%s24811_s8 + $0x498] sm:$0xff] }
 0xaa6   :  { %15048 = vmatpush1.bf16.msra.mxu1 %v15047_v5  ;;  %v11724_v5 = vld [vmem:[%s24811_s8 + $0x1f0] sm:$0xff] }
 0xaa7   :  { %15050 = vmatprep.subr.bf16.mxu1 %v15049_v13  ;;  %v11735_v13 = vld [vmem:[%s24811_s8 + $0x248] sm:$0xff]  ;;  %v15085_v29 = vpack.c.bf16 %v11729_v45, %v11724_v5  ;;  %v11774_v5 = vld [vmem:[%s24811_s8 + $0x380] sm:$0xff] }
 0xaa8   :  { %v15087_v26 = vpack.c.bf16 %v11740_v14, %v11735_v13  ;;  %v11779_v45 = vld [vmem:[%s24811_s8 + $0x3a8] sm:$0xff]  ;;  %v15280_v13 = vpack.c.bf16 %v12711_v46, %v12708_v35  ;;  %v11820_v35 = vld [vmem:[%s24811_s8 + $0x4f0] sm:$0xff] }
 0xaa9   :  { %12184 = vmatmul.mubr.f32.vlgmr.msra.gmra.mrb[134].mxu1 %v23280_v32  ;;  %v12710_v14 = vld [vmem:[%s24813_s10 + $0xa8] sm:$0xff]  ;;  %v15105_v3 = vpack.c.bf16 %v11779_v45, %v11774_v5  ;;  %v11814_v5 = vld [vmem:[%s24811_s8 + $0x4c0] sm:$0xff] }
 0xaaa   :  { %15052 = vmatpush1.bf16.msra.mxu1 %v15051_v43  ;;  %12254 = vmatprep.mubr.f32.mxu1 %v24883_v54  ;;  %v11739_v43 = vld [vmem:[%s24811_s8 + $0x268] sm:$0xff] }
 0xaab   :  { %15055 = vmatprep.subr.msk.bf16.mxu1 %vm23080_vm0, %v15053_v59  ;;  %v11745_v59 = vld [vmem:[%s24811_s8 + $0x298] sm:$0xff]  ;;  %v15089_v24 = vpack.c.bf16 %v11739_v43, %v11734_v42  ;;  %v11784_v43 = vld [vmem:[%s24811_s8 + $0x3d0] sm:$0xff]  ;;  %v12738_v46 = vld [vmem:[%s24813_s10 + $0x188] sm:$0xff] }
 0xaac   :  { %v11819_v45 = vld [vmem:[%s24811_s8 + $0x4e8] sm:$0xff] }
 0xaae   :  { %15058 = vmatpush1.bf16.msk.msra.mxu1 %vm23080_vm0, %v15056_v28  ;;  %v12689_v28 = vld [vmem:[%s24813_s10] sm:$0xff] }
 0xaaf   :  { %15060 = vmatprep.subr.bf16.mxu1 %v15059_v39  ;;  %v15091_v39 = vpack.c.bf16 %v11750_v7, %v11745_v59  ;;  %v15270_v4 = vpack.c.bf16 %v12692_v9, %v12689_v28  ;;  %v11789_v59 = vld [vmem:[%s24811_s8 + $0x3f8] sm:$0xff]  ;;  %v12714_v7 = vld [vmem:[%s24813_s10 + $0xc8] sm:$0xff] }
 0xab0   :  { %v11795_v9 = vld [vmem:[%s24811_s8 + $0x428] sm:$0xff] }
 0xab1   :  { %14062 = vmatmul.mubr.msk.f32.vlgmr.msra.gmra.mrb[134].mxu1 %vm12029_vm2, %v23100_v11  ;;  %15271 = vmatpush1.bf16.msra.mxu0 %v15270_v4  ;;  %v12719_v4 = vld [vmem:[%s24813_s10 + $0xf0] sm:$0xff] }
 0xab2   :  { %15062 = vmatpush1.bf16.msra.mxu1 %v15061_v19  ;;  %12325 = vmatprep.mubr.f32.mxu1 %v23045_v16  ;;  %v15069_v16 = vpack.c.bf16 %v11689_v23, %v11684_v57  ;;  %v11755_v19 = vld [vmem:[%s24811_s8 + $0x2e8] sm:$0xff]  ;;  %v11754_v57 = vld [vmem:[%s24811_s8 + $0x2e0] sm:$0xff] }
 0xab3   :  { %15064 = vmatprep.subr.bf16.mxu1 %v15063_v34  ;;  %v11760_v34 = vld [vmem:[%s24811_s8 + $0x310] sm:$0xff]  ;;  %v11759_v23 = vld [vmem:[%s24811_s8 + $0x308] sm:$0xff]  ;;  %15273 = vmatprep.subr.bf16.mxu0 %v15272_v12 }
 0xab4   :  { %v15097_v22 = vpack.c.bf16 %v11759_v23, %v11754_v57  ;;  %v11794_v57 = vld [vmem:[%s24811_s8 + $0x420] sm:$0xff]  ;;  %v11799_v23 = vld [vmem:[%s24811_s8 + $0x448] sm:$0xff] }
 0xab6   :  { %15066 = vmatpush1.bf16.msra.mxu1 %v15065_v1  ;;  %v12695_v1 = vld [vmem:[%s24813_s10 + $0x30] sm:$0xff] }
 0xab7   :  { %15068 = vmatprep.subr.bf16.mxu1 %v15067_v49  ;;  %v15095_v49 = vpack.c.bf16 %v11760_v34, %v11755_v19  ;;  %v15274_v44 = vpack.c.bf16 %v12698_v6, %v12695_v1  ;;  %v15288_v34 = vpack.c.bf16 %v12723_v51, %v12720_v38  ;;  %v12729_v1 = vld [vmem:[%s24813_s10 + $0x140] sm:$0xff]  ;;  %v15111_v6 = vpack.c.bf16 %v11800_v63, %v11795_v9  ;;  %v11829_v38 = vld [vmem:[%s24811_s8 + $0x538] sm:$0xff]  ;;  %v11835_v51 = vld [vmem:[%s24811_s8 + $0x568] sm:$0xff] }
 0xab8   :  { %v11840_v9 = vld [vmem:[%s24811_s8 + $0x590] sm:$0xff] }
 0xab9   :  { %15275 = vmatpush1.bf16.msra.mxu0 %v15274_v44  ;;  %v12725_v44 = vld [vmem:[%s24813_s10 + $0x120] sm:$0xff] }
 0xaba   :  { %15070 = vmatpush1.bf16.msra.mxu1 %v15069_v16  ;;  %v11765_v16 = vld [vmem:[%s24811_s8 + $0x338] sm:$0xff]  ;;  %15277 = vmatprep.subr.bf16.mxu0 %v15276_v48 }
 0xabb   :  { %15072 = vmatprep.subr.bf16.mxu1 %v15071_v37  ;;  %v11770_v37 = vld [vmem:[%s24811_s8 + $0x360] sm:$0xff] }
 0xabe   :  { %15074 = vmatpush1.bf16.msra.mxu1 %v15073_v27  ;;  %v12701_v27 = vld [vmem:[%s24813_s10 + $0x60] sm:$0xff] }
 0xabf   :  { %15076 = vmatprep.subr.bf16.mxu1 %v15075_v33  ;;  %v15099_v33 = vpack.c.bf16 %v11770_v37, %v11765_v16  ;;  %v15278_v47 = vpack.c.bf16 %v12704_v17, %v12701_v27  ;;  %v11805_v16 = vld [vmem:[%s24811_s8 + $0x478] sm:$0xff]  ;;  %v15292_v37 = vpack.c.bf16 %v12729_v1, %v12726_v18  ;;  %v12735_v27 = vld [vmem:[%s24813_s10 + $0x170] sm:$0xff]  ;;  %v15127_v18 = vpack.c.bf16 %v11840_v9, %v11835_v51  ;;  %v11834_v1 = vld [vmem:[%s24811_s8 + $0x560] sm:$0xff] }
 0xac0   :  { %v15115_v17 = vpack.c.bf16 %v11810_v50, %v11805_v16  ;;  %v12749_v16 = vld [vmem:[%s24813_s10 + $0x1e0] sm:$0xff]  ;;  %v12770_v51 = vld [vmem:[%s24813_s10 + $0x288] sm:$0xff] }
 0xac1   :  { %15279 = vmatpush1.bf16.msra.mxu0 %v15278_v47  ;;  %v12731_v47 = vld [vmem:[%s24813_s10 + $0x150] sm:$0xff]  ;;  %v12777_v9 = vld [vmem:[%s24813_s10 + $0x2c0] sm:$0xff] }
 0xac2   :  { %15078 = vmatpush1.bf16.msra.mxu1 %v15077_v0  ;;  %v11775_v0 = vld [vmem:[%s24811_s8 + $0x388] sm:$0xff]  ;;  %15281 = vmatprep.subr.bf16.mxu0 %v15280_v13 }
 0xac3   :  { %15080 = vmatprep.subr.bf16.mxu1 %v15079_v58  ;;  %v11780_v58 = vld [vmem:[%s24811_s8 + $0x3b0] sm:$0xff] }
 0xac6   :  { %15082 = vmatpush1.bf16.msra.mxu1 %v15081_v20  ;;  %v12707_v20 = vld [vmem:[%s24813_s10 + $0x90] sm:$0xff] }
 0xac7   :  { %15084 = vmatprep.subr.bf16.mxu1 %v15083_v25  ;;  %v15103_v25 = vpack.c.bf16 %v11780_v58, %v11775_v0  ;;  %v15282_v42 = vpack.c.bf16 %v12710_v14, %v12707_v20  ;;  %v11815_v0 = vld [vmem:[%s24811_s8 + $0x4c8] sm:$0xff]  ;;  %v15296_v58 = vpack.c.bf16 %v12735_v27, %v12732_v41  ;;  %v12741_v20 = vld [vmem:[%s24813_s10 + $0x1a0] sm:$0xff]  ;;  %v11844_v27 = vld [vmem:[%s24811_s8 + $0x5b0] sm:$0xff] }
 0xac8   :  { %v15119_v14 = vpack.c.bf16 %v11820_v35, %v11815_v0  ;;  %v12758_v0 = vld [vmem:[%s24813_s10 + $0x228] sm:$0xff] }
 0xac9   :  { %15283 = vmatpush1.bf16.msra.mxu0 %v15282_v42  ;;  %v12737_v42 = vld [vmem:[%s24813_s10 + $0x180] sm:$0xff] }
 0xaca   :  { %15086 = vmatpush1.bf16.msra.mxu1 %v15085_v29  ;;  %v11785_v29 = vld [vmem:[%s24811_s8 + $0x3d8] sm:$0xff] }
 0xacb   :  { %15088 = vmatprep.subr.bf16.mxu1 %v15087_v26  ;;  %v11790_v26 = vld [vmem:[%s24811_s8 + $0x400] sm:$0xff] }
 0xacc   :  { %v15107_v21 = vpack.c.bf16 %v11790_v26, %v11785_v29  ;;  %v11825_v29 = vld [vmem:[%s24811_s8 + $0x518] sm:$0xff]  ;;  %v15300_v26 = vpack.c.bf16 %v12741_v20, %v12738_v46  ;;  %v11854_v46 = vld [vmem:[%s24811_s8 + $0x600] sm:$0xff]  ;;  %v11859_v20 = vld [vmem:[%s24811_s8 + $0x628] sm:$0xff] }
 0xace   :  { %15090 = vmatpush1.bf16.msra.mxu1 %v15089_v24  ;;  %v12717_v24 = vld [vmem:[%s24813_s10 + $0xe0] sm:$0xff] }
 0xacf   :  { %15092 = vmatprep.subr.bf16.mxu1 %v15091_v39  ;;  %v15284_v28 = vpack.c.bf16 %v12717_v24, %v12714_v7  ;;  %v12716_v39 = vld [vmem:[%s24813_s10 + $0xd8] sm:$0xff]  ;;  %v12747_v24 = vld [vmem:[%s24813_s10 + $0x1d0] sm:$0xff] }
 0xad0   :  { %v15286_v19 = vpack.c.bf16 %v12716_v39, %v12713_v30  ;;  %v12744_v7 = vld [vmem:[%s24813_s10 + $0x1b8] sm:$0xff]  ;;  %v15121_v30 = vpack.c.bf16 %v11819_v45, %v11814_v5  ;;  %v11824_v39 = vld [vmem:[%s24811_s8 + $0x510] sm:$0xff]  ;;  %v11870_v45 = vld [vmem:[%s24811_s8 + $0x680] sm:$0xff] }
 0xad1   :  { %15285 = vmatprep.subr.bf16.mxu0 %v15284_v28  ;;  %v15125_v63 = vpack.c.bf16 %v11829_v38, %v11824_v39  ;;  %v12767_v38 = vld [vmem:[%s24813_s10 + $0x270] sm:$0xff] }
 0xad2   :  { %15094 = vmatpush1.bf16.msra.mxu1 %v15093_v61  ;;  %v12722_v61 = vld [vmem:[%s24813_s10 + $0x108] sm:$0xff]  ;;  %15287 = vmatpush1.bf16.msra.mxu0 %v15286_v19  ;;  %v12743_v19 = vld [vmem:[%s24813_s10 + $0x1b0] sm:$0xff] }
 0xad3   :  { %15096 = vmatprep.subr.bf16.mxu1 %v15095_v49  ;;  %v15109_v49 = vpack.c.bf16 %v11789_v59, %v11784_v43  ;;  %v15290_v12 = vpack.c.bf16 %v12722_v61, %v12719_v4  ;;  %15289 = vmatprep.subr.bf16.mxu0 %v15288_v34  ;;  %v12740_v43 = vld [vmem:[%s24813_s10 + $0x198] sm:$0xff]  ;;  %v11830_v59 = vld [vmem:[%s24811_s8 + $0x540] sm:$0xff]  ;;  %v12746_v34 = vld [vmem:[%s24813_s10 + $0x1c8] sm:$0xff] }
 0xad4   :  { %v15123_v28 = vpack.c.bf16 %v11830_v59, %v11825_v29  ;;  %v12750_v4 = vld [vmem:[%s24813_s10 + $0x1e8] sm:$0xff]  ;;  %v12753_v61 = vld [vmem:[%s24813_s10 + $0x200] sm:$0xff]  ;;  %v12764_v29 = vld [vmem:[%s24813_s10 + $0x258] sm:$0xff] }
 0xad6   :  { %15098 = vmatpush1.bf16.msra.mxu1 %v15097_v22  ;;  %v12728_v22 = vld [vmem:[%s24813_s10 + $0x138] sm:$0xff]  ;;  %15291 = vmatpush1.bf16.msra.mxu0 %v15290_v12  ;;  %v11850_v12 = vld [vmem:[%s24811_s8 + $0x5e0] sm:$0xff] }
 0xad7   :  { %15100 = vmatprep.subr.bf16.mxu1 %v15099_v33  ;;  %v15113_v33 = vpack.c.bf16 %v11799_v23, %v11794_v57  ;;  %v15294_v48 = vpack.c.bf16 %v12728_v22, %v12725_v44  ;;  %15293 = vmatprep.subr.bf16.mxu0 %v15292_v37  ;;  %v11845_v57 = vld [vmem:[%s24811_s8 + $0x5b8] sm:$0xff]  ;;  %v15306_v23 = vpack.c.bf16 %v12746_v34, %v12743_v19  ;;  %v12759_v22 = vld [vmem:[%s24813_s10 + $0x230] sm:$0xff] }
 0xad8   :  { %v12752_v37 = vld [vmem:[%s24813_s10 + $0x1f8] sm:$0xff]  ;;  %v15131_v41 = vpack.c.bf16 %v11850_v12, %v11845_v57  ;;  %v11884_v12 = vld [vmem:[%s24811_s8 + $0x6f0] sm:$0xff] }
 0xad9   :  { %v12756_v44 = vld [vmem:[%s24813_s10 + $0x218] sm:$0xff] }
 0xada   :  { %15102 = vmatpush1.bf16.msra.mxu1 %v15101_v15  ;;  %v12734_v15 = vld [vmem:[%s24813_s10 + $0x168] sm:$0xff]  ;;  %15295 = vmatpush1.bf16.msra.mxu0 %v15294_v48  ;;  %v15312_v48 = vpack.c.bf16 %v12759_v22, %v12756_v44  ;;  %v11894_v22 = vld [vmem:[%s24811_s8 + $0x740] sm:$0xff] }
 0xadb   :  { %15104 = vmatprep.subr.bf16.mxu1 %v15103_v25  ;;  %v15117_v25 = vpack.c.bf16 %v11809_v62, %v11804_v10  ;;  %v15298_v13 = vpack.c.bf16 %v12734_v15, %v12731_v47  ;;  %15297 = vmatprep.subr.bf16.mxu0 %v15296_v58  ;;  %v15310_v10 = vpack.c.bf16 %v12752_v37, %v12749_v16  ;;  %v11860_v62 = vld [vmem:[%s24811_s8 + $0x630] sm:$0xff]  ;;  %v12762_v58 = vld [vmem:[%s24813_s10 + $0x248] sm:$0xff]  ;;  %v12765_v47 = vld [vmem:[%s24813_s10 + $0x260] sm:$0xff] }
 0xadc   :  { %v11895_v16 = vld [vmem:[%s24811_s8 + $0x748] sm:$0xff]  ;;  %v11900_v37 = vld [vmem:[%s24811_s8 + $0x770] sm:$0xff] }
 0xade   :  { %15106 = vmatpush1.bf16.msra.mxu1 %v15105_v3  ;;  %15299 = vmatpush1.bf16.msra.mxu0 %v15298_v13  ;;  %v15302_v3 = vpack.c.bf16 %v12740_v43, %v12737_v42  ;;  %v15316_v13 = vpack.c.bf16 %v12765_v47, %v12762_v58  ;;  %v12771_v42 = vld [vmem:[%s24813_s10 + $0x290] sm:$0xff]  ;;  %v15137_v43 = vpack.c.bf16 %v11859_v20, %v11854_v46  ;;  %v11909_v20 = vld [vmem:[%s24811_s8 + $0x7b8] sm:$0xff] }
 0xadf   :  { %15108 = vmatprep.subr.bf16.mxu1 %v15107_v21  ;;  %15301 = vmatprep.subr.bf16.mxu0 %v15300_v26  ;;  %v15304_v21 = vpack.c.bf16 %v12747_v24, %v12744_v7  ;;  %v12768_v26 = vld [vmem:[%s24813_s10 + $0x278] sm:$0xff]  ;;  %v11864_v7 = vld [vmem:[%s24811_s8 + $0x650] sm:$0xff] }
 0xae0   :  { %v11869_v24 = vld [vmem:[%s24811_s8 + $0x678] sm:$0xff]  ;;  %v15320_v39 = vpack.c.bf16 %v12771_v42, %v12768_v26  ;;  %v12779_v58 = vld [vmem:[%s24813_s10 + $0x2d0] sm:$0xff] }
 0xae1   :  { %v15141_v19 = vpack.c.bf16 %v11869_v24, %v11864_v7  ;;  %v11925_v7 = vld [vmem:[%s24811_s8 + $0x838] sm:$0xff]  ;;  %v11930_v24 = vld [vmem:[%s24811_s8 + $0x860] sm:$0xff] }
 0xae2   :  { %15110 = vmatpush1.bf16.msra.mxu1 %v15109_v49  ;;  %15303 = vmatpush1.bf16.msra.mxu0 %v15302_v3  ;;  %v11839_v49 = vld [vmem:[%s24811_s8 + $0x588] sm:$0xff] }
 0xae3   :  { %15112 = vmatprep.subr.bf16.mxu1 %v15111_v6  ;;  %15305 = vmatprep.subr.bf16.mxu0 %v15304_v21  ;;  %v15308_v6 = vpack.c.bf16 %v12753_v61, %v12750_v4  ;;  %v15129_v50 = vpack.c.bf16 %v11839_v49, %v11834_v1  ;;  %v12774_v21 = vld [vmem:[%s24813_s10 + $0x2a8] sm:$0xff]  ;;  %v11874_v4 = vld [vmem:[%s24811_s8 + $0x6a0] sm:$0xff] }
 0xae4   :  { %v11879_v61 = vld [vmem:[%s24811_s8 + $0x6c8] sm:$0xff]  ;;  %v11890_v1 = vld [vmem:[%s24811_s8 + $0x720] sm:$0xff]  ;;  %v15324_v49 = vpack.c.bf16 %v12777_v9, %v12774_v21 }
 0xae5   :  { %v15145_v57 = vpack.c.bf16 %v11879_v61, %v11874_v4  ;;  %v11945_v4 = vld [vmem:[%s24811_s8 + $0x8d8] sm:$0xff]  ;;  %v11950_v61 = vld [vmem:[%s24811_s8 + $0x900] sm:$0xff] }
 0xae6   :  { %15114 = vmatpush1.bf16.msra.mxu1 %v15113_v33  ;;  %v11855_v33 = vld [vmem:[%s24811_s8 + $0x608] sm:$0xff]  ;;  %15307 = vmatpush1.bf16.msra.mxu0 %v15306_v23 }
 0xae7   :  { %15116 = vmatprep.subr.bf16.mxu1 %v15115_v17  ;;  %15309 = vmatprep.subr.bf16.mxu0 %v15308_v6  ;;  %v12755_v17 = vld [vmem:[%s24813_s10 + $0x210] sm:$0xff]  ;;  %v15135_v35 = vpack.c.bf16 %v11860_v62, %v11855_v33  ;;  %v11889_v6 = vld [vmem:[%s24811_s8 + $0x718] sm:$0xff] }
 0xae8   :  { %v15314_v5 = vpack.c.bf16 %v12758_v0, %v12755_v17  ;;  %v15149_v44 = vpack.c.bf16 %v11889_v6, %v11884_v12  ;;  %v12776_v33 = vld [vmem:[%s24813_s10 + $0x2b8] sm:$0xff]  ;;  %v12783_v17 = vld [vmem:[%s24813_s10 + $0x2f0] sm:$0xff] }
 0xaea   :  { %15118 = vmatpush1.bf16.msra.mxu1 %v15117_v25  ;;  %v11865_v25 = vld [vmem:[%s24811_s8 + $0x658] sm:$0xff]  ;;  %15311 = vmatpush1.bf16.msra.mxu0 %v15310_v10  ;;  %v11910_v10 = vld [vmem:[%s24811_s8 + $0x7c0] sm:$0xff] }
 0xaeb   :  { %15120 = vmatprep.subr.bf16.mxu1 %v15119_v14  ;;  %15313 = vmatprep.subr.bf16.mxu0 %v15312_v48  ;;  %v12761_v14 = vld [vmem:[%s24813_s10 + $0x240] sm:$0xff]  ;;  %v15139_v59 = vpack.c.bf16 %v11870_v45, %v11865_v25  ;;  %v12780_v48 = vld [vmem:[%s24813_s10 + $0x2d8] sm:$0xff] }
 0xaec   :  { %v15318_v3 = vpack.c.bf16 %v12764_v29, %v12761_v14  ;;  %v15328_v0 = vpack.c.bf16 %v12783_v17, %v12780_v48  ;;  %v12789_v45 = vld [vmem:[%s24813_s10 + $0x320] sm:$0xff]  ;;  %v11920_v14 = vld [vmem:[%s24811_s8 + $0x810] sm:$0xff] }
 0xaed   :  { %v11974_v17 = vld [vmem:[%s24811_s8 + $0x9c0] sm:$0xff] }
 0xaee   :  { %15122 = vmatpush1.bf16.msra.mxu1 %v15121_v30  ;;  %v11875_v30 = vld [vmem:[%s24811_s8 + $0x6a8] sm:$0xff]  ;;  %15315 = vmatpush1.bf16.msra.mxu0 %v15314_v5 }
 0xaef   :  { %15124 = vmatprep.subr.bf16.mxu1 %v15123_v28  ;;  %v11880_v28 = vld [vmem:[%s24811_s8 + $0x6d0] sm:$0xff]  ;;  %15317 = vmatprep.subr.bf16.mxu0 %v15316_v13  ;;  %v12786_v5 = vld [vmem:[%s24813_s10 + $0x308] sm:$0xff] }
 0xaf0   :  { %v15143_v34 = vpack.c.bf16 %v11880_v28, %v11875_v30  ;;  %v11915_v13 = vld [vmem:[%s24811_s8 + $0x7e8] sm:$0xff]  ;;  %v15332_v29 = vpack.c.bf16 %v12789_v45, %v12786_v5  ;;  %v11924_v28 = vld [vmem:[%s24811_s8 + $0x830] sm:$0xff] }
 0xaf1   :  { %12326 = vmatmul.mubr.f32.vlgmr.msra.gmra.mrb[136].mxu1 %v23052_v60  ;;  %v11849_v60 = vld [vmem:[%s24811_s8 + $0x5d8] sm:$0xff]  ;;  %v15159_v42 = vpack.c.bf16 %v11920_v14, %v11915_v13  ;;  %v12000_v5 = vld [vmem:[%s24811_s8 + $0xa90] sm:$0xf]  ;;  %v11994_v14 = vld [vmem:[%s24811_s8 + $0xa60] sm:$0xff] }
 0xaf2   :  { %15126 = vmatpush1.bf16.msra.mxu1 %v15125_v63  ;;  %12396 = vmatprep.mubr.f32.mxu1 %v23076_v2  ;;  %v15133_v15 = vpack.c.bf16 %v11849_v60, %v11844_v27  ;;  %v15322_v63 = vpack.c.bf16 %v12770_v51, %v12767_v38  ;;  %v11905_v27 = vld [vmem:[%s24811_s8 + $0x798] sm:$0xff]  ;;  %v12773_v60 = vld [vmem:[%s24813_s10 + $0x2a0] sm:$0xff]  ;;  %v11935_v38 = vld [vmem:[%s24811_s8 + $0x888] sm:$0xff] }
 0xaf3   :  { %15128 = vmatprep.subr.bf16.mxu1 %v15127_v18  ;;  %15319 = vmatpush1.bf16.msra.mxu0 %v15318_v3  ;;  %v11885_v18 = vld [vmem:[%s24811_s8 + $0x6f8] sm:$0xff]  ;;  %v15326_v62 = vpack.c.bf16 %v12776_v33, %v12773_v60  ;;  %v15155_v46 = vpack.c.bf16 %v11910_v10, %v11905_v27  ;;  %v15163_v3 = vpack.c.bf16 %v11930_v24, %v11925_v7  ;;  %v11940_v51 = vld [vmem:[%s24811_s8 + $0x8b0] sm:$0xff]  ;;  %v11975_v33 = vld [vmem:[%s24811_s8 + $0x9c8] sm:$0xff] }
 0xaf4   :  { %15321 = vmatprep.subr.bf16.mxu0 %v15320_v39  ;;  %v15147_v23 = vpack.c.bf16 %v11890_v1, %v11885_v18  ;;  %v11929_v39 = vld [vmem:[%s24811_s8 + $0x858] sm:$0xff]  ;;  %v15167_v9 = vpack.c.bf16 %v11940_v51, %v11935_v38  ;;  %v15171_v18 = vpack.c.bf16 %v11950_v61, %v11945_v4  ;;  %v11944_v1 = vld [vmem:[%s24811_s8 + $0x8d0] sm:$0xff]  ;;  %v11826_v7 = vld [vmem:[%s24811_s8 + $0x520] sm:$0xff] }
 0xaf5   :  { %v15165_v21 = vpack.c.bf16 %v11929_v39, %v11924_v28  ;;  %v11964_v27 = vld [vmem:[%s24811_s8 + $0x970] sm:$0xff]  ;;  %v11969_v60 = vld [vmem:[%s24811_s8 + $0x998] sm:$0xff]  ;;  %v11831_v24 = vld [vmem:[%s24811_s8 + $0x548] sm:$0xff] }
 0xaf6   :  { %15130 = vmatpush1.bf16.msra.mxu1 %v15129_v50  ;;  %v11899_v50 = vld [vmem:[%s24811_s8 + $0x768] sm:$0xff]  ;;  %v11980_v10 = vld [vmem:[%s24811_s8 + $0x9f0] sm:$0xff]  ;;  %v15231_v28 = vpack.c.bf16 %v11831_v24, %v11826_v7  ;;  %v11841_v51 = vld [vmem:[%s24811_s8 + $0x598] sm:$0xff] }
 0xaf7   :  { %15132 = vmatprep.subr.bf16.mxu1 %v15131_v41  ;;  %15323 = vmatpush1.bf16.msra.mxu0 %v15322_v63  ;;  %v15151_v41 = vpack.c.bf16 %v11900_v37, %v11895_v16  ;;  %v15153_v47 = vpack.c.bf16 %v11899_v50, %v11894_v22  ;;  %v11954_v16 = vld [vmem:[%s24811_s8 + $0x920] sm:$0xff]  ;;  %v11959_v37 = vld [vmem:[%s24811_s8 + $0x948] sm:$0xff]  ;;  %v15183_v48 = vpack.c.bf16 %v11980_v10, %v11975_v33  ;;  %v11836_v38 = vld [vmem:[%s24811_s8 + $0x570] sm:$0xff] }
 0xaf8   :  { %15325 = vmatprep.subr.bf16.mxu0 %v15324_v49  ;;  %v11949_v49 = vld [vmem:[%s24811_s8 + $0x8f8] sm:$0xff]  ;;  %v11970_v22 = vld [vmem:[%s24811_s8 + $0x9a0] sm:$0xff]  ;;  %v15177_v50 = vpack.c.bf16 %v11959_v37, %v11954_v16  ;;  %v11851_v61 = vld [vmem:[%s24811_s8 + $0x5e8] sm:$0xff] }
 0xaf9   :  { %v15173_v12 = vpack.c.bf16 %v11949_v49, %v11944_v1  ;;  %v11846_v4 = vld [vmem:[%s24811_s8 + $0x5c0] sm:$0xff]  ;;  %v11951_v16 = vld [vmem:[%s24811_s8 + $0x908] sm:$0xff] }
 0xafa   :  { %15134 = vmatpush1.bf16.msra.mxu1 %v15133_v15  ;;  %v11904_v15 = vld [vmem:[%s24811_s8 + $0x790] sm:$0xff]  ;;  %v15239_v49 = vpack.c.bf16 %v11851_v61, %v11846_v4  ;;  %v12694_v7 = vld [vmem:[%s24813_s10 + $0x28] sm:$0xff]  ;;  %v12745_v24 = vld [vmem:[%s24813_s10 + $0x1c0] sm:$0xff] }
 0xafb   :  { %15136 = vmatprep.subr.bf16.mxu1 %v15135_v35  ;;  %15327 = vmatpush1.bf16.msra.mxu0 %v15326_v62  ;;  %v12782_v35 = vld [vmem:[%s24813_s10 + $0x2e8] sm:$0xff]  ;;  %v15157_v26 = vpack.c.bf16 %v11909_v20, %v11904_v15  ;;  %v15181_v62 = vpack.c.bf16 %v11969_v60, %v11964_v27  ;;  %v11989_v20 = vld [vmem:[%s24811_s8 + $0xa38] sm:$0xff]  ;;  %v11956_v27 = vld [vmem:[%s24811_s8 + $0x930] sm:$0xff] }
 0xafc   :  { %15329 = vmatprep.subr.bf16.mxu0 %v15328_v0  ;;  %v15330_v25 = vpack.c.bf16 %v12782_v35, %v12779_v58  ;;  %v11979_v0 = vld [vmem:[%s24811_s8 + $0x9e8] sm:$0xff]  ;;  %v11985_v58 = vld [vmem:[%s24811_s8 + $0xa18] sm:$0xff]  ;;  %v12757_v61 = vld [vmem:[%s24813_s10 + $0x220] sm:$0xff] }
 0xafd   :  { %v15185_v15 = vpack.c.bf16 %v11979_v0, %v11974_v17  ;;  %v11961_v60 = vld [vmem:[%s24811_s8 + $0x958] sm:$0xff]  ;;  %v11966_v0 = vld [vmem:[%s24811_s8 + $0x980] sm:$0xff]  ;;  %v12706_v4 = vld [vmem:[%s24813_s10 + $0x88] sm:$0xff] }
 0xafe   :  { %15138 = vmatpush1.bf16.msra.mxu1 %v15137_v43  ;;  %v11914_v43 = vld [vmem:[%s24811_s8 + $0x7e0] sm:$0xff]  ;;  %v11881_v17 = vld [vmem:[%s24811_s8 + $0x6d8] sm:$0xff] }
 0xaff   :  { %15140 = vmatprep.subr.bf16.mxu1 %v15139_v59  ;;  %15331 = vmatpush1.bf16.msra.mxu0 %v15330_v25  ;;  %v11919_v59 = vld [vmem:[%s24811_s8 + $0x808] sm:$0xff] }
 0xb00   :  { %15333 = vmatprep.subr.bf16.mxu0 %v15332_v29  ;;  %v15161_v30 = vpack.c.bf16 %v11919_v59, %v11914_v43  ;;  %v11995_v25 = vld [vmem:[%s24811_s8 + $0xa68] sm:$0xff] }
 0xb01   :  { %v15191_v13 = vpack.c.bf16 %v12000_v5, %v11995_v25  ;;  %v11999_v29 = vld [vmem:[%s24811_s8 + $0xa88] sm:$0xf]  ;;  %v11981_v25 = vld [vmem:[%s24811_s8 + $0x9f8] sm:$0xff] }
 0xb02   :  { %15142 = vmatpush1.bf16.msra.mxu1 %v15141_v19  ;;  %v11934_v19 = vld [vmem:[%s24811_s8 + $0x880] sm:$0xff]  ;;  %v15194_v43 = vpack.c.bf16 %v11999_v29, %v11994_v14  ;;  %v11901_v14 = vld [vmem:[%s24811_s8 + $0x778] sm:$0xff]  ;;  %v12739_v29 = vld [vmem:[%s24813_s10 + $0x190] sm:$0xff] }
 0xb03   :  { %15144 = vmatprep.subr.bf16.mxu1 %v15143_v34  ;;  %v11939_v34 = vld [vmem:[%s24811_s8 + $0x8a8] sm:$0xff] }
 0xb04   :  { %v15169_v63 = vpack.c.bf16 %v11939_v34, %v11934_v19  ;;  %v15235_v19 = vpack.c.bf16 %v11841_v51, %v11836_v38  ;;  %v12700_v38 = vld [vmem:[%s24813_s10 + $0x58] sm:$0xff]  ;;  %v12751_v51 = vld [vmem:[%s24813_s10 + $0x1f0] sm:$0xff] }
 0xb06   :  { %15146 = vmatpush1.bf16.msra.mxu1 %v15145_v57  ;;  %v11955_v57 = vld [vmem:[%s24811_s8 + $0x928] sm:$0xff] }
 0xb07   :  { %15148 = vmatprep.subr.bf16.mxu1 %v15147_v23  ;;  %v11960_v23 = vld [vmem:[%s24811_s8 + $0x950] sm:$0xff] }
 0xb08   :  { %v15175_v6 = vpack.c.bf16 %v11960_v23, %v11955_v57  ;;  %v11856_v23 = vld [vmem:[%s24811_s8 + $0x610] sm:$0xff] }
 0xb0a   :  { %15150 = vmatpush1.bf16.msra.mxu1 %v15149_v44  ;;  %v11965_v44 = vld [vmem:[%s24811_s8 + $0x978] sm:$0xff] }
 0xb0b   :  { %15152 = vmatprep.subr.bf16.mxu1 %v15151_v41  ;;  %v15179_v41 = vpack.c.bf16 %v11970_v22, %v11965_v44  ;;  %v11866_v22 = vld [vmem:[%s24811_s8 + $0x660] sm:$0xff] }
 0xb0e   :  { %15154 = vmatpush1.bf16.msra.mxu1 %v15153_v47  ;;  %v11990_v47 = vld [vmem:[%s24811_s8 + $0xa40] sm:$0xff] }
 0xb0f   :  { %15156 = vmatprep.subr.bf16.mxu1 %v15155_v46  ;;  %v15187_v35 = vpack.c.bf16 %v11990_v47, %v11985_v58  ;;  %v11984_v46 = vld [vmem:[%s24811_s8 + $0xa10] sm:$0xff]  ;;  %v11971_v58 = vld [vmem:[%s24811_s8 + $0x9a8] sm:$0xff] }
 0xb10   :  { %v15189_v45 = vpack.c.bf16 %v11989_v20, %v11984_v46  ;;  %v11891_v46 = vld [vmem:[%s24811_s8 + $0x728] sm:$0xff]  ;;  %v11976_v20 = vld [vmem:[%s24811_s8 + $0x9d0] sm:$0xff] }
 0xb12   :  { %15158 = vmatpush1.bf16.msra.mxu1 %v15157_v26  ;;  %v11906_v26 = vld [vmem:[%s24811_s8 + $0x7a0] sm:$0xff] }
 0xb13   :  { %15160 = vmatprep.subr.bf16.mxu1 %v15159_v42  ;;  %v11911_v42 = vld [vmem:[%s24811_s8 + $0x7c8] sm:$0xff] }
 0xb14   :  { %v15229_v59 = vpack.c.bf16 %v11911_v42, %v11906_v26  ;;  %v12742_v26 = vld [vmem:[%s24813_s10 + $0x1a8] sm:$0xff] }
 0xb16   :  { %15162 = vmatpush1.bf16.msra.mxu1 %v15161_v30  ;;  %v11916_v30 = vld [vmem:[%s24811_s8 + $0x7f0] sm:$0xff] }
 0xb17   :  { %15164 = vmatprep.subr.bf16.mxu1 %v15163_v3  ;;  %v11921_v3 = vld [vmem:[%s24811_s8 + $0x818] sm:$0xff] }
 0xb18   :  { %v15233_v39 = vpack.c.bf16 %v11921_v3, %v11916_v30  ;;  %v12748_v30 = vld [vmem:[%s24813_s10 + $0x1d8] sm:$0xff] }
 0xb1a   :  { %15166 = vmatpush1.bf16.msra.mxu1 %v15165_v21  ;;  %v11926_v21 = vld [vmem:[%s24811_s8 + $0x840] sm:$0xff] }
 0xb1b   :  { %15168 = vmatprep.subr.bf16.mxu1 %v15167_v9  ;;  %v11931_v9 = vld [vmem:[%s24811_s8 + $0x868] sm:$0xff] }
 0xb1c   :  { %v15237_v34 = vpack.c.bf16 %v11931_v9, %v11926_v21  ;;  %v12754_v21 = vld [vmem:[%s24813_s10 + $0x208] sm:$0xff] }
 0xb1e   :  { %15170 = vmatpush1.bf16.msra.mxu1 %v15169_v63 }
 0xb1f   :  { %15172 = vmatprep.subr.bf16.mxu1 %v15171_v18  ;;  %v11936_v18 = vld [vmem:[%s24811_s8 + $0x890] sm:$0xff] }
 0xb22   :  { %15174 = vmatpush1.bf16.msra.mxu1 %v15173_v12  ;;  %v11861_v12 = vld [vmem:[%s24811_s8 + $0x638] sm:$0xff] }
 0xb23   :  { %15176 = vmatprep.subr.bf16.mxu1 %v15175_v6  ;;  %v11946_v6 = vld [vmem:[%s24811_s8 + $0x8e0] sm:$0xff]  ;;  %v15243_v37 = vpack.c.bf16 %v11861_v12, %v11856_v23 }
 0xb24   :  { %v15245_v44 = vpack.c.bf16 %v11951_v16, %v11946_v6  ;;  %v12715_v6 = vld [vmem:[%s24813_s10 + $0xd0] sm:$0xff]  ;;  %v12718_v16 = vld [vmem:[%s24813_s10 + $0xe8] sm:$0xff] }
 0xb26   :  { %15178 = vmatpush1.bf16.msra.mxu1 %v15177_v50  ;;  %v11871_v50 = vld [vmem:[%s24811_s8 + $0x688] sm:$0xff] }
 0xb27   :  { %15180 = vmatprep.subr.bf16.mxu1 %v15179_v41  ;;  %v15247_v10 = vpack.c.bf16 %v11871_v50, %v11866_v22  ;;  %v15424_v22 = vpack.c.bf16 %v12718_v16, %v12715_v6  ;;  %v12797_v16 = vld [vmem:[%s24813_s10 + $0x360] sm:$0xff] }
 0xb2a   :  { %15182 = vmatpush1.bf16.msra.mxu1 %v15181_v62  ;;  %v15249_v62 = vpack.c.bf16 %v11961_v60, %v11956_v27  ;;  %v12721_v27 = vld [vmem:[%s24813_s10 + $0x100] sm:$0xff]  ;;  %v12724_v60 = vld [vmem:[%s24813_s10 + $0x118] sm:$0xff] }
 0xb2b   :  { %15184 = vmatprep.subr.bf16.mxu1 %v15183_v48  ;;  %v11876_v48 = vld [vmem:[%s24811_s8 + $0x6b0] sm:$0xff] }
 0xb2c   :  { %v15251_v47 = vpack.c.bf16 %v11881_v17, %v11876_v48  ;;  %v12727_v17 = vld [vmem:[%s24813_s10 + $0x130] sm:$0xff] }
 0xb2e   :  { %15186 = vmatpush1.bf16.msra.mxu1 %v15185_v15  ;;  %v15253_v15 = vpack.c.bf16 %v11971_v58, %v11966_v0  ;;  %v12730_v0 = vld [vmem:[%s24813_s10 + $0x148] sm:$0xff]  ;;  %v12781_v58 = vld [vmem:[%s24813_s10 + $0x2e0] sm:$0xff] }
 0xb2f   :  { %15188 = vmatprep.subr.bf16.mxu1 %v15187_v35  ;;  %v11886_v35 = vld [vmem:[%s24811_s8 + $0x700] sm:$0xff] }
 0xb30   :  { %v15255_v5 = vpack.c.bf16 %v11891_v46, %v11886_v35  ;;  %v12733_v46 = vld [vmem:[%s24813_s10 + $0x160] sm:$0xff] }
 0xb31   :  { %12397 = vmatmul.mubr.f32.vlgmr.msra.gmra.mrb[136].mxu1 %v23280_v32 }
 0xb32   :  { %15190 = vmatpush1.bf16.msra.mxu1 %v15189_v45  ;;  %12467 = vmatprep.mubr.f32.mxu1 %v24883_v54  ;;  %v15257_v45 = vpack.c.bf16 %v11981_v25, %v11976_v20  ;;  %v12736_v20 = vld [vmem:[%s24813_s10 + $0x178] sm:$0xff]  ;;  %v12835_v25 = vld [vmem:[%s24813_s10 + $0x490] sm:$0xff] }
 0xb33   :  { %15193 = vmatprep.subr.msk.bf16.mxu1 %vm23080_vm0, %v15191_v13  ;;  %v11896_v13 = vld [vmem:[%s24811_s8 + $0x750] sm:$0xff] }
 0xb34   :  { %v15259_v42 = vpack.c.bf16 %v11901_v14, %v11896_v13  ;;  %v24120_v14 = vld [vmem:[%s24812_s9] sm:$0x1f] }
 0xb36   :  { %15196 = vmatpush1.bf16.msk.msra.mxu1 %vm23080_vm0, %v15194_v43  ;;  %v15406_v43 = vpack.c.bf16 %v12742_v26, %v12739_v29  ;;  %v12007_v29 = vrot.slane %v24120_v14, %v23008_v36  ;;  %v12011_v26 = vrot.slane %v24120_v14, %v23016_v8 }
 0xb37   :  { %15230 = vmatprep.subr.bf16.mxu1 %v15229_v59  ;;  %v12691_v59 = vld [vmem:[%s24813_s10 + $0x10] sm:$0xff] }
 0xb38   :  { %v15408_v3 = vpack.c.bf16 %v12694_v7, %v12691_v59  ;;  %v12788_v59 = vld [vmem:[%s24813_s10 + $0x318] sm:$0xff] }
 0xb39   :  { %14065 = vmatmul.mubr.msk.f32.vlgmr.msra.gmra.mrb[136].mxu1 %vm12029_vm2, %v23100_v11 }
 0xb3a   :  { %15232 = vmatpush3.bf16.msra.mxu1 %v15231_v28  ;;  %12608 = vmatprep.mubr.f32.mxu1 %v23076_v2  ;;  %v11941_v2 = vld [vmem:[%s24811_s8 + $0x8b8] sm:$0xff]  ;;  %v15410_v28 = vpack.c.bf16 %v12748_v30, %v12745_v24 }
 0xb3b   :  { %15234 = vmatprep.subr.bf16.mxu1 %v15233_v39  ;;  %v15241_v57 = vpack.c.bf16 %v11941_v2, %v11936_v18  ;;  %v12697_v39 = vld [vmem:[%s24813_s10 + $0x40] sm:$0xff]  ;;  %v12792_v30 = vld [vmem:[%s24813_s10 + $0x338] sm:$0xff] }
 0xb3c   :  { %v14193_v63 = vpop.f32.mrb[124].mxu0  ;;  %v15412_v9 = vpack.c.bf16 %v12700_v38, %v12697_v39  ;;  %v12709_v2 = vld [vmem:[%s24813_s10 + $0xa0] sm:$0xff]  ;;  %v12795_v38 = vld [vmem:[%s24813_s10 + $0x350] sm:$0xff] }
 0xb3d   :  { %v14194_v11 = vpop.f32.mrb[125].mxu0 }
 0xb3e   :  { %v23956_v1 = vadd.f32 %v14194_v11, %v14193_v63  ;;  %15236 = vmatpush3.bf16.msra.mxu1 %v15235_v19  ;;  %v15414_v19 = vpack.c.bf16 %v12754_v21, %v12751_v51  ;;  %v12712_v11 = vld [vmem:[%s24813_s10 + $0xb8] sm:$0xff]  ;;  %v12841_v51 = vld [vmem:[%s24813_s10 + $0x4c0] sm:$0xff] }
 0xb3f   :  { %15238 = vmatprep.subr.bf16.mxu1 %v15237_v34  ;;  %v12703_v34 = vld [vmem:[%s24813_s10 + $0x70] sm:$0xff]  ;;  %v15420_v23 = vpack.c.bf16 %v12712_v11, %v12709_v2  ;;  %v12844_v21 = vld [vmem:[%s24813_s10 + $0x4d8] sm:$0xff]  ;;  %v12793_v11 = vld [vmem:[%s24813_s10 + $0x340] sm:$0xff] }
 0xb40   :  { %v15416_v63 = vpack.c.bf16 %v12706_v4, %v12703_v34  ;;  %v12791_v34 = vld [vmem:[%s24813_s10 + $0x330] sm:$0xff]  ;;  %v12794_v4 = vld [vmem:[%s24813_s10 + $0x348] sm:$0xff]  ;;  %v15442_v2 = vpack.c.bf16 %v12844_v21, %v12841_v51 }
 0xb41   :  { %v15338_v6 = vpack.c.bf16 %v12794_v4, %v12791_v34  ;;  %v12815_v21 = vld [vmem:[%s24813_s10 + $0x3f0] sm:$0xff]  ;;  %v12822_v4 = vld [vmem:[%s24813_s10 + $0x428] sm:$0xff] }
 0xb42   :  { %15240 = vmatpush3.bf16.msra.mxu1 %v15239_v49  ;;  %v12763_v49 = vld [vmem:[%s24813_s10 + $0x250] sm:$0xff] }
 0xb43   :  { %15242 = vmatprep.subr.bf16.mxu1 %v15241_v57  ;;  %v12766_v57 = vld [vmem:[%s24813_s10 + $0x268] sm:$0xff] }
 0xb44   :  { %v23976_v41 = vpop.f32.mrb[126].mxu0  ;;  %v15422_v12 = vpack.c.bf16 %v12766_v57, %v12763_v49  ;;  %v12796_v49 = vld [vmem:[%s24813_s10 + $0x358] sm:$0xff]  ;;  %v12801_v57 = vld [vmem:[%s24813_s10 + $0x380] sm:$0xff] }
 0xb45   :  { %v14534_v33 = vpop.f32.mrb[127].mxu0 }
 0xb46   :  { %15244 = vmatpush3.bf16.msra.mxu1 %v15243_v37  ;;  %v12769_v37 = vld [vmem:[%s24813_s10 + $0x280] sm:$0xff]  ;;  %v12775_v33 = vld [vmem:[%s24813_s10 + $0x2b0] sm:$0xff] }
 0xb47   :  { %15246 = vmatprep.subr.bf16.mxu1 %v15245_v44  ;;  %v12772_v44 = vld [vmem:[%s24813_s10 + $0x298] sm:$0xff] }
 0xb48   :  { %v15426_v50 = vpack.c.bf16 %v12772_v44, %v12769_v37  ;;  %v12800_v37 = vld [vmem:[%s24813_s10 + $0x378] sm:$0xff]  ;;  %v15444_v44 = vpack.c.bf16 %v12796_v49, %v12793_v11  ;;  %v12874_v11 = vld [vmem:[%s24813_s10 + $0x5c8] sm:$0xff] }
 0xb4a   :  { %15248 = vmatpush3.bf16.msra.mxu1 %v15247_v10  ;;  %v12778_v10 = vld [vmem:[%s24813_s10 + $0x2c8] sm:$0xff] }
 0xb4b   :  { %15250 = vmatprep.subr.bf16.mxu1 %v15249_v62  ;;  %v15428_v62 = vpack.c.bf16 %v12724_v60, %v12721_v27  ;;  %v15430_v48 = vpack.c.bf16 %v12778_v10, %v12775_v33  ;;  %v12799_v60 = vld [vmem:[%s24813_s10 + $0x370] sm:$0xff]  ;;  %v12802_v33 = vld [vmem:[%s24813_s10 + $0x388] sm:$0xff] }
 0xb4c   :  { %v12807_v10 = vld [vmem:[%s24813_s10 + $0x3b0] sm:$0xff] }
 0xb4e   :  { %15252 = vmatpush3.bf16.msra.mxu1 %v15251_v47  ;;  %v12784_v47 = vld [vmem:[%s24813_s10 + $0x2f8] sm:$0xff] }
 0xb4f   :  { %15254 = vmatprep.subr.bf16.mxu1 %v15253_v15  ;;  %v15432_v15 = vpack.c.bf16 %v12730_v0, %v12727_v17  ;;  %v15434_v35 = vpack.c.bf16 %v12784_v47, %v12781_v58  ;;  %v15342_v17 = vpack.c.bf16 %v12800_v37, %v12797_v16  ;;  %v12803_v0 = vld [vmem:[%s24813_s10 + $0x390] sm:$0xff]  ;;  %v12806_v58 = vld [vmem:[%s24813_s10 + $0x3a8] sm:$0xff]  ;;  %v15448_v47 = vpack.c.bf16 %v12802_v33, %v12799_v60  ;;  %v12828_v16 = vld [vmem:[%s24813_s10 + $0x458] sm:$0xff] }
 0xb50   :  { %v12880_v60 = vld [vmem:[%s24813_s10 + $0x5f8] sm:$0xff] }
 0xb52   :  { %15256 = vmatpush3.bf16.msra.mxu1 %v15255_v5  ;;  %v12838_v5 = vld [vmem:[%s24813_s10 + $0x4a8] sm:$0xff] }
 0xb53   :  { %15258 = vmatprep.subr.bf16.mxu1 %v15257_v45  ;;  %v15436_v45 = vpack.c.bf16 %v12736_v20, %v12733_v46  ;;  %v15438_v13 = vpack.c.bf16 %v12838_v5, %v12835_v25  ;;  %v12805_v20 = vld [vmem:[%s24813_s10 + $0x3a0] sm:$0xff]  ;;  %v12808_v25 = vld [vmem:[%s24813_s10 + $0x3b8] sm:$0xff] }
 0xb54   :  { %v12813_v5 = vld [vmem:[%s24813_s10 + $0x3e0] sm:$0xff] }
 0xb56   :  { %15260 = vmatpush3.bf16.msra.mxu1 %v15259_v42 }
 0xb57   :  { %15407 = vmatprep.subr.bf16.mxu1 %v15406_v43  ;;  %v12785_v43 = vld [vmem:[%s24813_s10 + $0x300] sm:$0xff] }
 0xb59   :  { %12609 = vmatmul.mubr.f32.vlgmr.msra.gmra.mrb[138].mxu1 %v23280_v32  ;;  %v12760_v32 = vld [vmem:[%s24813_s10 + $0x238] sm:$0xff] }
 0xb5a   :  { %15409 = vmatpush3.bf16.msra.mxu1 %v15408_v3  ;;  %v15418_v18 = vpack.c.bf16 %v12760_v32, %v12757_v61  ;;  %v12787_v3 = vld [vmem:[%s24813_s10 + $0x310] sm:$0xff] }
 0xb5b   :  { %15411 = vmatprep.subr.bf16.mxu1 %v15410_v28  ;;  %v12790_v28 = vld [vmem:[%s24813_s10 + $0x328] sm:$0xff] }
 0xb5c   :  { %v15440_v61 = vpack.c.bf16 %v12790_v28, %v12787_v3  ;;  %v12814_v3 = vld [vmem:[%s24813_s10 + $0x3e8] sm:$0xff]  ;;  %v12819_v28 = vld [vmem:[%s24813_s10 + $0x410] sm:$0xff] }
 0xb5e   :  { %15413 = vmatpush3.bf16.msra.mxu1 %v15412_v9 }
 0xb5f   :  { %15415 = vmatprep.subr.bf16.mxu1 %v15414_v19  ;;  %v15334_v19 = vpack.c.bf16 %v12788_v59, %v12785_v43  ;;  %v15452_v43 = vpack.c.bf16 %v12808_v25, %v12805_v20 }
 0xb62   :  { %15417 = vmatpush3.bf16.msra.mxu1 %v15416_v63  ;;  %v15336_v63 = vpack.c.bf16 %v12795_v38, %v12792_v30  ;;  %v12811_v30 = vld [vmem:[%s24813_s10 + $0x3d0] sm:$0xff]  ;;  %v12868_v38 = vld [vmem:[%s24813_s10 + $0x598] sm:$0xff] }
 0xb63   :  { %15419 = vmatprep.subr.bf16.mxu1 %v15418_v18  ;;  %v12798_v18 = vld [vmem:[%s24813_s10 + $0x368] sm:$0xff] }
 0xb66   :  { %15421 = vmatpush3.bf16.msra.mxu1 %v15420_v23  ;;  %v12847_v23 = vld [vmem:[%s24813_s10 + $0x4f0] sm:$0xff] }
 0xb67   :  { %15423 = vmatprep.subr.bf16.mxu1 %v15422_v12  ;;  %v12850_v12 = vld [vmem:[%s24813_s10 + $0x508] sm:$0xff] }
 0xb68   :  { %v15446_v27 = vpack.c.bf16 %v12850_v12, %v12847_v23  ;;  %v12824_v23 = vld [vmem:[%s24813_s10 + $0x438] sm:$0xff] }
 0xb6a   :  { %15425 = vmatpush3.bf16.msra.mxu1 %v15424_v22  ;;  %v15340_v22 = vpack.c.bf16 %v12801_v57, %v12798_v18  ;;  %v12825_v18 = vld [vmem:[%s24813_s10 + $0x440] sm:$0xff] }
 0xb6b   :  { %15427 = vmatprep.subr.bf16.mxu1 %v15426_v50  ;;  %v12804_v50 = vld [vmem:[%s24813_s10 + $0x398] sm:$0xff]  ;;  %v12821_v57 = vld [vmem:[%s24813_s10 + $0x420] sm:$0xff] }
 0xb6c   :  { %v15358_v33 = vpack.c.bf16 %v12824_v23, %v12821_v57 }
 0xb6e   :  { %15429 = vmatpush3.bf16.msra.mxu1 %v15428_v62  ;;  %v12853_v62 = vld [vmem:[%s24813_s10 + $0x520] sm:$0xff] }
 0xb6f   :  { %15431 = vmatprep.subr.bf16.mxu1 %v15430_v48  ;;  %v12856_v48 = vld [vmem:[%s24813_s10 + $0x538] sm:$0xff] }
 0xb70   :  { %v15450_v46 = vpack.c.bf16 %v12856_v48, %v12853_v62 }
 0xb72   :  { %15433 = vmatpush3.bf16.msra.mxu1 %v15432_v15  ;;  %v15344_v15 = vpack.c.bf16 %v12807_v10, %v12804_v50  ;;  %v12831_v50 = vld [vmem:[%s24813_s10 + $0x470] sm:$0xff] }
 0xb73   :  { %15435 = vmatprep.subr.bf16.mxu1 %v15434_v35  ;;  %v12810_v35 = vld [vmem:[%s24813_s10 + $0x3c8] sm:$0xff]  ;;  %v12827_v10 = vld [vmem:[%s24813_s10 + $0x450] sm:$0xff]  ;;  %v15360_v48 = vpack.c.bf16 %v12831_v50, %v12828_v16  ;;  %v12869_v50 = vld [vmem:[%s24813_s10 + $0x5a0] sm:$0xff] }
 0xb74   :  { %v15348_v59 = vpack.c.bf16 %v12813_v5, %v12810_v35  ;;  %v12837_v35 = vld [vmem:[%s24813_s10 + $0x4a0] sm:$0xff]  ;;  %v12870_v16 = vld [vmem:[%s24813_s10 + $0x5a8] sm:$0xff] }
 0xb75   :  { %v12833_v5 = vld [vmem:[%s24813_s10 + $0x480] sm:$0xff] }
 0xb76   :  { %15437 = vmatpush3.bf16.msra.mxu1 %v15436_v45  ;;  %v12859_v45 = vld [vmem:[%s24813_s10 + $0x550] sm:$0xff] }
 0xb77   :  { %15439 = vmatprep.subr.bf16.mxu1 %v15438_v13  ;;  %v12862_v13 = vld [vmem:[%s24813_s10 + $0x568] sm:$0xff] }
 0xb84   :  { %v12256_v42 = vpop.f32.mrb[134].mxu1 }
 0xb85   :  { %v15590_v7 = vadd.f32 %v12256_v42, %v12007_v29  ;;  %v12258_v24 = vpop.f32.mrb[135].mxu1  ;;  %v15346_v29 = vpack.c.bf16 %v12806_v58, %v12803_v0  ;;  %v12812_v42 = vld [vmem:[%s24813_s10 + $0x3d8] sm:$0xff]  ;;  %v12829_v58 = vld [vmem:[%s24813_s10 + $0x460] sm:$0xff] }
 0xb86   :  { %v15591_v39 = vadd.f32 %v12258_v24, %v12011_v26  ;;  %v12809_v26 = vld [vmem:[%s24813_s10 + $0x3c0] sm:$0xff]  ;;  %v15454_v24 = vpack.c.bf16 %v12862_v13, %v12859_v45  ;;  %v12836_v45 = vld [vmem:[%s24813_s10 + $0x498] sm:$0xff] }
 0xb87   :  { %v12684_v32 = vmax.f32 %v15590_v7, 0.0  ;;  %v12816_v7 = vld [vmem:[%s24813_s10 + $0x3f8] sm:$0xff]  ;;  %v15350_v51 = vpack.c.bf16 %v12812_v42, %v12809_v26  ;;  %v15366_v26 = vpack.c.bf16 %v12836_v45, %v12833_v5 }
 0xb88   :  { %v12685_v9 = vmax.f32 %v15591_v39, 0.0  ;;  %v12865_v39 = vld [vmem:[%s24813_s10 + $0x580] sm:$0xff]  ;;  %v15352_v34 = vpack.c.bf16 %v12819_v28, %v12816_v7  ;;  %v12840_v13 = vld [vmem:[%s24813_s10 + $0x4b8] sm:$0xff]  ;;  %v12846_v7 = vld [vmem:[%s24813_s10 + $0x4e8] sm:$0xff] }
 0xb89   :  { %v12845_v28 = vld [vmem:[%s24813_s10 + $0x4e0] sm:$0xff] }
 0xb8a   :  { %12986 = vmatprep.mubr.f32.mxu0 %v12685_v9  ;;  %13199 = vmatprep.mubr.f32.mxu1 %v12685_v9  ;;  %v12818_v9 = vld [vmem:[%s24813_s10 + $0x408] sm:$0xff] }
 0xb8b   :  { %12987 = vmatmul.mubr.f32.vlgmr.msra.gmra.mrb[128].mxu0 %v12684_v32  ;;  %13200 = vmatmul.mubr.f32.vlgmr.msra.gmra.mrb[140].mxu1 %v12684_v32  ;;  %v12817_v32 = vld [vmem:[%s24813_s10 + $0x400] sm:$0xff]  ;;  %v15354_v49 = vpack.c.bf16 %v12818_v9, %v12815_v21 }
 0xb8c   :  { %15335 = vmatpush1.bf16.msra.mxu0 %v15334_v19  ;;  %15441 = vmatpush3.bf16.msra.mxu1 %v15440_v61  ;;  %v15456_v19 = vpack.c.bf16 %v12814_v3, %v12811_v30  ;;  %v15458_v61 = vpack.c.bf16 %v12868_v38, %v12865_v39  ;;  %v12848_v39 = vld [vmem:[%s24813_s10 + $0x4f8] sm:$0xff] }
 0xb8d   :  { %15337 = vmatprep.subr.bf16.mxu0 %v15336_v63  ;;  %15443 = vmatprep.subr.bf16.mxu1 %v15442_v2  ;;  %v12820_v63 = vld [vmem:[%s24813_s10 + $0x418] sm:$0xff]  ;;  %v12871_v2 = vld [vmem:[%s24813_s10 + $0x5b0] sm:$0xff]  ;;  %v15374_v21 = vpack.c.bf16 %v12848_v39, %v12845_v28  ;;  %v12890_v39 = vld [vmem:[%s24813_s10 + $0x648] sm:$0xf] }
 0xb8e   :  { %v15460_v12 = vpack.c.bf16 %v12820_v63, %v12817_v32  ;;  %v15462_v37 = vpack.c.bf16 %v12874_v11, %v12871_v2  ;;  %v12852_v38 = vld [vmem:[%s24813_s10 + $0x518] sm:$0xff] }
 0xb8f   :  { %v12860_v2 = vld [vmem:[%s24813_s10 + $0x558] sm:$0xff] }
 0xb90   :  { %15339 = vmatpush1.bf16.msra.mxu0 %v15338_v6  ;;  %15445 = vmatpush3.bf16.msra.mxu1 %v15444_v44  ;;  %v15356_v6 = vpack.c.bf16 %v12825_v18, %v12822_v4  ;;  %v12823_v44 = vld [vmem:[%s24813_s10 + $0x430] sm:$0xff]  ;;  %v12858_v4 = vld [vmem:[%s24813_s10 + $0x548] sm:$0xff]  ;;  %v12857_v18 = vld [vmem:[%s24813_s10 + $0x540] sm:$0xff] }
 0xb91   :  { %15341 = vmatprep.subr.bf16.mxu0 %v15340_v22  ;;  %15447 = vmatprep.subr.bf16.mxu1 %v15446_v27  ;;  %v12826_v22 = vld [vmem:[%s24813_s10 + $0x448] sm:$0xff]  ;;  %v12877_v27 = vld [vmem:[%s24813_s10 + $0x5e0] sm:$0xff]  ;;  %v12864_v11 = vld [vmem:[%s24813_s10 + $0x578] sm:$0xff]  ;;  %v15382_v57 = vpack.c.bf16 %v12860_v2, %v12857_v18 }
 0xb92   :  { %v15464_v62 = vpack.c.bf16 %v12826_v22, %v12823_v44  ;;  %v15466_v0 = vpack.c.bf16 %v12880_v60, %v12877_v27  ;;  %v12872_v27 = vld [vmem:[%s24813_s10 + $0x5b8] sm:$0xff] }
 0xb93   :  { %v12876_v60 = vld [vmem:[%s24813_s10 + $0x5d8] sm:$0xff] }
 0xb94   :  { %15343 = vmatpush1.bf16.msra.mxu0 %v15342_v17  ;;  %15449 = vmatpush3.bf16.msra.mxu1 %v15448_v47  ;;  %v12830_v17 = vld [vmem:[%s24813_s10 + $0x468] sm:$0xff]  ;;  %v12832_v47 = vld [vmem:[%s24813_s10 + $0x478] sm:$0xff] }
 0xb95   :  { %15345 = vmatprep.subr.bf16.mxu0 %v15344_v15  ;;  %15451 = vmatprep.subr.bf16.mxu1 %v15450_v46  ;;  %v12834_v15 = vld [vmem:[%s24813_s10 + $0x488] sm:$0xff]  ;;  %v15362_v46 = vpack.c.bf16 %v12830_v17, %v12827_v10  ;;  %v15468_v20 = vpack.c.bf16 %v12832_v47, %v12829_v58  ;;  %v15390_v10 = vpack.c.bf16 %v12872_v27, %v12869_v50  ;;  %v12885_v58 = vld [vmem:[%s24813_s10 + $0x620] sm:$0xff]  ;;  %v13363_v27 = vld [vmem:[%s24815_s12 + $0x78] sm:$0xff] }
 0xb96   :  { %v15364_v25 = vpack.c.bf16 %v12837_v35, %v12834_v15  ;;  %v12878_v17 = vld [vmem:[%s24813_s10 + $0x5e8] sm:$0xff]  ;;  %v12015_v35 = vrot.slane %v24120_v14, %v23239_v55  ;;  %v13360_v50 = vld [vmem:[%s24815_s12 + $0x60] sm:$0xff] }
 0xb98   :  { %15347 = vmatpush1.bf16.msra.mxu0 %v15346_v29  ;;  %15453 = vmatpush3.bf16.msra.mxu1 %v15452_v43  ;;  %v12843_v29 = vld [vmem:[%s24813_s10 + $0x4d0] sm:$0xff] }
 0xb99   :  { %15349 = vmatprep.subr.bf16.mxu0 %v15348_v59  ;;  %15455 = vmatprep.subr.bf16.mxu1 %v15454_v24  ;;  %v15368_v42 = vpack.c.bf16 %v12843_v29, %v12840_v13  ;;  %v12839_v43 = vld [vmem:[%s24813_s10 + $0x4b0] sm:$0xff]  ;;  %v12842_v59 = vld [vmem:[%s24813_s10 + $0x4c8] sm:$0xff]  ;;  %v12849_v24 = vld [vmem:[%s24813_s10 + $0x500] sm:$0xff] }
 0xb9a   :  { %v15370_v30 = vpack.c.bf16 %v12842_v59, %v12839_v43  ;;  %v15372_v3 = vpack.c.bf16 %v12849_v24, %v12846_v7  ;;  %v12884_v13 = vld [vmem:[%s24813_s10 + $0x618] sm:$0xff]  ;;  %v12883_v29 = vld [vmem:[%s24813_s10 + $0x610] sm:$0xff] }
 0xb9b   :  { %v12891_v43 = vld [vmem:[%s24813_s10 + $0x650] sm:$0xf] }
 0xb9c   :  { %15351 = vmatpush1.bf16.msra.mxu0 %v15350_v51  ;;  %15457 = vmatpush3.bf16.msra.mxu1 %v15456_v19  ;;  %v12855_v51 = vld [vmem:[%s24813_s10 + $0x530] sm:$0xff] }
 0xb9d   :  { %15353 = vmatprep.subr.bf16.mxu0 %v15352_v34  ;;  %15459 = vmatprep.subr.bf16.mxu1 %v15458_v61  ;;  %v15376_v9 = vpack.c.bf16 %v12855_v51, %v12852_v38  ;;  %v12851_v19 = vld [vmem:[%s24813_s10 + $0x510] sm:$0xff]  ;;  %v12854_v34 = vld [vmem:[%s24813_s10 + $0x528] sm:$0xff]  ;;  %v12861_v61 = vld [vmem:[%s24813_s10 + $0x560] sm:$0xff] }
 0xb9e   :  { %v15378_v32 = vpack.c.bf16 %v12854_v34, %v12851_v19  ;;  %v15380_v63 = vpack.c.bf16 %v12861_v61, %v12858_v4  ;;  %v12889_v38 = vld [vmem:[%s24813_s10 + $0x640] sm:$0xff]  ;;  %v12892_v51 = vld [vmem:[%s24813_s10 + $0x658] sm:$0xf]  ;;  %v12023_v61 = vrot.slane %v24120_v14, %v6843_v56  ;;  %v13358_v56 = vld [vmem:[%s24815_s12 + $0x50] sm:$0xff] }
 0xb9f   :  { %v15474_v34 = vpack.c.bf16 %v12892_v51, %v12889_v38 }
 0xba0   :  { %15355 = vmatpush1.bf16.msra.mxu0 %v15354_v49  ;;  %15461 = vmatpush3.bf16.msra.mxu1 %v15460_v12  ;;  %v12867_v49 = vld [vmem:[%s24813_s10 + $0x590] sm:$0xff]  ;;  %v12541_v18 = vadd.f32 %v23956_v1, %v12023_v61  ;;  %v13401_v61 = vld [vmem:[%s24815_s12 + $0x1a8] sm:$0xff] }
 0xba1   :  { %15357 = vmatprep.subr.bf16.mxu0 %v15356_v6  ;;  %15463 = vmatprep.subr.bf16.mxu1 %v15462_v37  ;;  %v15384_v23 = vpack.c.bf16 %v12867_v49, %v12864_v11  ;;  %v12863_v12 = vld [vmem:[%s24813_s10 + $0x570] sm:$0xff]  ;;  %v12866_v6 = vld [vmem:[%s24813_s10 + $0x588] sm:$0xff]  ;;  %v12873_v37 = vld [vmem:[%s24813_s10 + $0x5c0] sm:$0xff] }
 0xba2   :  { %v15386_v44 = vpack.c.bf16 %v12866_v6, %v12863_v12  ;;  %v15388_v22 = vpack.c.bf16 %v12873_v37, %v12870_v16  ;;  %v13348_v49 = vld [vmem:[%s24815_s12] sm:$0xff]  ;;  %v13354_v6 = vld [vmem:[%s24815_s12 + $0x30] sm:$0xff]  ;;  %v13357_v16 = vld [vmem:[%s24815_s12 + $0x48] sm:$0xff] }
 0xba3   :  { %v13361_v37 = vld [vmem:[%s24815_s12 + $0x68] sm:$0xff] }
 0xba4   :  { %15359 = vmatpush1.bf16.msra.mxu0 %v15358_v33  ;;  %15465 = vmatpush3.bf16.msra.mxu1 %v15464_v62  ;;  %v12879_v33 = vld [vmem:[%s24813_s10 + $0x5f0] sm:$0xff] }
 0xba5   :  { %15361 = vmatprep.subr.bf16.mxu0 %v15360_v48  ;;  %15467 = vmatprep.subr.bf16.mxu1 %v15466_v0  ;;  %v15392_v62 = vpack.c.bf16 %v12879_v33, %v12876_v60  ;;  %v12875_v48 = vld [vmem:[%s24813_s10 + $0x5d0] sm:$0xff]  ;;  %v12882_v0 = vld [vmem:[%s24813_s10 + $0x608] sm:$0xff]  ;;  %v13367_v60 = vld [vmem:[%s24815_s12 + $0x98] sm:$0xff] }
 0xba6   :  { %v15394_v47 = vpack.c.bf16 %v12878_v17, %v12875_v48  ;;  %v15396_v15 = vpack.c.bf16 %v12885_v58, %v12882_v0  ;;  %v13370_v33 = vld [vmem:[%s24815_s12 + $0xb0] sm:$0xff]  ;;  %v13369_v17 = vld [vmem:[%s24815_s12 + $0xa8] sm:$0xff]  ;;  %v13376_v58 = vld [vmem:[%s24815_s12 + $0xe0] sm:$0xff] }
 0xba7   :  { %v13366_v48 = vld [vmem:[%s24815_s12 + $0x90] sm:$0xff]  ;;  %v13373_v0 = vld [vmem:[%s24815_s12 + $0xc8] sm:$0xff] }
 0xba8   :  { %15363 = vmatpush1.bf16.msra.mxu0 %v15362_v46  ;;  %15469 = vmatpush3.bf16.msra.mxu1 %v15468_v20  ;;  %v12019_v46 = vrot.slane %v24120_v14, %v6839_v52  ;;  %v15479_v14 = vpack.c.bf16 %v13351_v53, %v13348_v49  ;;  %v13399_v49 = vld [vmem:[%s24815_s12 + $0x198] sm:$0xff]  ;;  %v13353_v53 = vld [vmem:[%s24815_s12 + $0x28] sm:$0xff] }
 0xba9   :  { %15365 = vmatprep.subr.bf16.mxu0 %v15364_v25  ;;  %15470 = vmatprep.subr.bf16.mxu1 %v15850_v31  ;;  %v12881_v25 = vld [vmem:[%s24813_s10 + $0x600] sm:$0xff] }
 0xbaa   :  { %v15398_v7 = vpack.c.bf16 %v12884_v13, %v12881_v25  ;;  %v13382_v25 = vld [vmem:[%s24815_s12 + $0x110] sm:$0xff] }
 0xbab   :  { %v13378_v13 = vld [vmem:[%s24815_s12 + $0xf0] sm:$0xff] }
 0xbac   :  { %15367 = vmatpush1.bf16.msra.mxu0 %v15366_v26  ;;  %v12886_v26 = vld [vmem:[%s24813_s10 + $0x628] sm:$0xff] }
 0xbad   :  { %15369 = vmatprep.subr.bf16.mxu0 %v15368_v42  ;;  %v12888_v42 = vld [vmem:[%s24813_s10 + $0x638] sm:$0xff]  ;;  %v15471_v24 = vpack.c.bf16 %v12886_v26, %v12883_v29  ;;  %v13381_v29 = vld [vmem:[%s24815_s12 + $0x108] sm:$0xff] }
 0xbae   :  { %v15400_v28 = vpack.c.bf16 %v12891_v43, %v12888_v42  ;;  %v15499_v26 = vpack.c.bf16 %v13381_v29, %v13378_v13  ;;  %v13371_v13 = vld [vmem:[%s24815_s12 + $0xb8] sm:$0xff]  ;;  %v13418_v29 = vld [vmem:[%s24815_s12 + $0x230] sm:$0xff] }
 0xbb0   :  { %15371 = vmatpush1.bf16.msra.mxu0 %v15370_v30  ;;  %v12887_v30 = vld [vmem:[%s24813_s10 + $0x630] sm:$0xff] }
 0xbb1   :  { %15373 = vmatprep.subr.bf16.mxu0 %v15372_v3  ;;  %v15403_v19 = vpack.c.bf16 %v12890_v39, %v12887_v30  ;;  %v13394_v39 = vld [vmem:[%s24815_s12 + $0x170] sm:$0xff] }
 0xbb4   :  { %15375 = vmatpush1.bf16.msra.mxu0 %v15374_v21  ;;  %v13349_v21 = vld [vmem:[%s24815_s12 + $0x8] sm:$0xff] }
 0xbb5   :  { %15377 = vmatprep.subr.bf16.mxu0 %v15376_v9  ;;  %v13352_v9 = vld [vmem:[%s24815_s12 + $0x20] sm:$0xff] }
 0xbb6   :  { %v15477_v4 = vpack.c.bf16 %v13352_v9, %v13349_v21  ;;  %v13390_v21 = vld [vmem:[%s24815_s12 + $0x150] sm:$0xff]  ;;  %v13393_v9 = vld [vmem:[%s24815_s12 + $0x168] sm:$0xff] }
 0xbb8   :  { %15379 = vmatpush1.bf16.msra.mxu0 %v15378_v32 }
 0xbb9   :  { %15381 = vmatprep.subr.bf16.mxu0 %v15380_v63 }
 0xbbc   :  { %15383 = vmatpush1.bf16.msra.mxu0 %v15382_v57  ;;  %v13355_v57 = vld [vmem:[%s24815_s12 + $0x38] sm:$0xff] }
 0xbbd   :  { %15385 = vmatprep.subr.bf16.mxu0 %v15384_v23  ;;  %v15481_v12 = vpack.c.bf16 %v13358_v56, %v13355_v57  ;;  %v13403_v57 = vld [vmem:[%s24815_s12 + $0x1b8] sm:$0xff] }
 0xbc0   :  { %15387 = vmatpush1.bf16.msra.mxu0 %v15386_v44  ;;  %v13364_v44 = vld [vmem:[%s24815_s12 + $0x80] sm:$0xff] }
 0xbc1   :  { %15389 = vmatprep.subr.bf16.mxu0 %v15388_v22  ;;  %v15485_v22 = vpack.c.bf16 %v13364_v44, %v13361_v37  ;;  %v13402_v44 = vld [vmem:[%s24815_s12 + $0x1b0] sm:$0xff] }
 0xbc4   :  { %15391 = vmatpush1.bf16.msra.mxu0 %v15390_v10  ;;  %v15487_v10 = vpack.c.bf16 %v13363_v27, %v13360_v50  ;;  %v13405_v27 = vld [vmem:[%s24815_s12 + $0x1c8] sm:$0xff] }
 0xbc5   :  { %15393 = vmatprep.subr.bf16.mxu0 %v15392_v62  ;;  %v15489_v62 = vpack.c.bf16 %v13370_v33, %v13367_v60  ;;  %v13409_v60 = vld [vmem:[%s24815_s12 + $0x1e8] sm:$0xff] }
 0xbc6   :  { %v13413_v33 = vld [vmem:[%s24815_s12 + $0x208] sm:$0xff] }
 0xbc8   :  { %15395 = vmatpush1.bf16.msra.mxu0 %v15394_v47  ;;  %v15491_v47 = vpack.c.bf16 %v13369_v17, %v13366_v48  ;;  %v13362_v48 = vld [vmem:[%s24815_s12 + $0x70] sm:$0xff]  ;;  %v13365_v17 = vld [vmem:[%s24815_s12 + $0x88] sm:$0xff] }
 0xbc9   :  { %15397 = vmatprep.subr.bf16.mxu0 %v15396_v15  ;;  %v15493_v15 = vpack.c.bf16 %v13376_v58, %v13373_v0  ;;  %v13416_v0 = vld [vmem:[%s24815_s12 + $0x220] sm:$0xff]  ;;  %v13419_v58 = vld [vmem:[%s24815_s12 + $0x238] sm:$0xff] }
 0xc0c   :  { %v12469_v20 = vpop.f32.mrb[136].mxu1 }
 0xc0d   :  { %v15592_v5 = vadd.f32 %v12469_v20, %v12015_v35  ;;  %v12471_v45 = vpop.f32.mrb[137].mxu1  ;;  %v13372_v35 = vld [vmem:[%s24815_s12 + $0xc0] sm:$0xff]  ;;  %v13379_v20 = vld [vmem:[%s24815_s12 + $0xf8] sm:$0xff] }
 0xc0e   :  { %v15593_v52 = vadd.f32 %v12471_v45, %v12019_v46  ;;  %v13375_v46 = vld [vmem:[%s24815_s12 + $0xd8] sm:$0xff]  ;;  %v15497_v45 = vpack.c.bf16 %v13382_v25, %v13379_v20 }
 0xc0f   :  { %v12686_v3 = vmax.f32 %v15592_v5, 0.0  ;;  %v15495_v5 = vpack.c.bf16 %v13375_v46, %v13372_v35  ;;  %v13411_v35 = vld [vmem:[%s24815_s12 + $0x1f8] sm:$0xff]  ;;  %v15557_v46 = vpack.c.bf16 %v13365_v17, %v13362_v48 }
 0xc10   :  { %v12687_v59 = vmax.f32 %v15593_v52, 0.0  ;;  %v13415_v25 = vld [vmem:[%s24815_s12 + $0x218] sm:$0xff] }
 0xc12   :  { %13057 = vmatprep.mubr.f32.mxu0 %v12687_v59  ;;  %13269 = vmatprep.mubr.f32.mxu1 %v12687_v59  ;;  %v13385_v59 = vld [vmem:[%s24815_s12 + $0x128] sm:$0xff] }
 0xc13   :  { %13058 = vmatmul.mubr.f32.vlgmr.msra.gmra.mrb[128].mxu0 %v12686_v3  ;;  %13270 = vmatmul.mubr.f32.vlgmr.msra.gmra.mrb[142].mxu1 %v12686_v3  ;;  %v13387_v3 = vld [vmem:[%s24815_s12 + $0x138] sm:$0xff] }
 0xc14   :  { %15399 = vmatpush1.bf16.msra.mxu0 %v15398_v7  ;;  %15472 = vmatpush3.bf16.msra.mxu1 %v15471_v24  ;;  %v13388_v7 = vld [vmem:[%s24815_s12 + $0x140] sm:$0xff] }
 0xc15   :  { %15402 = vmatprep.subr.msk.bf16.mxu0 %vm23080_vm0, %v15400_v28  ;;  %15473 = vmatprep.subr.bf16.mxu1 %v15850_v31  ;;  %v13384_v24 = vld [vmem:[%s24815_s12 + $0x120] sm:$0xff]  ;;  %v15501_v30 = vpack.c.bf16 %v13388_v7, %v13385_v59  ;;  %v13391_v28 = vld [vmem:[%s24815_s12 + $0x158] sm:$0xff]  ;;  %v13414_v59 = vld [vmem:[%s24815_s12 + $0x210] sm:$0xff] }
 0xc16   :  { %13128 = vmatprep.mubr.f32.mxu0 %v24883_v54  ;;  %14543 = vmatprep.mubr.msk.f32.mxu1 %vm15851_vm13, %v24883_v54  ;;  %v15503_v38 = vpack.c.bf16 %v13387_v3, %v13384_v24  ;;  %v15505_v51 = vpack.c.bf16 %v13394_v39, %v13391_v28  ;;  %v13417_v7 = vld [vmem:[%s24815_s12 + $0x228] sm:$0xff]  ;;  %v13374_v39 = vld [vmem:[%s24815_s12 + $0xd0] sm:$0xff] }
 0xc17   :  { %v13421_v3 = vld [vmem:[%s24815_s12 + $0x248] sm:$0xff] }
 0xc18   :  { %15405 = vmatpush1.bf16.msk.msra.mxu0 %vm23080_vm0, %v15403_v19  ;;  %15476 = vmatpush3.bf16.msk.msra.mxu1 %vm23080_vm0, %v15474_v34  ;;  %v13397_v19 = vld [vmem:[%s24815_s12 + $0x188] sm:$0xff]  ;;  %v13400_v34 = vld [vmem:[%s24815_s12 + $0x1a0] sm:$0xff] }
 0xc19   :  { %15478 = vmatprep.subr.bf16.mxu1 %v15477_v4  ;;  %v13398_v4 = vld [vmem:[%s24815_s12 + $0x190] sm:$0xff] }
 0xc2c   :  { %v14228_v32 = vpop.f32.mrb[138].mxu1 }
 0xc2d   :  { %v14229_v63 = vpop.f32.mrb[139].mxu1 }
 0xc2e   :  { %v14230_v2 = vadd.f32 %v14229_v63, %v14228_v32  ;;  %v15507_v32 = vpack.c.bf16 %v13393_v9, %v13390_v21  ;;  %v15547_v63 = vpack.c.bf16 %v13401_v61, %v13398_v4  ;;  %v13428_v21 = vld [vmem:[%s24815_s12 + $0x280] sm:$0xff]  ;;  %v13431_v9 = vld [vmem:[%s24815_s12 + $0x298] sm:$0xff] }
 0xc2f   :  { %v13423_v4 = vld [vmem:[%s24815_s12 + $0x258] sm:$0xff] }
 0xc30   :  { %v12611_v11 = vadd.f32 %v14230_v2, %v12541_v18  ;;  %v13396_v18 = vld [vmem:[%s24815_s12 + $0x180] sm:$0xff]  ;;  %v13350_v2 = vld [vmem:[%s24815_s12 + $0x10] sm:$0xff]  ;;  %15548 = vmatprep.subr.bf16.mxu0 %v15547_v63  ;;  %v13427_v63 = vld [vmem:[%s24815_s12 + $0x278] sm:$0xff] }
 0xc31   :  { %v15549_v56 = vpack.c.bf16 %v13353_v53, %v13350_v2  ;;  %v15511_v37 = vpack.c.bf16 %v13399_v49, %v13396_v18  ;;  %v15567_v18 = vpack.c.bf16 %v13431_v9, %v13428_v21  ;;  %v13380_v2 = vld [vmem:[%s24815_s12 + $0x100] sm:$0xff]  ;;  %v13430_v49 = vld [vmem:[%s24815_s12 + $0x290] sm:$0xff] }
 0xc32   :  { %v12681_v1 = vadd.f32 %v23976_v41, %v12611_v11  ;;  %v15483_v41 = vpack.c.bf16 %v13357_v16, %v13354_v6  ;;  %v15509_v11 = vpack.c.bf16 %v13400_v34, %v13397_v19  ;;  %v13356_v6 = vld [vmem:[%s24815_s12 + $0x40] sm:$0xff]  ;;  %v13359_v16 = vld [vmem:[%s24815_s12 + $0x58] sm:$0xff]  ;;  %v15523_v19 = vpack.c.bf16 %v13417_v7, %v13414_v59  ;;  %v13434_v53 = vld [vmem:[%s24815_s12 + $0x2b0] sm:$0xff] }
 0xc33   :  { %v13420_v34 = vld [vmem:[%s24815_s12 + $0x240] sm:$0xff] }
 0xc34   :  { %v12688_v23 = vmax.f32 %v12681_v1, 0.0  ;;  %v13406_v1 = vld [vmem:[%s24815_s12 + $0x1d0] sm:$0xff] }
 0xc35   :  { %v15513_v50 = vpack.c.bf16 %v13406_v1, %v13403_v57  ;;  %v13437_v57 = vld [vmem:[%s24815_s12 + $0x2c8] sm:$0xff] }
 0xc36   :  { %14070 = vmatmul.mubr.msk.f32.vlgmr.msra.gmra.mrb[128].mxu0 %vm12029_vm2, %v12688_v23  ;;  %14544 = vmatmul.mubr.msk.f32.vlgmr.msra.gmra.mrb[144].mxu1 %vm12029_vm2, %v12688_v23  ;;  %v13407_v23 = vld [vmem:[%s24815_s12 + $0x1d8] sm:$0xff] }
 0xc37   :  { %15480 = vmatpush1.bf16.msra.mxu1 %v15479_v14  ;;  %v13404_v14 = vld [vmem:[%s24815_s12 + $0x1c0] sm:$0xff]  ;;  %15550 = vmatpush3.bf16.msra.mxu0 %v15549_v56  ;;  %v15527_v56 = vpack.c.bf16 %v13423_v4, %v13420_v34 }
 0xc38   :  { %15482 = vmatprep.subr.bf16.mxu1 %v15481_v12  ;;  %v15551_v12 = vpack.c.bf16 %v13407_v23, %v13404_v14  ;;  %v15529_v14 = vpack.c.bf16 %v13430_v49, %v13427_v63  ;;  %v13426_v23 = vld [vmem:[%s24815_s12 + $0x270] sm:$0xff]  ;;  %v13444_v4 = vld [vmem:[%s24815_s12 + $0x300] sm:$0xff] }
 0xc3a   :  { %15552 = vmatprep.subr.bf16.mxu0 %v15551_v12  ;;  %v13429_v12 = vld [vmem:[%s24815_s12 + $0x288] sm:$0xff] }
 0xc3b   :  { %15484 = vmatpush1.bf16.msra.mxu1 %v15483_v41  ;;  %v15553_v41 = vpack.c.bf16 %v13359_v16, %v13356_v6  ;;  %v15571_v6 = vpack.c.bf16 %v13437_v57, %v13434_v53  ;;  %v13433_v16 = vld [vmem:[%s24815_s12 + $0x2a8] sm:$0xff] }
 0xc3c   :  { %15486 = vmatprep.subr.bf16.mxu1 %v15485_v22  ;;  %v13410_v22 = vld [vmem:[%s24815_s12 + $0x1f0] sm:$0xff] }
 0xc3d   :  { %15554 = vmatpush3.bf16.msra.mxu0 %v15553_v41 }
 0xc3f   :  { %15488 = vmatpush1.bf16.msra.mxu1 %v15487_v10  ;;  %v13412_v10 = vld [vmem:[%s24815_s12 + $0x200] sm:$0xff] }
 0xc40   :  { %15490 = vmatprep.subr.bf16.mxu1 %v15489_v62  ;;  %v15555_v62 = vpack.c.bf16 %v13413_v33, %v13410_v22  ;;  %v15517_v20 = vpack.c.bf16 %v13412_v10, %v13409_v60  ;;  %v13432_v22 = vld [vmem:[%s24815_s12 + $0x2a0] sm:$0xff]  ;;  %v13389_v33 = vld [vmem:[%s24815_s12 + $0x148] sm:$0xff]  ;;  %v13439_v10 = vld [vmem:[%s24815_s12 + $0x2d8] sm:$0xff] }
 0xc42   :  { %15556 = vmatprep.subr.bf16.mxu0 %v15555_v62  ;;  %v13442_v62 = vld [vmem:[%s24815_s12 + $0x2f0] sm:$0xff] }
 0xc43   :  { %15492 = vmatpush1.bf16.msra.mxu1 %v15491_v47  ;;  %v15515_v47 = vpack.c.bf16 %v13405_v27, %v13402_v44  ;;  %15558 = vmatpush3.bf16.msra.mxu0 %v15557_v46  ;;  %v15531_v44 = vpack.c.bf16 %v13429_v12, %v13426_v23  ;;  %v13386_v27 = vld [vmem:[%s24815_s12 + $0x130] sm:$0xff]  ;;  %v15537_v17 = vpack.c.bf16 %v13442_v62, %v13439_v10  ;;  %v13392_v46 = vld [vmem:[%s24815_s12 + $0x160] sm:$0xff] }
 0xc44   :  { %15494 = vmatprep.subr.bf16.mxu1 %v15493_v15  ;;  %v13408_v15 = vld [vmem:[%s24815_s12 + $0x1e0] sm:$0xff]  ;;  %v15573_v48 = vpack.c.bf16 %v13389_v33, %v13386_v27 }
 0xc45   :  { %v13450_v23 = vld [vmem:[%s24816_s13] sm:$0x7] }
 0xc46   :  { %v13455_v12 = vrot.slane %v13450_v23, %v23008_v36 }
 0xc47   :  { %15496 = vmatpush1.bf16.msra.mxu1 %v15495_v5  ;;  %v15559_v5 = vpack.c.bf16 %v13419_v58, %v13416_v0  ;;  %v13440_v0 = vld [vmem:[%s24815_s12 + $0x2e0] sm:$0xff]  ;;  %v13443_v58 = vld [vmem:[%s24815_s12 + $0x2f8] sm:$0xff] }
 0xc48   :  { %15498 = vmatprep.subr.bf16.mxu1 %v15497_v45  ;;  %v13368_v45 = vld [vmem:[%s24815_s12 + $0xa0] sm:$0xff] }
 0xc49   :  { %v15561_v24 = vpack.c.bf16 %v13371_v13, %v13368_v45  ;;  %15560 = vmatprep.subr.bf16.mxu0 %v15559_v5  ;;  %v13445_v45 = vld [vmem:[%s24815_s12 + $0x308] sm:$0xff]  ;;  %v13448_v13 = vld [vmem:[%s24815_s12 + $0x320] sm:$0x3f] }
 0xc4b   :  { %15500 = vmatpush1.bf16.msra.mxu1 %v15499_v26  ;;  %v13422_v26 = vld [vmem:[%s24815_s12 + $0x250] sm:$0xff]  ;;  %15562 = vmatpush3.bf16.msra.mxu0 %v15561_v24 }
 0xc4c   :  { %15502 = vmatprep.subr.bf16.mxu1 %v15501_v30  ;;  %v15521_v30 = vpack.c.bf16 %v13418_v29, %v13415_v25  ;;  %v15541_v29 = vpack.c.bf16 %v13448_v13, %v13445_v45 }
 0xc4f   :  { %15504 = vmatpush1.bf16.msra.mxu1 %v15503_v38  ;;  %v13377_v38 = vld [vmem:[%s24815_s12 + $0xe8] sm:$0xff] }
 0xc50   :  { %15506 = vmatprep.subr.bf16.mxu1 %v15505_v51  ;;  %v13424_v51 = vld [vmem:[%s24815_s12 + $0x260] sm:$0xff]  ;;  %v15565_v61 = vpack.c.bf16 %v13377_v38, %v13374_v39 }
 0xc53   :  { %15508 = vmatpush1.bf16.msra.mxu1 %v15507_v32  ;;  %v15525_v32 = vpack.c.bf16 %v13424_v51, %v13421_v3 }
 0xc54   :  { %15510 = vmatprep.subr.bf16.mxu1 %v15509_v11  ;;  %v13383_v11 = vld [vmem:[%s24815_s12 + $0x118] sm:$0xff] }
 0xc55   :  { %v15569_v1 = vpack.c.bf16 %v13383_v11, %v13380_v2  ;;  %v13446_v2 = vld [vmem:[%s24815_s12 + $0x310] sm:$0xff]  ;;  %v13449_v11 = vld [vmem:[%s24815_s12 + $0x328] sm:$0x3f] }
 0xc56   :  { %v15580_v49 = vpack.c.bf16 %v13449_v11, %v13446_v2 }
 0xc57   :  { %15512 = vmatpush1.bf16.msra.mxu1 %v15511_v37  ;;  %v13436_v37 = vld [vmem:[%s24815_s12 + $0x2c0] sm:$0xff] }
 0xc58   :  { %15514 = vmatprep.subr.bf16.mxu1 %v15513_v50  ;;  %v15533_v41 = vpack.c.bf16 %v13436_v37, %v13433_v16  ;;  %v13435_v50 = vld [vmem:[%s24815_s12 + $0x2b8] sm:$0xff]  ;;  %v13463_v37 = vrot.slane %v13450_v23, %v23239_v55 }
 0xc59   :  { %v15535_v60 = vpack.c.bf16 %v13435_v50, %v13432_v22 }
 0xc5b   :  { %15516 = vmatpush1.bf16.msra.mxu1 %v15515_v47  ;;  %v13438_v47 = vld [vmem:[%s24815_s12 + $0x2d0] sm:$0xff] }
 0xc5c   :  { %15518 = vmatprep.subr.bf16.mxu1 %v15517_v20  ;;  %v13395_v20 = vld [vmem:[%s24815_s12 + $0x178] sm:$0xff] }
 0xc5d   :  { %v15577_v5 = vpack.c.bf16 %v13395_v20, %v13392_v46 }
 0xc5e   :  { %v14268_v52 = vpop.f32.mrb[140].mxu1 }
 0xc5f   :  { %v14269_v42 = vpop.f32.mrb[141].mxu1 }
 0xc60   :  { %v24533_v43 = vadd.f32 %v14269_v42, %v14268_v52  ;;  %v13425_v52 = vld [vmem:[%s24815_s12 + $0x268] sm:$0xff]  ;;  %v15519_v42 = vpack.c.bf16 %v13411_v35, %v13408_v15  ;;  %v15575_v15 = vpack.c.bf16 %v13443_v58, %v13440_v0 }
 0xc61   :  { %v15563_v28 = vpack.c.bf16 %v13425_v52, %v13422_v26  ;;  %v13441_v35 = vld [vmem:[%s24815_s12 + $0x2e8] sm:$0xff]  ;;  %v12893_v52 = vld [vmem:[%s24814_s11] sm:$0x7] }
 0xc62   :  { %15520 = vmatpush1.bf16.msra.mxu1 %v15519_v42  ;;  %v15539_v25 = vpack.c.bf16 %v13441_v35, %v13438_v47  ;;  %v12906_v42 = vrot.slane %v12893_v52, %v23239_v55  ;;  %v12902_v39 = vrot.slane %v12893_v52, %v23016_v8 }
 0xc63   :  { %15522 = vmatprep.subr.bf16.mxu1 %v15521_v30  ;;  %15564 = vmatprep.subr.bf16.mxu0 %v15563_v28  ;;  %v12898_v28 = vrot.slane %v12893_v52, %v23008_v36 }
 0xc64   :  { %15566 = vmatpush3.bf16.msra.mxu0 %v15565_v61  ;;  %v13202_v24 = vadd.f32 %v24533_v43, %v12906_v42  ;;  %v13447_v43 = vld [vmem:[%s24815_s12 + $0x318] sm:$0x3f] }
 0xc65   :  { %15568 = vmatprep.subr.bf16.mxu0 %v15567_v18  ;;  %v15544_v63 = vpack.c.bf16 %v13447_v43, %v13444_v4 }
 0xc66   :  { %15524 = vmatpush1.bf16.msra.mxu1 %v15523_v19 }
 0xc67   :  { %15526 = vmatprep.subr.bf16.mxu1 %v15525_v32 }
 0xc68   :  { %15570 = vmatpush3.bf16.msra.mxu0 %v15569_v1  ;;  %v15852_v1 = vmov 1983009808  }
 0xc69   :  { %15572 = vmatprep.subr.bf16.mxu0 %v15571_v6  ;;  %v13459_v6 = vrot.slane %v13450_v23, %v23016_v8 }
 0xc6a   :  { %15528 = vmatpush1.bf16.msra.mxu1 %v15527_v56 }
 0xc6b   :  { %15530 = vmatprep.subr.bf16.mxu1 %v15529_v14  ;;  %v13767_v14 = vunpack.c.l.s4 %v15852_v1 }
 0xc6c   :  { %15574 = vmatpush3.bf16.msra.mxu0 %v15573_v48 }
 0xc6d   :  { %15576 = vmatprep.subr.bf16.mxu0 %v15575_v15  ;;  %v13768_v16 = vunpack.c.0.s8 %v13767_v14 }
 0xc6e   :  { %15532 = vmatpush1.bf16.msra.mxu1 %v15531_v44 }
 0xc6f   :  { %15534 = vmatprep.subr.bf16.mxu1 %v15533_v41  ;;  %v13771_v50 = vsub.s32 %v13768_v16, %v23005_v40 }
 0xc70   :  { %15578 = vmatpush3.bf16.msra.mxu0 %v15577_v5 }
 0xc72   :  { %15536 = vmatpush1.bf16.msra.mxu1 %v15535_v60 }
 0xc73   :  { %15538 = vmatprep.subr.bf16.mxu1 %v15537_v17 }
 0xc76   :  { %15540 = vmatpush1.bf16.msra.mxu1 %v15539_v25 }
 0xc77   :  { %15543 = vmatprep.subr.msk.bf16.mxu1 %vm24759_vm3, %v15541_v29 }
 0xce6   :  { %v14303_v59 = vpop.f32.mrb[142].mxu1 }
 0xce7   :  { %v14304_v7 = vpop.f32.mrb[143].mxu1 }
 0xce8   :  { %v14305_v30 = vadd.f32 %v14304_v7, %v14303_v59 }
 0xcea   :  { %v13272_v3 = vadd.f32 %v14305_v30, %v13202_v24 }
 0xd09   :  { %v13130_v38 = vpop.f32.mrb[128].mxu0  ;;  %v13341_v51 = vpop.f32.mrb[144].mxu1 }
 0xd0a   :  { %v15594_v21 = vadd.f32 %v13130_v38, %v12898_v28  ;;  %v13342_v9 = vadd.f32 %v13341_v51, %v13272_v3  ;;  %v13132_v19 = vpop.f32.mrb[129].mxu0  ;;  %v14545_v34 = vpop.f32.mrb[145].mxu1 }
 0xd0b   :  { %v15595_v61 = vadd.f32 %v13132_v19, %v12902_v39 }
 0xd0c   :  { %v13345_v18 = vmax.f32 %v15594_v21, 0.0  ;;  %v13347_v53 = vmax.f32 %v13342_v9, 0.0 }
 0xd0d   :  { %v13346_v32 = vmax.f32 %v15595_v61, 0.0 }
 0xd0f   :  { %13544 = vmatprep.mubr.f32.mxu1 %v13346_v32  ;;  %13686 = vmatprep.mubr.f32.mxu0 %v13346_v32 }
 0xd10   :  { %13545 = vmatmul.mubr.f32.vlgmr.msra.gmra.mrb[146].mxu1 %v13345_v18  ;;  %13687 = vmatmul.mubr.f32.vlgmr.msra.gmra.mrb[130].mxu0 %v13345_v18 }
 0xd11   :  { %15546 = vmatpush1.bf16.msk.msra.mxu1 %vm24759_vm3, %v15544_v63  ;;  %13615 = vmatprep.mubr.f32.mxu1 %v24883_v54 }
 0xd12   :  { %15579 = vmatprep.subr.bf16.mxu1 %v15850_v31 }
 0xd18   :  { %14075 = vmatmul.mubr.msk.f32.vlgmr.msra.gmra.mrb[146].mxu1 %vm13467_vm1, %v13347_v53 }
 0xd19   :  { %15582 = vmatpush3.bf16.msk.msra.mxu1 %vm24759_vm3, %v15580_v49  ;;  %14550 = vmatprep.mubr.msk.f32.mxu1 %vm15851_vm13, %v24883_v54 }
 0xd1c   :  { %14551 = vmatmul.mubr.msk.f32.vlgmr.msra.gmra.mrb[148].mxu1 %vm13467_vm1, %v13347_v53 }
 0xde3   :  { %v14343_v31 = vpop.f32.mrb[130].mxu0 }
 0xde4   :  { %v14344_v57 = vpop.f32.mrb[131].mxu0 }
 0xde5   :  { %v14345_v56 = vadd.f32 %v14344_v57, %v14343_v31 }
 0xde7   :  { %v13689_v27 = vadd.f32 %v14345_v56, %v13463_v37 }
 0xdeb   :  { %v13617_v44 = vpop.f32.mrb[146].mxu1 }
 0xdec   :  { %v15596_v41 = vadd.f32 %v13617_v44, %v13455_v12  ;;  %v13619_v54 = vpop.f32.mrb[147].mxu1 }
 0xded   :  { %v15597_v22 = vadd.f32 %v13619_v54, %v13459_v6 }
 0xdef   :  { %v13765_v60 = vcombine.low %v15596_v41, %v15597_v22  ;;  %v13758_v33 = vpop.f32.mrb[148].mxu1 }
 0xdf0   :  { %v13759_v10 = vadd.f32 %v13758_v33, %v13689_v27  ;;  %v14552_v36 = vpop.f32.mrb[149].mxu1 }
 0xdf1   :  { %v13772_v62 = vrot.slane %v13765_v60, %v13771_v50 }
 0xdf2   :  { %v13779_v8 = vrot.slane %v13759_v10, %v13771_v50 }
 0xdf4   :  { %v13780_v48 = vcombine.low %v13772_v62, %v13779_v8 }
 0xdf6   :  { %13786 = vst.msk [vmem:[%s24817_s14] sm:$0x3f] %vm13785_vm7, %v13780_v48 }
 0xdf7   :  { %13791 = vsyncpa [#allocation5], 1 }

</bundles_post_ra>
